<compile_context>
chip_gen: v5e
topology: v5e:2x2
jax: 0.10.0
libtpu: 0.0.40
codegen_flags: <defaults>
</compile_context>

<pallas_src>
import functools
import math

import jax
import jax.numpy as jnp
from jax.experimental import pallas as pl
from jax.experimental.pallas import tpu as pltpu


# ----------------------------------------------------------------------------
# Fused Pallas kernel: one grid step = one batch image, fully resident in VMEM
# ----------------------------------------------------------------------------
def _hp_block_kernel(*refs, H, W, split_num, split_in, split_out):
    n_stage = split_num - 1
    x_ref, w1_ref, b1_ref = refs[0], refs[1], refs[2]
    stage_refs = refs[3:3 + 2 * n_stage]
    w3_ref, b3_ref, o_ref = refs[3 + 2 * n_stage:]

    HW = H * W

    x_in = x_ref[0]                                    # (HW, Cin) bf16
    residual = x_in.astype(jnp.float32)                # Cin == Cout (identity residual)

    # conv1: 1x1 (BN scale folded into weights) + bias + ReLU, f32 accumulate.
    out = jnp.dot(x_in, w1_ref[...], preferred_element_type=jnp.float32)
    out = jnp.maximum(out + b1_ref[...], 0.0)          # (HW, hidden) f32

    def conv3x3(v_rows, w_ref):
        """3x3 'same' conv of a (HW, C) f32 tile as 9 accumulated bf16 matmuls
        over zero-padded shifted views (no im2col materialization)."""
        C = v_rows.shape[1]
        cout = w_ref.shape[2]
        v = v_rows.reshape(H, W, C)
        zr = jnp.zeros((1, W, C), v.dtype)
        vp = jnp.concatenate([zr, v, zr], axis=0)       # (H+2, W,   C)
        zc = jnp.zeros((H + 2, 1, C), v.dtype)
        vp = jnp.concatenate([zc, vp, zc], axis=1)      # (H+2, W+2, C)
        acc = jnp.zeros((HW, cout), jnp.float32)
        for ky in range(3):
            for kx in range(3):
                patch = vp[ky:ky + H, kx:kx + W, :].reshape(HW, C)
                acc = acc + jnp.dot(patch.astype(jnp.bfloat16),
                                    w_ref[ky * 3 + kx],
                                    preferred_element_type=jnp.float32)
        return acc

    # hierarchical split stages (conv2_1 .. conv2_{split_num-1})
    hs_pieces = [out[:, 0:split_in]]                    # chunk 0 passes through
    current = None
    for idx in range(1, split_num):
        w2_ref = stage_refs[2 * (idx - 1)]
        b2_ref = stage_refs[2 * (idx - 1) + 1]
        chunk = out[:, idx * split_in:(idx + 1) * split_in]
        if idx == 1:
            stage_in = chunk
        else:
            stage_in = jnp.concatenate([chunk, current[:, split_out:]], axis=1)
        current = jnp.maximum(conv3x3(stage_in, w2_ref) + b2_ref[...], 0.0)
        hs_pieces.append(current if idx == split_num - 1
                         else current[:, 0:split_out])

    # conv3: 1x1 + bias, with the residual add + ReLU fused into the epilogue.
    hs = jnp.concatenate(hs_pieces, axis=1).astype(jnp.bfloat16)   # (HW, conv3_in)
    out3 = jnp.dot(hs, w3_ref[...], preferred_element_type=jnp.float32)
    out3 = jnp.maximum(out3 + b3_ref[...] + residual, 0.0)

    # Channel-major store: lane-dense (HW lanes) and already NCHW-flat.
    o_ref[0] = out3.T.astype(o_ref.dtype)


# ----------------------------------------------------------------------------
# Host glue: BN folding, weight layout, pallas_call wrapper
# ----------------------------------------------------------------------------
def fold_conv_bn(p, eps=1e-5):
    """Fold inference-mode BatchNorm into the conv weight; returns f32 (w, bias)."""
    scale = p["gamma"] / jnp.sqrt(p["var"] + eps)
    w = p["w"] * scale[:, None, None, None]             # (O, I, k, k)
    bias = p["beta"] - p["mean"] * scale
    return w, bias


def _folded_1x1(p):
    w, b = fold_conv_bn(p)
    w2d = w[:, :, 0, 0].T                                # (Cin, Cout)
    return w2d.astype(jnp.bfloat16), b.reshape(1, -1).astype(jnp.float32)


def _folded_3x3(p):
    w, b = fold_conv_bn(p)
    o, i, _, _ = w.shape
    w9 = jnp.transpose(w, (2, 3, 1, 0)).reshape(9, i, o)  # (tap, Cin, Cout)
    return w9.astype(jnp.bfloat16), b.reshape(1, -1).astype(jnp.float32)


def hp_block_forward_pallas(x_nchw, params, split_num, hidden_channels,
                            expansion=1):
    B, Cin, H, W = x_nchw.shape
    out_channels = int(hidden_channels * expansion)
    # TODO(synk): DownSample2d / stride!=1 residual path is not implemented;
    # this covers stride=1 with in_channels == out_channels (identity residual).
    assert Cin == out_channels, "identity residual needs in_channels == out_channels"
    split_in = hidden_channels // split_num
    split_out = hidden_channels // int(2 ** (split_num - 1))
    HW = H * W

    w1, b1 = _folded_1x1(params["conv1"])
    w3, b3 = _folded_1x1(params["conv3"])
    stage_args = []
    for idx in range(1, split_num):
        w2, b2 = _folded_3x3(params[f"conv2_{idx}"])
        stage_args += [w2, b2]

    # NCHW -> (B, H*W, C) rows in bf16 (halves the HBM read bytes).
    x_rows = jnp.transpose(x_nchw, (0, 2, 3, 1)).reshape(B, HW, Cin)
    x_rows = x_rows.astype(jnp.bfloat16)

    def whole(shape):                       # whole-array operand (weights/biases)
        nd = len(shape)
        return pl.BlockSpec(shape, lambda b, _nd=nd: (0,) * _nd)

    in_specs = [pl.BlockSpec((1, HW, Cin), lambda b: (b, 0, 0)),
                whole(w1.shape), whole(b1.shape)]
    args = [x_rows, w1, b1]
    for t in stage_args:
        in_specs.append(whole(t.shape))
        args.append(t)
    in_specs += [whole(w3.shape), whole(b3.shape)]
    args += [w3, b3]

    kernel = functools.partial(_hp_block_kernel, H=H, W=W, split_num=split_num,
                               split_in=split_in, split_out=split_out)

    # TODO(synk): for large H*W, tile spatially with a 1-row halo instead of
    # one full image per grid step (current VMEM budget/step is a few 100 KiB).
    out = pl.pallas_call(
        kernel,
        out_shape=jax.ShapeDtypeStruct((B, out_channels, HW), jnp.float32),
        grid=(B,),
        in_specs=in_specs,
        out_specs=pl.BlockSpec((1, out_channels, HW), lambda b: (b, 0, 0)),
        compiler_params=pltpu.CompilerParams(
            dimension_semantics=("parallel",),
            vmem_limit_bytes=32 * 1024 * 1024),
    )(*args)

    return out.reshape(B, out_channels, H, W)


# ----------------------------------------------------------------------------
# Parameter init (matches the module's conv/BN structure)
# ----------------------------------------------------------------------------
def init_conv_bn(key, cin, cout, k):
    kw, kg, kb, km, kv = jax.random.split(key, 5)
    fan_in = cin * k * k
    return {
        "w": jax.random.normal(kw, (cout, cin, k, k), jnp.float32) / math.sqrt(fan_in),
        "gamma": 1.0 + 0.1 * jax.random.normal(kg, (cout,), jnp.float32),
        "beta": 0.1 * jax.random.normal(kb, (cout,), jnp.float32),
        "mean": 0.1 * jax.random.normal(km, (cout,), jnp.float32),
        "var": 1.0 + 0.2 * jax.random.uniform(kv, (cout,), jnp.float32),
    }


def init_hp_block_params(key, in_channels, hidden_channels, split_num, expansion=1):
    out_channels = int(hidden_channels * expansion)
    split_in = hidden_channels // split_num
    split_out = hidden_channels // int(2 ** (split_num - 1))
    keys = jax.random.split(key, split_num + 2)
    params = {"conv1": init_conv_bn(keys[0], in_channels, hidden_channels, 1)}
    for split_idx in range(1, split_num):
        in_planes = split_in if split_idx == 1 else int(2 * split_in - split_out)
        params[f"conv2_{split_idx}"] = init_conv_bn(keys[split_idx], in_planes, split_in, 3)
    conv3_in = int(2 * split_in + (split_num - 2) * split_out)
    params["conv3"] = init_conv_bn(keys[split_num], conv3_in, out_channels, 1)
    return params


# ----------------------------------------------------------------------------
# Pure-JAX reference (lax conv, f32) consuming the same bf16-quantized folded
# weights/input as the kernel, so the comparison isolates kernel correctness.
# ----------------------------------------------------------------------------
def hp_block_forward_ref(x, params, split_num, hidden_channels):
    def cbr(inp, p, padding, relu):
        w, b = fold_conv_bn(p)
        w = w.astype(jnp.bfloat16).astype(jnp.float32)
        y = jax.lax.conv_general_dilated(
            inp, w, (1, 1), [(padding, padding), (padding, padding)],
            dimension_numbers=("NCHW", "OIHW", "NCHW"))
        y = y + b[None, :, None, None]
        return jnp.maximum(y, 0.0) if relu else y

    split_in = hidden_channels // split_num
    split_out = hidden_channels // int(2 ** (split_num - 1))
    residual = x
    out = cbr(x, params["conv1"], 0, True)
    chunks = [out[:, i * split_in:(i + 1) * split_in] for i in range(split_num)]
    current = chunks[0]
    outs = [current]
    for idx in range(1, split_num):
        inp = chunks[1] if idx == 1 else jnp.concatenate(
            [chunks[idx], current[:, split_out:]], axis=1)
        current = cbr(inp, params[f"conv2_{idx}"], 1, True)
        outs.append(current if idx == split_num - 1 else current[:, :split_out])
    hs = jnp.concatenate(outs, axis=1)
    out = cbr(hs, params["conv3"], 0, False)
    return jnp.maximum(out + residual, 0.0)


# ----------------------------------------------------------------------------
if __name__ == "__main__":
    key = jax.random.PRNGKey(0)
    k_params, k_x = jax.random.split(key)

    # module config: stride=1, in_channels == out_channels -> no downsample
    B, H, W = 2, 16, 16
    in_channels = 32
    hidden_channels = 32
    split_num = 4            # split_in = 8, split_out = 32 // 2**3 = 4

    params = init_hp_block_params(k_params, in_channels, hidden_channels, split_num)
    x = jax.random.normal(k_x, (B, in_channels, H, W), jnp.float32)

    out = hp_block_forward_pallas(x, params, split_num, hidden_channels)
    out = jax.block_until_ready(out)

    # reference sees the same bf16-rounded input the kernel reads
    xq = x.astype(jnp.bfloat16).astype(jnp.float32)
    ref = hp_block_forward_ref(xq, params, split_num, hidden_channels)
    ref = jax.block_until_ready(ref)

    assert out.shape == (B, hidden_channels, H, W)
    max_err = float(jnp.max(jnp.abs(out - ref)))
    assert jnp.allclose(out, ref, atol=3e-2, rtol=3e-2), max_err

    print("KERNEL_OK")
</pallas_src>

<mosaic_0001>
module attributes {stable_mosaic.version = 11 : i64} {
  func.func @_hp_block_kernel(%arg0: i32, %arg1: memref<1x256x32xbf16, #tpu.memory_space<vmem>>, %arg2: memref<32x32xbf16, #tpu.memory_space<vmem>>, %arg3: memref<1x32xf32, #tpu.memory_space<vmem>>, %arg4: memref<9x8x8xbf16, #tpu.memory_space<vmem>>, %arg5: memref<1x8xf32, #tpu.memory_space<vmem>>, %arg6: memref<9x12x8xbf16, #tpu.memory_space<vmem>>, %arg7: memref<1x8xf32, #tpu.memory_space<vmem>>, %arg8: memref<9x12x8xbf16, #tpu.memory_space<vmem>>, %arg9: memref<1x8xf32, #tpu.memory_space<vmem>>, %arg10: memref<24x32xbf16, #tpu.memory_space<vmem>>, %arg11: memref<1x32xf32, #tpu.memory_space<vmem>>, %arg12: memref<1x32x256xf32, #tpu.memory_space<vmem>>) attributes {dimension_semantics = [#tpu.dimension_semantics<parallel>], iteration_bounds = array<i64: 2>, scalar_prefetch = 0 : i64, scratch_operands = 0 : i64, tpu.core_type = #tpu.core_type<tc>, window_params = [{transform_indices = @transform_0, window_bounds = array<i64: 1, 256, 32>}, {pipeline_mode = #tpu.pipeline_mode<synchronous>, transform_indices = @transform_1, window_bounds = array<i64: 32, 32>}, {pipeline_mode = #tpu.pipeline_mode<synchronous>, transform_indices = @transform_2, window_bounds = array<i64: 1, 32>}, {pipeline_mode = #tpu.pipeline_mode<synchronous>, transform_indices = @transform_3, window_bounds = array<i64: 9, 8, 8>}, {pipeline_mode = #tpu.pipeline_mode<synchronous>, transform_indices = @transform_4, window_bounds = array<i64: 1, 8>}, {pipeline_mode = #tpu.pipeline_mode<synchronous>, transform_indices = @transform_5, window_bounds = array<i64: 9, 12, 8>}, {pipeline_mode = #tpu.pipeline_mode<synchronous>, transform_indices = @transform_6, window_bounds = array<i64: 1, 8>}, {pipeline_mode = #tpu.pipeline_mode<synchronous>, transform_indices = @transform_7, window_bounds = array<i64: 9, 12, 8>}, {pipeline_mode = #tpu.pipeline_mode<synchronous>, transform_indices = @transform_8, window_bounds = array<i64: 1, 8>}, {pipeline_mode = #tpu.pipeline_mode<synchronous>, transform_indices = @transform_9, window_bounds = array<i64: 24, 32>}, {pipeline_mode = #tpu.pipeline_mode<synchronous>, transform_indices = @transform_10, window_bounds = array<i64: 1, 32>}, {transform_indices = @transform_11, window_bounds = array<i64: 1, 32, 256>}]} {
    %c0 = arith.constant 0 : index
    %c0_0 = arith.constant 0 : index
    %c0_1 = arith.constant 0 : index
    %0 = vector.load %arg1[%c0, %c0_0, %c0_1] : memref<1x256x32xbf16, #tpu.memory_space<vmem>>, vector<1x256x32xbf16>
    %1 = vector.shape_cast %0 : vector<1x256x32xbf16> to vector<256x32xbf16>
    %2 = arith.extf %1 : vector<256x32xbf16> to vector<256x32xf32>
    %c0_2 = arith.constant 0 : index
    %c0_3 = arith.constant 0 : index
    %3 = vector.load %arg2[%c0_2, %c0_3] : memref<32x32xbf16, #tpu.memory_space<vmem>>, vector<32x32xbf16>
    %cst = arith.constant dense<0.000000e+00> : vector<256x32xf32>
    %4 = tpu.matmul %1, %3, %cst {dimension_numbers = #tpu.dot_dimension_numbers<[1], [0], [0], [1], [0, 0, 1, 1], [], []>} : vector<256x32xbf16>, vector<32x32xbf16>, vector<256x32xf32> -> vector<256x32xf32>
    %c0_4 = arith.constant 0 : index
    %c0_5 = arith.constant 0 : index
    %5 = vector.load %arg3[%c0_4, %c0_5] : memref<1x32xf32, #tpu.memory_space<vmem>>, vector<1x32xf32>
    %6 = vector.broadcast %5 : vector<1x32xf32> to vector<256x32xf32>
    %7 = arith.addf %4, %6 : vector<256x32xf32>
    %cst_6 = arith.constant 0.000000e+00 : f32
    %8 = vector.broadcast %cst_6 : f32 to vector<256x32xf32>
    %9 = arith.maximumf %7, %8 : vector<256x32xf32>
    %10 = vector.extract_strided_slice %9 {offsets = [0, 0], sizes = [256, 8], strides = [1, 1]} : vector<256x32xf32> to vector<256x8xf32>
    %11 = vector.extract_strided_slice %9 {offsets = [0, 8], sizes = [256, 8], strides = [1, 1]} : vector<256x32xf32> to vector<256x8xf32>
    %12 = vector.shape_cast %11 : vector<256x8xf32> to vector<16x16x8xf32>
    %cst_7 = arith.constant 0.000000e+00 : f32
    %13 = vector.broadcast %cst_7 : f32 to vector<1x16x8xf32>
    %14 = tpu.concatenate %13, %12, %13 in 0 : vector<1x16x8xf32>, vector<16x16x8xf32>, vector<1x16x8xf32> -> vector<18x16x8xf32>
    %cst_8 = arith.constant 0.000000e+00 : f32
    %15 = vector.broadcast %cst_8 : f32 to vector<18x1x8xf32>
    %16 = tpu.concatenate %15, %14, %15 in 1 : vector<18x1x8xf32>, vector<18x16x8xf32>, vector<18x1x8xf32> -> vector<18x18x8xf32>
    %cst_9 = arith.constant 0.000000e+00 : f32
    %17 = vector.broadcast %cst_9 : f32 to vector<256x8xf32>
    %18 = vector.extract_strided_slice %16 {offsets = [0, 0, 0], sizes = [16, 16, 8], strides = [1, 1, 1]} : vector<18x18x8xf32> to vector<16x16x8xf32>
    %19 = vector.shape_cast %18 : vector<16x16x8xf32> to vector<256x8xf32>
    %20 = arith.truncf %19 : vector<256x8xf32> to vector<256x8xbf16>
    %c0_10 = arith.constant 0 : index
    %c0_11 = arith.constant 0 : index
    %c0_12 = arith.constant 0 : index
    %21 = vector.load %arg4[%c0_10, %c0_11, %c0_12] : memref<9x8x8xbf16, #tpu.memory_space<vmem>>, vector<1x8x8xbf16>
    %22 = vector.shape_cast %21 : vector<1x8x8xbf16> to vector<8x8xbf16>
    %cst_13 = arith.constant dense<0.000000e+00> : vector<256x8xf32>
    %23 = tpu.matmul %20, %22, %cst_13 {dimension_numbers = #tpu.dot_dimension_numbers<[1], [0], [0], [1], [0, 0, 1, 1], [], []>} : vector<256x8xbf16>, vector<8x8xbf16>, vector<256x8xf32> -> vector<256x8xf32>
    %24 = arith.addf %17, %23 : vector<256x8xf32>
    %25 = vector.extract_strided_slice %16 {offsets = [0, 1, 0], sizes = [16, 16, 8], strides = [1, 1, 1]} : vector<18x18x8xf32> to vector<16x16x8xf32>
    %26 = vector.shape_cast %25 : vector<16x16x8xf32> to vector<256x8xf32>
    %27 = arith.truncf %26 : vector<256x8xf32> to vector<256x8xbf16>
    %c1 = arith.constant 1 : index
    %c0_14 = arith.constant 0 : index
    %c0_15 = arith.constant 0 : index
    %28 = vector.load %arg4[%c1, %c0_14, %c0_15] : memref<9x8x8xbf16, #tpu.memory_space<vmem>>, vector<1x8x8xbf16>
    %29 = vector.shape_cast %28 : vector<1x8x8xbf16> to vector<8x8xbf16>
    %cst_16 = arith.constant dense<0.000000e+00> : vector<256x8xf32>
    %30 = tpu.matmul %27, %29, %cst_16 {dimension_numbers = #tpu.dot_dimension_numbers<[1], [0], [0], [1], [0, 0, 1, 1], [], []>} : vector<256x8xbf16>, vector<8x8xbf16>, vector<256x8xf32> -> vector<256x8xf32>
    %31 = arith.addf %24, %30 : vector<256x8xf32>
    %32 = vector.extract_strided_slice %16 {offsets = [0, 2, 0], sizes = [16, 16, 8], strides = [1, 1, 1]} : vector<18x18x8xf32> to vector<16x16x8xf32>
    %33 = vector.shape_cast %32 : vector<16x16x8xf32> to vector<256x8xf32>
    %34 = arith.truncf %33 : vector<256x8xf32> to vector<256x8xbf16>
    %c2 = arith.constant 2 : index
    %c0_17 = arith.constant 0 : index
    %c0_18 = arith.constant 0 : index
    %35 = vector.load %arg4[%c2, %c0_17, %c0_18] : memref<9x8x8xbf16, #tpu.memory_space<vmem>>, vector<1x8x8xbf16>
    %36 = vector.shape_cast %35 : vector<1x8x8xbf16> to vector<8x8xbf16>
    %cst_19 = arith.constant dense<0.000000e+00> : vector<256x8xf32>
    %37 = tpu.matmul %34, %36, %cst_19 {dimension_numbers = #tpu.dot_dimension_numbers<[1], [0], [0], [1], [0, 0, 1, 1], [], []>} : vector<256x8xbf16>, vector<8x8xbf16>, vector<256x8xf32> -> vector<256x8xf32>
    %38 = arith.addf %31, %37 : vector<256x8xf32>
    %39 = vector.extract_strided_slice %16 {offsets = [1, 0, 0], sizes = [16, 16, 8], strides = [1, 1, 1]} : vector<18x18x8xf32> to vector<16x16x8xf32>
    %40 = vector.shape_cast %39 : vector<16x16x8xf32> to vector<256x8xf32>
    %41 = arith.truncf %40 : vector<256x8xf32> to vector<256x8xbf16>
    %c3 = arith.constant 3 : index
    %c0_20 = arith.constant 0 : index
    %c0_21 = arith.constant 0 : index
    %42 = vector.load %arg4[%c3, %c0_20, %c0_21] : memref<9x8x8xbf16, #tpu.memory_space<vmem>>, vector<1x8x8xbf16>
    %43 = vector.shape_cast %42 : vector<1x8x8xbf16> to vector<8x8xbf16>
    %cst_22 = arith.constant dense<0.000000e+00> : vector<256x8xf32>
    %44 = tpu.matmul %41, %43, %cst_22 {dimension_numbers = #tpu.dot_dimension_numbers<[1], [0], [0], [1], [0, 0, 1, 1], [], []>} : vector<256x8xbf16>, vector<8x8xbf16>, vector<256x8xf32> -> vector<256x8xf32>
    %45 = arith.addf %38, %44 : vector<256x8xf32>
    %46 = vector.extract_strided_slice %16 {offsets = [1, 1, 0], sizes = [16, 16, 8], strides = [1, 1, 1]} : vector<18x18x8xf32> to vector<16x16x8xf32>
    %47 = vector.shape_cast %46 : vector<16x16x8xf32> to vector<256x8xf32>
    %48 = arith.truncf %47 : vector<256x8xf32> to vector<256x8xbf16>
    %c4 = arith.constant 4 : index
    %c0_23 = arith.constant 0 : index
    %c0_24 = arith.constant 0 : index
    %49 = vector.load %arg4[%c4, %c0_23, %c0_24] : memref<9x8x8xbf16, #tpu.memory_space<vmem>>, vector<1x8x8xbf16>
    %50 = vector.shape_cast %49 : vector<1x8x8xbf16> to vector<8x8xbf16>
    %cst_25 = arith.constant dense<0.000000e+00> : vector<256x8xf32>
    %51 = tpu.matmul %48, %50, %cst_25 {dimension_numbers = #tpu.dot_dimension_numbers<[1], [0], [0], [1], [0, 0, 1, 1], [], []>} : vector<256x8xbf16>, vector<8x8xbf16>, vector<256x8xf32> -> vector<256x8xf32>
    %52 = arith.addf %45, %51 : vector<256x8xf32>
    %53 = vector.extract_strided_slice %16 {offsets = [1, 2, 0], sizes = [16, 16, 8], strides = [1, 1, 1]} : vector<18x18x8xf32> to vector<16x16x8xf32>
    %54 = vector.shape_cast %53 : vector<16x16x8xf32> to vector<256x8xf32>
    %55 = arith.truncf %54 : vector<256x8xf32> to vector<256x8xbf16>
    %c5 = arith.constant 5 : index
    %c0_26 = arith.constant 0 : index
    %c0_27 = arith.constant 0 : index
    %56 = vector.load %arg4[%c5, %c0_26, %c0_27] : memref<9x8x8xbf16, #tpu.memory_space<vmem>>, vector<1x8x8xbf16>
    %57 = vector.shape_cast %56 : vector<1x8x8xbf16> to vector<8x8xbf16>
    %cst_28 = arith.constant dense<0.000000e+00> : vector<256x8xf32>
    %58 = tpu.matmul %55, %57, %cst_28 {dimension_numbers = #tpu.dot_dimension_numbers<[1], [0], [0], [1], [0, 0, 1, 1], [], []>} : vector<256x8xbf16>, vector<8x8xbf16>, vector<256x8xf32> -> vector<256x8xf32>
    %59 = arith.addf %52, %58 : vector<256x8xf32>
    %60 = vector.extract_strided_slice %16 {offsets = [2, 0, 0], sizes = [16, 16, 8], strides = [1, 1, 1]} : vector<18x18x8xf32> to vector<16x16x8xf32>
    %61 = vector.shape_cast %60 : vector<16x16x8xf32> to vector<256x8xf32>
    %62 = arith.truncf %61 : vector<256x8xf32> to vector<256x8xbf16>
    %c6 = arith.constant 6 : index
    %c0_29 = arith.constant 0 : index
    %c0_30 = arith.constant 0 : index
    %63 = vector.load %arg4[%c6, %c0_29, %c0_30] : memref<9x8x8xbf16, #tpu.memory_space<vmem>>, vector<1x8x8xbf16>
    %64 = vector.shape_cast %63 : vector<1x8x8xbf16> to vector<8x8xbf16>
    %cst_31 = arith.constant dense<0.000000e+00> : vector<256x8xf32>
    %65 = tpu.matmul %62, %64, %cst_31 {dimension_numbers = #tpu.dot_dimension_numbers<[1], [0], [0], [1], [0, 0, 1, 1], [], []>} : vector<256x8xbf16>, vector<8x8xbf16>, vector<256x8xf32> -> vector<256x8xf32>
    %66 = arith.addf %59, %65 : vector<256x8xf32>
    %67 = vector.extract_strided_slice %16 {offsets = [2, 1, 0], sizes = [16, 16, 8], strides = [1, 1, 1]} : vector<18x18x8xf32> to vector<16x16x8xf32>
    %68 = vector.shape_cast %67 : vector<16x16x8xf32> to vector<256x8xf32>
    %69 = arith.truncf %68 : vector<256x8xf32> to vector<256x8xbf16>
    %c7 = arith.constant 7 : index
    %c0_32 = arith.constant 0 : index
    %c0_33 = arith.constant 0 : index
    %70 = vector.load %arg4[%c7, %c0_32, %c0_33] : memref<9x8x8xbf16, #tpu.memory_space<vmem>>, vector<1x8x8xbf16>
    %71 = vector.shape_cast %70 : vector<1x8x8xbf16> to vector<8x8xbf16>
    %cst_34 = arith.constant dense<0.000000e+00> : vector<256x8xf32>
    %72 = tpu.matmul %69, %71, %cst_34 {dimension_numbers = #tpu.dot_dimension_numbers<[1], [0], [0], [1], [0, 0, 1, 1], [], []>} : vector<256x8xbf16>, vector<8x8xbf16>, vector<256x8xf32> -> vector<256x8xf32>
    %73 = arith.addf %66, %72 : vector<256x8xf32>
    %74 = vector.extract_strided_slice %16 {offsets = [2, 2, 0], sizes = [16, 16, 8], strides = [1, 1, 1]} : vector<18x18x8xf32> to vector<16x16x8xf32>
    %75 = vector.shape_cast %74 : vector<16x16x8xf32> to vector<256x8xf32>
    %76 = arith.truncf %75 : vector<256x8xf32> to vector<256x8xbf16>
    %c8 = arith.constant 8 : index
    %c0_35 = arith.constant 0 : index
    %c0_36 = arith.constant 0 : index
    %77 = vector.load %arg4[%c8, %c0_35, %c0_36] : memref<9x8x8xbf16, #tpu.memory_space<vmem>>, vector<1x8x8xbf16>
    %78 = vector.shape_cast %77 : vector<1x8x8xbf16> to vector<8x8xbf16>
    %cst_37 = arith.constant dense<0.000000e+00> : vector<256x8xf32>
    %79 = tpu.matmul %76, %78, %cst_37 {dimension_numbers = #tpu.dot_dimension_numbers<[1], [0], [0], [1], [0, 0, 1, 1], [], []>} : vector<256x8xbf16>, vector<8x8xbf16>, vector<256x8xf32> -> vector<256x8xf32>
    %80 = arith.addf %73, %79 : vector<256x8xf32>
    %c0_38 = arith.constant 0 : index
    %c0_39 = arith.constant 0 : index
    %81 = vector.load %arg5[%c0_38, %c0_39] : memref<1x8xf32, #tpu.memory_space<vmem>>, vector<1x8xf32>
    %82 = vector.broadcast %81 : vector<1x8xf32> to vector<256x8xf32>
    %83 = arith.addf %80, %82 : vector<256x8xf32>
    %cst_40 = arith.constant 0.000000e+00 : f32
    %84 = vector.broadcast %cst_40 : f32 to vector<256x8xf32>
    %85 = arith.maximumf %83, %84 : vector<256x8xf32>
    %86 = vector.extract_strided_slice %85 {offsets = [0, 0], sizes = [256, 4], strides = [1, 1]} : vector<256x8xf32> to vector<256x4xf32>
    %87 = vector.extract_strided_slice %9 {offsets = [0, 16], sizes = [256, 8], strides = [1, 1]} : vector<256x32xf32> to vector<256x8xf32>
    %88 = vector.extract_strided_slice %85 {offsets = [0, 4], sizes = [256, 4], strides = [1, 1]} : vector<256x8xf32> to vector<256x4xf32>
    %89 = tpu.concatenate %87, %88 in 1 : vector<256x8xf32>, vector<256x4xf32> -> vector<256x12xf32>
    %90 = vector.shape_cast %89 : vector<256x12xf32> to vector<16x16x12xf32>
    %cst_41 = arith.constant 0.000000e+00 : f32
    %91 = vector.broadcast %cst_41 : f32 to vector<1x16x12xf32>
    %92 = tpu.concatenate %91, %90, %91 in 0 : vector<1x16x12xf32>, vector<16x16x12xf32>, vector<1x16x12xf32> -> vector<18x16x12xf32>
    %cst_42 = arith.constant 0.000000e+00 : f32
    %93 = vector.broadcast %cst_42 : f32 to vector<18x1x12xf32>
    %94 = tpu.concatenate %93, %92, %93 in 1 : vector<18x1x12xf32>, vector<18x16x12xf32>, vector<18x1x12xf32> -> vector<18x18x12xf32>
    %cst_43 = arith.constant 0.000000e+00 : f32
    %95 = vector.broadcast %cst_43 : f32 to vector<256x8xf32>
    %96 = vector.extract_strided_slice %94 {offsets = [0, 0, 0], sizes = [16, 16, 12], strides = [1, 1, 1]} : vector<18x18x12xf32> to vector<16x16x12xf32>
    %97 = vector.shape_cast %96 : vector<16x16x12xf32> to vector<256x12xf32>
    %98 = arith.truncf %97 : vector<256x12xf32> to vector<256x12xbf16>
    %c0_44 = arith.constant 0 : index
    %c0_45 = arith.constant 0 : index
    %c0_46 = arith.constant 0 : index
    %99 = vector.load %arg6[%c0_44, %c0_45, %c0_46] : memref<9x12x8xbf16, #tpu.memory_space<vmem>>, vector<1x12x8xbf16>
    %100 = vector.shape_cast %99 : vector<1x12x8xbf16> to vector<12x8xbf16>
    %cst_47 = arith.constant dense<0.000000e+00> : vector<256x8xf32>
    %101 = tpu.matmul %98, %100, %cst_47 {dimension_numbers = #tpu.dot_dimension_numbers<[1], [0], [0], [1], [0, 0, 1, 1], [], []>} : vector<256x12xbf16>, vector<12x8xbf16>, vector<256x8xf32> -> vector<256x8xf32>
    %102 = arith.addf %95, %101 : vector<256x8xf32>
    %103 = vector.extract_strided_slice %94 {offsets = [0, 1, 0], sizes = [16, 16, 12], strides = [1, 1, 1]} : vector<18x18x12xf32> to vector<16x16x12xf32>
    %104 = vector.shape_cast %103 : vector<16x16x12xf32> to vector<256x12xf32>
    %105 = arith.truncf %104 : vector<256x12xf32> to vector<256x12xbf16>
    %c1_48 = arith.constant 1 : index
    %c0_49 = arith.constant 0 : index
    %c0_50 = arith.constant 0 : index
    %106 = vector.load %arg6[%c1_48, %c0_49, %c0_50] : memref<9x12x8xbf16, #tpu.memory_space<vmem>>, vector<1x12x8xbf16>
    %107 = vector.shape_cast %106 : vector<1x12x8xbf16> to vector<12x8xbf16>
    %cst_51 = arith.constant dense<0.000000e+00> : vector<256x8xf32>
    %108 = tpu.matmul %105, %107, %cst_51 {dimension_numbers = #tpu.dot_dimension_numbers<[1], [0], [0], [1], [0, 0, 1, 1], [], []>} : vector<256x12xbf16>, vector<12x8xbf16>, vector<256x8xf32> -> vector<256x8xf32>
    %109 = arith.addf %102, %108 : vector<256x8xf32>
    %110 = vector.extract_strided_slice %94 {offsets = [0, 2, 0], sizes = [16, 16, 12], strides = [1, 1, 1]} : vector<18x18x12xf32> to vector<16x16x12xf32>
    %111 = vector.shape_cast %110 : vector<16x16x12xf32> to vector<256x12xf32>
    %112 = arith.truncf %111 : vector<256x12xf32> to vector<256x12xbf16>
    %c2_52 = arith.constant 2 : index
    %c0_53 = arith.constant 0 : index
    %c0_54 = arith.constant 0 : index
    %113 = vector.load %arg6[%c2_52, %c0_53, %c0_54] : memref<9x12x8xbf16, #tpu.memory_space<vmem>>, vector<1x12x8xbf16>
    %114 = vector.shape_cast %113 : vector<1x12x8xbf16> to vector<12x8xbf16>
    %cst_55 = arith.constant dense<0.000000e+00> : vector<256x8xf32>
    %115 = tpu.matmul %112, %114, %cst_55 {dimension_numbers = #tpu.dot_dimension_numbers<[1], [0], [0], [1], [0, 0, 1, 1], [], []>} : vector<256x12xbf16>, vector<12x8xbf16>, vector<256x8xf32> -> vector<256x8xf32>
    %116 = arith.addf %109, %115 : vector<256x8xf32>
    %117 = vector.extract_strided_slice %94 {offsets = [1, 0, 0], sizes = [16, 16, 12], strides = [1, 1, 1]} : vector<18x18x12xf32> to vector<16x16x12xf32>
    %118 = vector.shape_cast %117 : vector<16x16x12xf32> to vector<256x12xf32>
    %119 = arith.truncf %118 : vector<256x12xf32> to vector<256x12xbf16>
    %c3_56 = arith.constant 3 : index
    %c0_57 = arith.constant 0 : index
    %c0_58 = arith.constant 0 : index
    %120 = vector.load %arg6[%c3_56, %c0_57, %c0_58] : memref<9x12x8xbf16, #tpu.memory_space<vmem>>, vector<1x12x8xbf16>
    %121 = vector.shape_cast %120 : vector<1x12x8xbf16> to vector<12x8xbf16>
    %cst_59 = arith.constant dense<0.000000e+00> : vector<256x8xf32>
    %122 = tpu.matmul %119, %121, %cst_59 {dimension_numbers = #tpu.dot_dimension_numbers<[1], [0], [0], [1], [0, 0, 1, 1], [], []>} : vector<256x12xbf16>, vector<12x8xbf16>, vector<256x8xf32> -> vector<256x8xf32>
    %123 = arith.addf %116, %122 : vector<256x8xf32>
    %124 = vector.extract_strided_slice %94 {offsets = [1, 1, 0], sizes = [16, 16, 12], strides = [1, 1, 1]} : vector<18x18x12xf32> to vector<16x16x12xf32>
    %125 = vector.shape_cast %124 : vector<16x16x12xf32> to vector<256x12xf32>
    %126 = arith.truncf %125 : vector<256x12xf32> to vector<256x12xbf16>
    %c4_60 = arith.constant 4 : index
    %c0_61 = arith.constant 0 : index
    %c0_62 = arith.constant 0 : index
    %127 = vector.load %arg6[%c4_60, %c0_61, %c0_62] : memref<9x12x8xbf16, #tpu.memory_space<vmem>>, vector<1x12x8xbf16>
    %128 = vector.shape_cast %127 : vector<1x12x8xbf16> to vector<12x8xbf16>
    %cst_63 = arith.constant dense<0.000000e+00> : vector<256x8xf32>
    %129 = tpu.matmul %126, %128, %cst_63 {dimension_numbers = #tpu.dot_dimension_numbers<[1], [0], [0], [1], [0, 0, 1, 1], [], []>} : vector<256x12xbf16>, vector<12x8xbf16>, vector<256x8xf32> -> vector<256x8xf32>
    %130 = arith.addf %123, %129 : vector<256x8xf32>
    %131 = vector.extract_strided_slice %94 {offsets = [1, 2, 0], sizes = [16, 16, 12], strides = [1, 1, 1]} : vector<18x18x12xf32> to vector<16x16x12xf32>
    %132 = vector.shape_cast %131 : vector<16x16x12xf32> to vector<256x12xf32>
    %133 = arith.truncf %132 : vector<256x12xf32> to vector<256x12xbf16>
    %c5_64 = arith.constant 5 : index
    %c0_65 = arith.constant 0 : index
    %c0_66 = arith.constant 0 : index
    %134 = vector.load %arg6[%c5_64, %c0_65, %c0_66] : memref<9x12x8xbf16, #tpu.memory_space<vmem>>, vector<1x12x8xbf16>
    %135 = vector.shape_cast %134 : vector<1x12x8xbf16> to vector<12x8xbf16>
    %cst_67 = arith.constant dense<0.000000e+00> : vector<256x8xf32>
    %136 = tpu.matmul %133, %135, %cst_67 {dimension_numbers = #tpu.dot_dimension_numbers<[1], [0], [0], [1], [0, 0, 1, 1], [], []>} : vector<256x12xbf16>, vector<12x8xbf16>, vector<256x8xf32> -> vector<256x8xf32>
    %137 = arith.addf %130, %136 : vector<256x8xf32>
    %138 = vector.extract_strided_slice %94 {offsets = [2, 0, 0], sizes = [16, 16, 12], strides = [1, 1, 1]} : vector<18x18x12xf32> to vector<16x16x12xf32>
    %139 = vector.shape_cast %138 : vector<16x16x12xf32> to vector<256x12xf32>
    %140 = arith.truncf %139 : vector<256x12xf32> to vector<256x12xbf16>
    %c6_68 = arith.constant 6 : index
    %c0_69 = arith.constant 0 : index
    %c0_70 = arith.constant 0 : index
    %141 = vector.load %arg6[%c6_68, %c0_69, %c0_70] : memref<9x12x8xbf16, #tpu.memory_space<vmem>>, vector<1x12x8xbf16>
    %142 = vector.shape_cast %141 : vector<1x12x8xbf16> to vector<12x8xbf16>
    %cst_71 = arith.constant dense<0.000000e+00> : vector<256x8xf32>
    %143 = tpu.matmul %140, %142, %cst_71 {dimension_numbers = #tpu.dot_dimension_numbers<[1], [0], [0], [1], [0, 0, 1, 1], [], []>} : vector<256x12xbf16>, vector<12x8xbf16>, vector<256x8xf32> -> vector<256x8xf32>
    %144 = arith.addf %137, %143 : vector<256x8xf32>
    %145 = vector.extract_strided_slice %94 {offsets = [2, 1, 0], sizes = [16, 16, 12], strides = [1, 1, 1]} : vector<18x18x12xf32> to vector<16x16x12xf32>
    %146 = vector.shape_cast %145 : vector<16x16x12xf32> to vector<256x12xf32>
    %147 = arith.truncf %146 : vector<256x12xf32> to vector<256x12xbf16>
    %c7_72 = arith.constant 7 : index
    %c0_73 = arith.constant 0 : index
    %c0_74 = arith.constant 0 : index
    %148 = vector.load %arg6[%c7_72, %c0_73, %c0_74] : memref<9x12x8xbf16, #tpu.memory_space<vmem>>, vector<1x12x8xbf16>
    %149 = vector.shape_cast %148 : vector<1x12x8xbf16> to vector<12x8xbf16>
    %cst_75 = arith.constant dense<0.000000e+00> : vector<256x8xf32>
    %150 = tpu.matmul %147, %149, %cst_75 {dimension_numbers = #tpu.dot_dimension_numbers<[1], [0], [0], [1], [0, 0, 1, 1], [], []>} : vector<256x12xbf16>, vector<12x8xbf16>, vector<256x8xf32> -> vector<256x8xf32>
    %151 = arith.addf %144, %150 : vector<256x8xf32>
    %152 = vector.extract_strided_slice %94 {offsets = [2, 2, 0], sizes = [16, 16, 12], strides = [1, 1, 1]} : vector<18x18x12xf32> to vector<16x16x12xf32>
    %153 = vector.shape_cast %152 : vector<16x16x12xf32> to vector<256x12xf32>
    %154 = arith.truncf %153 : vector<256x12xf32> to vector<256x12xbf16>
    %c8_76 = arith.constant 8 : index
    %c0_77 = arith.constant 0 : index
    %c0_78 = arith.constant 0 : index
    %155 = vector.load %arg6[%c8_76, %c0_77, %c0_78] : memref<9x12x8xbf16, #tpu.memory_space<vmem>>, vector<1x12x8xbf16>
    %156 = vector.shape_cast %155 : vector<1x12x8xbf16> to vector<12x8xbf16>
    %cst_79 = arith.constant dense<0.000000e+00> : vector<256x8xf32>
    %157 = tpu.matmul %154, %156, %cst_79 {dimension_numbers = #tpu.dot_dimension_numbers<[1], [0], [0], [1], [0, 0, 1, 1], [], []>} : vector<256x12xbf16>, vector<12x8xbf16>, vector<256x8xf32> -> vector<256x8xf32>
    %158 = arith.addf %151, %157 : vector<256x8xf32>
    %c0_80 = arith.constant 0 : index
    %c0_81 = arith.constant 0 : index
    %159 = vector.load %arg7[%c0_80, %c0_81] : memref<1x8xf32, #tpu.memory_space<vmem>>, vector<1x8xf32>
    %160 = vector.broadcast %159 : vector<1x8xf32> to vector<256x8xf32>
    %161 = arith.addf %158, %160 : vector<256x8xf32>
    %cst_82 = arith.constant 0.000000e+00 : f32
    %162 = vector.broadcast %cst_82 : f32 to vector<256x8xf32>
    %163 = arith.maximumf %161, %162 : vector<256x8xf32>
    %164 = vector.extract_strided_slice %163 {offsets = [0, 0], sizes = [256, 4], strides = [1, 1]} : vector<256x8xf32> to vector<256x4xf32>
    %165 = vector.extract_strided_slice %9 {offsets = [0, 24], sizes = [256, 8], strides = [1, 1]} : vector<256x32xf32> to vector<256x8xf32>
    %166 = vector.extract_strided_slice %163 {offsets = [0, 4], sizes = [256, 4], strides = [1, 1]} : vector<256x8xf32> to vector<256x4xf32>
    %167 = tpu.concatenate %165, %166 in 1 : vector<256x8xf32>, vector<256x4xf32> -> vector<256x12xf32>
    %168 = vector.shape_cast %167 : vector<256x12xf32> to vector<16x16x12xf32>
    %cst_83 = arith.constant 0.000000e+00 : f32
    %169 = vector.broadcast %cst_83 : f32 to vector<1x16x12xf32>
    %170 = tpu.concatenate %169, %168, %169 in 0 : vector<1x16x12xf32>, vector<16x16x12xf32>, vector<1x16x12xf32> -> vector<18x16x12xf32>
    %cst_84 = arith.constant 0.000000e+00 : f32
    %171 = vector.broadcast %cst_84 : f32 to vector<18x1x12xf32>
    %172 = tpu.concatenate %171, %170, %171 in 1 : vector<18x1x12xf32>, vector<18x16x12xf32>, vector<18x1x12xf32> -> vector<18x18x12xf32>
    %cst_85 = arith.constant 0.000000e+00 : f32
    %173 = vector.broadcast %cst_85 : f32 to vector<256x8xf32>
    %174 = vector.extract_strided_slice %172 {offsets = [0, 0, 0], sizes = [16, 16, 12], strides = [1, 1, 1]} : vector<18x18x12xf32> to vector<16x16x12xf32>
    %175 = vector.shape_cast %174 : vector<16x16x12xf32> to vector<256x12xf32>
    %176 = arith.truncf %175 : vector<256x12xf32> to vector<256x12xbf16>
    %c0_86 = arith.constant 0 : index
    %c0_87 = arith.constant 0 : index
    %c0_88 = arith.constant 0 : index
    %177 = vector.load %arg8[%c0_86, %c0_87, %c0_88] : memref<9x12x8xbf16, #tpu.memory_space<vmem>>, vector<1x12x8xbf16>
    %178 = vector.shape_cast %177 : vector<1x12x8xbf16> to vector<12x8xbf16>
    %cst_89 = arith.constant dense<0.000000e+00> : vector<256x8xf32>
    %179 = tpu.matmul %176, %178, %cst_89 {dimension_numbers = #tpu.dot_dimension_numbers<[1], [0], [0], [1], [0, 0, 1, 1], [], []>} : vector<256x12xbf16>, vector<12x8xbf16>, vector<256x8xf32> -> vector<256x8xf32>
    %180 = arith.addf %173, %179 : vector<256x8xf32>
    %181 = vector.extract_strided_slice %172 {offsets = [0, 1, 0], sizes = [16, 16, 12], strides = [1, 1, 1]} : vector<18x18x12xf32> to vector<16x16x12xf32>
    %182 = vector.shape_cast %181 : vector<16x16x12xf32> to vector<256x12xf32>
    %183 = arith.truncf %182 : vector<256x12xf32> to vector<256x12xbf16>
    %c1_90 = arith.constant 1 : index
    %c0_91 = arith.constant 0 : index
    %c0_92 = arith.constant 0 : index
    %184 = vector.load %arg8[%c1_90, %c0_91, %c0_92] : memref<9x12x8xbf16, #tpu.memory_space<vmem>>, vector<1x12x8xbf16>
    %185 = vector.shape_cast %184 : vector<1x12x8xbf16> to vector<12x8xbf16>
    %cst_93 = arith.constant dense<0.000000e+00> : vector<256x8xf32>
    %186 = tpu.matmul %183, %185, %cst_93 {dimension_numbers = #tpu.dot_dimension_numbers<[1], [0], [0], [1], [0, 0, 1, 1], [], []>} : vector<256x12xbf16>, vector<12x8xbf16>, vector<256x8xf32> -> vector<256x8xf32>
    %187 = arith.addf %180, %186 : vector<256x8xf32>
    %188 = vector.extract_strided_slice %172 {offsets = [0, 2, 0], sizes = [16, 16, 12], strides = [1, 1, 1]} : vector<18x18x12xf32> to vector<16x16x12xf32>
    %189 = vector.shape_cast %188 : vector<16x16x12xf32> to vector<256x12xf32>
    %190 = arith.truncf %189 : vector<256x12xf32> to vector<256x12xbf16>
    %c2_94 = arith.constant 2 : index
    %c0_95 = arith.constant 0 : index
    %c0_96 = arith.constant 0 : index
    %191 = vector.load %arg8[%c2_94, %c0_95, %c0_96] : memref<9x12x8xbf16, #tpu.memory_space<vmem>>, vector<1x12x8xbf16>
    %192 = vector.shape_cast %191 : vector<1x12x8xbf16> to vector<12x8xbf16>
    %cst_97 = arith.constant dense<0.000000e+00> : vector<256x8xf32>
    %193 = tpu.matmul %190, %192, %cst_97 {dimension_numbers = #tpu.dot_dimension_numbers<[1], [0], [0], [1], [0, 0, 1, 1], [], []>} : vector<256x12xbf16>, vector<12x8xbf16>, vector<256x8xf32> -> vector<256x8xf32>
    %194 = arith.addf %187, %193 : vector<256x8xf32>
    %195 = vector.extract_strided_slice %172 {offsets = [1, 0, 0], sizes = [16, 16, 12], strides = [1, 1, 1]} : vector<18x18x12xf32> to vector<16x16x12xf32>
    %196 = vector.shape_cast %195 : vector<16x16x12xf32> to vector<256x12xf32>
    %197 = arith.truncf %196 : vector<256x12xf32> to vector<256x12xbf16>
    %c3_98 = arith.constant 3 : index
    %c0_99 = arith.constant 0 : index
    %c0_100 = arith.constant 0 : index
    %198 = vector.load %arg8[%c3_98, %c0_99, %c0_100] : memref<9x12x8xbf16, #tpu.memory_space<vmem>>, vector<1x12x8xbf16>
    %199 = vector.shape_cast %198 : vector<1x12x8xbf16> to vector<12x8xbf16>
    %cst_101 = arith.constant dense<0.000000e+00> : vector<256x8xf32>
    %200 = tpu.matmul %197, %199, %cst_101 {dimension_numbers = #tpu.dot_dimension_numbers<[1], [0], [0], [1], [0, 0, 1, 1], [], []>} : vector<256x12xbf16>, vector<12x8xbf16>, vector<256x8xf32> -> vector<256x8xf32>
    %201 = arith.addf %194, %200 : vector<256x8xf32>
    %202 = vector.extract_strided_slice %172 {offsets = [1, 1, 0], sizes = [16, 16, 12], strides = [1, 1, 1]} : vector<18x18x12xf32> to vector<16x16x12xf32>
    %203 = vector.shape_cast %202 : vector<16x16x12xf32> to vector<256x12xf32>
    %204 = arith.truncf %203 : vector<256x12xf32> to vector<256x12xbf16>
    %c4_102 = arith.constant 4 : index
    %c0_103 = arith.constant 0 : index
    %c0_104 = arith.constant 0 : index
    %205 = vector.load %arg8[%c4_102, %c0_103, %c0_104] : memref<9x12x8xbf16, #tpu.memory_space<vmem>>, vector<1x12x8xbf16>
    %206 = vector.shape_cast %205 : vector<1x12x8xbf16> to vector<12x8xbf16>
    %cst_105 = arith.constant dense<0.000000e+00> : vector<256x8xf32>
    %207 = tpu.matmul %204, %206, %cst_105 {dimension_numbers = #tpu.dot_dimension_numbers<[1], [0], [0], [1], [0, 0, 1, 1], [], []>} : vector<256x12xbf16>, vector<12x8xbf16>, vector<256x8xf32> -> vector<256x8xf32>
    %208 = arith.addf %201, %207 : vector<256x8xf32>
    %209 = vector.extract_strided_slice %172 {offsets = [1, 2, 0], sizes = [16, 16, 12], strides = [1, 1, 1]} : vector<18x18x12xf32> to vector<16x16x12xf32>
    %210 = vector.shape_cast %209 : vector<16x16x12xf32> to vector<256x12xf32>
    %211 = arith.truncf %210 : vector<256x12xf32> to vector<256x12xbf16>
    %c5_106 = arith.constant 5 : index
    %c0_107 = arith.constant 0 : index
    %c0_108 = arith.constant 0 : index
    %212 = vector.load %arg8[%c5_106, %c0_107, %c0_108] : memref<9x12x8xbf16, #tpu.memory_space<vmem>>, vector<1x12x8xbf16>
    %213 = vector.shape_cast %212 : vector<1x12x8xbf16> to vector<12x8xbf16>
    %cst_109 = arith.constant dense<0.000000e+00> : vector<256x8xf32>
    %214 = tpu.matmul %211, %213, %cst_109 {dimension_numbers = #tpu.dot_dimension_numbers<[1], [0], [0], [1], [0, 0, 1, 1], [], []>} : vector<256x12xbf16>, vector<12x8xbf16>, vector<256x8xf32> -> vector<256x8xf32>
    %215 = arith.addf %208, %214 : vector<256x8xf32>
    %216 = vector.extract_strided_slice %172 {offsets = [2, 0, 0], sizes = [16, 16, 12], strides = [1, 1, 1]} : vector<18x18x12xf32> to vector<16x16x12xf32>
    %217 = vector.shape_cast %216 : vector<16x16x12xf32> to vector<256x12xf32>
    %218 = arith.truncf %217 : vector<256x12xf32> to vector<256x12xbf16>
    %c6_110 = arith.constant 6 : index
    %c0_111 = arith.constant 0 : index
    %c0_112 = arith.constant 0 : index
    %219 = vector.load %arg8[%c6_110, %c0_111, %c0_112] : memref<9x12x8xbf16, #tpu.memory_space<vmem>>, vector<1x12x8xbf16>
    %220 = vector.shape_cast %219 : vector<1x12x8xbf16> to vector<12x8xbf16>
    %cst_113 = arith.constant dense<0.000000e+00> : vector<256x8xf32>
    %221 = tpu.matmul %218, %220, %cst_113 {dimension_numbers = #tpu.dot_dimension_numbers<[1], [0], [0], [1], [0, 0, 1, 1], [], []>} : vector<256x12xbf16>, vector<12x8xbf16>, vector<256x8xf32> -> vector<256x8xf32>
    %222 = arith.addf %215, %221 : vector<256x8xf32>
    %223 = vector.extract_strided_slice %172 {offsets = [2, 1, 0], sizes = [16, 16, 12], strides = [1, 1, 1]} : vector<18x18x12xf32> to vector<16x16x12xf32>
    %224 = vector.shape_cast %223 : vector<16x16x12xf32> to vector<256x12xf32>
    %225 = arith.truncf %224 : vector<256x12xf32> to vector<256x12xbf16>
    %c7_114 = arith.constant 7 : index
    %c0_115 = arith.constant 0 : index
    %c0_116 = arith.constant 0 : index
    %226 = vector.load %arg8[%c7_114, %c0_115, %c0_116] : memref<9x12x8xbf16, #tpu.memory_space<vmem>>, vector<1x12x8xbf16>
    %227 = vector.shape_cast %226 : vector<1x12x8xbf16> to vector<12x8xbf16>
    %cst_117 = arith.constant dense<0.000000e+00> : vector<256x8xf32>
    %228 = tpu.matmul %225, %227, %cst_117 {dimension_numbers = #tpu.dot_dimension_numbers<[1], [0], [0], [1], [0, 0, 1, 1], [], []>} : vector<256x12xbf16>, vector<12x8xbf16>, vector<256x8xf32> -> vector<256x8xf32>
    %229 = arith.addf %222, %228 : vector<256x8xf32>
    %230 = vector.extract_strided_slice %172 {offsets = [2, 2, 0], sizes = [16, 16, 12], strides = [1, 1, 1]} : vector<18x18x12xf32> to vector<16x16x12xf32>
    %231 = vector.shape_cast %230 : vector<16x16x12xf32> to vector<256x12xf32>
    %232 = arith.truncf %231 : vector<256x12xf32> to vector<256x12xbf16>
    %c8_118 = arith.constant 8 : index
    %c0_119 = arith.constant 0 : index
    %c0_120 = arith.constant 0 : index
    %233 = vector.load %arg8[%c8_118, %c0_119, %c0_120] : memref<9x12x8xbf16, #tpu.memory_space<vmem>>, vector<1x12x8xbf16>
    %234 = vector.shape_cast %233 : vector<1x12x8xbf16> to vector<12x8xbf16>
    %cst_121 = arith.constant dense<0.000000e+00> : vector<256x8xf32>
    %235 = tpu.matmul %232, %234, %cst_121 {dimension_numbers = #tpu.dot_dimension_numbers<[1], [0], [0], [1], [0, 0, 1, 1], [], []>} : vector<256x12xbf16>, vector<12x8xbf16>, vector<256x8xf32> -> vector<256x8xf32>
    %236 = arith.addf %229, %235 : vector<256x8xf32>
    %c0_122 = arith.constant 0 : index
    %c0_123 = arith.constant 0 : index
    %237 = vector.load %arg9[%c0_122, %c0_123] : memref<1x8xf32, #tpu.memory_space<vmem>>, vector<1x8xf32>
    %238 = vector.broadcast %237 : vector<1x8xf32> to vector<256x8xf32>
    %239 = arith.addf %236, %238 : vector<256x8xf32>
    %cst_124 = arith.constant 0.000000e+00 : f32
    %240 = vector.broadcast %cst_124 : f32 to vector<256x8xf32>
    %241 = arith.maximumf %239, %240 : vector<256x8xf32>
    %242 = tpu.concatenate %10, %86, %164, %241 in 1 : vector<256x8xf32>, vector<256x4xf32>, vector<256x4xf32>, vector<256x8xf32> -> vector<256x24xf32>
    %243 = arith.truncf %242 : vector<256x24xf32> to vector<256x24xbf16>
    %c0_125 = arith.constant 0 : index
    %c0_126 = arith.constant 0 : index
    %244 = vector.load %arg10[%c0_125, %c0_126] : memref<24x32xbf16, #tpu.memory_space<vmem>>, vector<24x32xbf16>
    %cst_127 = arith.constant dense<0.000000e+00> : vector<256x32xf32>
    %245 = tpu.matmul %243, %244, %cst_127 {dimension_numbers = #tpu.dot_dimension_numbers<[1], [0], [0], [1], [0, 0, 1, 1], [], []>} : vector<256x24xbf16>, vector<24x32xbf16>, vector<256x32xf32> -> vector<256x32xf32>
    %c0_128 = arith.constant 0 : index
    %c0_129 = arith.constant 0 : index
    %246 = vector.load %arg11[%c0_128, %c0_129] : memref<1x32xf32, #tpu.memory_space<vmem>>, vector<1x32xf32>
    %247 = vector.broadcast %246 : vector<1x32xf32> to vector<256x32xf32>
    %248 = arith.addf %245, %247 : vector<256x32xf32>
    %249 = arith.addf %248, %2 : vector<256x32xf32>
    %cst_130 = arith.constant 0.000000e+00 : f32
    %250 = vector.broadcast %cst_130 : f32 to vector<256x32xf32>
    %251 = arith.maximumf %249, %250 : vector<256x32xf32>
    %252 = tpu.transpose %251, [1, 0] : vector<256x32xf32> -> vector<32x256xf32>
    %c0_131 = arith.constant 0 : index
    %c0_132 = arith.constant 0 : index
    %c0_133 = arith.constant 0 : index
    %253 = vector.load %arg12[%c0_131, %c0_132, %c0_133] : memref<1x32x256xf32, #tpu.memory_space<vmem>>, vector<1x32x256xf32>
    %254 = vector.shape_cast %253 : vector<1x32x256xf32> to vector<32x256xf32>
    %255 = vector.shape_cast %252 : vector<32x256xf32> to vector<1x32x256xf32>
    tpu.vector_store %arg12[%c0_131, %c0_132, %c0_133], %255 {strides = array<i32>} : memref<1x32x256xf32, #tpu.memory_space<vmem>>, vector<1x32x256xf32>,
    return
  }
  func.func @transform_0(%arg0: i32) -> (i32, i32, i32) {
    %c0_i32 = arith.constant 0 : i32
    %c0_i32_0 = arith.constant 0 : i32
    %c0_i32_1 = arith.constant 0 : i32
    return %arg0, %c0_i32, %c0_i32_0 : i32, i32, i32
  }
  func.func @transform_1(%arg0: i32) -> (i32, i32) {
    %c0_i32 = arith.constant 0 : i32
    %c0_i32_0 = arith.constant 0 : i32
    %c0_i32_1 = arith.constant 0 : i32
    return %c0_i32, %c0_i32_0 : i32, i32
  }
  func.func @transform_2(%arg0: i32) -> (i32, i32) {
    %c0_i32 = arith.constant 0 : i32
    %c0_i32_0 = arith.constant 0 : i32
    %c0_i32_1 = arith.constant 0 : i32
    return %c0_i32, %c0_i32_0 : i32, i32
  }
  func.func @transform_3(%arg0: i32) -> (i32, i32, i32) {
    %c0_i32 = arith.constant 0 : i32
    %c0_i32_0 = arith.constant 0 : i32
    %c0_i32_1 = arith.constant 0 : i32
    %c0_i32_2 = arith.constant 0 : i32
    return %c0_i32, %c0_i32_0, %c0_i32_1 : i32, i32, i32
  }
  func.func @transform_4(%arg0: i32) -> (i32, i32) {
    %c0_i32 = arith.constant 0 : i32
    %c0_i32_0 = arith.constant 0 : i32
    %c0_i32_1 = arith.constant 0 : i32
    return %c0_i32, %c0_i32_0 : i32, i32
  }
  func.func @transform_5(%arg0: i32) -> (i32, i32, i32) {
    %c0_i32 = arith.constant 0 : i32
    %c0_i32_0 = arith.constant 0 : i32
    %c0_i32_1 = arith.constant 0 : i32
    %c0_i32_2 = arith.constant 0 : i32
    return %c0_i32, %c0_i32_0, %c0_i32_1 : i32, i32, i32
  }
  func.func @transform_6(%arg0: i32) -> (i32, i32) {
    %c0_i32 = arith.constant 0 : i32
    %c0_i32_0 = arith.constant 0 : i32
    %c0_i32_1 = arith.constant 0 : i32
    return %c0_i32, %c0_i32_0 : i32, i32
  }
  func.func @transform_7(%arg0: i32) -> (i32, i32, i32) {
    %c0_i32 = arith.constant 0 : i32
    %c0_i32_0 = arith.constant 0 : i32
    %c0_i32_1 = arith.constant 0 : i32
    %c0_i32_2 = arith.constant 0 : i32
    return %c0_i32, %c0_i32_0, %c0_i32_1 : i32, i32, i32
  }
  func.func @transform_8(%arg0: i32) -> (i32, i32) {
    %c0_i32 = arith.constant 0 : i32
    %c0_i32_0 = arith.constant 0 : i32
    %c0_i32_1 = arith.constant 0 : i32
    return %c0_i32, %c0_i32_0 : i32, i32
  }
  func.func @transform_9(%arg0: i32) -> (i32, i32) {
    %c0_i32 = arith.constant 0 : i32
    %c0_i32_0 = arith.constant 0 : i32
    %c0_i32_1 = arith.constant 0 : i32
    return %c0_i32, %c0_i32_0 : i32, i32
  }
  func.func @transform_10(%arg0: i32) -> (i32, i32) {
    %c0_i32 = arith.constant 0 : i32
    %c0_i32_0 = arith.constant 0 : i32
    %c0_i32_1 = arith.constant 0 : i32
    return %c0_i32, %c0_i32_0 : i32, i32
  }
  func.func @transform_11(%arg0: i32) -> (i32, i32, i32) {
    %c0_i32 = arith.constant 0 : i32
    %c0_i32_0 = arith.constant 0 : i32
    %c0_i32_1 = arith.constant 0 : i32
    return %arg0, %c0_i32, %c0_i32_0 : i32, i32, i32
  }
}

</mosaic_0001>

<bundles_post_ra>
// kernel: tpu_custom_call.1
= control target key start
LH: loop header
LB: loop body
LE: loop exit
PB: predicated region body
PF: predicated region fallthrough
CT: control target
= control target key end

     0   :  { %s13267_s0 = inlined_call_operand.vmem [shape: bf16[2,256,32], index: 0, kind: input, shape index: {}]   ;;  %s13268_s1 = inlined_call_operand.vmem [shape: bf16[32,32], index: 1, kind: input, shape index: {}]   ;;  %s13269_s2 = inlined_call_operand.vmem [shape: f32[1,32], index: 2, kind: input, shape index: {}]   ;;  %s13270_s3 = inlined_call_operand.vmem [shape: bf16[9,8,8], index: 3, kind: input, shape index: {}]   ;;  %s13271_s4 = inlined_call_operand.vmem [shape: f32[1,8], index: 4, kind: input, shape index: {}]   ;;  %s13272_s5 = inlined_call_operand.vmem [shape: bf16[9,12,8], index: 5, kind: input, shape index: {}]   ;;  %s13273_s6 = inlined_call_operand.vmem [shape: f32[1,8], index: 6, kind: input, shape index: {}]   ;;  %s13274_s7 = inlined_call_operand.vmem [shape: bf16[9,12,8], index: 7, kind: input, shape index: {}]   ;;  %s13275_s8 = inlined_call_operand.vmem [shape: f32[1,8], index: 8, kind: input, shape index: {}]   ;;  %s13276_s9 = inlined_call_operand.vmem [shape: bf16[24,32], index: 9, kind: input, shape index: {}]   ;;  %s13277_s10 = inlined_call_operand.vmem [shape: f32[1,32], index: 10, kind: input, shape index: {}]   ;;  %s13278_s11 = inlined_call_operand.hbm [shape: f32[2,32,256], index: 11, kind: output, shape index: {}]  }
   0x1   :  { %13485 = sst [smem:[#allocation96_spill]] %s13267_s0 }
   0x2   :  { %13486 = sst [smem:[#allocation97_spill]] %s13268_s1 }
   0x3   :  { %13487 = sst [smem:[#allocation98_spill]] %s13269_s2 }
   0x4   :  { %16 = vsyncpa [#allocation3], 0 }
   0x5   :  { %18 = vsyncpa [#allocation3 + $0x1], 0  ;;  %s9024_s17 = smov 0   ;;  %s9026_s18 = smov 0  }
   0x6   :  { %s9028_s19 = smov 0   ;;  %s9030_s20 = smov 0  }
   0x7 LB: > { %s9045_s21 = sadd.s32 4294967295, %s8953_s20   ;;  %s7490_s22 = sadd.s32 4294967294, %s8953_s20   ;;  %s8953_s20 = sphi %s9030_s20, %s13868_s20   ;;  %s8949_s19 = sphi %s9028_s19, %s13867_s19   ;;  %s8945_s18 = sphi %s9026_s18, %s13866_s18   ;;  %s8941_s17 = sphi %s9024_s17, %s13865_s17  }
   0x8   : > { %s9049_s23 = sadd.s32 1, %s8953_s20   ;;  %s267_s24 = sadd.s32 1, %s8949_s19 }
   0x9   : > { %s264_s25 = ssub.s32 %s8953_s20, %s9049_s23  ;;  %p277_p0 = scmp.ne.s32.totalorder %s8949_s19, %s8945_s18 }
   0xa   : > { %p265_p1 = scmp.eq.s32.totalorder %s264_s25, 0  ;;  %p278_p2 = scmp.eq.s32.totalorder %s9045_s21, 1 }
   0xb   : > { %p283_p3 = scmp.ne.s32.totalorder %s8945_s18, %s8941_s17  ;;  %p284_p4 = scmp.eq.s32.totalorder %s7490_s22, 1 }
   0xc   : > { %s9060_s26 = scalar_select %p265_p1, %s8949_s19, %s267_s24  }
   0xd   : > { %p9062_p5 = por %p278_p2, %p277_p0  ;;  %p9066_p6 = por %p284_p4, %p283_p3 }
   0xe   : > { %p7493_p7 = scmp.ge.s32.totalorder %s8953_s20, 1  ;;  %p340_p8 = scmp.lt.s32.totalorder %s8953_s20, 3 }
  0x10   : > { %p341_p9 = pnand %p7493_p7, %p340_p8 }
  0x12   : > { %344 = sbr.rel (%p341_p9) target bundleno = 3235 (0xca3), region = 64 }
  0x17   : > { %s13490_s1 = sld [smem:[#allocation97_spill]]  ;;  %p380_p10 = scmp.lt.s32.totalorder %s9045_s21, 1  ;;  %vm550_vm0 = vcmask 261120   ;;  %vm1181_vm1 = vcmask 1043456   ;;  %vm817_vm2 = vcmask 1040384   ;;  %vm1001_vm3 = vcmask 1046528  }
  0x18   : > { %s13491_s0 = sld [smem:[#allocation96_spill]]  ;;  %s8955_s30 = smov 120   ;;  %vm1132_vm4 = vcmask 64512   ;;  %vm1414_vm5 = vcmask 1045504   ;;  %vm3160_vm6 = vcmask 97280   ;;  %vm7070_vm7 = vcmask 130048  }
  0x19   : > { %s381_s14 = scalar_select %p380_p10, %s9045_s21, 1  ;;  %vm7135_vm8 = vcmask 195584  }
  0x1a   : > { %s13492_s2 = sld [smem:[#allocation98_spill]]  ;;  %s13418_s25 = smov 112  }
  0x1b   : > { %s8154_s15 = sshll.u32 %s381_s14, 7  ;;  %s13415_s12 = smov 4  }
  0x1c   : > { %s13719_s13 = smov 104   ;;  %s377_s16 = sand.u32 1, %s8945_s18  }
  0x1d   : > { %v8172_v0 = vld [vmem:[%s13490_s1 + $0x8] sm:$0xff]  ;;  %v8171_v1 = vld [vmem:[%s13490_s1] sm:$0xff]  ;;  %s8192_s1 = sshll.u32 %s9045_s21, 6 }
  0x1e   : > { %605 = vmatpush.bf16.msra.mxu0 %v8172_v0  ;;  %s9083_s24 = scalar_lea.vmem %s13491_s0, %s8154_s15  ;;  %s13448_s15 = smov 104  }
  0x1f   : > { %v8155_v2 = vld [vmem:[%s9083_s24] sm:$0xff]  ;;  %v8156_v3 = vld [vmem:[%s9083_s24 + $0x8] sm:$0xff]  ;;  %v8157_v4 = vld [vmem:[%s9083_s24 + $0x10] sm:$0xff]  ;;  %s7494_s0 = sshll.u32 %s377_s16, 6 }
  0x20   : > { %v8158_v5 = vld [vmem:[%s9083_s24 + $0x18] sm:$0xff]  ;;  %v8159_v6 = vld [vmem:[%s9083_s24 + $0x20] sm:$0xff]  ;;  %v8160_v7 = vld [vmem:[%s9083_s24 + $0x28] sm:$0xff] }
  0x21   : > { %v8161_v8 = vld [vmem:[%s9083_s24 + $0x30] sm:$0xff]  ;;  %v8162_v9 = vld [vmem:[%s9083_s24 + $0x38] sm:$0xff]  ;;  %v8163_v10 = vld [vmem:[%s9083_s24 + $0x40] sm:$0xff] }
  0x22   : > { %606 = vmatpush.bf16.msra.mxu0 %v8171_v1  ;;  %v8164_v13 = vld [vmem:[%s9083_s24 + $0x48] sm:$0xff]  ;;  %v8165_v16 = vld [vmem:[%s9083_s24 + $0x50] sm:$0xff]  ;;  %v8166_v19 = vld [vmem:[%s9083_s24 + $0x58] sm:$0xff] }
  0x23   : > { %v8167_v22 = vld [vmem:[%s9083_s24 + $0x60] sm:$0xff]  ;;  %v8168_v25 = vld [vmem:[%s9083_s24 + $0x68] sm:$0xff]  ;;  %v8169_v34 = vld [vmem:[%s9083_s24 + $0x70] sm:$0xff] }
  0x24   : > { %v9126_v27 = vld [vmem:[%s13492_s2] ss:$0 sm:$0xff]  ;;  %v8170_v44 = vld [vmem:[%s9083_s24 + $0x78] sm:$0xff]  ;;  %s7424_s2 = scalar_lea.hbm %s13278_s11, %s8192_s1 }
  0x25   : > { %7569 = vmatmul.msk.bf16.vlgmr.msra.gmra.mxu0 %vm550_vm0, %v8155_v2  ;;  %s7427_s29 = sshll.u32 %s7424_s2, 4  ;;  %s7428_s29 = int_to_ptr.hbm [resolvable:$true] %s7427_s29 }
  0x35   : > { %7570 = vmatmul.msk.bf16.gmra.mxu0 %vm550_vm0, %v8156_v3 }
  0x45   : > { %7571 = vmatmul.msk.bf16.gmra.mxu0 %vm550_vm0, %v8157_v4 }
  0x55   : > { %7572 = vmatmul.msk.bf16.gmra.mxu0 %vm550_vm0, %v8158_v5 }
  0x65   : > { %7573 = vmatmul.msk.bf16.gmra.mxu0 %vm550_vm0, %v8159_v6 }
  0x75   : > { %7574 = vmatmul.msk.bf16.gmra.mxu0 %vm550_vm0, %v8160_v7 }
  0x85   : > { %7575 = vmatmul.msk.bf16.gmra.mxu0 %vm550_vm0, %v8161_v8 }
  0x95   : > { %7576 = vmatmul.msk.bf16.gmra.mxu0 %vm550_vm0, %v8162_v9 }
  0xa2   : > { %v9102_v11 = vpop.f32.mrf.mxu0 }
  0xa5   : > { %7577 = vmatmul.msk.bf16.gmra.mxu0 %vm550_vm0, %v8163_v10 }
  0xaa   : > { %v9105_v12 = vpop.f32.mrf.mxu0 }
  0xb2   : > { %v613_v14 = vpop.f32.mrf.mxu0 }
  0xb3   : > { %v9164_v43 = vadd.f32 %v9126_v27, %v613_v14 }
  0xb5   : > { %7578 = vmatmul.msk.bf16.gmra.mxu0 %vm550_vm0, %v8164_v13  ;;  %13500 = vst [vmem:[#allocation12_spill] sm:$0xff] %v9164_v43  ;;  %v13301_v47 = vmax.f32 %v9164_v43, 0.0 }
  0xba   : > { %v615_v15 = vpop.f32.mrf.mxu0 }
  0xbb   : > { %v9155_v41 = vadd.f32 %v9126_v27, %v615_v15 }
  0xbd   : > { %13498 = vst [vmem:[#allocation10_spill] sm:$0xff] %v9155_v41  ;;  %v13302_v46 = vmax.f32 %v9155_v41, 0.0 }
  0xbf   : > { %v9179_v49 = vpack.i.bf16 %v13302_v46, %v13301_v47 }
  0xc1   : > { %13502 = vst [vmem:[#allocation14_spill] sm:$0xff] %v9179_v49 }
  0xc2   : > { %v9110_v17 = vpop.f32.mrf.mxu0 }
  0xc3   : > { %v9231_v4 = vadd.f32 %v9126_v27, %v9110_v17 }
  0xc5   : > { %7579 = vmatmul.msk.bf16.gmra.mxu0 %vm550_vm0, %v8165_v16  ;;  %13512 = vst [vmem:[#allocation24_spill] sm:$0xff] %v9231_v4  ;;  %v13299_v7 = vmax.f32 %v9231_v4, 0.0  ;;  %v9255_v16 = vadd.f32 %v9126_v27, %v9105_v12 }
  0xc7   : > { %13516 = vst [vmem:[#allocation28_spill] sm:$0xff] %v9255_v16 }
  0xca   : > { %v620_v18 = vpop.f32.mrf.mxu0 }
  0xcb   : > { %v9221_v2 = vadd.f32 %v9126_v27, %v620_v18  ;;  %v9265_v18 = vadd.f32 %v9126_v27, %v9102_v11 }
  0xcd   : > { %13510 = vst [vmem:[#allocation22_spill] sm:$0xff] %v9221_v2  ;;  %v13300_v6 = vmax.f32 %v9221_v2, 0.0 }
  0xce   : > { %13518 = vst [vmem:[#allocation30_spill] sm:$0xff] %v9265_v18 }
  0xcf   : > { %v9244_v9 = vpack.i.bf16 %v13300_v6, %v13299_v7 }
  0xd1   : > { %13514 = vst [vmem:[#allocation26_spill] sm:$0xff] %v9244_v9 }
  0xd2   : > { %v9114_v20 = vpop.f32.mrf.mxu0 }
  0xd5   : > { %7580 = vmatmul.msk.bf16.gmra.mxu0 %vm550_vm0, %v8166_v19 }
  0xda   : > { %v9117_v21 = vpop.f32.mrf.mxu0 }
  0xdb   : > { %v9273_v12 = vadd.f32 %v9126_v27, %v9117_v21 }
  0xdd   : > { %13519 = vst [vmem:[#allocation31_spill] sm:$0xff] %v9273_v12  ;;  %v13298_v21 = vmax.f32 %v9273_v12, 0.0 }
  0xe2   : > { %v628_v23 = vpop.f32.mrf.mxu0 }
  0xe3   : > { %v9182_v50 = vadd.f32 %v9126_v27, %v628_v23  ;;  %v13303_v23 = vmax.f32 %v9265_v18, 0.0 }
  0xe5   : > { %7581 = vmatmul.msk.bf16.gmra.mxu0 %vm550_vm0, %v8167_v22  ;;  %13503 = vst [vmem:[#allocation15_spill] sm:$0xff] %v9182_v50  ;;  %v13293_v55 = vmax.f32 %v9182_v50, 0.0  ;;  %v13306_v22 = vmax.f32 %v9255_v16, 0.0 }
  0xe7   : > { %v9282_v11 = vpack.i.bf16 %v13306_v22, %v13303_v23 }
  0xe9   : > { %13521 = vst [vmem:[#allocation33_spill] sm:$0xff] %v9282_v11 }
  0xea   : > { %v630_v24 = vpop.f32.mrf.mxu0 }
  0xeb   : > { %v9173_v48 = vadd.f32 %v9126_v27, %v630_v24 }
  0xed   : > { %13501 = vst [vmem:[#allocation13_spill] sm:$0xff] %v9173_v48  ;;  %v13296_v53 = vmax.f32 %v9173_v48, 0.0 }
  0xef   : > { %v9206_v59 = vpack.i.bf16 %v13296_v53, %v13293_v55 }
  0xf1   : > { %13507 = vst [vmem:[#allocation19_spill] sm:$0xff] %v9206_v59 }
  0xf2   : > { %v633_v26 = vpop.f32.mrf.mxu0 }
  0xf3   : > { %v9129_v28 = vadd.f32 %v9126_v27, %v633_v26 }
  0xf5   : > { %7582 = vmatmul.msk.bf16.gmra.mxu0 %vm550_vm0, %v8168_v25  ;;  %13493 = vst [vmem:[#allocation5_spill] sm:$0xff] %v9129_v28  ;;  %v13291_v31 = vmax.f32 %v9129_v28, 0.0  ;;  %v9286_v25 = vadd.f32 %v9126_v27, %v9114_v20 }
  0xf7   : > { %13522 = vst [vmem:[#allocation34_spill] sm:$0xff] %v9286_v25 }
  0xfa   : > { %v635_v29 = vpop.f32.mrf.mxu0 }
  0xfb   : > { %v9132_v30 = vadd.f32 %v9126_v27, %v635_v29 }
  0xfd   : > { %13494 = vst [vmem:[#allocation6_spill] sm:$0xff] %v9132_v30  ;;  %v13292_v32 = vmax.f32 %v9132_v30, 0.0 }
  0xff   : > { %v9140_v33 = vpack.i.bf16 %v13292_v32, %v13291_v31 }
 0x101   : > { %13495 = vst [vmem:[#allocation7_spill] sm:$0xff] %v9140_v33  ;;  %8245 = vrot.lane.b32.xlu0 %v9140_v33, %s8955_s30 }
 0x102   : > { %v638_v35 = vpop.f32.mrf.mxu0 }
 0x103   : > { %v9147_v36 = vadd.f32 %v9126_v27, %v638_v35  ;;  %v13297_v35 = vmax.f32 %v9286_v25, 0.0 }
 0x105   : > { %7583 = vmatmul.msk.bf16.gmra.mxu0 %vm550_vm0, %v8169_v34  ;;  %13496 = vst [vmem:[#allocation8_spill] sm:$0xff] %v9147_v36  ;;  %v13289_v39 = vmax.f32 %v9147_v36, 0.0 }
 0x10a   : > { %v640_v37 = vpop.f32.mrf.mxu0 }
 0x10b   : > { %v9150_v38 = vadd.f32 %v9126_v27, %v640_v37 }
 0x10d   : > { %13497 = vst [vmem:[#allocation9_spill] sm:$0xff] %v9150_v38  ;;  %v13290_v40 = vmax.f32 %v9150_v38, 0.0 }
 0x10f   : > { %v9161_v42 = vpack.i.bf16 %v13290_v40, %v13289_v39 }
 0x111   : > { %13499 = vst [vmem:[#allocation11_spill] sm:$0xff] %v9161_v42  ;;  %8250 = vrot.lane.b32.xlu0 %v9161_v42, %s8955_s30 }
 0x112   : > { %v643_v45 = vpop.f32.mrf.mxu0 }
 0x113   : > { %v9185_v51 = vadd.f32 %v9126_v27, %v643_v45 }
 0x115   : > { %7584 = vmatmul.msk.bf16.gmra.mxu0 %vm550_vm0, %v8170_v44  ;;  %13504 = vst [vmem:[#allocation16_spill] sm:$0xff] %v9185_v51  ;;  %v13287_v56 = vmax.f32 %v9185_v51, 0.0  ;;  %v9307_v44 = vpack.i.bf16 %v13298_v21, %v13297_v35 }
 0x117   : > { %13525 = vst [vmem:[#allocation37_spill] sm:$0xff] %v9307_v44 }
 0x119   : > { %8275 = vrot.lane.b32.xlu0 %v9179_v49, %s8955_s30 }
 0x11a   : > { %v645_v52 = vpop.f32.mrf.mxu0 }
 0x11b   : > { %v9191_v54 = vadd.f32 %v9126_v27, %v645_v52 }
 0x11d   : > { %13505 = vst [vmem:[#allocation17_spill] sm:$0xff] %v9191_v54  ;;  %v13288_v57 = vmax.f32 %v9191_v54, 0.0 }
 0x11f   : > { %v9200_v58 = vpack.i.bf16 %v13288_v57, %v13287_v56 }
 0x121   : > { %13506 = vst [vmem:[#allocation18_spill] sm:$0xff] %v9200_v58  ;;  %8255 = vrot.lane.b32.xlu1 %v9200_v58, %s8955_s30  ;;  %8290 = vrot.lane.b32.xlu0 %v9206_v59, %s8955_s30 }
 0x122   : > { %v648_v60 = vpop.f32.mrf.mxu0 }
 0x123   : > { %v9213_v61 = vadd.f32 %v9126_v27, %v648_v60 }
 0x125   : > { %13508 = vst [vmem:[#allocation20_spill] sm:$0xff] %v9213_v61  ;;  %v13283_v0 = vmax.f32 %v9213_v61, 0.0 }
 0x12a   : > { %v650_v62 = vpop.f32.mrf.mxu0 }
 0x12b   : > { %v9216_v63 = vadd.f32 %v9126_v27, %v650_v62  ;;  %v7585_v62 = vld [vmem:[%s13270_s3 + $0x4] sm:$0xf] }
 0x12d   : > { %13509 = vst [vmem:[#allocation21_spill] sm:$0xff] %v9216_v63  ;;  %v13286_v1 = vmax.f32 %v9216_v63, 0.0 }
 0x12f   : > { %v9227_v3 = vpack.i.bf16 %v13286_v1, %v13283_v0 }
 0x131   : > { %13511 = vst [vmem:[#allocation23_spill] sm:$0xff] %v9227_v3  ;;  %8260 = vrot.lane.b32.xlu1 %v9227_v3, %s8955_s30 }
 0x132   : > { %v653_v5 = vpop.f32.mrf.mxu0 }
 0x133   : > { %v9238_v8 = vadd.f32 %v9126_v27, %v653_v5 }
 0x135   : > { %13513 = vst [vmem:[#allocation25_spill] sm:$0xff] %v9238_v8  ;;  %v13281_v13 = vmax.f32 %v9238_v8, 0.0 }
 0x139   : > { %8280 = vrot.lane.b32.xlu1 %v9244_v9, %s8955_s30 }
 0x13a   : > { %v655_v10 = vpop.f32.mrf.mxu0 }
 0x13b   : > { %v9250_v14 = vadd.f32 %v9126_v27, %v655_v10 }
 0x13d   : > { %13515 = vst [vmem:[#allocation27_spill] sm:$0xff] %v9250_v14  ;;  %v13282_v15 = vmax.f32 %v9250_v14, 0.0 }
 0x13f   : > { %v9261_v17 = vpack.i.bf16 %v13282_v15, %v13281_v13 }
 0x141   : > { %13517 = vst [vmem:[#allocation29_spill] sm:$0xff] %v9261_v17  ;;  %8265 = vrot.lane.b32.xlu2 %v9261_v17, %s8955_s30 }
 0x142   : > { %v658_v19 = vpop.f32.mrf.mxu0 }
 0x143   : > { %v9276_v24 = vadd.f32 %v9126_v27, %v658_v19  ;;  %v1183_v19 = vsel %vm1181_vm1, %v7585_v62, 0 }
 0x144   : > { %8194 = vmatpush.bf16.msra.mxu2 %v1183_v19  ;;  %1192 = vmatpush.bf16.msrb.mxu0 %v1183_v19 }
 0x145   : > { %13520 = vst [vmem:[#allocation32_spill] sm:$0xff] %v9276_v24  ;;  %v13279_v29 = vmax.f32 %v9276_v24, 0.0  ;;  %8193 = vmatpush.bf16.msra.mxu1 %v1183_v19  ;;  %8195 = vmatpush.bf16.msra.mxu3 %v1183_v19 }
 0x149   : > { %8270 = vrot.lane.b32.xlu2 %v9282_v11, %s8955_s30 }
 0x14a   : > { %v660_v26 = vpop.f32.mrf.mxu0 }
 0x14b   : > { %v9293_v34 = vadd.f32 %v9126_v27, %v660_v26  ;;  %v8956_v26 = vmov 0.0  }
 0x14d   : > { %13523 = vst [vmem:[#allocation35_spill] sm:$0xff] %v9293_v34  ;;  %v13280_v37 = vmax.f32 %v9293_v34, 0.0 }
 0x14f   : > { %v9301_v20 = vpack.i.bf16 %v13280_v37, %v13279_v29  ;;  %v9324_v29 = vrot.slane %v8956_v26, 7  ;;  %v968_v26 = vld [vmem:[%s13270_s3] sm:$0xf] }
 0x150   : > { %v1323_v0 = vsel %vm1181_vm1, %v968_v26, 0 }
 0x151   : > { %13524 = vst [vmem:[#allocation36_spill] sm:$0xff] %v9301_v20  ;;  %8295 = vrot.lane.b32.xlu1 %v9301_v20, %s8955_s30  ;;  %8285 = vrot.lane.b32.xlu2 %v9307_v44, %s8955_s30  ;;  %v9329_v37 = vsel %vm817_vm2, 0.0, %v9324_v29  ;;  %v1003_v13 = vrot.slane %v9324_v29, 1 }
 0x152   : > { %v663_v45 = vpop.f32.mrf.mxu0  ;;  %v1002_v19 = vrot.slane %v9329_v37, 1  ;;  %1332 = vmatpush.bf16.msrb.mxu2 %v1323_v0 }
 0x153   : > { %v9314_v52 = vadd.f32 %v9126_v27, %v663_v45 }
 0x155   : > { %13526 = vst [vmem:[#allocation38_spill] sm:$0xff] %v9314_v52  ;;  %v13284_v5 = vmax.f32 %v9314_v52, 0.0 }
 0x15a   : > { %v665_v60 = vpop.f32.mrf.mxu0 }
 0x15b   : > { %v9321_v10 = vadd.f32 %v9126_v27, %v665_v60  ;;  %v9333_v60 = vsel %vm817_vm2, %v9324_v29, 0.0 }
 0x15c   : > { %v1005_v15 = vrot.slane %v9333_v60, 1 }
 0x15d   : > { %13527 = vst [vmem:[#allocation39_spill] sm:$0xff] %v9321_v10  ;;  %v13285_v45 = vmax.f32 %v9321_v10, 0.0 }
 0x15f   : > { %v9339_v62 = vpack.i.bf16 %v13285_v45, %v13284_v5  ;;  %v1004_v5 = vsel %vm1001_vm3, %v1002_v19, %v1003_v13  ;;  %v1006_v45 = vsel %vm1001_vm3, %v1003_v13, %v1005_v15  ;;  %v7686_v15 = vld [vmem:[%s13270_s3 + $0x18] sm:$0xf] }
 0x160   : > { %v9352_v56 = vpack.c.bf16 %v1006_v45, %v1004_v5 }
 0x161   : > { %13528 = vst [vmem:[#allocation40_spill] sm:$0xff] %v9339_v62  ;;  %8300 = vrot.lane.b32.xlu2 %v9339_v62, %s8955_s30 }
 0x162   : > { %v668_v1 = vpop.f32.mrf.mxu0  ;;  %13529 = vst [vmem:[#allocation41_spill] sm:$0xff] %v9352_v56  ;;  %7586 = vmatmul.msk.bf16.vlgmr.msrb.gmra.mxu0 %vm1132_vm4, %v9352_v56 }
 0x163   : > { %v9357_v57 = vadd.f32 %v9126_v27, %v668_v1  ;;  %v2126_v1 = vsel %vm1181_vm1, %v7686_v15, 0 }
 0x164   : > { %2135 = vmatpush.bf16.msra.mxu0 %v2126_v1 }
 0x165   : > { %13530 = vst [vmem:[#allocation42_spill] sm:$0xff] %v9357_v57  ;;  %v13294_v26 = vmax.f32 %v9357_v57, 0.0 }
 0x16a   : > { %v670_v39 = vpop.f32.mrf.mxu0 }
 0x16b   : > { %v9361_v40 = vadd.f32 %v9126_v27, %v670_v39 }
 0x16d   : > { %13531 = vst [vmem:[#allocation43_spill] sm:$0xff] %v9361_v40  ;;  %v13295_v0 = vmax.f32 %v9361_v40, 0.0 }
 0x16f   : > { %v9368_v13 = vpack.i.bf16 %v13295_v0, %v13294_v26 }
 0x171   : > { %13532 = vst [vmem:[#allocation44_spill] sm:$0xff] %v9368_v13  ;;  %8305 = vrot.lane.b32.xlu0 %v9368_v13, %s8955_s30 }
 0x172   : > { %v673_v39 = vpop.f32.mrf.mxu0 }
 0x173   : > { %v8246_v5 = vpop.permute.xlu0 %8245  ;;  %v9377_v55 = vadd.f32 %v9126_v27, %v673_v39 }
 0x174   : > { %v8248_v45 = vunpack.i.h.bf16 %v8246_v5  ;;  %v8247_v19 = vunpack.i.l.bf16 %v8246_v5 }
 0x175   : > { %13533 = vst [vmem:[#allocation45_spill] sm:$0xff] %v9377_v55 }
 0x176   : > { %v836_v31 = vrot.slane %v8248_v45, 7  ;;  %v835_v32 = vrot.slane %v8247_v19, 7  ;;  %v13304_v19 = vmax.f32 %v9377_v55, 0.0 }
 0x178   : > { %v941_v26 = vsel %vm817_vm2, %v836_v31, 0.0  ;;  %v837_v0 = vsel %vm817_vm2, %v835_v32, %v836_v31  ;;  %v924_v53 = vsel %vm817_vm2, 0.0, %v835_v32 }
 0x179   : > { %v1035_v15 = vrot.slane %v941_v26, 1  ;;  %v1448_v35 = vrot.slane %v941_v26, 2  ;;  %v9382_v21 = vpack.c.bf16 %v837_v0, %v924_v53  ;;  %v1032_v1 = vrot.slane %v924_v53, 1 }
 0x17a   : > { %v1033_v7 = vrot.slane %v837_v0, 1  ;;  %v1445_v6 = vrot.slane %v924_v53, 2  ;;  %v1446_v5 = vrot.slane %v837_v0, 2  ;;  %v675_v45 = vpop.f32.mrf.mxu0 }
 0x17b   : > { %v9386_v39 = vadd.f32 %v9126_v27, %v675_v45 }
 0x17c   : > { %v1034_v47 = vsel %vm1001_vm3, %v1032_v1, %v1033_v7  ;;  %v1036_v31 = vsel %vm1001_vm3, %v1033_v7, %v1035_v15  ;;  %v1447_v32 = vsel %vm1414_vm5, %v1445_v6, %v1446_v5  ;;  %v1449_v26 = vsel %vm1414_vm5, %v1446_v5, %v1448_v35 }
 0x17d   : > { %13534 = vst [vmem:[#allocation46_spill] sm:$0xff] %v9386_v39  ;;  %v13305_v46 = vmax.f32 %v9386_v39, 0.0  ;;  %v9393_v23 = vpack.c.bf16 %v1036_v31, %v1034_v47  ;;  %v9395_v53 = vpack.c.bf16 %v1449_v26, %v1447_v32 }
 0x17f   : > { %7592 = vmatmul.msk.bf16.vlgmr.msra.gmra.mxu2 %vm1132_vm4, %v9393_v23  ;;  %v9403_v0 = vpack.i.bf16 %v13305_v46, %v13304_v19 }
 0x181   : > { %13535 = vst [vmem:[#allocation47_spill] sm:$0xff] %v9403_v0  ;;  %8310 = vrot.lane.b32.xlu1 %v9403_v0, %s8955_s30 }
 0x182   : > { %v678_v6 = vpop.f32.mrf.mxu0 }
 0x183   : > { %v8251_v7 = vpop.permute.xlu0 %8250  ;;  %v9408_v5 = vadd.f32 %v9126_v27, %v678_v6 }
 0x184   : > { %v8253_v35 = vunpack.i.h.bf16 %v8251_v7  ;;  %v8252_v15 = vunpack.i.l.bf16 %v8251_v7 }
 0x185   : > { %13536 = vst [vmem:[#allocation48_spill] sm:$0xff] %v9408_v5 }
 0x186   : > { %v839_v47 = vrot.slane %v8253_v35, 7  ;;  %v838_v1 = vrot.slane %v8252_v15, 7 }
 0x188   : > { %v942_v45 = vsel %vm817_vm2, %v839_v47, 0.0  ;;  %v840_v31 = vsel %vm817_vm2, %v838_v1, %v839_v47  ;;  %v925_v32 = vsel %vm817_vm2, 0.0, %v838_v1 }
 0x189   : > { %v1040_v26 = vrot.slane %v942_v45, 1  ;;  %v1453_v19 = vrot.slane %v942_v45, 2  ;;  %v9413_v46 = vpack.c.bf16 %v840_v31, %v925_v32  ;;  %v1037_v22 = vrot.slane %v925_v32, 1  ;;  %8325 = vrot.lane.b32.xlu1 %v9282_v11, %s13418_s25 }
 0x18a   : > { %v1038_v7 = vrot.slane %v840_v31, 1  ;;  %v1450_v35 = vrot.slane %v925_v32, 2  ;;  %v1451_v15 = vrot.slane %v840_v31, 2  ;;  %v680_v6 = vpop.f32.mrf.mxu0 }
 0x18b   : > { %v9419_v39 = vadd.f32 %v9126_v27, %v680_v6  ;;  %v8276_v47 = vpop.permute.xlu0 %8275  ;;  %v13539_v6 = vmax.f32 %v9408_v5, 0.0 }
 0x18c   : > { %v8278_v1 = vunpack.i.h.bf16 %v8276_v47  ;;  %v8277_v57 = vunpack.i.l.bf16 %v8276_v47  ;;  %v1039_v45 = vsel %vm1001_vm3, %v1037_v22, %v1038_v7  ;;  %v1041_v40 = vsel %vm1001_vm3, %v1038_v7, %v1040_v26 }
 0x18d   : > { %13537 = vst [vmem:[#allocation49_spill] sm:$0xff] %v9419_v39  ;;  %v13315_v52 = vmax.f32 %v9419_v39, 0.0  ;;  %v9424_v10 = vpack.c.bf16 %v1041_v40, %v1039_v45  ;;  %v1452_v32 = vsel %vm1414_vm5, %v1450_v35, %v1451_v15  ;;  %v1454_v31 = vsel %vm1414_vm5, %v1451_v15, %v1453_v19 }
 0x18e   : > { %v824_v24 = vrot.slane %v8278_v1, 7  ;;  %v823_v55 = vrot.slane %v8277_v57, 7  ;;  %v9428_v34 = vpack.c.bf16 %v1454_v31, %v1452_v32 }
 0x18f   : > { %13538 = vst [vmem:[#allocation50_spill] sm:$0xff] %v9424_v10  ;;  %7593 = vmatmul.msk.bf16.gmra.mxu2 %vm1132_vm4, %v9424_v10  ;;  %v9436_v22 = vpack.i.bf16 %v13315_v52, %v13539_v6 }
 0x190   : > { %v9439_v40 = vsel %vm817_vm2, %v824_v24, 0.0  ;;  %v9442_v26 = vsel %vm817_vm2, %v823_v55, %v824_v24  ;;  %v9445_v19 = vsel %vm817_vm2, 0.0, %v823_v55 }
 0x191   : > { %13540 = vst [vmem:[#allocation51_spill] sm:$0xff] %v9436_v22  ;;  %v9449_v57 = vpack.c.bf16 %v9442_v26, %v9445_v19  ;;  %8315 = vrot.lane.b32.xlu2 %v9436_v22, %s8955_s30  ;;  %v1425_v7 = vrot.slane %v9445_v19, 2  ;;  %v1426_v35 = vrot.slane %v9442_v26, 2  ;;  %v1428_v47 = vrot.slane %v9439_v40, 2 }
 0x192   : > { %v683_v15 = vpop.f32.mrf.mxu0 }
 0x193   : > { %v8256_v1 = vpop.permute.xlu1 %8255  ;;  %v8291_v24 = vpop.permute.xlu0 %8290  ;;  %7687 = vmatmul.msk.bf16.vlgmr.msra.gmra.mxu0 %vm1132_vm4, %v9449_v57  ;;  %v1427_v6 = vsel %vm1414_vm5, %v1425_v7, %v1426_v35  ;;  %v9460_v8 = vadd.f32 %v9126_v27, %v683_v15  ;;  %v1429_v61 = vsel %vm1414_vm5, %v1426_v35, %v1428_v47 }
 0x194   : > { %v8258_v55 = vunpack.i.h.bf16 %v8256_v1  ;;  %v8257_v45 = vunpack.i.l.bf16 %v8256_v1  ;;  %v8293_v32 = vunpack.i.h.bf16 %v8291_v24  ;;  %v8292_v31 = vunpack.i.l.bf16 %v8291_v24 }
 0x195   : > { %13541 = vst [vmem:[#allocation52_spill] sm:$0xff] %v9460_v8  ;;  %v13544_v12 = vmax.f32 %v9460_v8, 0.0  ;;  %v9495_v43 = vpack.c.bf16 %v1429_v61, %v1427_v6 }
 0x196   : > { %v842_v52 = vrot.slane %v8258_v55, 7  ;;  %v841_v5 = vrot.slane %v8257_v45, 7  ;;  %v833_v39 = vrot.slane %v8293_v32, 7  ;;  %v832_v14 = vrot.slane %v8292_v31, 7 }
 0x197   : > { %13546 = vst [vmem:[#allocation56_spill] sm:$0xff] %v9495_v43 }
 0x198   : > { %v943_v63 = vsel %vm817_vm2, %v842_v52, 0.0  ;;  %v843_v51 = vsel %vm817_vm2, %v841_v5, %v842_v52  ;;  %v926_v54 = vsel %vm817_vm2, 0.0, %v841_v5  ;;  %v9469_v24 = vsel %vm817_vm2, %v833_v39, 0.0 }
 0x199   : > { %v9466_v1 = vpack.c.bf16 %v843_v51, %v926_v54  ;;  %v1045_v7 = vrot.slane %v943_v63, 1  ;;  %v1042_v55 = vrot.slane %v926_v54, 1  ;;  %v1043_v45 = vrot.slane %v843_v51, 1 }
 0x19a   : > { %v685_v32 = vpop.f32.mrf.mxu0  ;;  %v9473_v31 = vsel %vm817_vm2, %v832_v14, %v833_v39  ;;  %v9476_v35 = vsel %vm817_vm2, 0.0, %v832_v14  ;;  %v1443_v47 = vrot.slane %v9469_v24, 2  ;;  %v1455_v50 = vrot.slane %v926_v54, 2 }
 0x19b   : > { %v9479_v52 = vadd.f32 %v9126_v27, %v685_v32  ;;  %v8266_v5 = vpop.permute.xlu2 %8265  ;;  %v1440_v36 = vrot.slane %v9476_v35, 2  ;;  %v1441_v38 = vrot.slane %v9473_v31, 2  ;;  %v1456_v39 = vrot.slane %v843_v51, 2 }
 0x19c   : > { %v8268_v30 = vunpack.i.h.bf16 %v8266_v5  ;;  %v8267_v15 = vunpack.i.l.bf16 %v8266_v5  ;;  %v1044_v48 = vsel %vm1001_vm3, %v1042_v55, %v1043_v45  ;;  %v1046_v14 = vsel %vm1001_vm3, %v1043_v45, %v1045_v7 }
 0x19d   : > { %13542 = vst [vmem:[#allocation53_spill] sm:$0xff] %v9479_v52  ;;  %v13335_v28 = vmax.f32 %v9479_v52, 0.0  ;;  %v9487_v32 = vpack.c.bf16 %v1046_v14, %v1044_v48  ;;  %v1458_v2 = vrot.slane %v943_v63, 2  ;;  %v1442_v54 = vsel %vm1414_vm5, %v1440_v36, %v1441_v38 }
 0x19e   : > { %v848_v25 = vrot.slane %v8268_v30, 7  ;;  %v847_v27 = vrot.slane %v8267_v15, 7  ;;  %v1444_v51 = vsel %vm1414_vm5, %v1441_v38, %v1443_v47  ;;  %v1457_v7 = vsel %vm1414_vm5, %v1455_v50, %v1456_v39 }
 0x19f   : > { %13543 = vst [vmem:[#allocation54_spill] sm:$0xff] %v9487_v32  ;;  %v9493_v4 = vpack.i.bf16 %v13335_v28, %v13544_v12  ;;  %7594 = vmatmul.msk.bf16.gmra.mxu2 %vm1132_vm4, %v9487_v32  ;;  %v9512_v61 = vpack.c.bf16 %v1444_v51, %v1442_v54  ;;  %v1459_v14 = vsel %vm1414_vm5, %v1456_v39, %v1458_v2 }
 0x1a0   : > { %v9500_v55 = vsel %vm817_vm2, %v848_v25, 0.0  ;;  %v9503_v30 = vsel %vm817_vm2, %v847_v27, %v848_v25  ;;  %v9506_v48 = vsel %vm817_vm2, 0.0, %v847_v27  ;;  %v9524_v52 = vpack.c.bf16 %v1459_v14, %v1457_v7 }
 0x1a1   : > { %13545 = vst [vmem:[#allocation55_spill] sm:$0xff] %v9493_v4  ;;  %8320 = vrot.lane.b32.xlu0 %v9493_v4, %s8955_s30  ;;  %v9516_v36 = vpack.c.bf16 %v9503_v30, %v9506_v48  ;;  %v1468_v38 = vrot.slane %v9500_v55, 2  ;;  %v1465_v63 = vrot.slane %v9506_v48, 2  ;;  %v1466_v12 = vrot.slane %v9503_v30, 2  ;;  %s7413_s30 = scalar_lea.sflag [#allocation3], %s377_s16 }
 0x1a2   : > { %13547 = vst [vmem:[#allocation57_spill] sm:$0xff] %v9512_v61  ;;  %v1055_v58 = vrot.slane %v9500_v55, 1  ;;  %v1053_v42 = vrot.slane %v9503_v30, 1 }
 0x1a3   : > { %v8261_v25 = vpop.permute.xlu1 %8260  ;;  %v8271_v6 = vpop.permute.xlu2 %8270  ;;  %v1467_v27 = vsel %vm1414_vm5, %v1465_v63, %v1466_v12  ;;  %v1469_v41 = vsel %vm1414_vm5, %v1466_v12, %v1468_v38 }
 0x1a4   : > { %v8263_v45 = vunpack.i.h.bf16 %v8261_v25  ;;  %v8262_v15 = vunpack.i.l.bf16 %v8261_v25  ;;  %v8273_v5 = vunpack.i.h.bf16 %v8271_v6  ;;  %v8272_v47 = vunpack.i.l.bf16 %v8271_v6 }
 0x1a6   : > { %v845_v54 = vrot.slane %v8263_v45, 7  ;;  %v844_v51 = vrot.slane %v8262_v15, 7  ;;  %v821_v28 = vrot.slane %v8273_v5, 7  ;;  %v820_v8 = vrot.slane %v8272_v47, 7 }
 0x1a7   : > { %v9552_v47 = vpack.c.bf16 %v1469_v41, %v1467_v27 }
 0x1a8   : > { %v9528_v18 = vsel %vm817_vm2, %v845_v54, 0.0  ;;  %v9531_v50 = vsel %vm817_vm2, %v844_v51, %v845_v54  ;;  %v9534_v25 = vsel %vm817_vm2, 0.0, %v844_v51  ;;  %v936_v2 = vsel %vm817_vm2, %v821_v28, 0.0 }
 0x1a9   : > { %v9539_v39 = vpack.c.bf16 %v9531_v50, %v9534_v25  ;;  %8335 = vrot.lane.b32.xlu0 %v9179_v49, %s13418_s25  ;;  %v1050_v38 = vrot.slane %v9528_v18, 1  ;;  %v1047_v63 = vrot.slane %v9534_v25, 1  ;;  %v1048_v12 = vrot.slane %v9531_v50, 1 }
 0x1aa   : > { %v1010_v6 = vrot.slane %v936_v2, 1  ;;  %v9547_v7 = vsel %vm817_vm2, %v820_v8, %v821_v28  ;;  %v9550_v45 = vsel %vm817_vm2, 0.0, %v820_v8 }
 0x1ab   : > { %v8281_v15 = vpop.permute.xlu1 %8280  ;;  %v8286_v5 = vpop.permute.xlu2 %8285  ;;  %v1007_v14 = vrot.slane %v9550_v45, 1  ;;  %v1008_v54 = vrot.slane %v9547_v7, 1  ;;  %v1420_v51 = vrot.slane %v9550_v45, 2  ;;  %v1421_v16 = vrot.slane %v9547_v7, 2 }
 0x1ac   : > { %v8283_v49 = vunpack.i.h.bf16 %v8281_v15  ;;  %v8282_v11 = vunpack.i.l.bf16 %v8281_v15  ;;  %v8288_v4 = vunpack.i.h.bf16 %v8286_v5  ;;  %v8287_v28 = vunpack.i.l.bf16 %v8286_v5 }
 0x1ad   : > { %v1009_v22 = vsel %vm1001_vm3, %v1007_v14, %v1008_v54  ;;  %v1011_v8 = vsel %vm1001_vm3, %v1008_v54, %v1010_v6  ;;  %v1049_v0 = vsel %vm1001_vm3, %v1047_v63, %v1048_v12  ;;  %v1051_v41 = vsel %vm1001_vm3, %v1048_v12, %v1050_v38 }
 0x1ae   : > { %v827_v27 = vrot.slane %v8283_v49, 7  ;;  %v826_v13 = vrot.slane %v8282_v11, 7  ;;  %v830_v62 = vrot.slane %v8288_v4, 7  ;;  %v829_v20 = vrot.slane %v8287_v28, 7 }
 0x1af   : > { %v9562_v17 = vpack.c.bf16 %v1011_v8, %v1009_v22  ;;  %v9564_v3 = vpack.c.bf16 %v1051_v41, %v1049_v0  ;;  %v1422_v15 = vsel %vm1414_vm5, %v1420_v51, %v1421_v16  ;;  %v1015_v11 = vrot.slane %v9439_v40, 1 }
 0x1b0   : > { %v9568_v5 = vsel %vm817_vm2, %v827_v27, 0.0  ;;  %v9571_v14 = vsel %vm817_vm2, %v826_v13, %v827_v27  ;;  %v9574_v63 = vsel %vm817_vm2, 0.0, %v826_v13  ;;  %v9581_v4 = vsel %vm817_vm2, %v830_v62, 0.0  ;;  %v7652_v13 = vld [vmem:[%s13270_s3 + $0x10] sm:$0xf] }
 0x1b1   : > { %13548 = vst [vmem:[#allocation58_spill] sm:$0xff] %v9564_v3  ;;  %v9578_v49 = vpack.c.bf16 %v9571_v14, %v9574_v63  ;;  %7587 = vmatmul.msk.bf16.vlgmr.msra.gmra.mxu1 %vm1132_vm4, %v9562_v17  ;;  %7595 = vmatmul.msk.bf16.gmra.mxu2 %vm1132_vm4, %v9564_v3  ;;  %v1423_v0 = vrot.slane %v936_v2, 2  ;;  %v1433_v22 = vrot.slane %v9568_v5, 2  ;;  %v1430_v38 = vrot.slane %v9574_v63, 2 }
 0x1b2   : > { %v1431_v12 = vrot.slane %v9571_v14, 2  ;;  %v9595_v6 = vsel %vm817_vm2, %v829_v20, %v830_v62  ;;  %v9598_v54 = vsel %vm817_vm2, 0.0, %v829_v20  ;;  %v1460_v40 = vrot.slane %v9534_v25, 2 }
 0x1b3   : > { %7688 = vmatmul.msk.bf16.gmra.mxu0 %vm1132_vm4, %v9578_v49  ;;  %v1461_v2 = vrot.slane %v9531_v50, 2  ;;  %v1438_v51 = vrot.slane %v9581_v4, 2  ;;  %v1435_v28 = vrot.slane %v9598_v54, 2  ;;  %v1012_v8 = vrot.slane %v9445_v19, 1 }
 0x1b4   : > { %v1463_v41 = vrot.slane %v9528_v18, 2  ;;  %v1436_v62 = vrot.slane %v9595_v6, 2  ;;  %v1863_v20 = vsel %vm1181_vm1, %v7652_v13, 0  ;;  %v1013_v27 = vrot.slane %v9442_v26, 1 }
 0x1b5   : > { %v1052_v25 = vrot.slane %v9506_v48, 1  ;;  %1872 = vmatpush.bf16.msra.mxu2 %v1863_v20  ;;  %v1424_v50 = vsel %vm1414_vm5, %v1421_v16, %v1423_v0  ;;  %v1432_v19 = vsel %vm1414_vm5, %v1430_v38, %v1431_v12  ;;  %v1434_v18 = vsel %vm1414_vm5, %v1431_v12, %v1433_v22 }
 0x1b6   : > { %v9615_v33 = vpack.c.bf16 %v1424_v50, %v1422_v15  ;;  %v9619_v59 = vpack.c.bf16 %v1434_v18, %v1432_v19  ;;  %v1437_v13 = vsel %vm1414_vm5, %v1435_v28, %v1436_v62  ;;  %v1439_v26 = vsel %vm1414_vm5, %v1436_v62, %v1438_v51 }
 0x1b7   : > { %v1462_v55 = vsel %vm1414_vm5, %v1460_v40, %v1461_v2  ;;  %v9624_v48 = vpack.c.bf16 %v1439_v26, %v1437_v13  ;;  %v1464_v16 = vsel %vm1414_vm5, %v1461_v2, %v1463_v41  ;;  %v1014_v38 = vsel %vm1001_vm3, %v1012_v8, %v1013_v27 }
 0x1b8   : > { %13549 = vst [vmem:[#allocation59_spill] sm:$0xff] %v9619_v59  ;;  %v9627_v30 = vpack.c.bf16 %v1464_v16, %v1462_v55  ;;  %v1016_v22 = vsel %vm1001_vm3, %v1013_v27, %v1015_v11  ;;  %v1054_v12 = vsel %vm1001_vm3, %v1052_v25, %v1053_v42  ;;  %v1056_v28 = vsel %vm1001_vm3, %v1053_v42, %v1055_v58 }
 0x1b9   : > { %13550 = vst [vmem:[#allocation60_spill] sm:$0xff] %v9624_v48  ;;  %v9633_v40 = vpack.c.bf16 %v1016_v22, %v1014_v38  ;;  %v9635_v50 = vpack.c.bf16 %v1056_v28, %v1054_v12  ;;  %v9649_v11 = vpack.c.bf16 %v9595_v6, %v9598_v54  ;;  %v1020_v18 = vrot.slane %v9568_v5, 1 }
 0x1ba   : > { %v1017_v13 = vrot.slane %v9574_v63, 1 }
 0x1bb   : > { %v8301_v0 = vpop.permute.xlu2 %8300  ;;  %13551 = vst [vmem:[#allocation61_spill] sm:$0xff] %v9635_v50 }
 0x1bc   : > { %v8303_v15 = vunpack.i.h.bf16 %v8301_v0  ;;  %v8302_v20 = vunpack.i.l.bf16 %v8301_v0  ;;  %v1018_v0 = vrot.slane %v9571_v14, 1  ;;  %v9684_v14 = vpack.c.bf16 %v9324_v29, %v9329_v37 }
 0x1be   : > { %v854_v51 = vrot.slane %v8303_v15, 7  ;;  %v853_v62 = vrot.slane %v8302_v20, 7  ;;  %v1019_v12 = vsel %vm1001_vm3, %v1017_v13, %v1018_v0  ;;  %v1021_v28 = vsel %vm1001_vm3, %v1018_v0, %v1020_v18  ;;  %13553 = vst [vmem:[#allocation63_spill] sm:$0xff] %v9684_v14 }
 0x1bf   : > { %v1025_v0 = vrot.slane %v9581_v4, 1 }
 0x1c0   : > { %v9638_v2 = vsel %vm817_vm2, %v853_v62, %v854_v51  ;;  %v9641_v41 = vsel %vm817_vm2, 0.0, %v853_v62 }
 0x1c1   : > { %v9645_v8 = vpack.c.bf16 %v9638_v2, %v9641_v41  ;;  %7588 = vmatmul.msk.bf16.gmra.mxu1 %vm1132_vm4, %v9633_v40  ;;  %7596 = vmatmul.msk.bf16.gmra.mxu2 %vm1132_vm4, %v9635_v50  ;;  %v1063_v18 = vrot.slane %v9638_v2, 1  ;;  %v1476_v3 = vrot.slane %v9638_v2, 2 }
 0x1c3   : > { %v8296_v42 = vpop.permute.xlu1 %8295  ;;  %7689 = vmatmul.msk.bf16.gmra.mxu0 %vm1132_vm4, %v9649_v11 }
 0x1c4   : > { %v8298_v58 = vunpack.i.h.bf16 %v8296_v42  ;;  %v8297_v27 = vunpack.i.l.bf16 %v8296_v42  ;;  %v9688_v42 = vpack.c.bf16 %v1021_v28, %v1019_v12 }
 0x1c6   : > { %v851_v25 = vrot.slane %v8298_v58, 7  ;;  %v850_v19 = vrot.slane %v8297_v27, 7  ;;  %v9691_v58 = vsel %vm817_vm2, %v854_v51, 0.0  ;;  %v9695_v27 = vpack.c.bf16 %v9473_v31, %v9476_v35 }
 0x1c7   : > { %v1478_v50 = vrot.slane %v9691_v58, 2 }
 0x1c8   : > { %v9660_v26 = vsel %vm817_vm2, %v851_v25, 0.0  ;;  %v9663_v55 = vsel %vm817_vm2, %v850_v19, %v851_v25  ;;  %v9666_v16 = vsel %vm817_vm2, 0.0, %v850_v19  ;;  %v1065_v25 = vrot.slane %v9691_v58, 1 }
 0x1c9   : > { %v1060_v15 = vrot.slane %v9660_v26, 1  ;;  %v9672_v20 = vpack.c.bf16 %v9663_v55, %v9666_v16  ;;  %v1057_v5 = vrot.slane %v9666_v16, 1  ;;  %v1058_v63 = vrot.slane %v9663_v55, 1 }
 0x1ca   : > { %v1062_v19 = vrot.slane %v9641_v41, 1  ;;  %v1066_v13 = vsel %vm1001_vm3, %v1063_v18, %v1065_v25  ;;  %v1479_v58 = vsel %vm1414_vm5, %v1476_v3, %v1478_v50 }
 0x1cb   : > { %v1059_v38 = vsel %vm1001_vm3, %v1057_v5, %v1058_v63  ;;  %v1061_v22 = vsel %vm1001_vm3, %v1058_v63, %v1060_v15  ;;  %v1022_v15 = vrot.slane %v9598_v54, 1  ;;  %v1023_v5 = vrot.slane %v9595_v6, 1  ;;  %v7635_v63 = vld [vmem:[%s13270_s3 + $0xc] sm:$0xf] }
 0x1cc   : > { %v9680_v62 = vpack.c.bf16 %v1061_v22, %v1059_v38  ;;  %v1064_v51 = vsel %vm1001_vm3, %v1062_v19, %v1063_v18  ;;  %v1724_v22 = vsel %vm1181_vm1, %v7635_v63, 0  ;;  %v953_v6 = vpack.c.bf16 %v9547_v7, %v9550_v45 }
 0x1cd   : > { %v9714_v38 = vpack.c.bf16 %v1066_v13, %v1064_v51  ;;  %1733 = vmatpush.bf16.msrb.mxu1 %v1724_v22  ;;  %v1024_v12 = vsel %vm1001_vm3, %v1022_v15, %v1023_v5  ;;  %v1026_v28 = vsel %vm1001_vm3, %v1023_v5, %v1025_v0  ;;  %v1030_v13 = vrot.slane %v9469_v24, 1 }
 0x1ce   : > { %13552 = vst [vmem:[#allocation62_spill] sm:$0xff] %v9680_v62  ;;  %7597 = vmatmul.msk.bf16.vlgmr.msra.gmra.mxu3 %vm1132_vm4, %v9680_v62  ;;  %v9721_v4 = vpack.c.bf16 %v1026_v28, %v1024_v12  ;;  %v1027_v0 = vrot.slane %v9476_v35, 1  ;;  %v1028_v5 = vrot.slane %v9473_v31, 1 }
 0x1cf   : > { %13554 = vst [vmem:[#allocation64_spill] sm:$0xff] %v9714_v38 }
 0x1d0   : > { %v1031_v31 = vsel %vm1001_vm3, %v1028_v5, %v1030_v13 }
 0x1d1   : > { %7589 = vmatmul.msk.bf16.gmra.mxu1 %vm1132_vm4, %v9688_v42  ;;  %7602 = vmatmul.msk.bf16.vlgmr.msrb.gmra.mxu2 %vm1132_vm4, %v9684_v14 }
 0x1d3   : > { %7690 = vmatmul.msk.bf16.gmra.mxu0 %vm1132_vm4, %v9695_v27 }
 0x1de   : > { %7598 = vmatmul.msk.bf16.gmra.mxu3 %vm1132_vm4, %v9714_v38 }
 0x1e1   : > { %7590 = vmatmul.msk.bf16.gmra.mxu1 %vm1132_vm4, %v9721_v4  ;;  %7603 = vmatmul.msk.bf16.gmra.mxu2 %vm1132_vm4, %v953_v6 }
 0x1e3   : > { %v8306_v54 = vpop.permute.xlu0 %8305  ;;  %7691 = vmatmul.msk.bf16.gmra.mxu0 %vm1132_vm4, %v9382_v21 }
 0x1e4   : > { %v8308_v25 = vunpack.i.h.bf16 %v8306_v54  ;;  %v8307_v19 = vunpack.i.l.bf16 %v8306_v54 }
 0x1e6   : > { %v857_v18 = vrot.slane %v8308_v25, 7  ;;  %v856_v51 = vrot.slane %v8307_v19, 7 }
 0x1e8   : > { %v9733_v15 = vsel %vm817_vm2, %v857_v18, 0.0  ;;  %v9736_v7 = vsel %vm817_vm2, %v856_v51, %v857_v18  ;;  %v9739_v45 = vsel %vm817_vm2, 0.0, %v856_v51  ;;  %v1029_v18 = vsel %vm1001_vm3, %v1027_v0, %v1028_v5 }
 0x1e9   : > { %v1070_v63 = vrot.slane %v9733_v15, 1  ;;  %v9745_v22 = vpack.c.bf16 %v9736_v7, %v9739_v45  ;;  %v1067_v24 = vrot.slane %v9739_v45, 1  ;;  %v1068_v35 = vrot.slane %v9736_v7, 1 }
 0x1ea   : > { %v9757_v56 = vpack.c.bf16 %v1031_v31, %v1029_v18 }
 0x1eb   : > { %v8316_v12 = vpop.permute.xlu2 %8315  ;;  %v1069_v28 = vsel %vm1001_vm3, %v1067_v24, %v1068_v35  ;;  %v1071_v54 = vsel %vm1001_vm3, %v1068_v35, %v1070_v63 }
 0x1ec   : > { %v8318_v25 = vunpack.i.h.bf16 %v8316_v12  ;;  %v8317_v19 = vunpack.i.l.bf16 %v8316_v12  ;;  %v9753_v51 = vpack.c.bf16 %v1071_v54, %v1069_v28 }
 0x1ee   : > { %13555 = vst [vmem:[#allocation65_spill] sm:$0xff] %v9753_v51  ;;  %v863_v44 = vrot.slane %v8318_v25, 7  ;;  %v862_v9 = vrot.slane %v8317_v19, 7  ;;  %7599 = vmatmul.msk.bf16.gmra.mxu3 %vm1132_vm4, %v9753_v51 }
 0x1f0   : > { %v9760_v38 = vsel %vm817_vm2, %v862_v9, %v863_v44  ;;  %v9763_v63 = vsel %vm817_vm2, 0.0, %v862_v9  ;;  %v9802_v51 = vsel %vm817_vm2, %v863_v44, 0.0 }
 0x1f1   : > { %v9767_v0 = vpack.c.bf16 %v9760_v38, %v9763_v63  ;;  %7591 = vmatmul.msk.bf16.gmra.mxu1 %vm1132_vm4, %v9757_v56  ;;  %7604 = vmatmul.msk.bf16.gmra.mxu2 %vm1132_vm4, %v9449_v57 }
 0x1f3   : > { %v8311_v13 = vpop.permute.xlu1 %8310  ;;  %7692 = vmatmul.msk.bf16.gmra.mxu0 %vm1132_vm4, %v9413_v46 }
 0x1f4   : > { %v8313_v5 = vunpack.i.h.bf16 %v8311_v13  ;;  %v8312_v24 = vunpack.i.l.bf16 %v8311_v13  ;;  %v7618_v13 = vld [vmem:[%s13270_s3 + $0x8] sm:$0xf] }
 0x1f6   : > { %v860_v35 = vrot.slane %v8313_v5, 7  ;;  %v859_v12 = vrot.slane %v8312_v24, 7  ;;  %v1594_v5 = vsel %vm1181_vm1, %v7618_v13, 0 }
 0x1f7   : > { %1603 = vmatpush.bf16.msrb.mxu3 %v1594_v5 }
 0x1f8   : > { %v9776_v9 = vsel %vm817_vm2, %v860_v35, 0.0  ;;  %v9779_v28 = vsel %vm817_vm2, %v859_v12, %v860_v35  ;;  %v9782_v54 = vsel %vm817_vm2, 0.0, %v859_v12 }
 0x1f9   : > { %v1075_v25 = vrot.slane %v9776_v9, 1  ;;  %v9787_v19 = vpack.c.bf16 %v9779_v28, %v9782_v54  ;;  %v1072_v18 = vrot.slane %v9782_v54, 1  ;;  %v1073_v31 = vrot.slane %v9779_v28, 1 }
 0x1fb   : > { %v1074_v24 = vsel %vm1001_vm3, %v1072_v18, %v1073_v31  ;;  %v1076_v35 = vsel %vm1001_vm3, %v1073_v31, %v1075_v25  ;;  %v1080_v18 = vrot.slane %v9802_v51, 1  ;;  %v1077_v25 = vrot.slane %v9763_v63, 1 }
 0x1fc   : > { %v9797_v12 = vpack.c.bf16 %v1076_v35, %v1074_v24  ;;  %v1078_v31 = vrot.slane %v9760_v38, 1  ;;  %v1415_v35 = vrot.slane %v9329_v37, 2 }
 0x1fe   : > { %13556 = vst [vmem:[#allocation66_spill] sm:$0xff] %v9797_v12  ;;  %7600 = vmatmul.msk.bf16.gmra.mxu3 %vm1132_vm4, %v9797_v12  ;;  %v1079_v13 = vsel %vm1001_vm3, %v1077_v25, %v1078_v31  ;;  %v1081_v44 = vsel %vm1001_vm3, %v1078_v31, %v1080_v18  ;;  %v1416_v18 = vrot.slane %v9324_v29, 2  ;;  %v1418_v25 = vrot.slane %v9333_v60, 2 }
 0x1ff   : > { %v9818_v24 = vpack.c.bf16 %v1081_v44, %v1079_v13 }
 0x200   : > { %v1417_v31 = vsel %vm1414_vm5, %v1415_v35, %v1416_v18  ;;  %v1419_v13 = vsel %vm1414_vm5, %v1416_v18, %v1418_v25  ;;  %v9861_v35 = vpop.f32.mrf.mxu0 }
 0x201   : > { %7605 = vmatmul.msk.bf16.gmra.mxu2 %vm1132_vm4, %v9578_v49  ;;  %7636 = vmatmul.msk.bf16.vlgmr.msrb.gmra.mxu1 %vm1132_vm4, %v953_v6  ;;  %13557 = vst [vmem:[#allocation67_spill] sm:$0xff] %v9818_v24 }
 0x202   : > { %v9807_v62 = vpop.f32.mrf.mxu2 }
 0x203   : > { %7693 = vmatmul.msk.bf16.gmra.mxu0 %vm1132_vm4, %v9466_v1 }
 0x20a   : > { %v9816_v5 = vpop.f32.mrf.mxu2 }
 0x20e   : > { %7601 = vmatmul.msk.bf16.gmra.mxu3 %vm1132_vm4, %v9818_v24  ;;  %v9837_v24 = vpack.c.bf16 %v1419_v13, %v1417_v31  ;;  %v9875_v31 = vpop.f32.mrf.mxu0 }
 0x210   : > { %13558 = vst [vmem:[#allocation68_spill] sm:$0xff] %v9837_v24 }
 0x211   : > { %7606 = vmatmul.msk.bf16.gmra.mxu2 %vm1132_vm4, %v9649_v11  ;;  %7637 = vmatmul.msk.bf16.gmra.mxu1 %vm1132_vm4, %v9449_v57 }
 0x212   : > { %v9826_v6 = vpop.f32.mrf.mxu2 }
 0x213   : > { %7694 = vmatmul.msk.bf16.gmra.mxu0 %vm1132_vm4, %v9539_v39 }
 0x216   : > { %v9888_v32 = vpop.f32.mrf.mxu0 }
 0x217   : > { %13563 = vst [vmem:[#allocation73_spill] sm:$0xff] %v9888_v32 }
 0x21a   : > { %v9835_v44 = vpop.f32.mrf.mxu2 }
 0x21e   : > { %7619 = vmatmul.msk.bf16.vlgmr.msrb.gmra.mxu3 %vm1132_vm4, %v9837_v24 }
 0x221   : > { %7607 = vmatmul.msk.bf16.gmra.mxu2 %vm1132_vm4, %v9695_v27  ;;  %7638 = vmatmul.msk.bf16.gmra.mxu1 %vm1132_vm4, %v9578_v49 }
 0x222   : > { %v9845_v29 = vpop.f32.mrf.mxu2 }
 0x223   : > { %7695 = vmatmul.msk.bf16.gmra.mxu0 %vm1132_vm4, %v9516_v36 }
 0x22a   : > { %v9849_v37 = vpop.f32.mrf.mxu2 }
 0x22e   : > { %v1199_v60 = vpop.f32.mrf.mxu1  ;;  %7620 = vmatmul.msk.bf16.gmra.mxu3 %vm1132_vm4, %v9615_v33 }
 0x231   : > { %7608 = vmatmul.msk.bf16.gmra.mxu2 %vm1132_vm4, %v9382_v21  ;;  %7639 = vmatmul.msk.bf16.gmra.mxu1 %vm1132_vm4, %v9649_v11 }
 0x233   : > { %7696 = vmatmul.msk.bf16.gmra.mxu0 %vm1132_vm4, %v9672_v20 }
 0x234   : > { %v9859_v57 = vpop.f32.mrf.mxu2 }
 0x235   : > { %13559 = vst [vmem:[#allocation69_spill] sm:$0xff] %v9859_v57 }
 0x236   : > { %v1201_v49 = vpop.f32.mrf.mxu1 }
 0x23c   : > { %v9863_v18 = vpop.f32.mrf.mxu2 }
 0x23d   : > { %13560 = vst [vmem:[#allocation70_spill] sm:$0xff] %v9863_v18  ;;  %v1470_v18 = vrot.slane %v9666_v16, 2 }
 0x23e   : > { %v1204_v25 = vpop.f32.mrf.mxu1  ;;  %7621 = vmatmul.msk.bf16.gmra.mxu3 %vm1132_vm4, %v9495_v43 }
 0x241   : > { %7609 = vmatmul.msk.bf16.gmra.mxu2 %vm1132_vm4, %v9413_v46  ;;  %7640 = vmatmul.msk.bf16.gmra.mxu1 %vm1132_vm4, %v9695_v27  ;;  %v1475_v27 = vrot.slane %v9641_v41, 2 }
 0x243   : > { %7697 = vmatmul.msk.bf16.gmra.mxu0 %vm1132_vm4, %v9645_v8 }
 0x244   : > { %v9873_v11 = vpop.f32.mrf.mxu2 }
 0x245   : > { %13561 = vst [vmem:[#allocation71_spill] sm:$0xff] %v9873_v11  ;;  %v1477_v11 = vsel %vm1414_vm5, %v1475_v27, %v1476_v3 }
 0x246   : > { %v9877_v13 = vpop.f32.mrf.mxu1  ;;  %v9902_v2 = vpack.c.bf16 %v1479_v58, %v1477_v11 }
 0x24c   : > { %v9879_v24 = vpop.f32.mrf.mxu2 }
 0x24d   : > { %13562 = vst [vmem:[#allocation72_spill] sm:$0xff] %v9879_v24 }
 0x24e   : > { %v9881_v12 = vpop.f32.mrf.mxu1  ;;  %7622 = vmatmul.msk.bf16.gmra.mxu3 %vm1132_vm4, %v9619_v59  ;;  %v1473_v59 = vrot.slane %v9660_v26, 2 }
 0x251   : > { %7610 = vmatmul.msk.bf16.gmra.mxu2 %vm1132_vm4, %v9466_v1  ;;  %7641 = vmatmul.msk.bf16.gmra.mxu1 %vm1132_vm4, %v9382_v21  ;;  %v9894_v24 = vpop.f32.mrf.mxu3  ;;  %v1471_v21 = vrot.slane %v9663_v55, 2 }
 0x252   : > { %13564 = vst [vmem:[#allocation74_spill] sm:$0xff] %v9894_v24  ;;  %v9909_v24 = vpop.f32.mrf.mxu0 }
 0x253   : > { %7698 = vmatmul.msk.bf16.gmra.mxu0 %vm1132_vm4, %v9745_v22  ;;  %13565 = vst [vmem:[#allocation75_spill] sm:$0xff] %v9909_v24  ;;  %v1472_v27 = vsel %vm1414_vm5, %v1470_v18, %v1471_v21  ;;  %v1474_v3 = vsel %vm1414_vm5, %v1471_v21, %v1473_v59 }
 0x254   : > { %v9900_v41 = vpop.f32.mrf.mxu2  ;;  %v9917_v11 = vpack.c.bf16 %v1474_v3, %v1472_v27 }
 0x256   : > { %v9904_v32 = vpop.f32.mrf.mxu1 }
 0x259   : > { %v9911_v10 = vpop.f32.mrf.mxu3 }
 0x25a   : > { %13566 = vst [vmem:[#allocation76_spill] sm:$0xff] %v9911_v10  ;;  %v9923_v26 = vpop.f32.mrf.mxu0  ;;  %v1480_v10 = vrot.slane %v9739_v45, 2 }
 0x25b   : > { %13567 = vst [vmem:[#allocation77_spill] sm:$0xff] %v9923_v26 }
 0x25c   : > { %v9915_v50 = vpop.f32.mrf.mxu2 }
 0x25e   : > { %v9919_v58 = vpop.f32.mrf.mxu1  ;;  %7623 = vmatmul.msk.bf16.gmra.mxu3 %vm1132_vm4, %v9624_v48 }
 0x261   : > { %7611 = vmatmul.msk.bf16.gmra.mxu2 %vm1132_vm4, %v9539_v39  ;;  %7642 = vmatmul.msk.bf16.gmra.mxu1 %vm1132_vm4, %v9413_v46  ;;  %v9929_v55 = vpop.f32.mrf.mxu3 }
 0x262   : > { %13568 = vst [vmem:[#allocation78_spill] sm:$0xff] %v9929_v55  ;;  %v9939_v27 = vpop.f32.mrf.mxu0 }
 0x263   : > { %7699 = vmatmul.msk.bf16.gmra.mxu0 %vm1132_vm4, %v9787_v19  ;;  %13570 = vst [vmem:[#allocation80_spill] sm:$0xff] %v9939_v27 }
 0x264   : > { %v1339_v59 = vpop.f32.mrf.mxu2 }
 0x265   : > { %v9933_v16 = vadd.f32 %v1339_v59, %v1199_v60  ;;  %v8321_v59 = vpop.permute.xlu0 %8320 }
 0x266   : > { %v9935_v18 = vpop.f32.mrf.mxu1  ;;  %v8323_v27 = vunpack.i.h.bf16 %v8321_v59 }
 0x268   : > { %v9966_v48 = vrot.slane %v8323_v27, 7  ;;  %v1488_v27 = vrot.slane %v9776_v9, 2 }
 0x269   : > { %v9937_v21 = vpop.f32.mrf.mxu3 }
 0x26a   : > { %13569 = vst [vmem:[#allocation79_spill] sm:$0xff] %v9937_v21  ;;  %v8322_v21 = vunpack.i.l.bf16 %v8321_v59 }
 0x26b   : > { %13573 = vst [vmem:[#allocation83_spill] sm:$0xff] %v9966_v48 }
 0x26c   : > { %v1341_v3 = vpop.f32.mrf.mxu2  ;;  %v865_v57 = vrot.slane %v8322_v21, 7 }
 0x26d   : > { %v9941_v26 = vadd.f32 %v1341_v3, %v1201_v49  ;;  %v9955_v49 = vpop.f32.mrf.mxu0 }
 0x26e   : > { %v9943_v24 = vpop.f32.mrf.mxu1  ;;  %7624 = vmatmul.msk.bf16.gmra.mxu3 %vm1132_vm4, %v9512_v61  ;;  %13572 = vst [vmem:[#allocation82_spill] sm:$0xff] %v9955_v49  ;;  %v1483_v61 = vrot.slane %v9733_v15, 2  ;;  %v9977_v15 = vsel %vm817_vm2, %v865_v57, %v9966_v48 }
 0x26f   : > { %13574 = vst [vmem:[#allocation84_spill] sm:$0xff] %v9977_v15 }
 0x271   : > { %7612 = vmatmul.msk.bf16.gmra.mxu2 %vm1132_vm4, %v9516_v36  ;;  %7643 = vmatmul.msk.bf16.gmra.mxu1 %vm1132_vm4, %v9466_v1  ;;  %v9951_v46 = vpop.f32.mrf.mxu3  ;;  %v1481_v1 = vrot.slane %v9736_v7, 2  ;;  %v9980_v7 = vsel %vm817_vm2, 0.0, %v865_v57 }
 0x272   : > { %13571 = vst [vmem:[#allocation81_spill] sm:$0xff] %v9951_v46 }
 0x273   : > { %7700 = vmatmul.msk.bf16.gmra.mxu0 %vm1132_vm4, %v9767_v0  ;;  %v1482_v43 = vsel %vm1414_vm5, %v1480_v10, %v1481_v1  ;;  %13575 = vst [vmem:[#allocation85_spill] sm:$0xff] %v9980_v7 }
 0x274   : > { %v1344_v60 = vpop.f32.mrf.mxu2 }
 0x275   : > { %v9957_v3 = vadd.f32 %v1344_v60, %v1204_v25  ;;  %v1484_v25 = vsel %vm1414_vm5, %v1481_v1, %v1483_v61  ;;  %v9984_v10 = vpop.f32.mrf.mxu0  ;;  %v1485_v1 = vrot.slane %v9782_v54, 2 }
 0x276   : > { %v9959_v55 = vpop.f32.mrf.mxu1  ;;  %v9970_v49 = vpack.c.bf16 %v1484_v25, %v1482_v43  ;;  %13576 = vst [vmem:[#allocation86_spill] sm:$0xff] %v9984_v10  ;;  %v9988_v43 = vpack.c.bf16 %v9977_v15, %v9980_v7  ;;  %v1486_v25 = vrot.slane %v9779_v28, 2 }
 0x278   : > { %v1489_v15 = vsel %vm1414_vm5, %v1486_v25, %v1488_v27  ;;  %v1490_v27 = vrot.slane %v9763_v63, 2 }
 0x279   : > { %v9964_v46 = vpop.f32.mrf.mxu3 }
 0x27c   : > { %v1346_v60 = vpop.f32.mrf.mxu2 }
 0x27d   : > { %v9973_v59 = vadd.f32 %v1346_v60, %v9877_v13  ;;  %v10004_v60 = vpop.f32.mrf.mxu0 }
 0x27e   : > { %v1735_v45 = vpop.f32.mrf.mxu1  ;;  %7625 = vmatmul.msk.bf16.gmra.mxu3 %vm1132_vm4, %v9395_v53  ;;  %13577 = vst [vmem:[#allocation87_spill] sm:$0xff] %v10004_v60 }
 0x281   : > { %7613 = vmatmul.msk.bf16.gmra.mxu2 %vm1132_vm4, %v9672_v20  ;;  %7644 = vmatmul.msk.bf16.gmra.mxu1 %vm1132_vm4, %v9539_v39  ;;  %v9994_v61 = vpop.f32.mrf.mxu3  ;;  %v1487_v39 = vsel %vm1414_vm5, %v1485_v1, %v1486_v25  ;;  %v1491_v1 = vrot.slane %v9760_v38, 2 }
 0x282   : > { %v10010_v48 = vpack.c.bf16 %v1489_v15, %v1487_v39 }
 0x283   : > { %7701 = vmatmul.msk.bf16.gmra.mxu0 %vm1132_vm4, %v9988_v43 }
 0x284   : > { %v1349_v57 = vpop.f32.mrf.mxu2  ;;  %13578 = vst [vmem:[#allocation88_spill] sm:$0xff] %v10010_v48 }
 0x285   : > { %v9999_v13 = vadd.f32 %v1349_v57, %v9881_v12  ;;  %v10023_v28 = vpop.f32.mrf.mxu0 }
 0x286   : > { %v1737_v21 = vpop.f32.mrf.mxu1  ;;  %13579 = vst [vmem:[#allocation89_spill] sm:$0xff] %v10023_v28 }
 0x289   : > { %v10006_v10 = vpop.f32.mrf.mxu3 }
 0x28c   : > { %v1351_v7 = vpop.f32.mrf.mxu2 }
 0x28d   : > { %v10013_v12 = vadd.f32 %v1351_v7, %v9904_v32  ;;  %v1493_v7 = vrot.slane %v9802_v51, 2  ;;  %v1335_v51 = vadd.f32 %v9900_v41, %v9861_v35  ;;  %v1337_v41 = vadd.f32 %v9915_v50, %v9875_v31  ;;  %v7720_v50 = vld [vmem:[%s13270_s3 + $0x20] sm:$0xf] }
 0x28e   : > { %v1740_v57 = vpop.f32.mrf.mxu1  ;;  %7626 = vmatmul.msk.bf16.gmra.mxu3 %vm1132_vm4, %v9428_v34 }
 0x28f   : > { %v1494_v39 = vsel %vm1414_vm5, %v1491_v1, %v1493_v7 }
 0x291   : > { %7614 = vmatmul.msk.bf16.gmra.mxu2 %vm1132_vm4, %v9645_v8  ;;  %7645 = vmatmul.msk.bf16.gmra.mxu1 %vm1132_vm4, %v9516_v36  ;;  %v10021_v9 = vpop.f32.mrf.mxu3  ;;  %v1492_v36 = vsel %vm1414_vm5, %v1490_v27, %v1491_v1  ;;  %v7669_v27 = vld [vmem:[%s13270_s3 + $0x14] sm:$0xf] }
 0x292   : > { %v10037_v60 = vpack.c.bf16 %v1494_v39, %v1492_v36  ;;  %v2000_v35 = vsel %vm1181_vm1, %v7669_v27, 0 }
 0x293   : > { %7702 = vmatmul.msk.bf16.gmra.mxu0 %vm1132_vm4, %v9684_v14  ;;  %2009 = vmatpush.bf16.msra.mxu3 %v2000_v35 }
 0x294   : > { %v1354_v54 = vpop.f32.mrf.mxu2  ;;  %13580 = vst [vmem:[#allocation90_spill] sm:$0xff] %v10037_v60 }
 0x295   : > { %v10028_v32 = vadd.f32 %v1354_v54, %v9919_v58 }
 0x296   : > { %v1742_v15 = vpop.f32.mrf.mxu1 }
 0x299   : > { %v10033_v25 = vpop.f32.mrf.mxu3 }
 0x29c   : > { %v1356_v28 = vpop.f32.mrf.mxu2 }
 0x29d   : > { %v10040_v14 = vadd.f32 %v1356_v28, %v9935_v18 }
 0x29e   : > { %v1745_v58 = vpop.f32.mrf.mxu1  ;;  %7627 = vmatmul.msk.bf16.gmra.mxu3 %vm1132_vm4, %v9524_v52 }
 0x2a1   : > { %7615 = vmatmul.msk.bf16.gmra.mxu2 %vm1132_vm4, %v9745_v22  ;;  %7646 = vmatmul.msk.bf16.gmra.mxu1 %vm1132_vm4, %v9672_v20  ;;  %v1605_v38 = vpop.f32.mrf.mxu3 }
 0x2a2   : > { %v1685_v63 = vadd.f32 %v1605_v38, %v1335_v51 }
 0x2a4   : > { %v1359_v54 = vpop.f32.mrf.mxu2  ;;  %v10050_v7 = vadd.f32 %v1735_v45, %v1685_v63  ;;  %v7703_v63 = vld [vmem:[%s13270_s3 + $0x1c] sm:$0xf] }
 0x2a5   : > { %v10053_v18 = vadd.f32 %v1359_v54, %v9943_v24 }
 0x2a6   : > { %v1747_v28 = vpop.f32.mrf.mxu1 }
 0x2a9   : > { %v1607_v20 = vpop.f32.mrf.mxu3 }
 0x2aa   : > { %v1686_v1 = vadd.f32 %v1607_v20, %v1337_v41 }
 0x2ac   : > { %v1361_v36 = vpop.f32.mrf.mxu2  ;;  %v10061_v39 = vadd.f32 %v1737_v21, %v1686_v1 }
 0x2ad   : > { %v10064_v45 = vadd.f32 %v1361_v36, %v9959_v55  ;;  %v2378_v55 = vsel %vm1181_vm1, %v7720_v50, 0 }
 0x2ae   : > { %v1750_v24 = vpop.f32.mrf.mxu1  ;;  %7628 = vmatmul.msk.bf16.gmra.mxu3 %vm1132_vm4, %v9627_v30  ;;  %2387 = vmatpush.bf16.msrb.mxu2 %v2378_v55 }
 0x2b1   : > { %7616 = vmatmul.msk.bf16.gmra.mxu2 %vm1132_vm4, %v9787_v19  ;;  %7647 = vmatmul.msk.bf16.gmra.mxu1 %vm1132_vm4, %v9645_v8  ;;  %v1610_v31 = vpop.f32.mrf.mxu3  ;;  %v2252_v8 = vsel %vm1181_vm1, %v7703_v63, 0 }
 0x2b2   : > { %v1687_v21 = vadd.f32 %v1610_v31, %v9933_v16  ;;  %2261 = vmatpush.bf16.msra.mxu1 %v2252_v8 }
 0x2b4   : > { %v10077_v51 = vpop.f32.mrf.mxu2  ;;  %v10079_v38 = vadd.f32 %v1740_v57, %v1687_v21 }
 0x2b6   : > { %v1752_v54 = vpop.f32.mrf.mxu1 }
 0x2b9   : > { %v1612_v27 = vpop.f32.mrf.mxu3 }
 0x2ba   : > { %v1688_v35 = vadd.f32 %v1612_v27, %v9941_v26 }
 0x2bc   : > { %v10086_v41 = vpop.f32.mrf.mxu2  ;;  %v10088_v16 = vadd.f32 %v1742_v15, %v1688_v35 }
 0x2be   : > { %v1755_v20 = vpop.f32.mrf.mxu1  ;;  %7629 = vmatmul.msk.bf16.gmra.mxu3 %vm1132_vm4, %v9552_v47 }
 0x2c1   : > { %7617 = vmatmul.msk.bf16.gmra.mxu2 %vm1132_vm4, %v9767_v0  ;;  %7648 = vmatmul.msk.bf16.gmra.mxu1 %vm1132_vm4, %v9745_v22  ;;  %v1615_v57 = vpop.f32.mrf.mxu3 }
 0x2c2   : > { %v1689_v1 = vadd.f32 %v1615_v57, %v9957_v3 }
 0x2c4   : > { %v10097_v36 = vpop.f32.mrf.mxu2  ;;  %v10099_v26 = vadd.f32 %v1745_v58, %v1689_v1 }
 0x2c6   : > { %v1757_v31 = vpop.f32.mrf.mxu1 }
 0x2c9   : > { %v1617_v15 = vpop.f32.mrf.mxu3 }
 0x2ca   : > { %v1690_v50 = vadd.f32 %v1617_v15, %v9973_v59 }
 0x2cc   : > { %v10102_v21 = vpop.f32.mrf.mxu2  ;;  %v10104_v55 = vadd.f32 %v1747_v28, %v1690_v50 }
 0x2ce   : > { %v1760_v63 = vpop.f32.mrf.mxu1  ;;  %7630 = vmatmul.msk.bf16.gmra.mxu3 %vm1132_vm4, %v9917_v11 }
 0x2d1   : > { %7649 = vmatmul.msk.bf16.gmra.mxu1 %vm1132_vm4, %v9787_v19  ;;  %7653 = vmatmul.msk.bf16.vlgmr.msra.gmra.mxu2 %vm1132_vm4, %v9562_v17  ;;  %v1620_v22 = vpop.f32.mrf.mxu3 }
 0x2d2   : > { %v1691_v3 = vadd.f32 %v1620_v22, %v9999_v13 }
 0x2d4   : > { %v10113_v58 = vpop.f32.mrf.mxu2  ;;  %v10115_v59 = vadd.f32 %v1750_v24, %v1691_v3 }
 0x2d6   : > { %v1762_v8 = vpop.f32.mrf.mxu1 }
 0x2d9   : > { %v1622_v28 = vpop.f32.mrf.mxu3 }
 0x2da   : > { %v1692_v27 = vadd.f32 %v1622_v28, %v10013_v12 }
 0x2dc   : > { %v10118_v35 = vpop.f32.mrf.mxu2  ;;  %v10120_v57 = vadd.f32 %v1752_v54, %v1692_v27 }
 0x2de   : > { %v1765_v1 = vpop.f32.mrf.mxu1  ;;  %7631 = vmatmul.msk.bf16.gmra.mxu3 %vm1132_vm4, %v9902_v2 }
 0x2e1   : > { %7650 = vmatmul.msk.bf16.gmra.mxu1 %vm1132_vm4, %v9767_v0  ;;  %7654 = vmatmul.msk.bf16.gmra.mxu2 %vm1132_vm4, %v9633_v40  ;;  %v1625_v17 = vpop.f32.mrf.mxu3 }
 0x2e2   : > { %v1693_v19 = vadd.f32 %v1625_v17, %v10028_v32 }
 0x2e4   : > { %v10129_v13 = vpop.f32.mrf.mxu2  ;;  %v10131_v12 = vadd.f32 %v1755_v20, %v1693_v19 }
 0x2e6   : > { %v1767_v24 = vpop.f32.mrf.mxu1 }
 0x2e9   : > { %v1627_v54 = vpop.f32.mrf.mxu3 }
 0x2ea   : > { %v1694_v15 = vadd.f32 %v1627_v54, %v10040_v14 }
 0x2ec   : > { %v10134_v50 = vpop.f32.mrf.mxu2  ;;  %v10136_v22 = vadd.f32 %v1757_v31, %v1694_v15 }
 0x2ee   : > { %v1770_v3 = vpop.f32.mrf.mxu1  ;;  %7632 = vmatmul.msk.bf16.gmra.mxu3 %vm1132_vm4, %v9970_v49 }
 0x2f1   : > { %7651 = vmatmul.msk.bf16.gmra.mxu1 %vm1132_vm4, %v9988_v43  ;;  %7655 = vmatmul.msk.bf16.gmra.mxu2 %vm1132_vm4, %v9688_v42  ;;  %v1630_v0 = vpop.f32.mrf.mxu3  ;;  %v1365_v43 = vadd.f32 %v10077_v51, %v9807_v62 }
 0x2f2   : > { %v1695_v32 = vadd.f32 %v1630_v0, %v10053_v18  ;;  %v1367_v0 = vadd.f32 %v10086_v41, %v9816_v5 }
 0x2f4   : > { %v10145_v20 = vpop.f32.mrf.mxu2  ;;  %v10147_v14 = vadd.f32 %v1760_v63, %v1695_v32 }
 0x2f6   : > { %v1772_v28 = vpop.f32.mrf.mxu1 }
 0x2f9   : > { %v1632_v31 = vpop.f32.mrf.mxu3 }
 0x2fa   : > { %v1696_v27 = vadd.f32 %v1632_v31, %v10064_v45 }
 0x2fc   : > { %v10150_v17 = vpop.f32.mrf.mxu2  ;;  %v10152_v19 = vadd.f32 %v1762_v8, %v1696_v27 }
 0x2fe   : > { %v1775_v54 = vpop.f32.mrf.mxu1  ;;  %7633 = vmatmul.msk.bf16.gmra.mxu3 %vm1132_vm4, %v10010_v48 }
 0x301   : > { %7656 = vmatmul.msk.bf16.gmra.mxu2 %vm1132_vm4, %v9721_v4  ;;  %7704 = vmatmul.msk.bf16.vlgmr.msra.gmra.mxu1 %vm1132_vm4, %v9633_v40  ;;  %v1635_v18 = vpop.f32.mrf.mxu3  ;;  %v1370_v40 = vadd.f32 %v10097_v36, %v9826_v6  ;;  %v1375_v36 = vadd.f32 %v10113_v58, %v9845_v29  ;;  %v13581_v58 = vld [vmem:[#allocation56_spill] sm:$0xff] }
 0x302   : > { %v1697_v63 = vadd.f32 %v1635_v18, %v1365_v43  ;;  %v1372_v18 = vadd.f32 %v10102_v21, %v9835_v44 }
 0x304   : > { %v10162_v45 = vpop.f32.mrf.mxu2  ;;  %v10164_v15 = vadd.f32 %v1765_v1, %v1697_v63 }
 0x306   : > { %v1777_v8 = vpop.f32.mrf.mxu1 }
 0x309   : > { %v1637_v32 = vpop.f32.mrf.mxu3 }
 0x30a   : > { %v1698_v31 = vadd.f32 %v1637_v32, %v1367_v0 }
 0x30c   : > { %v10168_v27 = vpop.f32.mrf.mxu2  ;;  %v10170_v62 = vadd.f32 %v1767_v24, %v1698_v31 }
 0x30e   : > { %v1780_v51 = vpop.f32.mrf.mxu1  ;;  %7634 = vmatmul.msk.bf16.gmra.mxu3 %vm1132_vm4, %v10037_v60 }
 0x311   : > { %7657 = vmatmul.msk.bf16.gmra.mxu2 %vm1132_vm4, %v9757_v56  ;;  %7705 = vmatmul.msk.bf16.gmra.mxu1 %vm1132_vm4, %v9688_v42  ;;  %v1640_v5 = vpop.f32.mrf.mxu3 }
 0x312   : > { %v1699_v41 = vadd.f32 %v1640_v5, %v1370_v40 }
 0x314   : > { %v10180_v1 = vpop.f32.mrf.mxu2  ;;  %v10182_v43 = vadd.f32 %v1770_v3, %v1699_v41 }
 0x316   : > { %v1782_v24 = vpop.f32.mrf.mxu1 }
 0x319   : > { %v1642_v63 = vpop.f32.mrf.mxu3 }
 0x31a   : > { %v1700_v0 = vadd.f32 %v1642_v63, %v1372_v18  ;;  %v13583_v63 = vld [vmem:[#allocation50_spill] sm:$0xff] }
 0x31c   : > { %v10186_v32 = vpop.f32.mrf.mxu2  ;;  %v10188_v6 = vadd.f32 %v1772_v28, %v1700_v0  ;;  %v1377_v28 = vadd.f32 %v10118_v35, %v9849_v37 }
 0x31e   : > { %7670 = vmatmul.msk.bf16.vlgmr.msra.gmra.mxu3 %vm1132_vm4, %v9615_v33  ;;  %v1785_v42 = vpop.f32.mrf.mxu1 }
 0x321   : > { %7658 = vmatmul.msk.bf16.gmra.mxu2 %vm1132_vm4, %v9393_v23  ;;  %7706 = vmatmul.msk.bf16.gmra.mxu1 %vm1132_vm4, %v9721_v4  ;;  %v1645_v44 = vpop.f32.mrf.mxu3  ;;  %v13582_v4 = vld [vmem:[#allocation69_spill] sm:$0xff] }
 0x322   : > { %v1701_v21 = vadd.f32 %v1645_v44, %v1375_v36  ;;  %v1380_v18 = vadd.f32 %v10129_v13, %v13582_v4  ;;  %v13586_v4 = vld [vmem:[#allocation59_spill] sm:$0xff] }
 0x324   : > { %v10198_v3 = vpop.f32.mrf.mxu2  ;;  %v10200_v31 = vadd.f32 %v1775_v54, %v1701_v21 }
 0x326   : > { %v1787_v33 = vpop.f32.mrf.mxu1 }
 0x329   : > { %v1647_v40 = vpop.f32.mrf.mxu3 }
 0x32a   : > { %v1702_v5 = vadd.f32 %v1647_v40, %v1377_v28 }
 0x32c   : > { %v10204_v41 = vpop.f32.mrf.mxu2  ;;  %v10206_v29 = vadd.f32 %v1777_v8, %v1702_v5  ;;  %v13584_v8 = vld [vmem:[#allocation70_spill] sm:$0xff] }
 0x32d   : > { %v1382_v44 = vadd.f32 %v10134_v50, %v13584_v8 }
 0x32e   : > { %7671 = vmatmul.msk.bf16.gmra.mxu3 %vm1132_vm4, %v13581_v58  ;;  %v1790_v54 = vpop.f32.mrf.mxu1 }
 0x331   : > { %7659 = vmatmul.msk.bf16.gmra.mxu2 %vm1132_vm4, %v13583_v63  ;;  %7707 = vmatmul.msk.bf16.gmra.mxu1 %vm1132_vm4, %v9757_v56  ;;  %v1650_v37 = vpop.f32.mrf.mxu3  ;;  %v13587_v56 = vld [vmem:[#allocation71_spill] sm:$0xff] }
 0x332   : > { %v1703_v35 = vadd.f32 %v1650_v37, %v1380_v18  ;;  %v1385_v18 = vadd.f32 %v10145_v20, %v13587_v56  ;;  %v13588_v37 = vld [vmem:[#allocation54_spill] sm:$0xff]  ;;  %v13592_v56 = vld [vmem:[#allocation60_spill] sm:$0xff] }
 0x334   : > { %v10216_v0 = vpop.f32.mrf.mxu2  ;;  %v10218_v36 = vadd.f32 %v1780_v51, %v1703_v35 }
 0x336   : > { %v1792_v5 = vpop.f32.mrf.mxu1 }
 0x339   : > { %v1652_v21 = vpop.f32.mrf.mxu3 }
 0x33a   : > { %v1704_v28 = vadd.f32 %v1652_v21, %v1382_v44  ;;  %v13590_v44 = vld [vmem:[#allocation72_spill] sm:$0xff] }
 0x33b   : > { %v1387_v21 = vadd.f32 %v10150_v17, %v13590_v44 }
 0x33c   : > { %v10222_v40 = vpop.f32.mrf.mxu2  ;;  %v10224_v13 = vadd.f32 %v1782_v24, %v1704_v28 }
 0x33e   : > { %13585 = vst [vmem:[#allocation56_spill] sm:$0xff] %v10224_v13  ;;  %7672 = vmatmul.msk.bf16.gmra.mxu3 %vm1132_vm4, %v13586_v4  ;;  %v1795_v24 = vpop.f32.mrf.mxu1  ;;  %v13594_v13 = vld [vmem:[#allocation58_spill] sm:$0xff] }
 0x341   : > { %7660 = vmatmul.msk.bf16.gmra.mxu2 %vm1132_vm4, %v13588_v37  ;;  %7708 = vmatmul.msk.bf16.gmra.mxu1 %vm1132_vm4, %v9393_v23  ;;  %v1655_v50 = vpop.f32.mrf.mxu3  ;;  %v13593_v23 = vld [vmem:[#allocation74_spill] sm:$0xff] }
 0x342   : > { %v1705_v51 = vadd.f32 %v1655_v50, %v1385_v18  ;;  %v1390_v18 = vadd.f32 %v10162_v45, %v13593_v23 }
 0x344   : > { %v10234_v35 = vpop.f32.mrf.mxu2  ;;  %v10236_v8 = vadd.f32 %v1785_v42, %v1705_v51 }
 0x346   : > { %13589 = vst [vmem:[#allocation69_spill] sm:$0xff] %v10236_v8  ;;  %v1797_v50 = vpop.f32.mrf.mxu1 }
 0x349   : > { %v1657_v28 = vpop.f32.mrf.mxu3 }
 0x34a   : > { %v1706_v60 = vadd.f32 %v1657_v28, %v1387_v21 }
 0x34c   : > { %v10240_v48 = vpop.f32.mrf.mxu2  ;;  %v10242_v20 = vadd.f32 %v1787_v33, %v1706_v60  ;;  %v13595_v33 = vld [vmem:[#allocation76_spill] sm:$0xff] }
 0x34d   : > { %v1392_v21 = vadd.f32 %v10168_v27, %v13595_v33 }
 0x34e   : > { %13591 = vst [vmem:[#allocation50_spill] sm:$0xff] %v10242_v20  ;;  %7673 = vmatmul.msk.bf16.gmra.mxu3 %vm1132_vm4, %v13592_v56  ;;  %v1800_v23 = vpop.f32.mrf.mxu1 }
 0x351   : > { %7661 = vmatmul.msk.bf16.gmra.mxu2 %vm1132_vm4, %v13594_v13  ;;  %7709 = vmatmul.msk.bf16.gmra.mxu1 %vm1132_vm4, %v13583_v63  ;;  %v1660_v17 = vpop.f32.mrf.mxu3  ;;  %v13596_v63 = vld [vmem:[#allocation57_spill] sm:$0xff] }
 0x352   : > { %v1707_v42 = vadd.f32 %v1660_v17, %v1390_v18 }
 0x354   : > { %v1874_v51 = vpop.f32.mrf.mxu2  ;;  %v10252_v44 = vadd.f32 %v1790_v54, %v1707_v42  ;;  %v13597_v54 = vld [vmem:[#allocation78_spill] sm:$0xff] }
 0x355   : > { %v10255_v60 = vadd.f32 %v1874_v51, %v10050_v7  ;;  %v1395_v18 = vadd.f32 %v10180_v1, %v13597_v54  ;;  %v13598_v7 = vld [vmem:[#allocation61_spill] sm:$0xff] }
 0x356   : > { %v1802_v51 = vpop.f32.mrf.mxu1 }
 0x359   : > { %v1662_v28 = vpop.f32.mrf.mxu3 }
 0x35a   : > { %v1708_v45 = vadd.f32 %v1662_v28, %v1392_v21 }
 0x35c   : > { %v1876_v20 = vpop.f32.mrf.mxu2  ;;  %v10259_v8 = vadd.f32 %v1792_v5, %v1708_v45 }
 0x35d   : > { %v10262_v56 = vadd.f32 %v1876_v20, %v10061_v39  ;;  %v13599_v20 = vld [vmem:[#allocation79_spill] sm:$0xff] }
 0x35e   : > { %7674 = vmatmul.msk.bf16.gmra.mxu3 %vm1132_vm4, %v13596_v63  ;;  %v1397_v33 = vadd.f32 %v10186_v32, %v13599_v20 }
 0x361   : > { %7662 = vmatmul.msk.bf16.gmra.mxu2 %vm1132_vm4, %v13598_v7  ;;  %7710 = vmatmul.msk.bf16.gmra.mxu1 %vm1132_vm4, %v13588_v37  ;;  %v1665_v27 = vpop.f32.mrf.mxu3  ;;  %v1805_v37 = vpop.f32.mrf.mxu1 }
 0x362   : > { %v1709_v17 = vadd.f32 %v1665_v27, %v1395_v18 }
 0x364   : > { %v1879_v42 = vpop.f32.mrf.mxu2  ;;  %v10272_v5 = vadd.f32 %v1795_v24, %v1709_v17  ;;  %v13600_v24 = vld [vmem:[#allocation81_spill] sm:$0xff] }
 0x365   : > { %v10275_v39 = vadd.f32 %v1879_v42, %v10079_v38  ;;  %v1400_v18 = vadd.f32 %v10198_v3, %v13600_v24  ;;  %v13601_v38 = vld [vmem:[#allocation62_spill] sm:$0xff]  ;;  %v1402_v42 = vadd.f32 %v10204_v41, %v9964_v46 }
 0x369   : > { %v1667_v21 = vpop.f32.mrf.mxu3  ;;  %v1807_v20 = vpop.f32.mrf.mxu1 }
 0x36a   : > { %v1710_v1 = vadd.f32 %v1667_v21, %v1397_v33 }
 0x36c   : > { %v1881_v28 = vpop.f32.mrf.mxu2  ;;  %v10279_v45 = vadd.f32 %v1797_v50, %v1710_v1 }
 0x36d   : > { %v10282_v54 = vadd.f32 %v1881_v28, %v10088_v16 }
 0x36e   : > { %7675 = vmatmul.msk.bf16.gmra.mxu3 %vm1132_vm4, %v9395_v53 }
 0x371   : > { %7663 = vmatmul.msk.bf16.gmra.mxu2 %vm1132_vm4, %v13601_v38  ;;  %7711 = vmatmul.msk.bf16.gmra.mxu1 %vm1132_vm4, %v13594_v13  ;;  %v1670_v32 = vpop.f32.mrf.mxu3  ;;  %v1405_v13 = vadd.f32 %v10216_v0, %v9994_v61 }
 0x372   : > { %v1711_v27 = vadd.f32 %v1670_v32, %v1400_v18  ;;  %v1407_v18 = vadd.f32 %v10222_v40, %v10006_v10 }
 0x374   : > { %v1884_v50 = vpop.f32.mrf.mxu2  ;;  %v10292_v17 = vadd.f32 %v1800_v23, %v1711_v27  ;;  %v1810_v23 = vpop.f32.mrf.mxu1 }
 0x375   : > { %v10295_v16 = vadd.f32 %v1884_v50, %v10099_v26  ;;  %v13602_v26 = vld [vmem:[#allocation64_spill] sm:$0xff] }
 0x379   : > { %v1672_v33 = vpop.f32.mrf.mxu3 }
 0x37a   : > { %v1712_v3 = vadd.f32 %v1672_v33, %v1402_v42  ;;  %v13604_v33 = vld [vmem:[#allocation83_spill] sm:$0xff] }
 0x37c   : > { %v1886_v21 = vpop.f32.mrf.mxu2  ;;  %v10299_v1 = vadd.f32 %v1802_v51, %v1712_v3  ;;  %v1812_v50 = vpop.f32.mrf.mxu1  ;;  %v951_v3 = vsel %vm817_vm2, %v13604_v33, 0.0 }
 0x37d   : > { %v10302_v28 = vadd.f32 %v1886_v21, %v10104_v55 }
 0x37e   : > { %7676 = vmatmul.msk.bf16.gmra.mxu3 %vm1132_vm4, %v9428_v34 }
 0x381   : > { %7664 = vmatmul.msk.bf16.gmra.mxu2 %vm1132_vm4, %v13602_v26  ;;  %7712 = vmatmul.msk.bf16.gmra.mxu1 %vm1132_vm4, %v13598_v7  ;;  %v1675_v46 = vpop.f32.mrf.mxu3 }
 0x382   : > { %v1713_v41 = vadd.f32 %v1675_v46, %v1405_v13  ;;  %v1852_v13 = vrot.slane %v951_v3, 1  ;;  %v13605_v46 = vld [vmem:[#allocation85_spill] sm:$0xff] }
 0x384   : > { %v1889_v51 = vpop.f32.mrf.mxu2  ;;  %v10312_v24 = vadd.f32 %v1805_v37, %v1713_v41  ;;  %v1410_v37 = vadd.f32 %v10234_v35, %v10021_v9  ;;  %v2263_v21 = vpop.f32.mrf.mxu1  ;;  %v1412_v9 = vadd.f32 %v10240_v48, %v10033_v25  ;;  %v1849_v41 = vrot.slane %v13605_v46, 1 }
 0x385   : > { %v10315_v55 = vadd.f32 %v1889_v51, %v10115_v59  ;;  %v13603_v59 = vld [vmem:[#allocation65_spill] sm:$0xff] }
 0x389   : > { %v1677_v32 = vpop.f32.mrf.mxu3 }
 0x38a   : > { %v1714_v61 = vadd.f32 %v1677_v32, %v1407_v18 }
 0x38c   : > { %v1891_v0 = vpop.f32.mrf.mxu2  ;;  %v10319_v27 = vadd.f32 %v1807_v20, %v1714_v61  ;;  %v1989_v61 = vrot.slane %v951_v3, 2 }
 0x38d   : > { %v10322_v7 = vadd.f32 %v1891_v0, %v10120_v57 }
 0x38e   : > { %7677 = vmatmul.msk.bf16.gmra.mxu3 %vm1132_vm4, %v9524_v52 }
 0x391   : > { %7665 = vmatmul.msk.bf16.gmra.mxu2 %vm1132_vm4, %v13603_v59  ;;  %7713 = vmatmul.msk.bf16.gmra.mxu1 %vm1132_vm4, %v13601_v38  ;;  %v1680_v10 = vpop.f32.mrf.mxu3  ;;  %v13606_v38 = vld [vmem:[#allocation84_spill] sm:$0xff] }
 0x392   : > { %v1715_v40 = vadd.f32 %v1680_v10, %v1410_v37  ;;  %v1850_v51 = vrot.slane %v13606_v38, 1  ;;  %v1987_v0 = vrot.slane %v13606_v38, 2 }
 0x394   : > { %v1894_v42 = vpop.f32.mrf.mxu2  ;;  %v10332_v20 = vadd.f32 %v1810_v23, %v1715_v40  ;;  %v1851_v48 = vsel %vm1001_vm3, %v1849_v41, %v1850_v51  ;;  %v1853_v25 = vsel %vm1001_vm3, %v1850_v51, %v1852_v13  ;;  %v2265_v40 = vpop.f32.mrf.mxu1  ;;  %v1990_v33 = vsel %vm1414_vm5, %v1987_v0, %v1989_v61  ;;  %v13608_v13 = vld [vmem:[#allocation73_spill] sm:$0xff] }
 0x395   : > { %v10335_v57 = vadd.f32 %v1894_v42, %v10131_v12  ;;  %v1986_v12 = vrot.slane %v13605_v46, 2  ;;  %v10354_v10 = vpack.c.bf16 %v1853_v25, %v1851_v48 }
 0x399   : > { %v1682_v35 = vpop.f32.mrf.mxu3 }
 0x39a   : > { %v1716_v18 = vadd.f32 %v1682_v35, %v1412_v9 }
 0x39c   : > { %v1896_v32 = vpop.f32.mrf.mxu2  ;;  %v10343_v23 = vadd.f32 %v1812_v50, %v1716_v18  ;;  %v13607_v50 = vld [vmem:[#allocation66_spill] sm:$0xff]  ;;  %v2268_v18 = vpop.f32.mrf.mxu1 }
 0x39d   : > { %v10348_v37 = vadd.f32 %v1896_v32, %v10136_v22  ;;  %v1988_v22 = vsel %vm1414_vm5, %v1986_v12, %v1987_v0  ;;  %v13609_v12 = vld [vmem:[#allocation75_spill] sm:$0xff] }
 0x39e   : > { %7678 = vmatmul.msk.bf16.gmra.mxu3 %vm1132_vm4, %v9627_v30  ;;  %v10363_v9 = vpack.c.bf16 %v1990_v33, %v1988_v22  ;;  %v13610_v0 = vld [vmem:[#allocation67_spill] sm:$0xff] }
 0x3a1   : > { %7666 = vmatmul.msk.bf16.gmra.mxu2 %vm1132_vm4, %v13607_v50  ;;  %7714 = vmatmul.msk.bf16.gmra.mxu1 %vm1132_vm4, %v13602_v26  ;;  %v2011_v42 = vpop.f32.mrf.mxu3 }
 0x3a2   : > { %v2091_v3 = vadd.f32 %v2011_v42, %v10255_v60  ;;  %v13611_v42 = vld [vmem:[#allocation77_spill] sm:$0xff] }
 0x3a4   : > { %v1899_v35 = vpop.f32.mrf.mxu2  ;;  %v2217_v46 = vadd.f32 %v13608_v13, %v2091_v3  ;;  %v2270_v3 = vpop.f32.mrf.mxu1 }
 0x3a5   : > { %v10367_v41 = vadd.f32 %v1899_v35, %v10147_v14 }
 0x3a6   : > { %v10369_v38 = vadd.f32 %v2263_v21, %v2217_v46 }
 0x3a9   : > { %v2013_v51 = vpop.f32.mrf.mxu3 }
 0x3aa   : > { %v2092_v26 = vadd.f32 %v2013_v51, %v10262_v56  ;;  %v7741_v56 = vld [vmem:[%s13272_s5 + $0x8] sm:$0xf] }
 0x3ac   : > { %v1901_v32 = vpop.f32.mrf.mxu2  ;;  %v2218_v48 = vadd.f32 %v13609_v12, %v2092_v26  ;;  %v13612_v26 = vld [vmem:[#allocation80_spill] sm:$0xff] }
 0x3ad   : > { %v10374_v61 = vadd.f32 %v1901_v32, %v10152_v19  ;;  %v8174_v19 = vld [vmem:[%s13272_s5 + $0x8] sm:$0x30] }
 0x3ae   : > { %7679 = vmatmul.msk.bf16.gmra.mxu3 %vm1132_vm4, %v9552_v47  ;;  %v10378_v60 = vadd.f32 %v2265_v40, %v2218_v48  ;;  %v7742_v25 = vor.u32 %v8174_v19, %v7741_v56  ;;  %v2273_v48 = vpop.f32.mrf.mxu1 }
 0x3b0   : > { %v3209_v33 = vsel %vm1414_vm5, %v7742_v25, 0 }
 0x3b1   : > { %7667 = vmatmul.msk.bf16.gmra.mxu2 %vm1132_vm4, %v13610_v0  ;;  %7715 = vmatmul.msk.bf16.gmra.mxu1 %vm1132_vm4, %v13603_v59  ;;  %v2016_v14 = vpop.f32.mrf.mxu3 }
 0x3b2   : > { %v2093_v21 = vadd.f32 %v2016_v14, %v10275_v39  ;;  %3218 = vmatpush.bf16.msrb.mxu3 %v3209_v33  ;;  %v13613_v14 = vld [vmem:[#allocation82_spill] sm:$0xff] }
 0x3b4   : > { %v1904_v40 = vpop.f32.mrf.mxu2  ;;  %v2219_v22 = vadd.f32 %v13611_v42, %v2093_v21 }
 0x3b5   : > { %v10394_v59 = vadd.f32 %v1904_v40, %v10164_v15 }
 0x3b6   : > { %v10396_v35 = vadd.f32 %v2268_v18, %v2219_v22  ;;  %v2275_v21 = vpop.f32.mrf.mxu1  ;;  %v13614_v22 = vld [vmem:[#allocation86_spill] sm:$0xff] }
 0x3b9   : > { %v2018_v13 = vpop.f32.mrf.mxu3 }
 0x3ba   : > { %v2094_v46 = vadd.f32 %v2018_v13, %v10282_v54 }
 0x3bc   : > { %v1906_v51 = vpop.f32.mrf.mxu2  ;;  %v2220_v32 = vadd.f32 %v13612_v26, %v2094_v46  ;;  %v13615_v46 = vld [vmem:[#allocation87_spill] sm:$0xff] }
 0x3bd   : > { %v10401_v39 = vadd.f32 %v1906_v51, %v10170_v62 }
 0x3be   : > { %7680 = vmatmul.msk.bf16.gmra.mxu3 %vm1132_vm4, %v9917_v11  ;;  %v10405_v12 = vadd.f32 %v2270_v3, %v2220_v32  ;;  %v2278_v3 = vpop.f32.mrf.mxu1 }
 0x3c1   : > { %7668 = vmatmul.msk.bf16.gmra.mxu2 %vm1132_vm4, %v10354_v10  ;;  %7716 = vmatmul.msk.bf16.gmra.mxu1 %vm1132_vm4, %v13607_v50  ;;  %v2021_v15 = vpop.f32.mrf.mxu3 }
 0x3c2   : > { %v2095_v54 = vadd.f32 %v2021_v15, %v10295_v16 }
 0x3c4   : > { %v1909_v18 = vpop.f32.mrf.mxu2  ;;  %v2221_v56 = vadd.f32 %v13613_v14, %v2095_v54 }
 0x3c5   : > { %v10414_v62 = vadd.f32 %v1909_v18, %v10182_v43 }
 0x3c6   : > { %v10416_v19 = vadd.f32 %v2273_v48, %v2221_v56  ;;  %v2280_v18 = vpop.f32.mrf.mxu1  ;;  %v13617_v56 = vld [vmem:[#allocation56_spill] sm:$0xff] }
 0x3c9   : > { %v2023_v25 = vpop.f32.mrf.mxu3 }
 0x3ca   : > { %v2096_v40 = vadd.f32 %v2023_v25, %v10302_v28  ;;  %v13619_v25 = vld [vmem:[#allocation60_spill] sm:$0xff] }
 0x3cc   : > { %v1911_v42 = vpop.f32.mrf.mxu2  ;;  %v2222_v33 = vadd.f32 %v13614_v22, %v2096_v40  ;;  %v13620_v40 = vld [vmem:[#allocation41_spill] sm:$0xff] }
 0x3cd   : > { %v10421_v50 = vadd.f32 %v1911_v42, %v10188_v6  ;;  %v13621_v42 = vld [vmem:[#allocation69_spill] sm:$0xff] }
 0x3ce   : > { %7681 = vmatmul.msk.bf16.gmra.mxu3 %vm1132_vm4, %v9902_v2  ;;  %v10425_v16 = vadd.f32 %v2275_v21, %v2222_v33 }
 0x3d1   : > { %7717 = vmatmul.msk.bf16.gmra.mxu1 %vm1132_vm4, %v13610_v0  ;;  %7721 = vmatmul.msk.bf16.vlgmr.msrb.gmra.mxu2 %vm1132_vm4, %v13581_v58  ;;  %v2026_v43 = vpop.f32.mrf.mxu3  ;;  %v13616_v0 = vld [vmem:[#allocation89_spill] sm:$0xff] }
 0x3d2   : > { %v2097_v28 = vadd.f32 %v2026_v43, %v10315_v55  ;;  %v13623_v43 = vld [vmem:[#allocation90_spill] sm:$0xff] }
 0x3d4   : > { %v1914_v13 = vpop.f32.mrf.mxu2  ;;  %v2223_v51 = vadd.f32 %v13615_v46, %v2097_v28 }
 0x3d5   : > { %v10434_v6 = vadd.f32 %v1914_v13, %v10200_v31 }
 0x3d6   : > { %v10436_v26 = vadd.f32 %v2278_v3, %v2223_v51 }
 0x3d9   : > { %v2028_v32 = vpop.f32.mrf.mxu3 }
 0x3da   : > { %v2098_v48 = vadd.f32 %v2028_v32, %v10322_v7 }
 0x3dc   : > { %v1916_v15 = vpop.f32.mrf.mxu2  ;;  %v2224_v54 = vadd.f32 %v13616_v0, %v2098_v48 }
 0x3dd   : > { %v10441_v58 = vadd.f32 %v1916_v15, %v10206_v29  ;;  %v13618_v29 = vld [vmem:[#allocation88_spill] sm:$0xff] }
 0x3de   : > { %7682 = vmatmul.msk.bf16.gmra.mxu3 %vm1132_vm4, %v9970_v49  ;;  %v10445_v55 = vadd.f32 %v2280_v18, %v2224_v54  ;;  %v10504_v18 = vpop.f32.mrf.mxu0 }
 0x3e1   : > { %7718 = vmatmul.msk.bf16.gmra.mxu1 %vm1132_vm4, %v10354_v10  ;;  %7722 = vmatmul.msk.bf16.gmra.mxu2 %vm1132_vm4, %v13586_v4 }
 0x3e4   : > { %v1919_v31 = vpop.f32.mrf.mxu2 }
 0x3e5   : > { %v10452_v7 = vadd.f32 %v1919_v31, %v10218_v36  ;;  %v13622_v36 = vld [vmem:[#allocation50_spill] sm:$0xff] }
 0x3e6   : > { %v10516_v31 = vpop.f32.mrf.mxu0 }
 0x3ec   : > { %v1921_v14 = vpop.f32.mrf.mxu2 }
 0x3ed   : > { %v10455_v21 = vadd.f32 %v1921_v14, %v13617_v56 }
 0x3ee   : > { %7683 = vmatmul.msk.bf16.gmra.mxu3 %vm1132_vm4, %v13618_v29 }
 0x3f1   : > { %7723 = vmatmul.msk.bf16.gmra.mxu2 %vm1132_vm4, %v13619_v25  ;;  %7719 = vmatmul.msk.bf16.gmra.mxu1 %vm1132_vm4, %v13620_v40 }
 0x3f4   : > { %v1924_v10 = vpop.f32.mrf.mxu2 }
 0x3f5   : > { %v10464_v4 = vadd.f32 %v1924_v10, %v13621_v42 }
 0x3fc   : > { %v1926_v22 = vpop.f32.mrf.mxu2 }
 0x3fd   : > { %v10467_v33 = vadd.f32 %v1926_v22, %v13622_v36  ;;  %v10537_v22 = vld [vmem:[%s13271_s4] ss:$0 sm:$0xff] }
 0x3fe   : > { %7684 = vmatmul.msk.bf16.gmra.mxu3 %vm1132_vm4, %v13623_v43 }
 0x401   : > { %7724 = vmatmul.msk.bf16.gmra.mxu2 %vm1132_vm4, %v13596_v63 }
 0x404   : > { %v1929_v28 = vpop.f32.mrf.mxu2 }
 0x405   : > { %v10474_v3 = vadd.f32 %v1929_v28, %v10252_v44 }
 0x40c   : > { %v1931_v13 = vpop.f32.mrf.mxu2 }
 0x40d   : > { %v10477_v46 = vadd.f32 %v1931_v13, %v10259_v8 }
 0x40e   : > { %7685 = vmatmul.msk.bf16.gmra.mxu3 %vm1132_vm4, %v10363_v9 }
 0x411   : > { %7725 = vmatmul.msk.bf16.gmra.mxu2 %vm1132_vm4, %v9395_v53 }
 0x414   : > { %v1934_v51 = vpop.f32.mrf.mxu2 }
 0x415   : > { %v10484_v32 = vadd.f32 %v1934_v51, %v10272_v5  ;;  %v10499_v5 = vpop.f32.mrf.mxu3 }
 0x41c   : > { %v1936_v48 = vpop.f32.mrf.mxu2 }
 0x41d   : > { %v10487_v63 = vadd.f32 %v1936_v48, %v10279_v45 }
 0x421   : > { %7726 = vmatmul.msk.bf16.gmra.mxu2 %vm1132_vm4, %v9428_v34 }
 0x424   : > { %v1939_v44 = vpop.f32.mrf.mxu2 }
 0x425   : > { %v10492_v8 = vadd.f32 %v1939_v44, %v10292_v17  ;;  %v10509_v17 = vpop.f32.mrf.mxu3  ;;  %7743 = vmatmul.msk.bf16.vlgmr.msrb.gmra.mxu3 %vm3160_vm6, %v13620_v40 }
 0x42c   : > { %v1941_v15 = vpop.f32.mrf.mxu2 }
 0x42d   : > { %v10495_v0 = vadd.f32 %v1941_v15, %v10299_v1  ;;  %v10518_v14 = vpop.f32.mrf.mxu3 }
 0x431   : > { %7727 = vmatmul.msk.bf16.gmra.mxu2 %vm1132_vm4, %v9524_v52 }
 0x434   : > { %v1944_v53 = vpop.f32.mrf.mxu2 }
 0x435   : > { %v10502_v45 = vadd.f32 %v1944_v53, %v10312_v24  ;;  %v10520_v24 = vpop.f32.mrf.mxu1 }
 0x43c   : > { %v1946_v54 = vpop.f32.mrf.mxu2 }
 0x43d   : > { %v10507_v34 = vadd.f32 %v1946_v54, %v10319_v27  ;;  %v10525_v27 = vpop.f32.mrf.mxu0  ;;  %v10531_v10 = vpop.f32.mrf.mxu1 }
 0x441   : > { %7728 = vmatmul.msk.bf16.gmra.mxu2 %vm1132_vm4, %v9627_v30  ;;  %v10529_v30 = vpop.f32.mrf.mxu3 }
 0x444   : > { %v1949_v1 = vpop.f32.mrf.mxu2 }
 0x445   : > { %v10514_v52 = vadd.f32 %v1949_v1, %v10332_v20  ;;  %v10539_v36 = vpop.f32.mrf.mxu0  ;;  %v10545_v51 = vpop.f32.mrf.mxu1 }
 0x447   : > { %13624 = vst [vmem:[#allocation70_spill] sm:$0xff] %v10514_v52 }
 0x449   : > { %v10541_v28 = vpop.f32.mrf.mxu3 }
 0x44c   : > { %v1951_v56 = vpop.f32.mrf.mxu2 }
 0x44d   : > { %v10523_v25 = vadd.f32 %v1951_v56, %v10343_v23  ;;  %v10552_v54 = vpop.f32.mrf.mxu0 }
 0x44f   : > { %13625 = vst [vmem:[#allocation59_spill] sm:$0xff] %v10523_v25 }
 0x451   : > { %7729 = vmatmul.msk.bf16.gmra.mxu2 %vm1132_vm4, %v9552_v47  ;;  %v10556_v1 = vpop.f32.mrf.mxu3 }
 0x454   : > { %v2389_v20 = vpop.f32.mrf.mxu2 }
 0x455   : > { %v2469_v42 = vadd.f32 %v2389_v20, %v10369_v38 }
 0x457   : > { %v2505_v13 = vadd.f32 %v10537_v22, %v2469_v42 }
 0x459   : > { %v2537_v44 = vmax.f32 %v2505_v13, 0.0  ;;  %v10565_v13 = vpop.f32.mrf.mxu0 }
 0x45c   : > { %v2391_v23 = vpop.f32.mrf.mxu2 }
 0x45d   : > { %v2470_v47 = vadd.f32 %v2391_v23, %v10378_v60  ;;  %v10558_v60 = vpop.f32.mrf.mxu1  ;;  %v13627_v23 = vld [vmem:[#allocation26_spill] sm:$0xff] }
 0x45f   : > { %v2506_v48 = vadd.f32 %v10537_v22, %v2470_v47 }
 0x461   : > { %v2538_v38 = vmax.f32 %v2506_v48, 0.0  ;;  %7730 = vmatmul.msk.bf16.gmra.mxu2 %vm1132_vm4, %v9917_v11  ;;  %v10568_v48 = vpop.f32.mrf.mxu3 }
 0x463   : > { %v10550_v15 = vpack.i.bf16 %v2538_v38, %v2537_v44 }
 0x464   : > { %v2394_v53 = vpop.f32.mrf.mxu2 }
 0x465   : > { %13626 = vst [vmem:[#allocation71_spill] sm:$0xff] %v10550_v15  ;;  %8330 = vrot.lane.b32.xlu2 %v10550_v15, %s13415_s12  ;;  %v2471_v56 = vadd.f32 %v2394_v53, %v10396_v35  ;;  %v10572_v35 = vpop.f32.mrf.mxu1 }
 0x467   : > { %v2507_v42 = vadd.f32 %v10537_v22, %v2471_v56 }
 0x469   : > { %v2539_v44 = vmax.f32 %v2507_v42, 0.0 }
 0x46c   : > { %v2396_v20 = vpop.f32.mrf.mxu2 }
 0x46d   : > { %v2472_v11 = vadd.f32 %v2396_v20, %v10405_v12  ;;  %8345 = vrot.lane.b32.xlu2 %v13627_v23, %s13418_s25  ;;  %v10578_v12 = vpop.f32.mrf.mxu0  ;;  %v10583_v15 = vpop.f32.mrf.mxu1 }
 0x46f   : > { %v2508_v47 = vadd.f32 %v10537_v22, %v2472_v11  ;;  %v10581_v11 = vpop.f32.mrf.mxu3 }
 0x471   : > { %v2540_v38 = vmax.f32 %v2508_v47, 0.0  ;;  %7731 = vmatmul.msk.bf16.gmra.mxu2 %vm1132_vm4, %v9902_v2 }
 0x473   : > { %v10574_v53 = vpack.i.bf16 %v2540_v38, %v2539_v44  ;;  %v13629_v44 = vld [vmem:[#allocation37_spill] sm:$0xff] }
 0x474   : > { %v2399_v56 = vpop.f32.mrf.mxu2 }
 0x475   : > { %13628 = vst [vmem:[#allocation54_spill] sm:$0xff] %v10574_v53  ;;  %8340 = vrot.lane.b32.xlu1 %v10574_v53, %s13415_s12  ;;  %v2473_v20 = vadd.f32 %v2399_v56, %v10416_v19  ;;  %v10592_v19 = vpop.f32.mrf.mxu0 }
 0x477   : > { %v2509_v47 = vadd.f32 %v10537_v22, %v2473_v20  ;;  %v10596_v52 = vpop.f32.mrf.mxu3 }
 0x479   : > { %v2541_v23 = vmax.f32 %v2509_v47, 0.0 }
 0x47c   : > { %v2401_v42 = vpop.f32.mrf.mxu2 }
 0x47d   : > { %v2474_v2 = vadd.f32 %v2401_v42, %v10425_v16  ;;  %8355 = vrot.lane.b32.xlu1 %v13629_v44, %s13418_s25  ;;  %v10600_v16 = vpop.f32.mrf.mxu1  ;;  %v10603_v47 = vpop.f32.mrf.mxu0 }
 0x47f   : > { %v2510_v38 = vadd.f32 %v10537_v22, %v2474_v2 }
 0x481   : > { %v2542_v53 = vmax.f32 %v2510_v38, 0.0  ;;  %7732 = vmatmul.msk.bf16.gmra.mxu2 %vm1132_vm4, %v9970_v49  ;;  %v10611_v38 = vpop.f32.mrf.mxu3 }
 0x483   : > { %v10594_v56 = vpack.i.bf16 %v2542_v53, %v2541_v23  ;;  %v13631_v23 = vld [vmem:[#allocation19_spill] sm:$0xff]  ;;  %v2099_v53 = vadd.f32 %v10499_v5, %v10335_v57 }
 0x484   : > { %v2404_v25 = vpop.f32.mrf.mxu2 }
 0x485   : > { %13630 = vst [vmem:[#allocation72_spill] sm:$0xff] %v10594_v56  ;;  %8350 = vrot.lane.b32.xlu0 %v10594_v56, %s13415_s12  ;;  %v2475_v20 = vadd.f32 %v2404_v25, %v10436_v26  ;;  %v10614_v44 = vpop.f32.mrf.mxu1  ;;  %v10625_v57 = vpop.f32.mrf.mxu0 }
 0x487   : > { %v2511_v2 = vadd.f32 %v10537_v22, %v2475_v20  ;;  %v2225_v20 = vadd.f32 %v10504_v18, %v2099_v53  ;;  %v7761_v18 = vld [vmem:[%s13272_s5] sm:$0xf] }
 0x489   : > { %v2543_v26 = vmax.f32 %v2511_v2, 0.0  ;;  %v10629_v2 = vpop.f32.mrf.mxu3 }
 0x48c   : > { %v2406_v42 = vpop.f32.mrf.mxu2 }
 0x48d   : > { %v2476_v49 = vadd.f32 %v2406_v42, %v10445_v55  ;;  %8365 = vrot.lane.b32.xlu0 %v13631_v23, %s13418_s25  ;;  %v2100_v55 = vadd.f32 %v10509_v17, %v10348_v37  ;;  %v8173_v37 = vld [vmem:[%s13272_s5] sm:$0x30]  ;;  %v10637_v17 = vpop.f32.mrf.mxu1 }
 0x48f   : > { %v2512_v56 = vadd.f32 %v10537_v22, %v2476_v49  ;;  %v2226_v5 = vadd.f32 %v10516_v31, %v2100_v55  ;;  %v7762_v49 = vor.u32 %v8173_v37, %v7761_v18  ;;  %v7783_v31 = vld [vmem:[%s13272_s5 + $0x10] sm:$0xf]  ;;  %v10653_v37 = vpop.f32.mrf.mxu0 }
 0x491   : > { %v2544_v25 = vmax.f32 %v2512_v56, 0.0  ;;  %7733 = vmatmul.msk.bf16.gmra.mxu2 %vm1132_vm4, %v13618_v29  ;;  %v2351_v56 = vadd.f32 %v10520_v24, %v2225_v20  ;;  %v8175_v24 = vld [vmem:[%s13272_s5 + $0x10] sm:$0x30] }
 0x492   : > { %v7784_v53 = vor.u32 %v8175_v24, %v7783_v31  ;;  %v13635_v31 = vld [vmem:[#allocation68_spill] sm:$0xff] }
 0x493   : > { %v10621_v42 = vpack.i.bf16 %v2544_v25, %v2543_v26  ;;  %v3353_v25 = vsel %vm1414_vm5, %v7762_v49, 0 }
 0x494   : > { %v2409_v23 = vpop.f32.mrf.mxu2  ;;  %3362 = vmatpush.bf16.msrb.mxu0 %v3353_v25  ;;  %v3620_v18 = vsel %vm1414_vm5, %v7784_v53, 0  ;;  %v10667_v53 = vpop.f32.mrf.mxu3 }
 0x495   : > { %13632 = vst [vmem:[#allocation74_spill] sm:$0xff] %v10621_v42  ;;  %8360 = vrot.lane.b32.xlu2 %v10621_v42, %s13415_s12  ;;  %v2477_v29 = vadd.f32 %v2409_v23, %v2351_v56  ;;  %v2352_v23 = vadd.f32 %v10531_v10, %v2226_v5  ;;  %v13633_v56 = vld [vmem:[#allocation7_spill] sm:$0xff]  ;;  %3629 = vmatpush.bf16.msrb.mxu1 %v3620_v18  ;;  %s13637_s12 = smov 4  }
 0x496   : > { %v2101_v42 = vadd.f32 %v10518_v14, %v10367_v41  ;;  %v13634_v5 = vld [vmem:[#allocation63_spill] sm:$0xff]  ;;  %v10671_v14 = vpop.f32.mrf.mxu1 }
 0x497   : > { %v2513_v20 = vadd.f32 %v10537_v22, %v2477_v29  ;;  %7763 = vmatmul.msk.bf16.vlgmr.msrb.gmra.mxu0 %vm3160_vm6, %v13634_v5 }
 0x498   : > { %7785 = vmatmul.msk.bf16.vlgmr.msrb.gmra.mxu1 %vm3160_vm6, %v13635_v31  ;;  %v2227_v24 = vadd.f32 %v10525_v27, %v2101_v42 }
 0x499   : > { %v2545_v49 = vmax.f32 %v2513_v20, 0.0  ;;  %v10677_v20 = vpop.f32.mrf.mxu0 }
 0x49a   : > { %v2353_v25 = vadd.f32 %v10545_v51, %v2227_v24 }
 0x49c   : > { %v2411_v26 = vpop.f32.mrf.mxu2 }
 0x49d   : > { %v2478_v55 = vadd.f32 %v2411_v26, %v2352_v23  ;;  %8375 = vrot.lane.b32.xlu2 %v13633_v56, %s13418_s25  ;;  %v2102_v23 = vadd.f32 %v10529_v30, %v10374_v61  ;;  %v10680_v30 = vpop.f32.mrf.mxu3 }
 0x49f   : > { %v2514_v10 = vadd.f32 %v10537_v22, %v2478_v55 }
 0x4a1   : > { %v2546_v29 = vmax.f32 %v2514_v10, 0.0  ;;  %7734 = vmatmul.msk.bf16.gmra.mxu2 %vm1132_vm4, %v13623_v43  ;;  %v2228_v43 = vadd.f32 %v10539_v36, %v2102_v23  ;;  %v13638_v10 = vld [vmem:[#allocation11_spill] sm:$0xff]  ;;  %v10687_v36 = vpop.f32.mrf.mxu1  ;;  %v8176_v23 = vld [vmem:[%s13272_s5 + $0x18] sm:$0x30] }
 0x4a3   : > { %v10669_v41 = vpack.i.bf16 %v2546_v29, %v2545_v49  ;;  %v2354_v42 = vadd.f32 %v10558_v60, %v2228_v43  ;;  %v2103_v49 = vadd.f32 %v10541_v28, %v10394_v59  ;;  %v7805_v60 = vld [vmem:[%s13272_s5 + $0x18] sm:$0xf]  ;;  %v7827_v28 = vld [vmem:[%s13272_s5 + $0x20] sm:$0xf]  ;;  %v8177_v43 = vld [vmem:[%s13272_s5 + $0x20] sm:$0x30] }
 0x4a4   : > { %v2414_v26 = vpop.f32.mrf.mxu2  ;;  %v7806_v59 = vor.u32 %v8176_v23, %v7805_v60  ;;  %v8326_v60 = vpop.permute.xlu1 %8325 }
 0x4a5   : > { %13636 = vst [vmem:[#allocation58_spill] sm:$0xff] %v10669_v41  ;;  %8370 = vrot.lane.b32.xlu1 %v10669_v41, %s13637_s12  ;;  %v2479_v27 = vadd.f32 %v2414_v26, %v2353_v25  ;;  %v2229_v26 = vadd.f32 %v10552_v54, %v2103_v49  ;;  %v2104_v25 = vadd.f32 %v10556_v1, %v10401_v39  ;;  %v10716_v49 = vpop.f32.mrf.mxu3 }
 0x4a6   : > { %v3756_v54 = vsel %vm1414_vm5, %v7806_v59, 0  ;;  %v2105_v59 = vadd.f32 %v10568_v48, %v10414_v62  ;;  %v2106_v62 = vadd.f32 %v10581_v11, %v10421_v50 }
 0x4a7   : > { %v2515_v55 = vadd.f32 %v10537_v22, %v2479_v27  ;;  %3765 = vmatpush.bf16.msra.mxu2 %v3756_v54 }
 0x4a8   : > { %v2231_v54 = vadd.f32 %v10578_v12, %v2105_v59 }
 0x4a9   : > { %v2547_v29 = vmax.f32 %v2515_v55, 0.0  ;;  %v10719_v39 = vpop.f32.mrf.mxu1 }
 0x4ac   : > { %v2416_v61 = vpop.f32.mrf.mxu2 }
 0x4ad   : > { %v2480_v18 = vadd.f32 %v2416_v61, %v2354_v42  ;;  %8385 = vrot.lane.b32.xlu1 %v13638_v10, %s13418_s25  ;;  %v7828_v42 = vor.u32 %v8177_v43, %v7827_v28  ;;  %s13640_s25 = smov 112  }
 0x4af   : > { %v2516_v51 = vadd.f32 %v10537_v22, %v2480_v18  ;;  %v3901_v55 = vsel %vm1414_vm5, %v7828_v42, 0  ;;  %v2230_v18 = vadd.f32 %v10565_v13, %v2104_v25  ;;  %v13641_v13 = vld [vmem:[#allocation18_spill] sm:$0xff]  ;;  %v8328_v25 = vunpack.i.h.bf16 %v8326_v60 }
 0x4b0   : > { %3910 = vmatpush.bf16.msra.mxu3 %v3901_v55  ;;  %v8327_v42 = vunpack.i.l.bf16 %v8326_v60  ;;  %v10731_v55 = vpop.f32.mrf.mxu3 }
 0x4b1   : > { %v2548_v24 = vmax.f32 %v2516_v51, 0.0  ;;  %7735 = vmatmul.msk.bf16.gmra.mxu2 %vm1132_vm4, %v10363_v9  ;;  %v10705_v9 = vpop.f32.mrf.mxu0  ;;  %v2355_v51 = vadd.f32 %v10572_v35, %v2229_v26  ;;  %v10737_v48 = vpop.f32.mrf.mxu1 }
 0x4b3   : > { %v10709_v27 = vpack.i.bf16 %v2548_v24, %v2547_v29  ;;  %v2356_v29 = vadd.f32 %v10583_v15, %v2230_v18 }
 0x4b4   : > { %v2419_v61 = vpop.f32.mrf.mxu2 }
 0x4b5   : > { %13639 = vst [vmem:[#allocation76_spill] sm:$0xff] %v10709_v27  ;;  %8380 = vrot.lane.b32.xlu0 %v10709_v27, %s13637_s12  ;;  %v2481_v1 = vadd.f32 %v2419_v61, %v2355_v51 }
 0x4b7   : > { %v2517_v28 = vadd.f32 %v10537_v22, %v2481_v1 }
 0x4b9   : > { %v10722_v23 = vpop.f32.mrf.mxu0  ;;  %v2549_v18 = vmax.f32 %v2517_v28, 0.0 }
 0x4bc   : > { %v2421_v24 = vpop.f32.mrf.mxu2 }
 0x4bd   : > { %v2482_v43 = vadd.f32 %v2421_v24, %v2356_v29  ;;  %8395 = vrot.lane.b32.xlu0 %v13641_v13, %s13640_s25 }
 0x4bf   : > { %v2518_v35 = vadd.f32 %v10537_v22, %v2482_v43  ;;  %v8331_v26 = vpop.permute.xlu2 %8330 }
 0x4c0   : > { %v8333_v61 = vunpack.i.h.bf16 %v8331_v26  ;;  %v8332_v15 = vunpack.i.l.bf16 %v8331_v26  ;;  %v2357_v26 = vadd.f32 %v10600_v16, %v2231_v54 }
 0x4c1   : > { %v2550_v51 = vmax.f32 %v2518_v35, 0.0  ;;  %7736 = vmatmul.msk.bf16.gmra.mxu2 %vm1132_vm4, %v13635_v31  ;;  %v10743_v59 = vpop.f32.mrf.mxu0 }
 0x4c2   : > { %v2794_v1 = vsel %vm1132_vm4, %v8328_v25, %v8333_v61  ;;  %v2793_v29 = vsel %vm1132_vm4, %v8327_v42, %v8332_v15  ;;  %v2232_v15 = vadd.f32 %v10592_v19, %v2106_v62  ;;  %v10764_v62 = vpop.f32.mrf.mxu1 }
 0x4c3   : > { %v2858_v24 = vrot.slane %v2794_v1, 7  ;;  %v2857_v60 = vrot.slane %v2793_v29, 7  ;;  %v10741_v43 = vpack.i.bf16 %v2550_v51, %v2549_v18 }
 0x4c4   : > { %v2424_v12 = vpop.f32.mrf.mxu2  ;;  %v2358_v19 = vadd.f32 %v10614_v44, %v2232_v15  ;;  %v2107_v44 = vadd.f32 %v10596_v52, %v10434_v6  ;;  %v2108_v15 = vadd.f32 %v10611_v38, %v10441_v58 }
 0x4c5   : > { %13642 = vst [vmem:[#allocation57_spill] sm:$0xff] %v10741_v43  ;;  %v2969_v28 = vsel %vm817_vm2, %v2858_v24, 0.0  ;;  %v2953_v35 = vsel %vm817_vm2, 0.0, %v2857_v60  ;;  %8390 = vrot.lane.b32.xlu2 %v10741_v43, %s13637_s12  ;;  %v2859_v50 = vsel %vm817_vm2, %v2857_v60, %v2858_v24  ;;  %v2483_v29 = vadd.f32 %v2424_v12, %v2357_v26  ;;  %v10759_v60 = vpop.f32.mrf.mxu3  ;;  %v13643_v26 = vld [vmem:[#allocation23_spill] sm:$0xff] }
 0x4c6   : > { %v3035_v11 = vrot.slane %v2969_v28, 1  ;;  %v3447_v25 = vrot.slane %v2969_v28, 2  ;;  %v3032_v42 = vrot.slane %v2953_v35, 1  ;;  %v3444_v61 = vrot.slane %v2953_v35, 2 }
 0x4c7   : > { %v2985_v18 = vpack.c.bf16 %v2859_v50, %v2953_v35  ;;  %v3033_v51 = vrot.slane %v2859_v50, 1  ;;  %v3445_v1 = vrot.slane %v2859_v50, 2  ;;  %v2519_v35 = vadd.f32 %v10537_v22, %v2483_v29 }
 0x4c8   : > { %v2234_v52 = vadd.f32 %v10625_v57, %v2108_v15 }
 0x4c9   : > { %7764 = vmatmul.msk.bf16.gmra.mxu0 %vm3160_vm6, %v2985_v18  ;;  %v3034_v27 = vsel %vm1001_vm3, %v3032_v42, %v3033_v51  ;;  %v3036_v16 = vsel %vm1001_vm3, %v3033_v51, %v3035_v11  ;;  %v3446_v54 = vsel %vm1414_vm5, %v3444_v61, %v3445_v1  ;;  %v3448_v24 = vsel %vm1414_vm5, %v3445_v1, %v3447_v25  ;;  %v10773_v50 = vpop.f32.mrf.mxu0 }
 0x4ca   : > { %v10756_v43 = vpack.c.bf16 %v3036_v16, %v3034_v27  ;;  %v10761_v28 = vpack.c.bf16 %v3448_v24, %v3446_v54  ;;  %v2551_v25 = vmax.f32 %v2519_v35, 0.0  ;;  %v2233_v61 = vadd.f32 %v10603_v47, %v2107_v44  ;;  %v10788_v6 = vpop.f32.mrf.mxu1 }
 0x4cb   : > { %v2360_v54 = vadd.f32 %v10671_v14, %v2234_v52 }
 0x4cc   : > { %7744 = vmatmul.msk.bf16.gmra.mxu3 %vm3160_vm6, %v10756_v43  ;;  %v2426_v12 = vpop.f32.mrf.mxu2  ;;  %7786 = vmatmul.msk.bf16.gmra.mxu1 %vm3160_vm6, %v10761_v28  ;;  %v2359_v16 = vadd.f32 %v10637_v17, %v2233_v61  ;;  %v8336_v61 = vpop.permute.xlu0 %8335 }
 0x4cd   : > { %v2484_v27 = vadd.f32 %v2426_v12, %v2358_v19  ;;  %8405 = vrot.lane.b32.xlu2 %v13643_v26, %s13640_s25  ;;  %v10784_v29 = vpop.f32.mrf.mxu3  ;;  %v13645_v19 = vld [vmem:[#allocation29_spill] sm:$0xff]  ;;  %v2109_v12 = vadd.f32 %v10629_v2, %v10452_v7  ;;  %v8338_v2 = vunpack.i.h.bf16 %v8336_v61 }
 0x4cf   : > { %v2520_v11 = vadd.f32 %v10537_v22, %v2484_v27  ;;  %v2235_v14 = vadd.f32 %v10653_v37, %v2109_v12 }
 0x4d1   : > { %v2552_v42 = vmax.f32 %v2520_v11, 0.0  ;;  %7807 = vmatmul.msk.bf16.vlgmr.msra.gmra.mxu2 %vm3160_vm6, %v2985_v18  ;;  %v10792_v18 = vpop.f32.mrf.mxu0  ;;  %v2361_v7 = vadd.f32 %v10687_v36, %v2235_v14 }
 0x4d2   : > { %v10803_v17 = vpop.f32.mrf.mxu1 }
 0x4d3   : > { %v10782_v51 = vpack.i.bf16 %v2552_v42, %v2551_v25  ;;  %v2110_v25 = vadd.f32 %v10667_v53, %v10455_v21 }
 0x4d4   : > { %v2429_v1 = vpop.f32.mrf.mxu2 }
 0x4d5   : > { %13644 = vst [vmem:[#allocation78_spill] sm:$0xff] %v10782_v51  ;;  %8400 = vrot.lane.b32.xlu1 %v10782_v51, %s13637_s12  ;;  %v2485_v47 = vadd.f32 %v2429_v1, %v2359_v16  ;;  %v10800_v35 = vpop.f32.mrf.mxu3  ;;  %v2236_v1 = vadd.f32 %v10677_v20, %v2110_v25  ;;  %v8337_v16 = vunpack.i.l.bf16 %v8336_v61  ;;  %v2111_v20 = vadd.f32 %v10680_v30, %v10464_v4 }
 0x4d7   : > { %v2521_v38 = vadd.f32 %v10537_v22, %v2485_v47  ;;  %v2362_v36 = vadd.f32 %v10719_v39, %v2236_v1 }
 0x4d9   : > { %v2553_v27 = vmax.f32 %v2521_v38, 0.0  ;;  %v10806_v11 = vpop.f32.mrf.mxu0 }
 0x4da   : > { %v10818_v21 = vpop.f32.mrf.mxu1 }
 0x4dc   : > { %v2431_v58 = vpop.f32.mrf.mxu2 }
 0x4dd   : > { %v2486_v24 = vadd.f32 %v2431_v58, %v2360_v54  ;;  %8415 = vrot.lane.b32.xlu1 %v13645_v19, %s13640_s25  ;;  %v10816_v58 = vpop.f32.mrf.mxu3 }
 0x4df   : > { %v2522_v57 = vadd.f32 %v10537_v22, %v2486_v24 }
 0x4e1   : > { %v2554_v44 = vmax.f32 %v2522_v57, 0.0 }
 0x4e3   : > { %v10810_v42 = vpack.i.bf16 %v2554_v44, %v2553_v27  ;;  %v10826_v44 = vpop.f32.mrf.mxu0 }
 0x4e4   : > { %v2434_v15 = vpop.f32.mrf.mxu2 }
 0x4e5   : > { %13646 = vst [vmem:[#allocation61_spill] sm:$0xff] %v10810_v42  ;;  %8410 = vrot.lane.b32.xlu0 %v10810_v42, %s13637_s12  ;;  %v2487_v37 = vadd.f32 %v2434_v15, %v2361_v7  ;;  %v13647_v15 = vld [vmem:[#allocation36_spill] sm:$0xff] }
 0x4e7   : > { %v8341_v52 = vpop.permute.xlu1 %8340  ;;  %v2523_v57 = vadd.f32 %v10537_v22, %v2487_v37 }
 0x4e8   : > { %v8343_v47 = vunpack.i.h.bf16 %v8341_v52  ;;  %v8342_v54 = vunpack.i.l.bf16 %v8341_v52 }
 0x4ea   : > { %v2796_v53 = vsel %vm1132_vm4, %v8338_v2, %v8343_v47  ;;  %v2795_v38 = vsel %vm1132_vm4, %v8337_v16, %v8342_v54  ;;  %v8346_v47 = vpop.permute.xlu2 %8345  ;;  %v2555_v54 = vmax.f32 %v2523_v57, 0.0 }
 0x4eb   : > { %v2861_v24 = vrot.slane %v2796_v53, 7  ;;  %v2860_v12 = vrot.slane %v2795_v38, 7 }
 0x4ec   : > { %v2436_v27 = vpop.f32.mrf.mxu2 }
 0x4ed   : > { %v2970_v14 = vsel %vm817_vm2, %v2861_v24, 0.0  ;;  %v2954_v25 = vsel %vm817_vm2, 0.0, %v2860_v12  ;;  %v2488_v61 = vadd.f32 %v2436_v27, %v2362_v36  ;;  %8425 = vrot.lane.b32.xlu0 %v13647_v15, %s13640_s25  ;;  %v2862_v7 = vsel %vm817_vm2, %v2860_v12, %v2861_v24 }
 0x4ee   : > { %v3040_v2 = vrot.slane %v2970_v14, 1  ;;  %v3452_v39 = vrot.slane %v2970_v14, 2  ;;  %v3037_v1 = vrot.slane %v2954_v25, 1  ;;  %v3449_v52 = vrot.slane %v2954_v25, 2 }
 0x4ef   : > { %v2524_v4 = vadd.f32 %v10537_v22, %v2488_v61  ;;  %v10834_v30 = vpack.c.bf16 %v2862_v7, %v2954_v25  ;;  %v3038_v16 = vrot.slane %v2862_v7, 1  ;;  %v3450_v37 = vrot.slane %v2862_v7, 2  ;;  %v10849_v25 = vpop.f32.mrf.mxu3 }
 0x4f0   : > { %v2237_v36 = vadd.f32 %v10705_v9, %v2111_v20  ;;  %v2112_v27 = vadd.f32 %v10716_v49, %v10467_v33  ;;  %v10865_v49 = vpop.f32.mrf.mxu0  ;;  %v8348_v20 = vunpack.i.h.bf16 %v8346_v47 }
 0x4f1   : > { %v2556_v53 = vmax.f32 %v2524_v4, 0.0  ;;  %7765 = vmatmul.msk.bf16.gmra.mxu0 %vm3160_vm6, %v10834_v30  ;;  %7808 = vmatmul.msk.bf16.gmra.mxu2 %vm3160_vm6, %v10834_v30  ;;  %v3039_v38 = vsel %vm1001_vm3, %v3037_v1, %v3038_v16  ;;  %v3041_v24 = vsel %vm1001_vm3, %v3038_v16, %v3040_v2  ;;  %v3451_v12 = vsel %vm1414_vm5, %v3449_v52, %v3450_v37  ;;  %v10855_v1 = vpop.f32.mrf.mxu1 }
 0x4f2   : > { %v10846_v14 = vpack.c.bf16 %v3041_v24, %v3039_v38  ;;  %v3453_v57 = vsel %vm1414_vm5, %v3450_v37, %v3452_v39  ;;  %v2238_v33 = vadd.f32 %v10722_v23, %v2112_v27  ;;  %v2363_v9 = vadd.f32 %v10737_v48, %v2237_v36  ;;  %v8361_v4 = vpop.permute.xlu2 %8360 }
 0x4f3   : > { %v10851_v61 = vpack.c.bf16 %v3453_v57, %v3451_v12  ;;  %v10853_v7 = vpack.i.bf16 %v2556_v53, %v2555_v54  ;;  %v8347_v52 = vunpack.i.l.bf16 %v8346_v47  ;;  %v8356_v53 = vpop.permute.xlu1 %8355  ;;  %v2113_v23 = vadd.f32 %v10731_v55, %v10474_v3 }
 0x4f4   : > { %7745 = vmatmul.msk.bf16.gmra.mxu3 %vm3160_vm6, %v10846_v14  ;;  %v2439_v2 = vpop.f32.mrf.mxu2  ;;  %v2364_v12 = vadd.f32 %v10764_v62, %v2238_v33  ;;  %v8363_v48 = vunpack.i.h.bf16 %v8361_v4  ;;  %v8362_v57 = vunpack.i.l.bf16 %v8361_v4  ;;  %v8357_v47 = vunpack.i.l.bf16 %v8356_v53  ;;  %v13649_v62 = vld [vmem:[#allocation40_spill] sm:$0xff] }
 0x4f5   : > { %13648 = vst [vmem:[#allocation79_spill] sm:$0xff] %v10853_v7  ;;  %7787 = vmatmul.msk.bf16.gmra.mxu1 %vm3160_vm6, %v10851_v61  ;;  %8420 = vrot.lane.b32.xlu2 %v10853_v7, %s13637_s12  ;;  %v2489_v16 = vadd.f32 %v2439_v2, %v2363_v9  ;;  %v8358_v7 = vunpack.i.h.bf16 %v8356_v53 }
 0x4f7   : > { %v8351_v39 = vpop.permute.xlu0 %8350  ;;  %v2525_v2 = vadd.f32 %v10537_v22, %v2489_v16 }
 0x4f8   : > { %v8353_v37 = vunpack.i.h.bf16 %v8351_v39  ;;  %v8352_v54 = vunpack.i.l.bf16 %v8351_v39  ;;  %v10873_v39 = vpop.f32.mrf.mxu3  ;;  %v10882_v16 = vpop.f32.mrf.mxu0 }
 0x4f9   : > { %v10880_v55 = vpop.f32.mrf.mxu1  ;;  %v2557_v41 = vmax.f32 %v2525_v2, 0.0 }
 0x4fa   : > { %v2798_v38 = vsel %vm1132_vm4, %v8348_v20, %v8353_v37  ;;  %v2797_v24 = vsel %vm1132_vm4, %v8347_v52, %v8352_v54 }
 0x4fb   : > { %v2864_v36 = vrot.slane %v2798_v38, 7  ;;  %v2863_v27 = vrot.slane %v2797_v24, 7 }
 0x4fc   : > { %v2441_v9 = vpop.f32.mrf.mxu2 }
 0x4fd   : > { %v2971_v20 = vsel %vm817_vm2, %v2864_v36, 0.0  ;;  %v2955_v52 = vsel %vm817_vm2, 0.0, %v2863_v27  ;;  %v2490_v37 = vadd.f32 %v2441_v9, %v2364_v12  ;;  %8435 = vrot.lane.b32.xlu2 %v13649_v62, %s13640_s25  ;;  %v2865_v3 = vsel %vm817_vm2, %v2863_v27, %v2864_v36 }
 0x4fe   : > { %v3045_v33 = vrot.slane %v2971_v20, 1  ;;  %v3457_v4 = vrot.slane %v2971_v20, 2  ;;  %v3042_v54 = vrot.slane %v2955_v52, 1  ;;  %v3454_v53 = vrot.slane %v2955_v52, 2 }
 0x4ff   : > { %v2526_v38 = vadd.f32 %v10537_v22, %v2490_v37  ;;  %v10885_v24 = vpack.c.bf16 %v2865_v3, %v2955_v52  ;;  %v3043_v42 = vrot.slane %v2865_v3, 1  ;;  %v3455_v51 = vrot.slane %v2865_v3, 2 }
 0x500   : > { %v2800_v12 = vsel %vm1132_vm4, %v8358_v7, %v8363_v48  ;;  %v2799_v9 = vsel %vm1132_vm4, %v8357_v47, %v8362_v57  ;;  %v2239_v37 = vadd.f32 %v10743_v59, %v2113_v23  ;;  %v2114_v48 = vadd.f32 %v10759_v60, %v10477_v46 }
 0x501   : > { %v2558_v36 = vmax.f32 %v2526_v38, 0.0  ;;  %7766 = vmatmul.msk.bf16.gmra.mxu0 %vm3160_vm6, %v10885_v24  ;;  %7809 = vmatmul.msk.bf16.gmra.mxu2 %vm3160_vm6, %v10885_v24  ;;  %v3044_v27 = vsel %vm1001_vm3, %v3042_v54, %v3043_v42  ;;  %v3046_v20 = vsel %vm1001_vm3, %v3043_v42, %v3045_v33  ;;  %v3456_v52 = vsel %vm1414_vm5, %v3454_v53, %v3455_v51 }
 0x502   : > { %v10897_v3 = vpack.c.bf16 %v3046_v20, %v3044_v27  ;;  %v3458_v7 = vsel %vm1414_vm5, %v3455_v51, %v3457_v4  ;;  %v2867_v2 = vrot.slane %v2800_v12, 7  ;;  %v2866_v38 = vrot.slane %v2799_v9, 7  ;;  %v10913_v51 = vpop.f32.mrf.mxu3  ;;  %v10921_v4 = vpop.f32.mrf.mxu0 }
 0x503   : > { %v10902_v57 = vpack.c.bf16 %v3458_v7, %v3456_v52  ;;  %v10904_v47 = vpack.i.bf16 %v2558_v36, %v2557_v41  ;;  %v2240_v59 = vadd.f32 %v10773_v50, %v2114_v48  ;;  %v2365_v46 = vadd.f32 %v10788_v6, %v2239_v37  ;;  %v10916_v41 = vpop.f32.mrf.mxu1  ;;  %v13651_v7 = vld [vmem:[#allocation44_spill] sm:$0xff] }
 0x504   : > { %7746 = vmatmul.msk.bf16.gmra.mxu3 %vm3160_vm6, %v10897_v3  ;;  %v2444_v42 = vpop.f32.mrf.mxu2  ;;  %v2972_v60 = vsel %vm817_vm2, %v2867_v2, 0.0  ;;  %v2956_v23 = vsel %vm817_vm2, 0.0, %v2866_v38  ;;  %v2868_v33 = vsel %vm817_vm2, %v2866_v38, %v2867_v2  ;;  %v2115_v48 = vadd.f32 %v10784_v29, %v10484_v32 }
 0x505   : > { %13650 = vst [vmem:[#allocation81_spill] sm:$0xff] %v10904_v47  ;;  %7788 = vmatmul.msk.bf16.gmra.mxu1 %vm3160_vm6, %v10902_v57  ;;  %8430 = vrot.lane.b32.xlu1 %v10904_v47, %s13637_s12  ;;  %v2491_v54 = vadd.f32 %v2444_v42, %v2365_v46  ;;  %v3050_v53 = vrot.slane %v2972_v60, 1  ;;  %v3047_v12 = vrot.slane %v2956_v23, 1  ;;  %v2366_v9 = vadd.f32 %v10803_v17, %v2240_v59 }
 0x506   : > { %v3048_v50 = vrot.slane %v2868_v33, 1  ;;  %v3462_v36 = vrot.slane %v2972_v60, 2  ;;  %v3459_v27 = vrot.slane %v2956_v23, 2  ;;  %v3460_v6 = vrot.slane %v2868_v33, 2 }
 0x507   : > { %v2527_v52 = vadd.f32 %v10537_v22, %v2491_v54  ;;  %v10930_v38 = vpack.c.bf16 %v2868_v33, %v2956_v23  ;;  %v2241_v29 = vadd.f32 %v10792_v18, %v2115_v48  ;;  %v2116_v33 = vadd.f32 %v10800_v35, %v10487_v63 }
 0x508   : > { %v3049_v17 = vsel %vm1001_vm3, %v3047_v12, %v3048_v50  ;;  %v3051_v42 = vsel %vm1001_vm3, %v3048_v50, %v3050_v53  ;;  %v3461_v59 = vsel %vm1414_vm5, %v3459_v27, %v3460_v6  ;;  %v3463_v46 = vsel %vm1414_vm5, %v3460_v6, %v3462_v36  ;;  %v8366_v50 = vpop.permute.xlu0 %8365 }
 0x509   : > { %v10947_v23 = vpack.c.bf16 %v3051_v42, %v3049_v17  ;;  %v10951_v53 = vpack.c.bf16 %v3463_v46, %v3461_v59  ;;  %v2367_v18 = vadd.f32 %v10818_v21, %v2241_v29  ;;  %v2242_v27 = vadd.f32 %v10806_v11, %v2116_v33 }
 0x50a   : > { %v10936_v60 = vpop.f32.mrf.mxu3  ;;  %v10938_v54 = vpop.f32.mrf.mxu0  ;;  %v8368_v63 = vunpack.i.h.bf16 %v8366_v50  ;;  %v8367_v6 = vunpack.i.l.bf16 %v8366_v50  ;;  %v2117_v11 = vadd.f32 %v10816_v58, %v10492_v8 }
 0x50b   : > { %v10944_v32 = vpop.f32.mrf.mxu1  ;;  %v2368_v21 = vadd.f32 %v10855_v1, %v2242_v27 }
 0x50c   : > { %v2446_v20 = vpop.f32.mrf.mxu2 }
 0x50d   : > { %v2492_v37 = vadd.f32 %v2446_v20, %v2366_v9  ;;  %8445 = vrot.lane.b32.xlu1 %v13651_v7, %s13640_s25  ;;  %v2559_v9 = vmax.f32 %v2527_v52, 0.0 }
 0x50f   : > { %v2528_v2 = vadd.f32 %v10537_v22, %v2492_v37 }
 0x511   : > { %v2560_v20 = vmax.f32 %v2528_v2, 0.0  ;;  %7767 = vmatmul.msk.bf16.gmra.mxu0 %vm3160_vm6, %v10930_v38  ;;  %7810 = vmatmul.msk.bf16.gmra.mxu2 %vm3160_vm6, %v10930_v38 }
 0x512   : > { %v10965_v42 = vpop.f32.mrf.mxu3  ;;  %v10967_v59 = vpop.f32.mrf.mxu0 }
 0x513   : > { %v10953_v12 = vpack.i.bf16 %v2560_v20, %v2559_v9  ;;  %v10970_v20 = vpop.f32.mrf.mxu1 }
 0x514   : > { %7747 = vmatmul.msk.bf16.gmra.mxu3 %vm3160_vm6, %v10947_v23  ;;  %v2449_v36 = vpop.f32.mrf.mxu2 }
 0x515   : > { %13652 = vst [vmem:[#allocation62_spill] sm:$0xff] %v10953_v12  ;;  %7789 = vmatmul.msk.bf16.gmra.mxu1 %vm3160_vm6, %v10951_v53  ;;  %8440 = vrot.lane.b32.xlu0 %v10953_v12, %s13637_s12  ;;  %v2493_v52 = vadd.f32 %v2449_v36, %v2367_v18 }
 0x517   : > { %v8371_v35 = vpop.permute.xlu1 %8370  ;;  %v2529_v29 = vadd.f32 %v10537_v22, %v2493_v52 }
 0x518   : > { %v8373_v37 = vunpack.i.h.bf16 %v8371_v35  ;;  %v8372_v48 = vunpack.i.l.bf16 %v8371_v35 }
 0x51a   : > { %v2802_v2 = vsel %vm1132_vm4, %v8368_v63, %v8373_v37  ;;  %v2801_v17 = vsel %vm1132_vm4, %v8367_v6, %v8372_v48  ;;  %v13653_v63 = vld [vmem:[#allocation47_spill] sm:$0xff]  ;;  %v3220_v47 = vpop.f32.mrf.mxu3 }
 0x51b   : > { %v2870_v46 = vrot.slane %v2802_v2, 7  ;;  %v2869_v9 = vrot.slane %v2801_v17, 7  ;;  %v8376_v2 = vpop.permute.xlu2 %8375  ;;  %v2561_v17 = vmax.f32 %v2529_v29, 0.0 }
 0x51c   : > { %v2451_v33 = vpop.f32.mrf.mxu2 }
 0x51d   : > { %v2973_v50 = vsel %vm817_vm2, %v2870_v46, 0.0  ;;  %v2957_v36 = vsel %vm817_vm2, 0.0, %v2869_v9  ;;  %v2494_v18 = vadd.f32 %v2451_v33, %v2368_v21  ;;  %8455 = vrot.lane.b32.xlu0 %v13653_v63, %s13640_s25  ;;  %v2871_v35 = vsel %vm817_vm2, %v2869_v9, %v2870_v46 }
 0x51e   : > { %v3055_v6 = vrot.slane %v2973_v50, 1  ;;  %v3467_v1 = vrot.slane %v2973_v50, 2  ;;  %v3052_v27 = vrot.slane %v2957_v36, 1  ;;  %v3464_v37 = vrot.slane %v2957_v36, 2 }
 0x51f   : > { %v2530_v48 = vadd.f32 %v10537_v22, %v2494_v18  ;;  %v10981_v8 = vpack.c.bf16 %v2871_v35, %v2957_v36  ;;  %v3053_v58 = vrot.slane %v2871_v35, 1  ;;  %v3465_v52 = vrot.slane %v2871_v35, 2 }
 0x520   : > { %v2243_v33 = vadd.f32 %v10826_v44, %v2117_v11  ;;  %v2118_v50 = vadd.f32 %v10849_v25, %v10495_v0 }
 0x521   : > { %v2562_v12 = vmax.f32 %v2530_v48, 0.0  ;;  %7768 = vmatmul.msk.bf16.gmra.mxu0 %vm3160_vm6, %v10981_v8  ;;  %7811 = vmatmul.msk.bf16.gmra.mxu2 %vm3160_vm6, %v10981_v8  ;;  %v3054_v46 = vsel %vm1001_vm3, %v3052_v27, %v3053_v58  ;;  %v3056_v9 = vsel %vm1001_vm3, %v3053_v58, %v3055_v6  ;;  %v3466_v21 = vsel %vm1414_vm5, %v3464_v37, %v3465_v52  ;;  %v3364_v48 = vpop.f32.mrf.mxu0  ;;  %v11000_v27 = vpop.f32.mrf.mxu1 }
 0x522   : > { %v10993_v36 = vpack.c.bf16 %v3056_v9, %v3054_v46  ;;  %v3468_v29 = vsel %vm1414_vm5, %v3465_v52, %v3467_v1  ;;  %v11004_v44 = vadd.f32 %v3364_v48, %v3220_v47  ;;  %v2244_v0 = vadd.f32 %v10865_v49, %v2118_v50  ;;  %v8386_v46 = vpop.permute.xlu1 %8385 }
 0x523   : > { %v10996_v18 = vpack.c.bf16 %v3468_v29, %v3466_v21  ;;  %v10998_v35 = vpack.i.bf16 %v2562_v12, %v2561_v17  ;;  %v2369_v25 = vadd.f32 %v10880_v55, %v2243_v33  ;;  %v8378_v12 = vunpack.i.h.bf16 %v8376_v2  ;;  %v8391_v37 = vpop.permute.xlu2 %8390 }
 0x524   : > { %7748 = vmatmul.msk.bf16.gmra.mxu3 %vm3160_vm6, %v10993_v36  ;;  %v2454_v6 = vpop.f32.mrf.mxu2  ;;  %v8377_v1 = vunpack.i.l.bf16 %v8376_v2  ;;  %v2370_v21 = vadd.f32 %v10916_v41, %v2244_v0  ;;  %v2119_v29 = vadd.f32 %v10873_v39, %v10502_v45  ;;  %v8393_v49 = vunpack.i.h.bf16 %v8391_v37 }
 0x525   : > { %13654 = vst [vmem:[#allocation64_spill] sm:$0xff] %v10998_v35  ;;  %7790 = vmatmul.msk.bf16.gmra.mxu1 %vm3160_vm6, %v10996_v18  ;;  %8450 = vrot.lane.b32.xlu2 %v10998_v35, %s13637_s12  ;;  %v2495_v58 = vadd.f32 %v2454_v6, %v2369_v25  ;;  %v8392_v33 = vunpack.i.l.bf16 %v8391_v37  ;;  %v8388_v48 = vunpack.i.h.bf16 %v8386_v46  ;;  %v8387_v2 = vunpack.i.l.bf16 %v8386_v46 }
 0x527   : > { %v8381_v11 = vpop.permute.xlu0 %8380  ;;  %v2531_v6 = vadd.f32 %v10537_v22, %v2495_v58  ;;  %v2806_v35 = vsel %vm1132_vm4, %v8388_v48, %v8393_v49 }
 0x528   : > { %v8383_v52 = vunpack.i.h.bf16 %v8381_v11  ;;  %v8382_v17 = vunpack.i.l.bf16 %v8381_v11 }
 0x529   : > { %v11023_v45 = vpop.f32.mrf.mxu1 }
 0x52a   : > { %v2804_v47 = vsel %vm1132_vm4, %v8378_v12, %v8383_v52  ;;  %v2803_v9 = vsel %vm1132_vm4, %v8377_v1, %v8382_v17  ;;  %v13655_v1 = vld [vmem:[#allocation51_spill] sm:$0xff] }
 0x52b   : > { %v2873_v50 = vrot.slane %v2804_v47, 7  ;;  %v2872_v55 = vrot.slane %v2803_v9, 7 }
 0x52c   : > { %v2456_v25 = vpop.f32.mrf.mxu2 }
 0x52d   : > { %v2974_v11 = vsel %vm817_vm2, %v2873_v50, 0.0  ;;  %v2958_v12 = vsel %vm817_vm2, 0.0, %v2872_v55  ;;  %v2496_v52 = vadd.f32 %v2456_v25, %v2370_v21  ;;  %8465 = vrot.lane.b32.xlu2 %v13655_v1, %s13640_s25  ;;  %v2874_v41 = vsel %vm817_vm2, %v2872_v55, %v2873_v50 }
 0x52e   : > { %v3060_v39 = vrot.slane %v2974_v11, 1  ;;  %v3472_v0 = vrot.slane %v2974_v11, 2  ;;  %v3057_v37 = vrot.slane %v2958_v12, 1  ;;  %v3469_v17 = vrot.slane %v2958_v12, 2 }
 0x52f   : > { %v2532_v46 = vadd.f32 %v10537_v22, %v2496_v52  ;;  %v11026_v58 = vpack.c.bf16 %v2874_v41, %v2958_v12  ;;  %v3058_v47 = vrot.slane %v2874_v41, 1  ;;  %v3470_v9 = vrot.slane %v2874_v41, 2 }
 0x530   : > { %v2805_v21 = vsel %vm1132_vm4, %v8387_v2, %v8392_v33  ;;  %v2563_v25 = vmax.f32 %v2531_v6, 0.0  ;;  %v2245_v11 = vadd.f32 %v10882_v16, %v2119_v29  ;;  %v2120_v33 = vadd.f32 %v10913_v51, %v10507_v34 }
 0x531   : > { %v2564_v1 = vmax.f32 %v2532_v46, 0.0  ;;  %7769 = vmatmul.msk.bf16.gmra.mxu0 %vm3160_vm6, %v11026_v58  ;;  %7812 = vmatmul.msk.bf16.gmra.mxu2 %vm3160_vm6, %v11026_v58  ;;  %v3059_v50 = vsel %vm1001_vm3, %v3057_v37, %v3058_v47  ;;  %v3061_v22 = vsel %vm1001_vm3, %v3058_v47, %v3060_v39  ;;  %v3471_v55 = vsel %vm1414_vm5, %v3469_v17, %v3470_v9  ;;  %v3631_v16 = vpop.f32.mrf.mxu1 }
 0x532   : > { %v11038_v12 = vpack.c.bf16 %v3061_v22, %v3059_v50  ;;  %v3473_v49 = vsel %vm1414_vm5, %v3470_v9, %v3472_v0  ;;  %v2876_v6 = vrot.slane %v2806_v35, 7  ;;  %v2875_v52 = vrot.slane %v2805_v21, 7  ;;  %v13657_v22 = vld [vmem:[#allocation55_spill] sm:$0xff] }
 0x533   : > { %v11043_v48 = vpack.c.bf16 %v3473_v49, %v3471_v55  ;;  %v11045_v2 = vpack.i.bf16 %v2564_v1, %v2563_v25  ;;  %v2246_v29 = vadd.f32 %v10921_v4, %v2120_v33  ;;  %v2371_v34 = vadd.f32 %v10944_v32, %v2245_v11  ;;  %v8889_v32 = vld [vmem:[%s13271_s4] ss:$0 sm:$0xff]  ;;  %v13658_v55 = vld [vmem:[#allocation70_spill] sm:$0xff] }
 0x534   : > { %7749 = vmatmul.msk.bf16.gmra.mxu3 %vm3160_vm6, %v11038_v12  ;;  %v2459_v41 = vpop.f32.mrf.mxu2  ;;  %v11056_v51 = vadd.f32 %v3631_v16, %v11004_v44  ;;  %v2975_v35 = vsel %vm817_vm2, %v2876_v6, 0.0  ;;  %v2959_v1 = vsel %vm817_vm2, 0.0, %v2875_v52  ;;  %v2877_v39 = vsel %vm817_vm2, %v2875_v52, %v2876_v6 }
 0x535   : > { %13656 = vst [vmem:[#allocation65_spill] sm:$0xff] %v11045_v2  ;;  %7791 = vmatmul.msk.bf16.gmra.mxu1 %vm3160_vm6, %v11043_v48  ;;  %8460 = vrot.lane.b32.xlu1 %v11045_v2, %s13637_s12  ;;  %v2497_v0 = vadd.f32 %v2459_v41, %v2371_v34  ;;  %v3065_v37 = vrot.slane %v2975_v35, 1  ;;  %v3062_v17 = vrot.slane %v2959_v1, 1  ;;  %v2372_v46 = vadd.f32 %v10970_v20, %v2246_v29 }
 0x536   : > { %v3063_v47 = vrot.slane %v2877_v39, 1  ;;  %v3477_v9 = vrot.slane %v2975_v35, 2  ;;  %v3474_v21 = vrot.slane %v2959_v1, 2  ;;  %v3475_v25 = vrot.slane %v2877_v39, 2  ;;  %v13659_v35 = vld [vmem:[#allocation59_spill] sm:$0xff] }
 0x537   : > { %v2533_v44 = vadd.f32 %v8889_v32, %v2497_v0  ;;  %v2121_v11 = vadd.f32 %v10936_v60, %v13658_v55  ;;  %v11069_v33 = vpack.c.bf16 %v2877_v39, %v2959_v1  ;;  %v2122_v1 = vadd.f32 %v10965_v42, %v13659_v35 }
 0x538   : > { %v3064_v20 = vsel %vm1001_vm3, %v3062_v17, %v3063_v47  ;;  %v3066_v6 = vsel %vm1001_vm3, %v3063_v47, %v3065_v37  ;;  %v3476_v52 = vsel %vm1414_vm5, %v3474_v21, %v3475_v25  ;;  %v3478_v41 = vsel %vm1414_vm5, %v3475_v25, %v3477_v9  ;;  %v8396_v37 = vpop.permute.xlu0 %8395 }
 0x539   : > { %v2565_v16 = vmax.f32 %v2533_v44, 0.0  ;;  %v2247_v60 = vadd.f32 %v10938_v54, %v2121_v11  ;;  %v11080_v34 = vpack.c.bf16 %v3066_v6, %v3064_v20  ;;  %v11084_v39 = vpack.c.bf16 %v3478_v41, %v3476_v52  ;;  %v11096_v54 = vpop.f32.mrf.mxu3  ;;  %v11100_v21 = vpop.f32.mrf.mxu1 }
 0x53a   : > { %v2248_v47 = vadd.f32 %v10967_v59, %v2122_v1  ;;  %v8398_v9 = vunpack.i.h.bf16 %v8396_v37  ;;  %v8397_v25 = vunpack.i.l.bf16 %v8396_v37 }
 0x53b   : > { %v2373_v42 = vadd.f32 %v11000_v27, %v2247_v60  ;;  %v13661_v60 = vld [vmem:[#allocation33_spill] sm:$0xff] }
 0x53c   : > { %v2461_v4 = vpop.f32.mrf.mxu2  ;;  %v2374_v20 = vadd.f32 %v11023_v45, %v2248_v47 }
 0x53d   : > { %v2498_v50 = vadd.f32 %v2461_v4, %v2372_v46  ;;  %8475 = vrot.lane.b32.xlu1 %v13657_v22, %s13640_s25  ;;  %v11090_v46 = vpop.f32.mrf.mxu0  ;;  %s8905_s25 = sshra.s32 %s7428_s29, 4  ;;  %s8906_s25 = int_to_ptr.hbm [resolvable:$true] %s8905_s25 }
 0x53e   : > { %s8907_s14 = scalar_lea.hbm %s8906_s25, 64  ;;  %p8912_p0 = scmp.lt.s32.totalorder %s8906_s25, %s13278_s11 }
 0x53f   : > { %v2534_v49 = vadd.f32 %v8889_v32, %v2498_v50  ;;  %p8908_p11 = scmp.ne.s32.totalorder %s8906_s25, %s8907_s14 }
 0x541   : > { %v2566_v29 = vmax.f32 %v2534_v49, 0.0  ;;  %7770 = vmatmul.msk.bf16.gmra.mxu0 %vm3160_vm6, %v11069_v33  ;;  %7813 = vmatmul.msk.bf16.gmra.mxu2 %vm3160_vm6, %v11069_v33  ;;  %p8909_p12 = pnand %p8908_p11, %p9062_p5 }
 0x543   : > { %v11086_v0 = vpack.i.bf16 %v2566_v29, %v2565_v16  ;;  %p8910_p13 = pneg %p8909_p12 }
 0x544   : > { %7750 = vmatmul.msk.bf16.gmra.mxu3 %vm3160_vm6, %v11080_v34  ;;  %v2464_v17 = vpop.f32.mrf.mxu2 }
 0x545   : > { %13660 = vst [vmem:[#allocation83_spill] sm:$0xff] %v11086_v0  ;;  %7792 = vmatmul.msk.bf16.gmra.mxu1 %vm3160_vm6, %v11084_v39  ;;  %8470 = vrot.lane.b32.xlu0 %v11086_v0, %s13637_s12  ;;  %v2499_v44 = vadd.f32 %v2464_v17, %v2373_v42 }
 0x546   : > { %v3369_v45 = vpop.f32.mrf.mxu0 }
 0x547   : > { %v8401_v4 = vpop.permute.xlu1 %8400  ;;  %v2535_v41 = vadd.f32 %v8889_v32, %v2499_v44 }
 0x548   : > { %v8403_v50 = vunpack.i.h.bf16 %v8401_v4  ;;  %v8402_v55 = vunpack.i.l.bf16 %v8401_v4 }
 0x54a   : > { %v2808_v11 = vsel %vm1132_vm4, %v8398_v9, %v8403_v50  ;;  %v2807_v49 = vsel %vm1132_vm4, %v8397_v25, %v8402_v55  ;;  %v2567_v55 = vmax.f32 %v2535_v41, 0.0 }
 0x54b   : > { %v2879_v6 = vrot.slane %v2808_v11, 7  ;;  %v2878_v52 = vrot.slane %v2807_v49, 7  ;;  %v3636_v11 = vpop.f32.mrf.mxu1 }
 0x54c   : > { %v2466_v27 = vpop.f32.mrf.mxu2 }
 0x54d   : > { %v2976_v59 = vsel %vm817_vm2, %v2879_v6, 0.0  ;;  %v2960_v16 = vsel %vm817_vm2, 0.0, %v2878_v52  ;;  %v2500_v29 = vadd.f32 %v2466_v27, %v2374_v20  ;;  %8485 = vrot.lane.b32.xlu0 %v13661_v60, %s13448_s15  ;;  %v2880_v35 = vsel %vm817_vm2, %v2878_v52, %v2879_v6  ;;  %v8406_v6 = vpop.permute.xlu2 %8405 }
 0x54e   : > { %v3070_v1 = vrot.slane %v2976_v59, 1  ;;  %v3482_v37 = vrot.slane %v2976_v59, 2  ;;  %v3067_v17 = vrot.slane %v2960_v16, 1  ;;  %v3479_v42 = vrot.slane %v2960_v16, 2 }
 0x54f   : > { %v2536_v47 = vadd.f32 %v8889_v32, %v2500_v29  ;;  %v3225_v9 = vpop.f32.mrf.mxu3  ;;  %v11110_v4 = vpack.c.bf16 %v2880_v35, %v2960_v16  ;;  %v3068_v25 = vrot.slane %v2880_v35, 1  ;;  %v3480_v44 = vrot.slane %v2880_v35, 2 }
 0x550   : > { %v3370_v50 = vadd.f32 %v3369_v45, %v3225_v9  ;;  %v8416_v9 = vpop.permute.xlu1 %8415 }
 0x551   : > { %v2568_v49 = vmax.f32 %v2536_v47, 0.0  ;;  %7771 = vmatmul.msk.bf16.gmra.mxu0 %vm3160_vm6, %v11110_v4  ;;  %7814 = vmatmul.msk.bf16.gmra.mxu2 %vm3160_vm6, %v11110_v4  ;;  %v3069_v20 = vsel %vm1001_vm3, %v3067_v17, %v3068_v25  ;;  %v3071_v32 = vsel %vm1001_vm3, %v3068_v25, %v3070_v1  ;;  %v3481_v52 = vsel %vm1414_vm5, %v3479_v42, %v3480_v44 }
 0x552   : > { %v3483_v27 = vsel %vm1414_vm5, %v3480_v44, %v3482_v37  ;;  %v11120_v59 = vadd.f32 %v3636_v11, %v3370_v50  ;;  %v11122_v41 = vpack.c.bf16 %v3071_v32, %v3069_v20  ;;  %v8408_v37 = vunpack.i.h.bf16 %v8406_v6 }
 0x553   : > { %v11124_v16 = vpack.c.bf16 %v3483_v27, %v3481_v52  ;;  %v11126_v60 = vpack.i.bf16 %v2568_v49, %v2567_v55  ;;  %v8407_v17 = vunpack.i.l.bf16 %v8406_v6  ;;  %v8417_v20 = vunpack.i.l.bf16 %v8416_v9  ;;  %v13663_v6 = vld [vmem:[#allocation14_spill] sm:$0xff] }
 0x554   : > { %v3767_v29 = vpop.f32.mrf.mxu2  ;;  %7751 = vmatmul.msk.bf16.gmra.mxu3 %vm3160_vm6, %v11122_v41 }
 0x555   : > { %13662 = vst [vmem:[#allocation85_spill] sm:$0xff] %v11126_v60  ;;  %7793 = vmatmul.msk.bf16.gmra.mxu1 %vm3160_vm6, %v11124_v16  ;;  %v11133_v35 = vadd.f32 %v3767_v29, %v11056_v51  ;;  %8480 = vrot.lane.b32.xlu2 %v11126_v60, %s13637_s12  ;;  %v8421_v47 = vpop.permute.xlu2 %8420  ;;  %v8418_v51 = vunpack.i.h.bf16 %v8416_v9 }
 0x556   : > { %v8423_v11 = vunpack.i.h.bf16 %v8421_v47  ;;  %v8422_v49 = vunpack.i.l.bf16 %v8421_v47 }
 0x557   : > { %v8411_v1 = vpop.permute.xlu0 %8410 }
 0x558   : > { %v8413_v42 = vunpack.i.h.bf16 %v8411_v1  ;;  %v8412_v45 = vunpack.i.l.bf16 %v8411_v1  ;;  %v2812_v47 = vsel %vm1132_vm4, %v8418_v51, %v8423_v11  ;;  %v2811_v9 = vsel %vm1132_vm4, %v8417_v20, %v8422_v49  ;;  %v11162_v51 = vpop.f32.mrf.mxu0 }
 0x559   : > { %v2885_v11 = vrot.slane %v2812_v47, 7  ;;  %v2884_v49 = vrot.slane %v2811_v9, 7  ;;  %13664 = vst [vmem:[#allocation84_spill] sm:$0xff] %v11162_v51 }
 0x55a   : > { %v2810_v25 = vsel %vm1132_vm4, %v8408_v37, %v8413_v42  ;;  %v2809_v44 = vsel %vm1132_vm4, %v8407_v17, %v8412_v45 }
 0x55b   : > { %v2882_v50 = vrot.slane %v2810_v25, 7  ;;  %v2881_v55 = vrot.slane %v2809_v44, 7  ;;  %v2978_v20 = vsel %vm817_vm2, %v2885_v11, 0.0 }
 0x55c   : > { %v3492_v47 = vrot.slane %v2978_v20, 2 }
 0x55d   : > { %v2977_v32 = vsel %vm817_vm2, %v2882_v50, 0.0  ;;  %v2961_v52 = vsel %vm817_vm2, 0.0, %v2881_v55  ;;  %8495 = vrot.lane.b32.xlu2 %v13663_v6, %s13448_s15  ;;  %v2883_v27 = vsel %vm817_vm2, %v2881_v55, %v2882_v50  ;;  %s8961_s15 = smov 8  }
 0x55e   : > { %v3075_v29 = vrot.slane %v2977_v32, 1  ;;  %v3487_v1 = vrot.slane %v2977_v32, 2  ;;  %v3072_v37 = vrot.slane %v2961_v52, 1  ;;  %v3484_v42 = vrot.slane %v2961_v52, 2 }
 0x55f   : > { %v11144_v17 = vpack.c.bf16 %v2883_v27, %v2961_v52  ;;  %v3073_v45 = vrot.slane %v2883_v27, 1  ;;  %v3485_v25 = vrot.slane %v2883_v27, 2  ;;  %v2962_v27 = vsel %vm817_vm2, 0.0, %v2884_v49  ;;  %v8426_v22 = vpop.permute.xlu0 %8425 }
 0x560   : > { %v3489_v9 = vrot.slane %v2962_v27, 2 }
 0x561   : > { %7772 = vmatmul.msk.bf16.gmra.mxu0 %vm3160_vm6, %v11144_v17  ;;  %7815 = vmatmul.msk.bf16.gmra.mxu2 %vm3160_vm6, %v11144_v17  ;;  %v3074_v44 = vsel %vm1001_vm3, %v3072_v37, %v3073_v45  ;;  %v3076_v50 = vsel %vm1001_vm3, %v3073_v45, %v3075_v29  ;;  %v3486_v55 = vsel %vm1414_vm5, %v3484_v42, %v3485_v25  ;;  %v11169_v37 = vpop.f32.mrf.mxu1  ;;  %v3077_v42 = vrot.slane %v2962_v27, 1  ;;  %v11171_v45 = vpop.f32.mrf.mxu2 }
 0x562   : > { %v11155_v32 = vpack.c.bf16 %v3076_v50, %v3074_v44  ;;  %v3488_v52 = vsel %vm1414_vm5, %v3485_v25, %v3487_v1  ;;  %v2886_v29 = vsel %vm817_vm2, %v2884_v49, %v2885_v11  ;;  %13665 = vst [vmem:[#allocation66_spill] sm:$0xff] %v11169_v37  ;;  %v3080_v1 = vrot.slane %v2978_v20, 1 }
 0x563   : > { %v11158_v6 = vpack.c.bf16 %v3488_v52, %v3486_v55  ;;  %v3078_v25 = vrot.slane %v2886_v29, 1  ;;  %v3490_v44 = vrot.slane %v2886_v29, 2  ;;  %v11173_v55 = vpop.f32.mrf.mxu3  ;;  %v11175_v52 = vpack.c.bf16 %v2886_v29, %v2962_v27 }
 0x564   : > { %7752 = vmatmul.msk.bf16.gmra.mxu3 %vm3160_vm6, %v11155_v32  ;;  %13666 = vst [vmem:[#allocation73_spill] sm:$0xff] %v11173_v55 }
 0x565   : > { %7794 = vmatmul.msk.bf16.gmra.mxu1 %vm3160_vm6, %v11158_v6  ;;  %v3079_v60 = vsel %vm1001_vm3, %v3077_v42, %v3078_v25  ;;  %v3081_v0 = vsel %vm1001_vm3, %v3078_v25, %v3080_v1  ;;  %v3491_v11 = vsel %vm1414_vm5, %v3489_v9, %v3490_v44  ;;  %v3493_v49 = vsel %vm1414_vm5, %v3490_v44, %v3492_v47 }
 0x566   : > { %v11185_v20 = vpack.c.bf16 %v3081_v0, %v3079_v60  ;;  %v11187_v27 = vpack.c.bf16 %v3493_v49, %v3491_v11  ;;  %v8428_v25 = vunpack.i.h.bf16 %v8426_v22  ;;  %v8427_v44 = vunpack.i.l.bf16 %v8426_v22 }
 0x568   : > { %13667 = vst [vmem:[#allocation75_spill] sm:$0xff] %v11185_v20 }
 0x569   : > { %13668 = vst [vmem:[#allocation67_spill] sm:$0xff] %v11187_v27 }
 0x56e   : > { %v3374_v50 = vpop.f32.mrf.mxu0 }
 0x571   : > { %7773 = vmatmul.msk.bf16.gmra.mxu0 %vm3160_vm6, %v11175_v52  ;;  %7816 = vmatmul.msk.bf16.gmra.mxu2 %vm3160_vm6, %v11175_v52 }
 0x572   : > { %v3641_v2 = vpop.f32.mrf.mxu1 }
 0x574   : > { %v3772_v29 = vpop.f32.mrf.mxu2  ;;  %7753 = vmatmul.msk.bf16.gmra.mxu3 %vm3160_vm6, %v11185_v20 }
 0x575   : > { %v11192_v1 = vadd.f32 %v3772_v29, %v11120_v59  ;;  %7795 = vmatmul.msk.bf16.gmra.mxu1 %vm3160_vm6, %v11187_v27 }
 0x576   : > { %v3376_v42 = vpop.f32.mrf.mxu0 }
 0x577   : > { %13669 = vst [vmem:[#allocation77_spill] sm:$0xff] %v11192_v1  ;;  %v3230_v47 = vpop.f32.mrf.mxu3  ;;  %v8431_v9 = vpop.permute.xlu1 %8430 }
 0x578   : > { %v3375_v0 = vadd.f32 %v3374_v50, %v3230_v47  ;;  %v8433_v60 = vunpack.i.h.bf16 %v8431_v9  ;;  %v8432_v63 = vunpack.i.l.bf16 %v8431_v9 }
 0x57a   : > { %v2814_v11 = vsel %vm1132_vm4, %v8428_v25, %v8433_v60  ;;  %v2813_v49 = vsel %vm1132_vm4, %v8427_v44, %v8432_v63  ;;  %v3643_v7 = vpop.f32.mrf.mxu1  ;;  %v3715_v62 = vadd.f32 %v3641_v2, %v3375_v0  ;;  %v8436_v0 = vpop.permute.xlu2 %8435 }
 0x57b   : > { %v2888_v15 = vrot.slane %v2814_v11, 7  ;;  %v2887_v59 = vrot.slane %v2813_v49, 7  ;;  %v8438_v10 = vunpack.i.h.bf16 %v8436_v0 }
 0x57c   : > { %v11198_v29 = vpop.f32.mrf.mxu2 }
 0x57d   : > { %13670 = vst [vmem:[#allocation80_spill] sm:$0xff] %v11198_v29  ;;  %v2979_v19 = vsel %vm817_vm2, %v2888_v15, 0.0  ;;  %v2963_v26 = vsel %vm817_vm2, 0.0, %v2887_v59  ;;  %v2889_v13 = vsel %vm817_vm2, %v2887_v59, %v2888_v15 }
 0x57e   : > { %v3085_v22 = vrot.slane %v2979_v19, 1  ;;  %v3497_v50 = vrot.slane %v2979_v19, 2  ;;  %v3082_v47 = vrot.slane %v2963_v26, 1  ;;  %v3494_v9 = vrot.slane %v2963_v26, 2  ;;  %v3379_v31 = vpop.f32.mrf.mxu0 }
 0x57f   : > { %v3232_v25 = vpop.f32.mrf.mxu3  ;;  %v11203_v60 = vpack.c.bf16 %v2889_v13, %v2963_v26  ;;  %v3083_v63 = vrot.slane %v2889_v13, 1  ;;  %v3495_v2 = vrot.slane %v2889_v13, 2 }
 0x580   : > { %v3377_v44 = vadd.f32 %v3376_v42, %v3232_v25 }
 0x581   : > { %13671 = vst [vmem:[#allocation82_spill] sm:$0xff] %v11203_v60  ;;  %v3084_v11 = vsel %vm1001_vm3, %v3082_v47, %v3083_v63  ;;  %v3086_v49 = vsel %vm1001_vm3, %v3083_v63, %v3085_v22  ;;  %7774 = vmatmul.msk.bf16.gmra.mxu0 %vm3160_vm6, %v11203_v60  ;;  %7817 = vmatmul.msk.bf16.gmra.mxu2 %vm3160_vm6, %v11203_v60 }
 0x582   : > { %v3646_v15 = vpop.f32.mrf.mxu1  ;;  %v11211_v19 = vpack.c.bf16 %v3086_v49, %v3084_v11  ;;  %v3496_v26 = vsel %vm1414_vm5, %v3494_v9, %v3495_v2  ;;  %v3498_v59 = vsel %vm1414_vm5, %v3495_v2, %v3497_v50  ;;  %v3716_v42 = vadd.f32 %v3643_v7, %v3377_v44  ;;  %v8451_v56 = vpop.permute.xlu2 %8450 }
 0x583   : > { %v11215_v13 = vpack.c.bf16 %v3498_v59, %v3496_v26  ;;  %v8437_v9 = vunpack.i.l.bf16 %v8436_v0  ;;  %v8446_v26 = vpop.permute.xlu1 %8445 }
 0x584   : > { %13672 = vst [vmem:[#allocation86_spill] sm:$0xff] %v11211_v19  ;;  %v3777_v25 = vpop.f32.mrf.mxu2  ;;  %7754 = vmatmul.msk.bf16.gmra.mxu3 %vm3160_vm6, %v11211_v19  ;;  %v8452_v19 = vunpack.i.l.bf16 %v8451_v56 }
 0x585   : > { %13673 = vst [vmem:[#allocation87_spill] sm:$0xff] %v11215_v13  ;;  %v11219_v22 = vadd.f32 %v3777_v25, %v3715_v62  ;;  %7796 = vmatmul.msk.bf16.gmra.mxu1 %vm3160_vm6, %v11215_v13  ;;  %v8453_v25 = vunpack.i.h.bf16 %v8451_v56  ;;  %v8448_v13 = vunpack.i.h.bf16 %v8446_v26 }
 0x586   : > { %v3381_v47 = vpop.f32.mrf.mxu0 }
 0x587   : > { %13674 = vst [vmem:[#allocation89_spill] sm:$0xff] %v11219_v22  ;;  %v3235_v63 = vpop.f32.mrf.mxu3  ;;  %v8441_v49 = vpop.permute.xlu0 %8440 }
 0x588   : > { %v3380_v11 = vadd.f32 %v3379_v31, %v3235_v63  ;;  %v8443_v50 = vunpack.i.h.bf16 %v8441_v49  ;;  %v8442_v2 = vunpack.i.l.bf16 %v8441_v49  ;;  %v8447_v31 = vunpack.i.l.bf16 %v8446_v26 }
 0x58a   : > { %v3648_v7 = vpop.f32.mrf.mxu1  ;;  %v3717_v44 = vadd.f32 %v3646_v15, %v3380_v11  ;;  %v2816_v59 = vsel %vm1132_vm4, %v8438_v10, %v8443_v50  ;;  %v2815_v62 = vsel %vm1132_vm4, %v8437_v9, %v8442_v2 }
 0x58b   : > { %v2891_v40 = vrot.slane %v2816_v59, 7  ;;  %v2890_v5 = vrot.slane %v2815_v62, 7 }
 0x58c   : > { %v3779_v22 = vpop.f32.mrf.mxu2 }
 0x58d   : > { %v11225_v63 = vadd.f32 %v3779_v22, %v3716_v42  ;;  %v2980_v0 = vsel %vm817_vm2, %v2891_v40, 0.0  ;;  %v2964_v49 = vsel %vm817_vm2, 0.0, %v2890_v5  ;;  %v2892_v15 = vsel %vm817_vm2, %v2890_v5, %v2891_v40 }
 0x58e   : > { %v3384_v29 = vpop.f32.mrf.mxu0  ;;  %v3090_v11 = vrot.slane %v2980_v0, 1  ;;  %v3502_v10 = vrot.slane %v2980_v0, 2  ;;  %v3087_v50 = vrot.slane %v2964_v49, 1  ;;  %v3499_v9 = vrot.slane %v2964_v49, 2 }
 0x58f   : > { %13675 = vst [vmem:[#allocation56_spill] sm:$0xff] %v11225_v63  ;;  %v3237_v2 = vpop.f32.mrf.mxu3  ;;  %v11230_v62 = vpack.c.bf16 %v2892_v15, %v2964_v49  ;;  %v3088_v56 = vrot.slane %v2892_v15, 1  ;;  %v3500_v37 = vrot.slane %v2892_v15, 2  ;;  %v2818_v42 = vsel %vm1132_vm4, %v8448_v13, %v8453_v25 }
 0x590   : > { %v3382_v59 = vadd.f32 %v3381_v47, %v3237_v2  ;;  %v2817_v22 = vsel %vm1132_vm4, %v8447_v31, %v8452_v19  ;;  %v2894_v31 = vrot.slane %v2818_v42, 7 }
 0x591   : > { %13676 = vst [vmem:[#allocation88_spill] sm:$0xff] %v11230_v62  ;;  %7775 = vmatmul.msk.bf16.gmra.mxu0 %vm3160_vm6, %v11230_v62  ;;  %7818 = vmatmul.msk.bf16.gmra.mxu2 %vm3160_vm6, %v11230_v62  ;;  %v3089_v40 = vsel %vm1001_vm3, %v3087_v50, %v3088_v56  ;;  %v3091_v5 = vsel %vm1001_vm3, %v3088_v56, %v3090_v11  ;;  %v2893_v15 = vrot.slane %v2817_v22, 7 }
 0x592   : > { %v3651_v26 = vpop.f32.mrf.mxu1  ;;  %v3501_v47 = vsel %vm1414_vm5, %v3499_v9, %v3500_v37  ;;  %v11241_v0 = vpack.c.bf16 %v3091_v5, %v3089_v40  ;;  %v3503_v49 = vsel %vm1414_vm5, %v3500_v37, %v3502_v10  ;;  %v3718_v13 = vadd.f32 %v3648_v7, %v3382_v59 }
 0x593   : > { %v11244_v25 = vpack.c.bf16 %v3503_v49, %v3501_v47  ;;  %v2981_v56 = vsel %vm817_vm2, %v2894_v31, 0.0  ;;  %v2965_v37 = vsel %vm817_vm2, 0.0, %v2893_v15  ;;  %v2895_v7 = vsel %vm817_vm2, %v2893_v15, %v2894_v31 }
 0x594   : > { %13677 = vst [vmem:[#allocation60_spill] sm:$0xff] %v11241_v0  ;;  %v3782_v19 = vpop.f32.mrf.mxu2  ;;  %7755 = vmatmul.msk.bf16.gmra.mxu3 %vm3160_vm6, %v11241_v0  ;;  %v3095_v42 = vrot.slane %v2981_v56, 1  ;;  %v3092_v22 = vrot.slane %v2965_v37, 1  ;;  %v3093_v5 = vrot.slane %v2895_v7, 1  ;;  %v3504_v47 = vrot.slane %v2965_v37, 2 }
 0x595   : > { %13678 = vst [vmem:[#allocation69_spill] sm:$0xff] %v11244_v25  ;;  %v11248_v2 = vadd.f32 %v3782_v19, %v3717_v44  ;;  %7797 = vmatmul.msk.bf16.gmra.mxu1 %vm3160_vm6, %v11244_v25  ;;  %v3507_v44 = vrot.slane %v2981_v56, 2  ;;  %v3505_v19 = vrot.slane %v2895_v7, 2 }
 0x596   : > { %v3386_v11 = vpop.f32.mrf.mxu0  ;;  %v3094_v25 = vsel %vm1001_vm3, %v3092_v22, %v3093_v5  ;;  %v3096_v31 = vsel %vm1001_vm3, %v3093_v5, %v3095_v42 }
 0x597   : > { %13679 = vst [vmem:[#allocation50_spill] sm:$0xff] %v11248_v2  ;;  %v3240_v50 = vpop.f32.mrf.mxu3  ;;  %v3508_v15 = vsel %vm1414_vm5, %v3505_v19, %v3507_v44  ;;  %v11267_v56 = vpack.c.bf16 %v3096_v31, %v3094_v25  ;;  %v11277_v44 = vpop.permute.xlu2 %8465 }
 0x598   : > { %v3385_v9 = vadd.f32 %v3384_v29, %v3240_v50  ;;  %v11257_v50 = vpack.c.bf16 %v2895_v7, %v2965_v37 }
 0x599   : > { %13682 = vst [vmem:[#allocation59_spill] sm:$0xff] %v11267_v56 }
 0x59a   : > { %v3653_v10 = vpop.f32.mrf.mxu1  ;;  %v3719_v59 = vadd.f32 %v3651_v26, %v3385_v9  ;;  %13681 = vst [vmem:[#allocation70_spill] sm:$0xff] %v11257_v50  ;;  %v3506_v26 = vsel %vm1414_vm5, %v3504_v47, %v3505_v19 }
 0x59c   : > { %v3784_v40 = vpop.f32.mrf.mxu2 }
 0x59d   : > { %v11255_v49 = vadd.f32 %v3784_v40, %v3718_v13 }
 0x59e   : > { %v3389_v2 = vpop.f32.mrf.mxu0 }
 0x59f   : > { %13680 = vst [vmem:[#allocation90_spill] sm:$0xff] %v11255_v49  ;;  %v3242_v0 = vpop.f32.mrf.mxu3 }
 0x5a0   : > { %v3387_v29 = vadd.f32 %v3386_v11, %v3242_v0  ;;  %v8456_v0 = vpop.permute.xlu0 %8455  ;;  %v11269_v11 = vpack.c.bf16 %v3508_v15, %v3506_v26 }
 0x5a1   : > { %7776 = vmatmul.msk.bf16.gmra.mxu0 %vm3160_vm6, %v11257_v50  ;;  %7819 = vmatmul.msk.bf16.gmra.mxu2 %vm3160_vm6, %v11257_v50  ;;  %v8458_v22 = vunpack.i.h.bf16 %v8456_v0  ;;  %v8457_v25 = vunpack.i.l.bf16 %v8456_v0 }
 0x5a2   : > { %v3656_v9 = vpop.f32.mrf.mxu1  ;;  %v3720_v13 = vadd.f32 %v3653_v10, %v3387_v29  ;;  %13683 = vst [vmem:[#allocation33_spill] sm:$0xff] %v11269_v11 }
 0x5a4   : > { %v3787_v37 = vpop.f32.mrf.mxu2  ;;  %7756 = vmatmul.msk.bf16.gmra.mxu3 %vm3160_vm6, %v11267_v56 }
 0x5a5   : > { %v11273_v7 = vadd.f32 %v3787_v37, %v3719_v59  ;;  %7798 = vmatmul.msk.bf16.gmra.mxu1 %vm3160_vm6, %v11269_v11 }
 0x5a6   : > { %v3391_v42 = vpop.f32.mrf.mxu0 }
 0x5a7   : > { %13684 = vst [vmem:[#allocation14_spill] sm:$0xff] %v11273_v7  ;;  %v3245_v40 = vpop.f32.mrf.mxu3  ;;  %v8461_v5 = vpop.permute.xlu1 %8460 }
 0x5a8   : > { %v3390_v10 = vadd.f32 %v3389_v2, %v3245_v40  ;;  %v8463_v47 = vunpack.i.h.bf16 %v8461_v5  ;;  %v8462_v19 = vunpack.i.l.bf16 %v8461_v5 }
 0x5aa   : > { %v2820_v29 = vsel %vm1132_vm4, %v8458_v22, %v8463_v47  ;;  %v2819_v31 = vsel %vm1132_vm4, %v8457_v25, %v8462_v19  ;;  %v3658_v26 = vpop.f32.mrf.mxu1  ;;  %v3721_v59 = vadd.f32 %v3656_v9, %v3390_v10  ;;  %v7849_v9 = vld [vmem:[%s13272_s5 + $0x28] sm:$0xf] }
 0x5ab   : > { %v2897_v15 = vrot.slane %v2820_v29, 7  ;;  %v2896_v37 = vrot.slane %v2819_v31, 7 }
 0x5ac   : > { %v3789_v7 = vpop.f32.mrf.mxu2 }
 0x5ad   : > { %v2982_v56 = vsel %vm817_vm2, %v2897_v15, 0.0  ;;  %v2966_v11 = vsel %vm817_vm2, 0.0, %v2896_v37  ;;  %v11283_v49 = vadd.f32 %v3789_v7, %v3720_v13  ;;  %v2898_v0 = vsel %vm817_vm2, %v2896_v37, %v2897_v15  ;;  %v8178_v13 = vld [vmem:[%s13272_s5 + $0x28] sm:$0x30] }
 0x5ae   : > { %v3100_v2 = vrot.slane %v2982_v56, 1  ;;  %v3512_v40 = vrot.slane %v2982_v56, 2  ;;  %v3097_v5 = vrot.slane %v2966_v11, 1  ;;  %v3509_v50 = vrot.slane %v2966_v11, 2  ;;  %v3394_v22 = vpop.f32.mrf.mxu0 }
 0x5af   : > { %13685 = vst [vmem:[#allocation91_spill] sm:$0xff] %v11283_v49  ;;  %v3247_v25 = vpop.f32.mrf.mxu3  ;;  %v8476_v10 = vpop.permute.xlu1 %8475  ;;  %v11289_v47 = vpack.c.bf16 %v2898_v0, %v2966_v11  ;;  %v3098_v19 = vrot.slane %v2898_v0, 1  ;;  %v3510_v29 = vrot.slane %v2898_v0, 2  ;;  %v7850_v37 = vor.u32 %v8178_v13, %v7849_v9 }
 0x5b0   : > { %v3392_v7 = vadd.f32 %v3391_v42, %v3247_v25  ;;  %v8481_v31 = vpop.permute.xlu2 %8480  ;;  %v8478_v56 = vunpack.i.h.bf16 %v8476_v10  ;;  %v8477_v15 = vunpack.i.l.bf16 %v8476_v10 }
 0x5b1   : > { %13686 = vst [vmem:[#allocation92_spill] sm:$0xff] %v11289_v47  ;;  %v8483_v49 = vunpack.i.h.bf16 %v8481_v31  ;;  %v8482_v63 = vunpack.i.l.bf16 %v8481_v31  ;;  %v3099_v62 = vsel %vm1001_vm3, %v3097_v5, %v3098_v19  ;;  %v3101_v1 = vsel %vm1001_vm3, %v3098_v19, %v3100_v2  ;;  %7777 = vmatmul.msk.bf16.gmra.mxu0 %vm3160_vm6, %v11289_v47  ;;  %7820 = vmatmul.msk.bf16.gmra.mxu2 %vm3160_vm6, %v11289_v47  ;;  %v7871_v5 = vld [vmem:[%s13272_s5 + $0x30] sm:$0xf]  ;;  %v8179_v2 = vld [vmem:[%s13272_s5 + $0x30] sm:$0x30] }
 0x5b2   : > { %v3661_v11 = vpop.f32.mrf.mxu1  ;;  %v11300_v0 = vpack.c.bf16 %v3101_v1, %v3099_v62  ;;  %v3511_v42 = vsel %vm1414_vm5, %v3509_v50, %v3510_v29  ;;  %v3513_v25 = vsel %vm1414_vm5, %v3510_v29, %v3512_v40  ;;  %v4044_v9 = vsel %vm1414_vm5, %v7850_v37, 0  ;;  %v7893_v50 = vld [vmem:[%s13272_s5 + $0x38] sm:$0xf]  ;;  %v8180_v40 = vld [vmem:[%s13272_s5 + $0x38] sm:$0x30] }
 0x5b3   : > { %v2824_v10 = vsel %vm1132_vm4, %v8478_v56, %v8483_v49  ;;  %v2823_v19 = vsel %vm1132_vm4, %v8477_v15, %v8482_v63  ;;  %v11313_v1 = vpack.c.bf16 %v3513_v25, %v3511_v42  ;;  %v3722_v62 = vadd.f32 %v3658_v26, %v3392_v7  ;;  %4053 = vmatpush.bf16.msra.mxu0 %v4044_v9 }
 0x5b4   : > { %13687 = vst [vmem:[#allocation93_spill] sm:$0xff] %v11300_v0  ;;  %v2903_v29 = vrot.slane %v2824_v10, 7  ;;  %v2902_v13 = vrot.slane %v2823_v19, 7  ;;  %v3792_v31 = vpop.f32.mrf.mxu2  ;;  %v7872_v37 = vor.u32 %v8179_v2, %v7871_v5  ;;  %v8468_v49 = vunpack.i.h.bf16 %v11277_v44  ;;  %7757 = vmatmul.msk.bf16.gmra.mxu3 %vm3160_vm6, %v11300_v0 }
 0x5b5   : > { %13688 = vst [vmem:[#allocation94_spill] sm:$0xff] %v11313_v1  ;;  %v11324_v63 = vadd.f32 %v3792_v31, %v3721_v59  ;;  %v7894_v26 = vor.u32 %v8180_v40, %v7893_v50  ;;  %7799 = vmatmul.msk.bf16.gmra.mxu1 %vm3160_vm6, %v11313_v1  ;;  %v8467_v9 = vunpack.i.l.bf16 %v11277_v44  ;;  %v8181_v44 = vld [vmem:[%s13272_s5 + $0x40] sm:$0x30] }
 0x5b6   : > { %v2984_v7 = vsel %vm817_vm2, %v2903_v29, 0.0  ;;  %v11328_v56 = vsel %vm817_vm2, 0.0, %v2902_v13  ;;  %v3396_v15 = vpop.f32.mrf.mxu0  ;;  %v11333_v42 = vsel %vm817_vm2, %v2902_v13, %v2903_v29  ;;  %v4176_v25 = vsel %vm1414_vm5, %v7872_v37, 0  ;;  %v7915_v29 = vld [vmem:[%s13272_s5 + $0x40] sm:$0xf] }
 0x5b7   : > { %13689 = vst [vmem:[#allocation95_spill] sm:$0xff] %v11324_v63  ;;  %v3884_v5 = vrot.slane %v2984_v7, 1  ;;  %v4027_v59 = vrot.slane %v2984_v7, 2  ;;  %v4024_v2 = vrot.slane %v11328_v56, 2  ;;  %v3250_v10 = vpop.f32.mrf.mxu3  ;;  %v8471_v19 = vpop.permute.xlu0 %8470  ;;  %4185 = vmatpush.bf16.msra.mxu1 %v4176_v25  ;;  %v3881_v50 = vrot.slane %v11328_v56, 1 }
 0x5b8   : > { %v3395_v40 = vadd.f32 %v3394_v22, %v3250_v10  ;;  %v8473_v31 = vunpack.i.h.bf16 %v8471_v19  ;;  %v8472_v63 = vunpack.i.l.bf16 %v8471_v19  ;;  %v3882_v13 = vrot.slane %v11333_v42, 1 }
 0x5b9   : > { %v4025_v37 = vrot.slane %v11333_v42, 2  ;;  %v4308_v10 = vsel %vm1414_vm5, %v7894_v26, 0  ;;  %v7916_v47 = vor.u32 %v8181_v44, %v7915_v29 }
 0x5ba   : > { %v2822_v7 = vsel %vm1132_vm4, %v8468_v49, %v8473_v31  ;;  %v2821_v25 = vsel %vm1132_vm4, %v8467_v9, %v8472_v63  ;;  %v3663_v0 = vpop.f32.mrf.mxu1  ;;  %v3723_v22 = vadd.f32 %v3661_v11, %v3395_v40  ;;  %4317 = vmatpush.bf16.msrb.mxu2 %v4308_v10  ;;  %v3883_v20 = vsel %vm1001_vm3, %v3881_v50, %v3882_v13 }
 0x5bb   : > { %v2900_v19 = vrot.slane %v2822_v7, 7  ;;  %v2899_v1 = vrot.slane %v2821_v25, 7  ;;  %v4026_v51 = vsel %vm1414_vm5, %v4024_v2, %v4025_v37  ;;  %v4028_v60 = vsel %vm1414_vm5, %v4025_v37, %v4027_v59 }
 0x5bc   : > { %v3794_v55 = vpop.f32.mrf.mxu2  ;;  %v3885_v27 = vsel %vm1001_vm3, %v3882_v13, %v3884_v5  ;;  %v4440_v5 = vsel %vm1414_vm5, %v7916_v47, 0  ;;  %v11362_v37 = vpack.c.bf16 %v4028_v60, %v4026_v51 }
 0x5bd   : > { %v2983_v49 = vsel %vm817_vm2, %v2900_v19, 0.0  ;;  %v2967_v63 = vsel %vm817_vm2, 0.0, %v2899_v1  ;;  %v11356_v11 = vadd.f32 %v3794_v55, %v3722_v62  ;;  %v2901_v26 = vsel %vm817_vm2, %v2899_v1, %v2900_v19  ;;  %4449 = vmatpush.bf16.msrb.mxu3 %v4440_v5 }
 0x5be   : > { %v3105_v9 = vrot.slane %v2983_v49, 1  ;;  %v3517_v40 = vrot.slane %v2983_v49, 2  ;;  %v3102_v31 = vrot.slane %v2967_v63, 1  ;;  %v3514_v29 = vrot.slane %v2967_v63, 2  ;;  %v3399_v2 = vpop.f32.mrf.mxu0 }
 0x5bf   : > { %v3252_v44 = vpop.f32.mrf.mxu3  ;;  %v11359_v7 = vpack.c.bf16 %v2901_v26, %v2967_v63  ;;  %v3103_v59 = vrot.slane %v2901_v26, 1  ;;  %v3515_v50 = vrot.slane %v2901_v26, 2  ;;  %v11376_v60 = vpack.c.bf16 %v3885_v27, %v3883_v20 }
 0x5c0   : > { %v3397_v13 = vadd.f32 %v3396_v15, %v3252_v44 }
 0x5c1   : > { %v3104_v55 = vsel %vm1001_vm3, %v3102_v31, %v3103_v59  ;;  %v3106_v1 = vsel %vm1001_vm3, %v3103_v59, %v3105_v9  ;;  %v3516_v62 = vsel %vm1414_vm5, %v3514_v29, %v3515_v50  ;;  %v3518_v25 = vsel %vm1414_vm5, %v3515_v50, %v3517_v40  ;;  %7778 = vmatmul.msk.bf16.gmra.mxu0 %vm3160_vm6, %v11359_v7 }
 0x5c2   : > { %v3666_v10 = vpop.f32.mrf.mxu1  ;;  %7821 = vmatmul.msk.bf16.gmra.mxu2 %vm3160_vm6, %v11359_v7  ;;  %v11372_v47 = vpack.c.bf16 %v3106_v1, %v3104_v55  ;;  %v11374_v15 = vpack.c.bf16 %v3518_v25, %v3516_v62  ;;  %v3724_v51 = vadd.f32 %v3663_v0, %v3397_v13  ;;  %v11388_v59 = vpack.c.bf16 %v11333_v42, %v11328_v56 }
 0x5c4   : > { %v3797_v19 = vpop.f32.mrf.mxu2  ;;  %7758 = vmatmul.msk.bf16.gmra.mxu3 %vm3160_vm6, %v11372_v47 }
 0x5c5   : > { %v11380_v49 = vadd.f32 %v3797_v19, %v3723_v22  ;;  %7800 = vmatmul.msk.bf16.gmra.mxu1 %vm3160_vm6, %v11374_v15 }
 0x5c6   : > { %v3401_v63 = vpop.f32.mrf.mxu0 }
 0x5c7   : > { %v3255_v26 = vpop.f32.mrf.mxu3 }
 0x5c8   : > { %v3400_v9 = vadd.f32 %v3399_v2, %v3255_v26 }
 0x5ca   : > { %v3668_v40 = vpop.f32.mrf.mxu1  ;;  %v3725_v31 = vadd.f32 %v3666_v10, %v3400_v9 }
 0x5cc   : > { %v3799_v29 = vpop.f32.mrf.mxu2 }
 0x5cd   : > { %v11384_v44 = vadd.f32 %v3799_v29, %v3724_v51 }
 0x5ce   : > { %v3404_v0 = vpop.f32.mrf.mxu0 }
 0x5cf   : > { %v3257_v20 = vpop.f32.mrf.mxu3 }
 0x5d0   : > { %v3402_v27 = vadd.f32 %v3401_v63, %v3257_v20 }
 0x5d1   : > { %7851 = vmatmul.msk.bf16.vlgmr.msra.gmra.mxu0 %vm3160_vm6, %v10761_v28 }
 0x5d2   : > { %v3671_v22 = vpop.f32.mrf.mxu1  ;;  %7822 = vmatmul.msk.bf16.gmra.mxu2 %vm3160_vm6, %v11388_v59  ;;  %v3726_v2 = vadd.f32 %v3668_v40, %v3402_v27 }
 0x5d4   : > { %v3802_v50 = vpop.f32.mrf.mxu2  ;;  %7829 = vmatmul.msk.bf16.vlgmr.msra.gmra.mxu3 %vm3160_vm6, %v10756_v43 }
 0x5d5   : > { %v11394_v5 = vadd.f32 %v3802_v50, %v3725_v31  ;;  %7873 = vmatmul.msk.bf16.vlgmr.msra.gmra.mxu1 %vm3160_vm6, %v10834_v30 }
 0x5d6   : > { %v3406_v13 = vpop.f32.mrf.mxu0 }
 0x5d7   : > { %v3260_v56 = vpop.f32.mrf.mxu3 }
 0x5d8   : > { %v3405_v42 = vadd.f32 %v3404_v0, %v3260_v56 }
 0x5da   : > { %v3673_v55 = vpop.f32.mrf.mxu1  ;;  %v3727_v1 = vadd.f32 %v3671_v22, %v3405_v42 }
 0x5dc   : > { %v3804_v62 = vpop.f32.mrf.mxu2 }
 0x5dd   : > { %v11400_v25 = vadd.f32 %v3804_v62, %v3726_v2 }
 0x5de   : > { %v3409_v10 = vpop.f32.mrf.mxu0 }
 0x5df   : > { %v3262_v28 = vpop.f32.mrf.mxu3 }
 0x5e0   : > { %v3407_v51 = vadd.f32 %v3406_v13, %v3262_v28 }
 0x5e1   : > { %7852 = vmatmul.msk.bf16.gmra.mxu0 %vm3160_vm6, %v10851_v61 }
 0x5e2   : > { %7895 = vmatmul.msk.bf16.vlgmr.msrb.gmra.mxu2 %vm3160_vm6, %v10846_v14  ;;  %v3676_v43 = vpop.f32.mrf.mxu1  ;;  %v3728_v19 = vadd.f32 %v3673_v55, %v3407_v51 }
 0x5e4   : > { %v3807_v30 = vpop.f32.mrf.mxu2  ;;  %7830 = vmatmul.msk.bf16.gmra.mxu3 %vm3160_vm6, %v10846_v14 }
 0x5e5   : > { %v11408_v63 = vadd.f32 %v3807_v30, %v3727_v1  ;;  %7874 = vmatmul.msk.bf16.gmra.mxu1 %vm3160_vm6, %v10885_v24 }
 0x5e6   : > { %v3411_v26 = vpop.f32.mrf.mxu0 }
 0x5e7   : > { %v3265_v9 = vpop.f32.mrf.mxu3 }
 0x5e8   : > { %v3410_v40 = vadd.f32 %v3409_v10, %v3265_v9 }
 0x5ea   : > { %v3678_v31 = vpop.f32.mrf.mxu1  ;;  %v3729_v29 = vadd.f32 %v3676_v43, %v3410_v40 }
 0x5ec   : > { %v3809_v0 = vpop.f32.mrf.mxu2 }
 0x5ed   : > { %v11412_v20 = vadd.f32 %v3809_v0, %v3728_v19 }
 0x5ee   : > { %v3414_v27 = vpop.f32.mrf.mxu0 }
 0x5ef   : > { %v3267_v22 = vpop.f32.mrf.mxu3 }
 0x5f0   : > { %v3412_v2 = vadd.f32 %v3411_v26, %v3267_v22 }
 0x5f1   : > { %7853 = vmatmul.msk.bf16.gmra.mxu0 %vm3160_vm6, %v10902_v57 }
 0x5f2   : > { %7896 = vmatmul.msk.bf16.gmra.mxu2 %vm3160_vm6, %v10897_v3  ;;  %v3681_v14 = vpop.f32.mrf.mxu1  ;;  %v3730_v50 = vadd.f32 %v3678_v31, %v3412_v2 }
 0x5f4   : > { %v3812_v24 = vpop.f32.mrf.mxu2  ;;  %7831 = vmatmul.msk.bf16.gmra.mxu3 %vm3160_vm6, %v10897_v3 }
 0x5f5   : > { %v11420_v13 = vadd.f32 %v3812_v24, %v3729_v29  ;;  %7875 = vmatmul.msk.bf16.gmra.mxu1 %vm3160_vm6, %v10930_v38 }
 0x5f6   : > { %v3416_v56 = vpop.f32.mrf.mxu0 }
 0x5f7   : > { %v3270_v42 = vpop.f32.mrf.mxu3 }
 0x5f8   : > { %v3415_v55 = vadd.f32 %v3414_v27, %v3270_v42 }
 0x5fa   : > { %v3683_v1 = vpop.f32.mrf.mxu1  ;;  %v3731_v62 = vadd.f32 %v3681_v14, %v3415_v55 }
 0x5fc   : > { %v3814_v10 = vpop.f32.mrf.mxu2 }
 0x5fd   : > { %v11424_v28 = vadd.f32 %v3814_v10, %v3730_v50 }
 0x5fe   : > { %v3419_v51 = vpop.f32.mrf.mxu0 }
 0x5ff   : > { %v3272_v43 = vpop.f32.mrf.mxu3 }
 0x600   : > { %v3417_v19 = vadd.f32 %v3416_v56, %v3272_v43 }
 0x601   : > { %7854 = vmatmul.msk.bf16.gmra.mxu0 %vm3160_vm6, %v10951_v53 }
 0x602   : > { %7897 = vmatmul.msk.bf16.gmra.mxu2 %vm3160_vm6, %v10947_v23  ;;  %v3686_v3 = vpop.f32.mrf.mxu1  ;;  %v3732_v30 = vadd.f32 %v3683_v1, %v3417_v19 }
 0x604   : > { %v3817_v38 = vpop.f32.mrf.mxu2  ;;  %7832 = vmatmul.msk.bf16.gmra.mxu3 %vm3160_vm6, %v10947_v23 }
 0x605   : > { %v11432_v26 = vadd.f32 %v3817_v38, %v3731_v62  ;;  %7876 = vmatmul.msk.bf16.gmra.mxu1 %vm3160_vm6, %v10981_v8 }
 0x606   : > { %v3421_v9 = vpop.f32.mrf.mxu0 }
 0x607   : > { %v3275_v40 = vpop.f32.mrf.mxu3 }
 0x608   : > { %v3420_v31 = vadd.f32 %v3419_v51, %v3275_v40 }
 0x60a   : > { %v3688_v29 = vpop.f32.mrf.mxu1  ;;  %v3733_v0 = vadd.f32 %v3686_v3, %v3420_v31 }
 0x60c   : > { %v3819_v27 = vpop.f32.mrf.mxu2 }
 0x60d   : > { %v11436_v22 = vadd.f32 %v3819_v27, %v3732_v30 }
 0x60e   : > { %v3424_v2 = vpop.f32.mrf.mxu0 }
 0x60f   : > { %v3277_v14 = vpop.f32.mrf.mxu3 }
 0x610   : > { %v3422_v50 = vadd.f32 %v3421_v9, %v3277_v14 }
 0x611   : > { %7855 = vmatmul.msk.bf16.gmra.mxu0 %vm3160_vm6, %v10996_v18 }
 0x612   : > { %7898 = vmatmul.msk.bf16.gmra.mxu2 %vm3160_vm6, %v10993_v36  ;;  %v3691_v23 = vpop.f32.mrf.mxu1  ;;  %v3734_v24 = vadd.f32 %v3688_v29, %v3422_v50 }
 0x614   : > { %v3822_v8 = vpop.f32.mrf.mxu2  ;;  %7833 = vmatmul.msk.bf16.gmra.mxu3 %vm3160_vm6, %v10993_v36 }
 0x615   : > { %v11444_v56 = vadd.f32 %v3822_v8, %v3733_v0  ;;  %7877 = vmatmul.msk.bf16.gmra.mxu1 %vm3160_vm6, %v11026_v58 }
 0x616   : > { %v3426_v42 = vpop.f32.mrf.mxu0 }
 0x617   : > { %v3280_v55 = vpop.f32.mrf.mxu3 }
 0x618   : > { %v3425_v1 = vadd.f32 %v3424_v2, %v3280_v55 }
 0x61a   : > { %v3693_v62 = vpop.f32.mrf.mxu1  ;;  %v3735_v10 = vadd.f32 %v3691_v23, %v3425_v1 }
 0x61c   : > { %v3824_v51 = vpop.f32.mrf.mxu2 }
 0x61d   : > { %v11448_v43 = vadd.f32 %v3824_v51, %v3734_v24 }
 0x61e   : > { %v3429_v19 = vpop.f32.mrf.mxu0 }
 0x61f   : > { %v3282_v3 = vpop.f32.mrf.mxu3 }
 0x620   : > { %v3427_v30 = vadd.f32 %v3426_v42, %v3282_v3 }
 0x621   : > { %7856 = vmatmul.msk.bf16.gmra.mxu0 %vm3160_vm6, %v11043_v48 }
 0x622   : > { %7899 = vmatmul.msk.bf16.gmra.mxu2 %vm3160_vm6, %v11038_v12  ;;  %v3696_v36 = vpop.f32.mrf.mxu1  ;;  %v3736_v38 = vadd.f32 %v3693_v62, %v3427_v30 }
 0x624   : > { %v3827_v58 = vpop.f32.mrf.mxu2  ;;  %7834 = vmatmul.msk.bf16.gmra.mxu3 %vm3160_vm6, %v11038_v12 }
 0x625   : > { %v11456_v9 = vadd.f32 %v3827_v58, %v3735_v10  ;;  %7878 = vmatmul.msk.bf16.gmra.mxu1 %vm3160_vm6, %v11069_v33 }
 0x626   : > { %v3431_v40 = vpop.f32.mrf.mxu0 }
 0x627   : > { %v3285_v31 = vpop.f32.mrf.mxu3 }
 0x628   : > { %v3430_v29 = vadd.f32 %v3429_v19, %v3285_v31 }
 0x62a   : > { %v3698_v0 = vpop.f32.mrf.mxu1  ;;  %v3737_v27 = vadd.f32 %v3696_v36, %v3430_v29 }
 0x62c   : > { %v3829_v2 = vpop.f32.mrf.mxu2 }
 0x62d   : > { %v11460_v14 = vadd.f32 %v3829_v2, %v3736_v38 }
 0x62e   : > { %v3434_v50 = vpop.f32.mrf.mxu0 }
 0x62f   : > { %v3287_v23 = vpop.f32.mrf.mxu3 }
 0x630   : > { %v3432_v24 = vadd.f32 %v3431_v40, %v3287_v23 }
 0x631   : > { %7857 = vmatmul.msk.bf16.gmra.mxu0 %vm3160_vm6, %v11084_v39 }
 0x632   : > { %7900 = vmatmul.msk.bf16.gmra.mxu2 %vm3160_vm6, %v11080_v34  ;;  %v3701_v12 = vpop.f32.mrf.mxu1  ;;  %v3738_v8 = vadd.f32 %v3698_v0, %v3432_v24 }
 0x634   : > { %v3832_v33 = vpop.f32.mrf.mxu2  ;;  %7835 = vmatmul.msk.bf16.gmra.mxu3 %vm3160_vm6, %v11080_v34 }
 0x635   : > { %v11468_v42 = vadd.f32 %v3832_v33, %v3737_v27  ;;  %7879 = vmatmul.msk.bf16.gmra.mxu1 %vm3160_vm6, %v11110_v4 }
 0x636   : > { %v3436_v55 = vpop.f32.mrf.mxu0 }
 0x637   : > { %v3290_v1 = vpop.f32.mrf.mxu3 }
 0x638   : > { %v3435_v62 = vadd.f32 %v3434_v50, %v3290_v1 }
 0x63a   : > { %v3703_v10 = vpop.f32.mrf.mxu1  ;;  %v3739_v51 = vadd.f32 %v3701_v12, %v3435_v62 }
 0x63c   : > { %v3834_v19 = vpop.f32.mrf.mxu2 }
 0x63d   : > { %v11472_v3 = vadd.f32 %v3834_v19, %v3738_v8 }
 0x63e   : > { %v3439_v30 = vpop.f32.mrf.mxu0 }
 0x63f   : > { %v3292_v36 = vpop.f32.mrf.mxu3 }
 0x640   : > { %v3437_v38 = vadd.f32 %v3436_v55, %v3292_v36 }
 0x641   : > { %7858 = vmatmul.msk.bf16.gmra.mxu0 %vm3160_vm6, %v11124_v16 }
 0x642   : > { %7901 = vmatmul.msk.bf16.gmra.mxu2 %vm3160_vm6, %v11122_v41  ;;  %v3706_v34 = vpop.f32.mrf.mxu1  ;;  %v3740_v58 = vadd.f32 %v3703_v10, %v3437_v38  ;;  %v3367_v10 = vadd.f32 %v11090_v46, %v11096_v54 }
 0x644   : > { %7836 = vmatmul.msk.bf16.gmra.mxu3 %vm3160_vm6, %v11122_v41  ;;  %v3712_v36 = vadd.f32 %v11100_v21, %v3367_v10 }
 0x645   : > { %v3837_v4 = vpop.f32.mrf.mxu2  ;;  %7880 = vmatmul.msk.bf16.gmra.mxu1 %vm3160_vm6, %v11144_v17 }
 0x646   : > { %v11480_v40 = vadd.f32 %v3837_v4, %v3739_v51  ;;  %v3441_v31 = vpop.f32.mrf.mxu0 }
 0x647   : > { %v3295_v29 = vpop.f32.mrf.mxu3 }
 0x648   : > { %v3440_v0 = vadd.f32 %v3439_v30, %v3295_v29  ;;  %v13690_v29 = vld [vmem:[#allocation67_spill] sm:$0xff] }
 0x64a   : > { %v3708_v27 = vpop.f32.mrf.mxu1  ;;  %v3741_v2 = vadd.f32 %v3706_v34, %v3440_v0  ;;  %v13691_v0 = vld [vmem:[#allocation75_spill] sm:$0xff] }
 0x64d   : > { %v3839_v50 = vpop.f32.mrf.mxu2 }
 0x64e   : > { %v11484_v23 = vadd.f32 %v3839_v50, %v3740_v58  ;;  %v4055_v24 = vpop.f32.mrf.mxu0 }
 0x64f   : > { %v3297_v12 = vpop.f32.mrf.mxu3 }
 0x650   : > { %v3442_v8 = vadd.f32 %v3441_v31, %v3297_v12  ;;  %v13694_v12 = vld [vmem:[#allocation84_spill] sm:$0xff] }
 0x651   : > { %7859 = vmatmul.msk.bf16.gmra.mxu0 %vm3160_vm6, %v11158_v6 }
 0x652   : > { %7902 = vmatmul.msk.bf16.gmra.mxu2 %vm3160_vm6, %v11155_v32  ;;  %v4187_v41 = vpop.f32.mrf.mxu1  ;;  %v3742_v33 = vadd.f32 %v3708_v27, %v3442_v8  ;;  %v13692_v27 = vld [vmem:[#allocation82_spill] sm:$0xff] }
 0x654   : > { %7837 = vmatmul.msk.bf16.gmra.mxu3 %vm3160_vm6, %v11155_v32  ;;  %v3848_v32 = vadd.f32 %v11171_v45, %v3712_v36 }
 0x655   : > { %v3842_v17 = vpop.f32.mrf.mxu2  ;;  %7881 = vmatmul.msk.bf16.gmra.mxu1 %vm3160_vm6, %v11175_v52 }
 0x656   : > { %v11492_v55 = vadd.f32 %v3842_v17, %v3741_v2  ;;  %v4057_v1 = vpop.f32.mrf.mxu0 }
 0x657   : > { %v3912_v62 = vpop.f32.mrf.mxu3 }
 0x658   : > { %v3992_v51 = vadd.f32 %v3912_v62, %v11133_v35  ;;  %v13696_v62 = vld [vmem:[#allocation66_spill] sm:$0xff] }
 0x65a   : > { %v4135_v19 = vadd.f32 %v4055_v24, %v3992_v51  ;;  %v4189_v30 = vpop.f32.mrf.mxu1  ;;  %v13693_v24 = vld [vmem:[#allocation73_spill] sm:$0xff] }
 0x65b   : > { %v3372_v8 = vadd.f32 %v13694_v12, %v13693_v24  ;;  %v13701_v24 = vld [vmem:[#allocation89_spill] sm:$0xff] }
 0x65c   : > { %v4267_v34 = vadd.f32 %v4187_v41, %v4135_v19  ;;  %v13695_v41 = vld [vmem:[#allocation77_spill] sm:$0xff] }
 0x65d   : > { %v3844_v38 = vpop.f32.mrf.mxu2  ;;  %v3714_v10 = vadd.f32 %v13696_v62, %v3372_v8 }
 0x65e   : > { %v11500_v58 = vadd.f32 %v3844_v38, %v3742_v33  ;;  %v4060_v4 = vpop.f32.mrf.mxu0 }
 0x65f   : > { %v3914_v31 = vpop.f32.mrf.mxu3 }
 0x660   : > { %v3993_v52 = vadd.f32 %v3914_v31, %v3848_v32 }
 0x661   : > { %7860 = vmatmul.msk.bf16.gmra.mxu0 %vm3160_vm6, %v13690_v29 }
 0x662   : > { %7903 = vmatmul.msk.bf16.gmra.mxu2 %vm3160_vm6, %v13691_v0  ;;  %v4136_v46 = vadd.f32 %v4057_v1, %v3993_v52  ;;  %v4192_v54 = vpop.f32.mrf.mxu1  ;;  %v13698_v52 = vld [vmem:[#allocation87_spill] sm:$0xff] }
 0x664   : > { %7838 = vmatmul.msk.bf16.gmra.mxu3 %vm3160_vm6, %v13691_v0  ;;  %v4268_v35 = vadd.f32 %v4189_v30, %v4136_v46  ;;  %v13697_v30 = vld [vmem:[#allocation80_spill] sm:$0xff]  ;;  %v13699_v0 = vld [vmem:[#allocation86_spill] sm:$0xff] }
 0x665   : > { %v4319_v21 = vpop.f32.mrf.mxu2  ;;  %7882 = vmatmul.msk.bf16.gmra.mxu1 %vm3160_vm6, %v13692_v27  ;;  %v3850_v38 = vadd.f32 %v13697_v30, %v3714_v10 }
 0x666   : > { %v11511_v45 = vadd.f32 %v4319_v21, %v4267_v34  ;;  %v4062_v2 = vpop.f32.mrf.mxu0 }
 0x667   : > { %v3917_v50 = vpop.f32.mrf.mxu3 }
 0x668   : > { %v3994_v33 = vadd.f32 %v3917_v50, %v13695_v41 }
 0x66a   : > { %v4137_v17 = vadd.f32 %v4060_v4, %v3994_v33  ;;  %v4194_v1 = vpop.f32.mrf.mxu1 }
 0x66c   : > { %v4269_v19 = vadd.f32 %v4192_v54, %v4137_v17 }
 0x66d   : > { %v4321_v51 = vpop.f32.mrf.mxu2 }
 0x66e   : > { %v11517_v36 = vadd.f32 %v4321_v51, %v4268_v35  ;;  %v4065_v32 = vpop.f32.mrf.mxu0  ;;  %v13700_v35 = vld [vmem:[#allocation88_spill] sm:$0xff] }
 0x66f   : > { %v3919_v34 = vpop.f32.mrf.mxu3  ;;  %v13702_v51 = vld [vmem:[#allocation56_spill] sm:$0xff] }
 0x670   : > { %v3995_v31 = vadd.f32 %v3919_v34, %v3850_v38  ;;  %v13704_v38 = vld [vmem:[#allocation60_spill] sm:$0xff] }
 0x671   : > { %7861 = vmatmul.msk.bf16.gmra.mxu0 %vm3160_vm6, %v13698_v52 }
 0x672   : > { %7904 = vmatmul.msk.bf16.gmra.mxu2 %vm3160_vm6, %v13699_v0  ;;  %v4138_v46 = vadd.f32 %v4062_v2, %v3995_v31  ;;  %v4197_v54 = vpop.f32.mrf.mxu1 }
 0x674   : > { %7839 = vmatmul.msk.bf16.gmra.mxu3 %vm3160_vm6, %v13699_v0  ;;  %v4270_v21 = vadd.f32 %v4194_v1, %v4138_v46  ;;  %v13703_v1 = vld [vmem:[#allocation69_spill] sm:$0xff]  ;;  %v13705_v0 = vld [vmem:[#allocation70_spill] sm:$0xff] }
 0x675   : > { %v4324_v4 = vpop.f32.mrf.mxu2  ;;  %7883 = vmatmul.msk.bf16.gmra.mxu1 %vm3160_vm6, %v13700_v35 }
 0x676   : > { %v11528_v27 = vadd.f32 %v4324_v4, %v4269_v19  ;;  %v4067_v8 = vpop.f32.mrf.mxu0 }
 0x677   : > { %v3922_v50 = vpop.f32.mrf.mxu3 }
 0x678   : > { %v3996_v12 = vadd.f32 %v3922_v50, %v13701_v24 }
 0x67a   : > { %v4139_v41 = vadd.f32 %v4065_v32, %v3996_v12  ;;  %v4199_v2 = vpop.f32.mrf.mxu1 }
 0x67c   : > { %v4271_v17 = vadd.f32 %v4197_v54, %v4139_v41 }
 0x67d   : > { %v4326_v33 = vpop.f32.mrf.mxu2 }
 0x67e   : > { %v11531_v62 = vadd.f32 %v4326_v33, %v4270_v21  ;;  %v4070_v34 = vpop.f32.mrf.mxu0  ;;  %v13706_v21 = vld [vmem:[#allocation50_spill] sm:$0xff] }
 0x67f   : > { %v3924_v10 = vpop.f32.mrf.mxu3 }
 0x680   : > { %v3997_v30 = vadd.f32 %v3924_v10, %v13702_v51  ;;  %v13707_v10 = vld [vmem:[#allocation90_spill] sm:$0xff] }
 0x681   : > { %7862 = vmatmul.msk.bf16.gmra.mxu0 %vm3160_vm6, %v13703_v1 }
 0x682   : > { %7905 = vmatmul.msk.bf16.gmra.mxu2 %vm3160_vm6, %v13704_v38  ;;  %v4140_v19 = vadd.f32 %v4067_v8, %v3997_v30  ;;  %v4202_v35 = vpop.f32.mrf.mxu1  ;;  %v13708_v30 = vld [vmem:[#allocation33_spill] sm:$0xff] }
 0x684   : > { %7840 = vmatmul.msk.bf16.gmra.mxu3 %vm3160_vm6, %v13704_v38  ;;  %v4272_v31 = vadd.f32 %v4199_v2, %v4140_v19  ;;  %v13709_v2 = vld [vmem:[#allocation59_spill] sm:$0xff] }
 0x685   : > { %v4329_v32 = vpop.f32.mrf.mxu2  ;;  %7884 = vmatmul.msk.bf16.gmra.mxu1 %vm3160_vm6, %v13705_v0 }
 0x686   : > { %v11542_v46 = vadd.f32 %v4329_v32, %v4271_v17  ;;  %v4072_v41 = vpop.f32.mrf.mxu0  ;;  %v13710_v32 = vld [vmem:[#allocation92_spill] sm:$0xff] }
 0x687   : > { %v3927_v4 = vpop.f32.mrf.mxu3 }
 0x688   : > { %v3998_v54 = vadd.f32 %v3927_v4, %v13706_v21  ;;  %v13711_v21 = vld [vmem:[#allocation14_spill] sm:$0xff] }
 0x68a   : > { %v4141_v50 = vadd.f32 %v4070_v34, %v3998_v54  ;;  %v4204_v38 = vpop.f32.mrf.mxu1 }
 0x68c   : > { %v4273_v12 = vadd.f32 %v4202_v35, %v4141_v50 }
 0x68d   : > { %v4331_v24 = vpop.f32.mrf.mxu2 }
 0x68e   : > { %v11545_v8 = vadd.f32 %v4331_v24, %v4272_v31  ;;  %v4075_v0 = vpop.f32.mrf.mxu0 }
 0x68f   : > { %v3929_v33 = vpop.f32.mrf.mxu3 }
 0x690   : > { %v3999_v51 = vadd.f32 %v3929_v33, %v13707_v10  ;;  %v13712_v33 = vld [vmem:[#allocation91_spill] sm:$0xff] }
 0x691   : > { %7863 = vmatmul.msk.bf16.gmra.mxu0 %vm3160_vm6, %v13708_v30 }
 0x692   : > { %7906 = vmatmul.msk.bf16.gmra.mxu2 %vm3160_vm6, %v13709_v2  ;;  %v4142_v17 = vadd.f32 %v4072_v41, %v3999_v51 }
 0x694   : > { %7841 = vmatmul.msk.bf16.gmra.mxu3 %vm3160_vm6, %v13709_v2  ;;  %v4274_v34 = vadd.f32 %v4204_v38, %v4142_v17  ;;  %v13713_v2 = vld [vmem:[#allocation94_spill] sm:$0xff]  ;;  %v13714_v17 = vld [vmem:[#allocation93_spill] sm:$0xff] }
 0x695   : > { %v4334_v19 = vpop.f32.mrf.mxu2  ;;  %7885 = vmatmul.msk.bf16.gmra.mxu1 %vm3160_vm6, %v13710_v32 }
 0x696   : > { %v11556_v31 = vadd.f32 %v4334_v19, %v4273_v12  ;;  %v4077_v51 = vpop.f32.mrf.mxu0  ;;  %v13715_v19 = vld [vmem:[#allocation95_spill] sm:$0xff] }
 0x697   : > { %v3932_v4 = vpop.f32.mrf.mxu3 }
 0x698   : > { %v4000_v54 = vadd.f32 %v3932_v4, %v13711_v21 }
 0x69a   : > { %v11559_v35 = vadd.f32 %v4075_v0, %v4000_v54 }
 0x69d   : > { %v4336_v50 = vpop.f32.mrf.mxu2 }
 0x69e   : > { %v11561_v24 = vadd.f32 %v4336_v50, %v4274_v34 }
 0x69f   : > { %v3934_v41 = vpop.f32.mrf.mxu3 }
 0x6a0   : > { %v4001_v10 = vadd.f32 %v3934_v41, %v13712_v33 }
 0x6a1   : > { %7864 = vmatmul.msk.bf16.gmra.mxu0 %vm3160_vm6, %v13713_v2 }
 0x6a2   : > { %7907 = vmatmul.msk.bf16.gmra.mxu2 %vm3160_vm6, %v13714_v17  ;;  %v11568_v12 = vadd.f32 %v4077_v51, %v4001_v10  ;;  %v13717_v51 = vld [vmem:[#allocation41_spill] sm:$0xff] }
 0x6a4   : > { %7842 = vmatmul.msk.bf16.gmra.mxu3 %vm3160_vm6, %v13714_v17 }
 0x6a5   : > { %7886 = vmatmul.msk.bf16.gmra.mxu1 %vm3160_vm6, %v11359_v7  ;;  %v7937_v7 = vld [vmem:[%s13274_s7 + $0x8] sm:$0xf] }
 0x6a7   : > { %v3937_v38 = vpop.f32.mrf.mxu3 }
 0x6a8   : > { %v11575_v34 = vadd.f32 %v3937_v38, %v13715_v19 }
 0x6af   : > { %v3939_v32 = vpop.f32.mrf.mxu3 }
 0x6b0   : > { %v11578_v0 = vadd.f32 %v3939_v32, %v11356_v11  ;;  %v8183_v11 = vld [vmem:[%s13274_s7 + $0x8] sm:$0x30] }
 0x6b1   : > { %7865 = vmatmul.msk.bf16.gmra.mxu0 %vm3160_vm6, %v11374_v15  ;;  %v7938_v21 = vor.u32 %v8183_v11, %v7937_v7 }
 0x6b2   : > { %7908 = vmatmul.msk.bf16.gmra.mxu2 %vm3160_vm6, %v11372_v47 }
 0x6b3   : > { %v5268_v50 = vsel %vm1414_vm5, %v7938_v21, 0 }
 0x6b4   : > { %7843 = vmatmul.msk.bf16.gmra.mxu3 %vm3160_vm6, %v11372_v47  ;;  %5277 = vmatpush.bf16.msrb.mxu0 %v5268_v50 }
 0x6b5   : > { %7887 = vmatmul.msk.bf16.gmra.mxu1 %vm3160_vm6, %v11388_v59  ;;  %v13716_v59 = vld [vmem:[#allocation63_spill] sm:$0xff] }
 0x6b7   : > { %v3942_v4 = vpop.f32.mrf.mxu3 }
 0x6b8   : > { %v11595_v54 = vadd.f32 %v3942_v4, %v11380_v49 }
 0x6bf   : > { %v3944_v47 = vpop.f32.mrf.mxu3 }
 0x6c0   : > { %v11599_v41 = vadd.f32 %v3944_v47, %v11384_v44 }
 0x6c1   : > { %7866 = vmatmul.msk.bf16.gmra.mxu0 %vm3160_vm6, %v11362_v37 }
 0x6c2   : > { %7909 = vmatmul.msk.bf16.gmra.mxu2 %vm3160_vm6, %v11376_v60 }
 0x6c4   : > { %7844 = vmatmul.msk.bf16.gmra.mxu3 %vm3160_vm6, %v11376_v60 }
 0x6c5   : > { %7888 = vmatmul.msk.bf16.gmra.mxu1 %vm3160_vm6, %v13716_v59 }
 0x6c7   : > { %v3947_v49 = vpop.f32.mrf.mxu3 }
 0x6c8   : > { %v11610_v33 = vadd.f32 %v3947_v49, %v11394_v5  ;;  %v11679_v49 = vpop.f32.mrf.mxu2 }
 0x6cf   : > { %v3949_v10 = vpop.f32.mrf.mxu3 }
 0x6d0   : > { %v11613_v44 = vadd.f32 %v3949_v10, %v11400_v25 }
 0x6d1   : > { %7939 = vmatmul.msk.bf16.vlgmr.msrb.gmra.mxu0 %vm3160_vm6, %v13717_v51 }
 0x6d2   : > { %7910 = vmatmul.msk.bf16.gmra.mxu2 %vm3160_vm6, %v13717_v51 }
 0x6d4   : > { %7917 = vmatmul.msk.bf16.vlgmr.msrb.gmra.mxu3 %vm3160_vm6, %v10851_v61 }
 0x6d7   : > { %v3952_v60 = vpop.f32.mrf.mxu3 }
 0x6d8   : > { %v11622_v17 = vadd.f32 %v3952_v60, %v11408_v63  ;;  %v11689_v60 = vpop.f32.mrf.mxu2 }
 0x6df   : > { %v3954_v38 = vpop.f32.mrf.mxu3 }
 0x6e0   : > { %v11625_v5 = vadd.f32 %v3954_v38, %v11412_v20 }
 0x6e4   : > { %7918 = vmatmul.msk.bf16.gmra.mxu3 %vm3160_vm6, %v10902_v57 }
 0x6e7   : > { %v3957_v25 = vpop.f32.mrf.mxu3 }
 0x6e8   : > { %v11630_v19 = vadd.f32 %v3957_v25, %v11420_v13  ;;  %v11697_v25 = vpop.f32.mrf.mxu2 }
 0x6ef   : > { %v3959_v32 = vpop.f32.mrf.mxu3 }
 0x6f0   : > { %v11633_v7 = vadd.f32 %v3959_v32, %v11424_v28  ;;  %v11703_v32 = vld [vmem:[%s13273_s6] ss:$0 sm:$0xff] }
 0x6f4   : > { %7919 = vmatmul.msk.bf16.gmra.mxu3 %vm3160_vm6, %v10951_v53 }
 0x6f7   : > { %v3962_v61 = vpop.f32.mrf.mxu3 }
 0x6f8   : > { %v11638_v63 = vadd.f32 %v3962_v61, %v11432_v26 }
 0x6ff   : > { %v3964_v20 = vpop.f32.mrf.mxu3 }
 0x700   : > { %v11641_v11 = vadd.f32 %v3964_v20, %v11436_v22 }
 0x704   : > { %7920 = vmatmul.msk.bf16.gmra.mxu3 %vm3160_vm6, %v10996_v18 }
 0x707   : > { %v3967_v57 = vpop.f32.mrf.mxu3 }
 0x708   : > { %v11646_v13 = vadd.f32 %v3967_v57, %v11444_v56 }
 0x70f   : > { %v3969_v28 = vpop.f32.mrf.mxu3 }
 0x710   : > { %v11649_v4 = vadd.f32 %v3969_v28, %v11448_v43 }
 0x714   : > { %7921 = vmatmul.msk.bf16.gmra.mxu3 %vm3160_vm6, %v11043_v48 }
 0x717   : > { %v3972_v53 = vpop.f32.mrf.mxu3 }
 0x718   : > { %v11654_v26 = vadd.f32 %v3972_v53, %v11456_v9 }
 0x71f   : > { %v3974_v22 = vpop.f32.mrf.mxu3 }
 0x720   : > { %v11657_v21 = vadd.f32 %v3974_v22, %v11460_v14 }
 0x724   : > { %7922 = vmatmul.msk.bf16.gmra.mxu3 %vm3160_vm6, %v11084_v39  ;;  %v11677_v39 = vpop.f32.mrf.mxu1 }
 0x727   : > { %v3977_v18 = vpop.f32.mrf.mxu3 }
 0x728   : > { %v11662_v56 = vadd.f32 %v3977_v18, %v11468_v42 }
 0x72f   : > { %v3979_v43 = vpop.f32.mrf.mxu3 }
 0x730   : > { %v11665_v50 = vadd.f32 %v3979_v43, %v11472_v3 }
 0x734   : > { %7923 = vmatmul.msk.bf16.gmra.mxu3 %vm3160_vm6, %v11124_v16  ;;  %v11684_v16 = vpop.f32.mrf.mxu1 }
 0x737   : > { %v3982_v48 = vpop.f32.mrf.mxu3 }
 0x738   : > { %v11670_v9 = vadd.f32 %v3982_v48, %v11480_v40 }
 0x73c   : > { %v11695_v38 = vpop.f32.mrf.mxu1 }
 0x73f   : > { %v3984_v14 = vpop.f32.mrf.mxu3 }
 0x740   : > { %v11673_v47 = vadd.f32 %v3984_v14, %v11484_v23 }
 0x744   : > { %7924 = vmatmul.msk.bf16.gmra.mxu3 %vm3160_vm6, %v11158_v6  ;;  %v11693_v6 = vpop.f32.mrf.mxu0  ;;  %v11710_v28 = vpop.f32.mrf.mxu1 }
 0x747   : > { %v3987_v42 = vpop.f32.mrf.mxu3 }
 0x748   : > { %v11682_v3 = vadd.f32 %v3987_v42, %v11492_v55 }
 0x74c   : > { %v11705_v61 = vpop.f32.mrf.mxu0  ;;  %v11723_v14 = vpop.f32.mrf.mxu1 }
 0x74f   : > { %v3989_v10 = vpop.f32.mrf.mxu3 }
 0x750   : > { %v11687_v40 = vadd.f32 %v3989_v10, %v11500_v58 }
 0x754   : > { %7925 = vmatmul.msk.bf16.gmra.mxu3 %vm3160_vm6, %v13690_v29  ;;  %v11720_v48 = vpop.f32.mrf.mxu0 }
 0x757   : > { %v4451_v23 = vpop.f32.mrf.mxu3 }
 0x758   : > { %v4531_v55 = vadd.f32 %v4451_v23, %v11511_v45  ;;  %v11714_v45 = vpop.f32.mrf.mxu2 }
 0x75a   : > { %v4567_v20 = vadd.f32 %v11703_v32, %v4531_v55  ;;  %v13720_v55 = vld [vmem:[#allocation26_spill] sm:$0xff] }
 0x75c   : > { %v4599_v53 = vmax.f32 %v4567_v20, 0.0  ;;  %v11732_v20 = vpop.f32.mrf.mxu0 }
 0x75f   : > { %v4453_v58 = vpop.f32.mrf.mxu3 }
 0x760   : > { %v4532_v29 = vadd.f32 %v4453_v58, %v11517_v36  ;;  %v11725_v10 = vpop.f32.mrf.mxu2 }
 0x762   : > { %v4568_v57 = vadd.f32 %v11703_v32, %v4532_v29 }
 0x764   : > { %v4600_v22 = vmax.f32 %v4568_v57, 0.0  ;;  %7926 = vmatmul.msk.bf16.gmra.mxu3 %vm3160_vm6, %v13698_v52 }
 0x766   : > { %v11716_v18 = vpack.i.bf16 %v4600_v22, %v4599_v53  ;;  %v11738_v53 = vpop.f32.mrf.mxu1 }
 0x767   : > { %v4456_v43 = vpop.f32.mrf.mxu3 }
 0x768   : > { %13718 = vst [vmem:[#allocation67_spill] sm:$0xff] %v11716_v18  ;;  %8490 = vrot.lane.b32.xlu1 %v11716_v18, %s13637_s12  ;;  %v4533_v36 = vadd.f32 %v4456_v43, %v11528_v27 }
 0x76a   : > { %v4569_v23 = vadd.f32 %v11703_v32, %v4533_v36  ;;  %v11745_v36 = vpop.f32.mrf.mxu0 }
 0x76c   : > { %v4601_v29 = vmax.f32 %v4569_v23, 0.0 }
 0x76f   : > { %v4458_v42 = vpop.f32.mrf.mxu3 }
 0x770   : > { %v4534_v52 = vadd.f32 %v4458_v42, %v11531_v62  ;;  %8505 = vrot.lane.b32.xlu1 %v13720_v55, %s13719_s13  ;;  %v11742_v62 = vpop.f32.mrf.mxu2  ;;  %v11751_v55 = vpop.f32.mrf.mxu1 }
 0x772   : > { %v4570_v58 = vadd.f32 %v11703_v32, %v4534_v52 }
 0x774   : > { %v4602_v57 = vmax.f32 %v4570_v58, 0.0  ;;  %7927 = vmatmul.msk.bf16.gmra.mxu3 %vm3160_vm6, %v13703_v1  ;;  %v13722_v1 = vld [vmem:[#allocation37_spill] sm:$0xff] }
 0x776   : > { %v11736_v27 = vpack.i.bf16 %v4602_v57, %v4601_v29 }
 0x777   : > { %v4461_v22 = vpop.f32.mrf.mxu3 }
 0x778   : > { %13721 = vst [vmem:[#allocation75_spill] sm:$0xff] %v11736_v27  ;;  %8500 = vrot.lane.b32.xlu0 %v11736_v27, %s13637_s12  ;;  %v4535_v43 = vadd.f32 %v4461_v22, %v11542_v46  ;;  %v11754_v29 = vpop.f32.mrf.mxu2 }
 0x77a   : > { %v4571_v23 = vadd.f32 %v11703_v32, %v4535_v43  ;;  %v11760_v43 = vpop.f32.mrf.mxu0 }
 0x77c   : > { %v4603_v57 = vmax.f32 %v4571_v23, 0.0 }
 0x77f   : > { %v4463_v42 = vpop.f32.mrf.mxu3 }
 0x780   : > { %v4536_v52 = vadd.f32 %v4463_v42, %v11545_v8  ;;  %8515 = vrot.lane.b32.xlu0 %v13722_v1, %s13719_s13  ;;  %v11764_v8 = vpop.f32.mrf.mxu1 }
 0x782   : > { %v4572_v58 = vadd.f32 %v11703_v32, %v4536_v52  ;;  %v11767_v52 = vpop.f32.mrf.mxu2 }
 0x784   : > { %v4604_v51 = vmax.f32 %v4572_v58, 0.0  ;;  %7928 = vmatmul.msk.bf16.gmra.mxu3 %vm3160_vm6, %v13708_v30  ;;  %v13724_v30 = vld [vmem:[#allocation19_spill] sm:$0xff] }
 0x786   : > { %v11758_v46 = vpack.i.bf16 %v4604_v51, %v4603_v57  ;;  %v11773_v51 = vpop.f32.mrf.mxu0 }
 0x787   : > { %v4466_v22 = vpop.f32.mrf.mxu3 }
 0x788   : > { %13723 = vst [vmem:[#allocation82_spill] sm:$0xff] %v11758_v46  ;;  %8510 = vrot.lane.b32.xlu2 %v11758_v46, %s13637_s12  ;;  %v4537_v42 = vadd.f32 %v4466_v22, %v11556_v31  ;;  %v11778_v31 = vpop.f32.mrf.mxu1 }
 0x78a   : > { %v4573_v23 = vadd.f32 %v11703_v32, %v4537_v42  ;;  %v11784_v42 = vpop.f32.mrf.mxu2 }
 0x78c   : > { %v4605_v27 = vmax.f32 %v4573_v23, 0.0  ;;  %v4276_v23 = vadd.f32 %v11684_v16, %v11568_v12  ;;  %v4145_v12 = vadd.f32 %v11693_v6, %v11575_v34 }
 0x78f   : > { %v4468_v1 = vpop.f32.mrf.mxu3 }
 0x790   : > { %v4538_v58 = vadd.f32 %v4468_v1, %v11561_v24  ;;  %8525 = vrot.lane.b32.xlu2 %v13724_v30, %s13719_s13  ;;  %v4275_v24 = vadd.f32 %v11677_v39, %v11559_v35 }
 0x792   : > { %v4574_v57 = vadd.f32 %v11703_v32, %v4538_v58  ;;  %v4407_v1 = vadd.f32 %v11679_v49, %v4275_v24  ;;  %v11791_v58 = vpop.f32.mrf.mxu0 }
 0x794   : > { %v4606_v46 = vmax.f32 %v4574_v57, 0.0  ;;  %7929 = vmatmul.msk.bf16.gmra.mxu3 %vm3160_vm6, %v13713_v2  ;;  %v13726_v57 = vld [vmem:[#allocation7_spill] sm:$0xff] }
 0x796   : > { %v11780_v22 = vpack.i.bf16 %v4606_v46, %v4605_v27  ;;  %v4408_v27 = vadd.f32 %v11689_v60, %v4276_v23  ;;  %v11794_v46 = vpop.f32.mrf.mxu1  ;;  %v4146_v23 = vadd.f32 %v11705_v61, %v11578_v0  ;;  %v8184_v0 = vld [vmem:[%s13274_s7 + $0x10] sm:$0x30]  ;;  %v7957_v61 = vld [vmem:[%s13274_s7] sm:$0xf] }
 0x797   : > { %v4471_v18 = vpop.f32.mrf.mxu3 }
 0x798   : > { %13725 = vst [vmem:[#allocation73_spill] sm:$0xff] %v11780_v22  ;;  %8520 = vrot.lane.b32.xlu1 %v11780_v22, %s13637_s12  ;;  %v4539_v2 = vadd.f32 %v4471_v18, %v4407_v1  ;;  %v11799_v22 = vpop.f32.mrf.mxu2  ;;  %v4278_v6 = vadd.f32 %v11710_v28, %v4146_v23  ;;  %v8001_v28 = vld [vmem:[%s13274_s7 + $0x18] sm:$0xf] }
 0x79a   : > { %v4575_v35 = vadd.f32 %v11703_v32, %v4539_v2  ;;  %v11806_v60 = vpop.f32.mrf.mxu0  ;;  %v4277_v2 = vadd.f32 %v11695_v38, %v4145_v12 }
 0x79c   : > { %v4607_v16 = vmax.f32 %v4575_v35, 0.0  ;;  %v4409_v34 = vadd.f32 %v11697_v25, %v4277_v2  ;;  %v7979_v35 = vld [vmem:[%s13274_s7 + $0x10] sm:$0xf]  ;;  %v8182_v25 = vld [vmem:[%s13274_s7] sm:$0x30] }
 0x79d   : > { %v7980_v38 = vor.u32 %v8184_v0, %v7979_v35 }
 0x79f   : > { %v4473_v30 = vpop.f32.mrf.mxu3 }
 0x7a0   : > { %v4540_v39 = vadd.f32 %v4473_v30, %v4408_v27  ;;  %8535 = vrot.lane.b32.xlu1 %v13726_v57, %s13719_s13  ;;  %v11815_v27 = vpop.f32.mrf.mxu1  ;;  %v7958_v57 = vor.u32 %v8182_v25, %v7957_v61 }
 0x7a2   : > { %v4576_v49 = vadd.f32 %v11703_v32, %v4540_v39  ;;  %v4410_v39 = vadd.f32 %v11714_v45, %v4278_v6  ;;  %v5410_v45 = vsel %vm1414_vm5, %v7958_v57, 0 }
 0x7a3   : > { %5419 = vmatpush.bf16.msrb.mxu1 %v5410_v45 }
 0x7a4   : > { %v4608_v18 = vmax.f32 %v4576_v49, 0.0  ;;  %7930 = vmatmul.msk.bf16.gmra.mxu3 %vm3160_vm6, %v11374_v15  ;;  %v11819_v15 = vpop.f32.mrf.mxu2  ;;  %v8185_v49 = vld [vmem:[%s13274_s7 + $0x18] sm:$0x30] }
 0x7a6   : > { %v11808_v24 = vpack.i.bf16 %v4608_v18, %v4607_v16  ;;  %v5675_v16 = vsel %vm1414_vm5, %v7980_v38, 0  ;;  %v8002_v18 = vor.u32 %v8185_v49, %v8001_v28  ;;  %v13728_v38 = vld [vmem:[#allocation68_spill] sm:$0xff]  ;;  %7959 = vmatmul.msk.bf16.vlgmr.msrb.gmra.mxu1 %vm3160_vm6, %v13716_v59  ;;  %v8023_v28 = vld [vmem:[%s13274_s7 + $0x20] sm:$0xf] }
 0x7a7   : > { %v4476_v1 = vpop.f32.mrf.mxu3  ;;  %5684 = vmatpush.bf16.msra.mxu2 %v5675_v16 }
 0x7a8   : > { %8530 = vrot.lane.b32.xlu0 %v11808_v24, %s13637_s12  ;;  %v4541_v30 = vadd.f32 %v4476_v1, %v4409_v34  ;;  %v11841_v1 = vpop.f32.mrf.mxu0  ;;  %v13727_v34 = vld [vmem:[#allocation11_spill] sm:$0xff]  ;;  %v5811_v6 = vsel %vm1414_vm5, %v8002_v18, 0  ;;  %v11849_v0 = vpop.f32.mrf.mxu1 }
 0x7a9   : > { %5820 = vmatpush.bf16.msra.mxu3 %v5811_v6 }
 0x7aa   : > { %v4577_v23 = vadd.f32 %v11703_v32, %v4541_v30  ;;  %7981 = vmatmul.msk.bf16.vlgmr.msra.gmra.mxu2 %vm3160_vm6, %v13728_v38  ;;  %v4147_v30 = vadd.f32 %v11720_v48, %v11595_v54 }
 0x7ac   : > { %v4609_v61 = vmax.f32 %v4577_v23, 0.0  ;;  %v11865_v49 = vpop.f32.mrf.mxu2  ;;  %v4279_v16 = vadd.f32 %v11723_v14, %v4147_v30  ;;  %v4149_v30 = vadd.f32 %v11745_v36, %v11610_v33 }
 0x7ae   : > { %v4411_v18 = vadd.f32 %v11725_v10, %v4279_v16 }
 0x7af   : > { %v4478_v12 = vpop.f32.mrf.mxu3 }
 0x7b0   : > { %v4542_v2 = vadd.f32 %v4478_v12, %v4410_v39  ;;  %8545 = vrot.lane.b32.xlu0 %v13727_v34, %s13719_s13  ;;  %v8186_v39 = vld [vmem:[%s13274_s7 + $0x20] sm:$0x30]  ;;  %v11876_v23 = vpop.f32.mrf.mxu0  ;;  %v11879_v45 = vpop.f32.mrf.mxu1 }
 0x7b1   : > { %v8024_v57 = vor.u32 %v8186_v39, %v8023_v28 }
 0x7b2   : > { %v4578_v35 = vadd.f32 %v11703_v32, %v4542_v2 }
 0x7b3   : > { %v5956_v12 = vsel %vm1414_vm5, %v8024_v57, 0 }
 0x7b4   : > { %v4610_v25 = vmax.f32 %v4578_v35, 0.0  ;;  %7931 = vmatmul.msk.bf16.gmra.mxu3 %vm3160_vm6, %v11362_v37  ;;  %v4148_v37 = vadd.f32 %v11732_v20, %v11599_v41  ;;  %5965 = vmatpush.bf16.msra.mxu0 %v5956_v12  ;;  %v13729_v20 = vld [vmem:[#allocation18_spill] sm:$0xff]  ;;  %v4281_v12 = vadd.f32 %v11751_v55, %v4149_v30  ;;  %v13730_v55 = vld [vmem:[#allocation23_spill] sm:$0xff] }
 0x7b6   : > { %v11867_v54 = vpack.i.bf16 %v4610_v25, %v4609_v61  ;;  %v4280_v2 = vadd.f32 %v11738_v53, %v4148_v37  ;;  %v11882_v61 = vpop.f32.mrf.mxu2  ;;  %v4413_v33 = vadd.f32 %v11754_v29, %v4281_v12 }
 0x7b7   : > { %v4481_v48 = vpop.f32.mrf.mxu3 }
 0x7b8   : > { %8540 = vrot.lane.b32.xlu2 %v11867_v54, %s13637_s12  ;;  %v4543_v34 = vadd.f32 %v4481_v48, %v4411_v18  ;;  %v4412_v6 = vadd.f32 %v11742_v62, %v4280_v2  ;;  %v11890_v53 = vpop.f32.mrf.mxu0  ;;  %v11896_v39 = vpop.f32.mrf.mxu1  ;;  %v4150_v48 = vadd.f32 %v11760_v43, %v11613_v44 }
 0x7ba   : > { %v4579_v41 = vadd.f32 %v11703_v32, %v4543_v34  ;;  %v4282_v37 = vadd.f32 %v11764_v8, %v4150_v48 }
 0x7bc   : > { %v4611_v25 = vmax.f32 %v4579_v41, 0.0  ;;  %v4414_v18 = vadd.f32 %v11767_v52, %v4282_v37 }
 0x7be   : > { %v11904_v36 = vpop.f32.mrf.mxu2 }
 0x7bf   : > { %v4483_v35 = vpop.f32.mrf.mxu3 }
 0x7c0   : > { %v4544_v14 = vadd.f32 %v4483_v35, %v4412_v6  ;;  %8555 = vrot.lane.b32.xlu2 %v13729_v20, %s13719_s13  ;;  %v11908_v2 = vpop.f32.mrf.mxu0  ;;  %v11913_v43 = vpop.f32.mrf.mxu1  ;;  %v4151_v35 = vadd.f32 %v11773_v51, %v11622_v17 }
 0x7c1   : > { %v8486_v20 = vpop.permute.xlu0 %8485 }
 0x7c2   : > { %v4580_v10 = vadd.f32 %v11703_v32, %v4544_v14  ;;  %v8488_v51 = vunpack.i.h.bf16 %v8486_v20  ;;  %v8487_v48 = vunpack.i.l.bf16 %v8486_v20 }
 0x7c4   : > { %v4612_v28 = vmax.f32 %v4580_v10, 0.0  ;;  %7932 = vmatmul.msk.bf16.gmra.mxu3 %vm3160_vm6, %v13728_v38  ;;  %v4283_v10 = vadd.f32 %v11778_v31, %v4151_v35 }
 0x7c6   : > { %v11894_v62 = vpack.i.bf16 %v4612_v28, %v4611_v25  ;;  %v11918_v8 = vpop.f32.mrf.mxu2  ;;  %v4152_v25 = vadd.f32 %v11791_v58, %v11625_v5  ;;  %v4415_v17 = vadd.f32 %v11784_v42, %v4283_v10 }
 0x7c7   : > { %v4486_v57 = vpop.f32.mrf.mxu3 }
 0x7c8   : > { %8550 = vrot.lane.b32.xlu1 %v11894_v62, %s13637_s12  ;;  %v4545_v16 = vadd.f32 %v4486_v57, %v4413_v33  ;;  %v11925_v28 = vpop.f32.mrf.mxu0  ;;  %v11930_v12 = vpop.f32.mrf.mxu1  ;;  %v4284_v31 = vadd.f32 %v11794_v46, %v4152_v25  ;;  %v13731_v46 = vld [vmem:[#allocation29_spill] sm:$0xff] }
 0x7ca   : > { %v4581_v6 = vadd.f32 %v11703_v32, %v4545_v16  ;;  %v4416_v58 = vadd.f32 %v11799_v22, %v4284_v31 }
 0x7cc   : > { %v4613_v41 = vmax.f32 %v4581_v6, 0.0 }
 0x7cf   : > { %v4488_v34 = vpop.f32.mrf.mxu3 }
 0x7d0   : > { %v4546_v44 = vadd.f32 %v4488_v34, %v4414_v18  ;;  %8565 = vrot.lane.b32.xlu1 %v13730_v55, %s13719_s13  ;;  %v11936_v34 = vpop.f32.mrf.mxu2  ;;  %v11944_v25 = vpop.f32.mrf.mxu0 }
 0x7d2   : > { %v4582_v29 = vadd.f32 %v11703_v32, %v4546_v44 }
 0x7d4   : > { %v4614_v52 = vmax.f32 %v4582_v29, 0.0 }
 0x7d6   : > { %v11920_v14 = vpack.i.bf16 %v4614_v52, %v4613_v41 }
 0x7d7   : > { %v4491_v30 = vpop.f32.mrf.mxu3 }
 0x7d8   : > { %8560 = vrot.lane.b32.xlu0 %v11920_v14, %s13637_s12  ;;  %v4547_v33 = vadd.f32 %v4491_v30, %v4415_v17 }
 0x7da   : > { %v8491_v57 = vpop.permute.xlu1 %8490  ;;  %v4583_v44 = vadd.f32 %v11703_v32, %v4547_v33  ;;  %v4153_v33 = vadd.f32 %v11806_v60, %v11630_v19 }
 0x7db   : > { %v8493_v37 = vunpack.i.h.bf16 %v8491_v57  ;;  %v8492_v16 = vunpack.i.l.bf16 %v8491_v57 }
 0x7dd   : > { %v4856_v18 = vsel %vm1132_vm4, %v8488_v51, %v8493_v37  ;;  %v4855_v5 = vsel %vm1132_vm4, %v8487_v48, %v8492_v16  ;;  %v4615_v37 = vmax.f32 %v4583_v44, 0.0  ;;  %v8496_v16 = vpop.permute.xlu2 %8495  ;;  %v4285_v44 = vadd.f32 %v11815_v27, %v4153_v33 }
 0x7de   : > { %v4920_v6 = vrot.slane %v4856_v18, 7  ;;  %v4919_v42 = vrot.slane %v4855_v5, 7  ;;  %v8497_v27 = vunpack.i.l.bf16 %v8496_v16 }
 0x7df   : > { %v4493_v55 = vpop.f32.mrf.mxu3 }
 0x7e0   : > { %v5031_v29 = vsel %vm817_vm2, %v4920_v6, 0.0  ;;  %v5015_v35 = vsel %vm817_vm2, 0.0, %v4919_v42  ;;  %v4548_v41 = vadd.f32 %v4493_v55, %v4416_v58  ;;  %8575 = vrot.lane.b32.xlu0 %v13731_v46, %s13719_s13  ;;  %v4921_v52 = vsel %vm817_vm2, %v4919_v42, %v4920_v6  ;;  %v11954_v6 = vpop.f32.mrf.mxu1 }
 0x7e1   : > { %v5097_v20 = vrot.slane %v5031_v29, 1  ;;  %v5504_v10 = vrot.slane %v5031_v29, 2  ;;  %v5094_v22 = vrot.slane %v5015_v35, 1  ;;  %v5501_v30 = vrot.slane %v5015_v35, 2 }
 0x7e2   : > { %v4584_v17 = vadd.f32 %v11703_v32, %v4548_v41  ;;  %v5047_v51 = vpack.c.bf16 %v4921_v52, %v5015_v35  ;;  %v5095_v57 = vrot.slane %v4921_v52, 1  ;;  %v5502_v48 = vrot.slane %v4921_v52, 2  ;;  %v11968_v41 = vpop.f32.mrf.mxu2 }
 0x7e3   : > { %v4154_v35 = vadd.f32 %v11841_v1, %v11633_v7  ;;  %v4417_v46 = vadd.f32 %v11819_v15, %v4285_v44  ;;  %v8498_v52 = vunpack.i.h.bf16 %v8496_v16  ;;  %v11976_v7 = vpop.f32.mrf.mxu0 }
 0x7e4   : > { %v4616_v31 = vmax.f32 %v4584_v17, 0.0  ;;  %7960 = vmatmul.msk.bf16.gmra.mxu1 %vm3160_vm6, %v5047_v51  ;;  %8003 = vmatmul.msk.bf16.vlgmr.msra.gmra.mxu3 %vm3160_vm6, %v5047_v51  ;;  %v5096_v18 = vsel %vm1001_vm3, %v5094_v22, %v5095_v57  ;;  %v5098_v5 = vsel %vm1001_vm3, %v5095_v57, %v5097_v20  ;;  %v5503_v58 = vsel %vm1414_vm5, %v5501_v30, %v5502_v48 }
 0x7e5   : > { %v11956_v42 = vpack.c.bf16 %v5098_v5, %v5096_v18  ;;  %v5505_v55 = vsel %vm1414_vm5, %v5502_v48, %v5504_v10  ;;  %v8506_v10 = vpop.permute.xlu1 %8505  ;;  %v4286_v51 = vadd.f32 %v11849_v0, %v4154_v35  ;;  %v8511_v1 = vpop.permute.xlu2 %8510 }
 0x7e6   : > { %v11959_v19 = vpack.c.bf16 %v5505_v55, %v5503_v58  ;;  %v11961_v60 = vpack.i.bf16 %v4616_v31, %v4615_v37  ;;  %v8508_v37 = vunpack.i.h.bf16 %v8506_v10  ;;  %v8507_v16 = vunpack.i.l.bf16 %v8506_v10 }
 0x7e7   : > { %7940 = vmatmul.msk.bf16.gmra.mxu0 %vm3160_vm6, %v11956_v42  ;;  %v4496_v29 = vpop.f32.mrf.mxu3  ;;  %v4418_v33 = vadd.f32 %v11865_v49, %v4286_v51  ;;  %v8513_v5 = vunpack.i.h.bf16 %v8511_v1  ;;  %v8512_v58 = vunpack.i.l.bf16 %v8511_v1 }
 0x7e8   : > { %7982 = vmatmul.msk.bf16.gmra.mxu2 %vm3160_vm6, %v11959_v19  ;;  %8570 = vrot.lane.b32.xlu2 %v11961_v60, %s13637_s12  ;;  %v4549_v22 = vadd.f32 %v4496_v29, %v4417_v46  ;;  %v11981_v18 = vpop.f32.mrf.mxu1  ;;  %v13732_v46 = vld [vmem:[#allocation36_spill] sm:$0xff] }
 0x7ea   : > { %v8501_v20 = vpop.permute.xlu0 %8500  ;;  %v4585_v55 = vadd.f32 %v11703_v32, %v4549_v22  ;;  %v11989_v10 = vpop.f32.mrf.mxu2 }
 0x7eb   : > { %v8503_v30 = vunpack.i.h.bf16 %v8501_v20  ;;  %v8502_v17 = vunpack.i.l.bf16 %v8501_v20 }
 0x7ed   : > { %v4858_v57 = vsel %vm1132_vm4, %v8498_v52, %v8503_v30  ;;  %v4857_v48 = vsel %vm1132_vm4, %v8497_v27, %v8502_v17 }
 0x7ee   : > { %v4923_v15 = vrot.slane %v4858_v57, 7  ;;  %v4922_v31 = vrot.slane %v4857_v48, 7  ;;  %v4155_v57 = vadd.f32 %v11876_v23, %v11638_v63  ;;  %v4860_v48 = vsel %vm1132_vm4, %v8508_v37, %v8513_v5  ;;  %v12008_v23 = vpop.f32.mrf.mxu0 }
 0x7ef   : > { %v4498_v0 = vpop.f32.mrf.mxu3  ;;  %v4926_v5 = vrot.slane %v4860_v48, 7  ;;  %v4161_v38 = vadd.f32 %v12008_v23, %v11662_v56 }
 0x7f0   : > { %v5032_v44 = vsel %vm817_vm2, %v4923_v15, 0.0  ;;  %v5016_v29 = vsel %vm817_vm2, 0.0, %v4922_v31  ;;  %v4550_v35 = vadd.f32 %v4498_v0, %v4418_v33  ;;  %8585 = vrot.lane.b32.xlu2 %v13732_v46, %s13719_s13  ;;  %v4924_v49 = vsel %vm817_vm2, %v4922_v31, %v4923_v15 }
 0x7f1   : > { %v5102_v52 = vrot.slane %v5032_v44, 1  ;;  %v5509_v20 = vrot.slane %v5032_v44, 2  ;;  %v5099_v27 = vrot.slane %v5016_v29, 1  ;;  %v5506_v30 = vrot.slane %v5016_v29, 2 }
 0x7f2   : > { %v4586_v17 = vadd.f32 %v11703_v32, %v4550_v35  ;;  %v11992_v22 = vpack.c.bf16 %v4924_v49, %v5016_v29  ;;  %v5100_v51 = vrot.slane %v4924_v49, 1  ;;  %v5507_v1 = vrot.slane %v4924_v49, 2 }
 0x7f3   : > { %v4859_v33 = vsel %vm1132_vm4, %v8507_v16, %v8512_v58  ;;  %v4617_v15 = vmax.f32 %v4585_v55, 0.0  ;;  %v4156_v46 = vadd.f32 %v11890_v53, %v11641_v11  ;;  %v4287_v49 = vadd.f32 %v11879_v45, %v4155_v57  ;;  %v12030_v53 = vpop.f32.mrf.mxu2 }
 0x7f4   : > { %v4618_v31 = vmax.f32 %v4586_v17, 0.0  ;;  %7961 = vmatmul.msk.bf16.gmra.mxu1 %vm3160_vm6, %v11992_v22  ;;  %8004 = vmatmul.msk.bf16.gmra.mxu3 %vm3160_vm6, %v11992_v22  ;;  %v5101_v0 = vsel %vm1001_vm3, %v5099_v27, %v5100_v51  ;;  %v5103_v44 = vsel %vm1001_vm3, %v5100_v51, %v5102_v52  ;;  %v5508_v29 = vsel %vm1414_vm5, %v5506_v30, %v5507_v1  ;;  %v12023_v52 = vpop.f32.mrf.mxu1 }
 0x7f5   : > { %v12005_v35 = vpack.c.bf16 %v5103_v44, %v5101_v0  ;;  %v5510_v63 = vsel %vm1414_vm5, %v5507_v1, %v5509_v20  ;;  %v4925_v58 = vrot.slane %v4859_v33, 7  ;;  %v4419_v20 = vadd.f32 %v11882_v61, %v4287_v49 }
 0x7f6   : > { %v12010_v37 = vpack.c.bf16 %v5510_v63, %v5508_v29  ;;  %v12012_v16 = vpack.i.bf16 %v4618_v31, %v4617_v15  ;;  %v5033_v27 = vsel %vm817_vm2, %v4926_v5, 0.0  ;;  %v4288_v11 = vadd.f32 %v11896_v39, %v4156_v46  ;;  %v12033_v0 = vpop.f32.mrf.mxu0  ;;  %v13733_v63 = vld [vmem:[#allocation40_spill] sm:$0xff] }
 0x7f7   : > { %7941 = vmatmul.msk.bf16.gmra.mxu0 %vm3160_vm6, %v12005_v35  ;;  %v4501_v55 = vpop.f32.mrf.mxu3  ;;  %v5017_v30 = vsel %vm817_vm2, 0.0, %v4925_v58  ;;  %v4927_v17 = vsel %vm817_vm2, %v4925_v58, %v4926_v5  ;;  %v5107_v1 = vrot.slane %v5033_v27, 1  ;;  %v5514_v33 = vrot.slane %v5033_v27, 2 }
 0x7f8   : > { %7983 = vmatmul.msk.bf16.gmra.mxu2 %vm3160_vm6, %v12010_v37  ;;  %8580 = vrot.lane.b32.xlu1 %v12012_v16, %s13637_s12  ;;  %v4551_v45 = vadd.f32 %v4501_v55, %v4419_v20  ;;  %v4420_v51 = vadd.f32 %v11904_v36, %v4288_v11  ;;  %v5104_v57 = vrot.slane %v5017_v30, 1  ;;  %v5105_v48 = vrot.slane %v4927_v17, 1 }
 0x7f9   : > { %v5511_v15 = vrot.slane %v5017_v30, 2  ;;  %v5512_v61 = vrot.slane %v4927_v17, 2  ;;  %v12039_v5 = vpack.c.bf16 %v4927_v17, %v5017_v30  ;;  %v4157_v55 = vadd.f32 %v11908_v2, %v11646_v13 }
 0x7fa   : > { %v4587_v44 = vadd.f32 %v11703_v32, %v4551_v45  ;;  %v5106_v36 = vsel %vm1001_vm3, %v5104_v57, %v5105_v48  ;;  %v5108_v58 = vsel %vm1001_vm3, %v5105_v48, %v5107_v1  ;;  %v4158_v57 = vadd.f32 %v11925_v28, %v11649_v4 }
 0x7fb   : > { %v5513_v49 = vsel %vm1414_vm5, %v5511_v15, %v5512_v61  ;;  %v5515_v20 = vsel %vm1414_vm5, %v5512_v61, %v5514_v33  ;;  %v12053_v30 = vpack.c.bf16 %v5108_v58, %v5106_v36  ;;  %v12055_v17 = vpop.f32.mrf.mxu2  ;;  %v4289_v2 = vadd.f32 %v11913_v43, %v4157_v55 }
 0x7fc   : > { %v12045_v46 = vpop.f32.mrf.mxu1  ;;  %v4619_v27 = vmax.f32 %v4587_v44, 0.0  ;;  %v12057_v45 = vpack.c.bf16 %v5515_v20, %v5513_v49 }
 0x7fd   : > { %v4421_v48 = vadd.f32 %v11918_v8, %v4289_v2  ;;  %v13734_v2 = vld [vmem:[#allocation44_spill] sm:$0xff] }
 0x7fe   : > { %v12071_v33 = vpop.f32.mrf.mxu0 }
 0x7ff   : > { %v4503_v31 = vpop.f32.mrf.mxu3 }
 0x800   : > { %v4552_v29 = vadd.f32 %v4503_v31, %v4420_v51  ;;  %8595 = vrot.lane.b32.xlu1 %v13733_v63, %s13719_s13  ;;  %v8516_v51 = vpop.permute.xlu0 %8515  ;;  %v4290_v63 = vadd.f32 %v11930_v12, %v4158_v57 }
 0x801   : > { %v8518_v15 = vunpack.i.h.bf16 %v8516_v51  ;;  %v8517_v31 = vunpack.i.l.bf16 %v8516_v51 }
 0x802   : > { %v4588_v39 = vadd.f32 %v11703_v32, %v4552_v29  ;;  %v4422_v36 = vadd.f32 %v11936_v34, %v4290_v63 }
 0x803   : > { %v12080_v20 = vpop.f32.mrf.mxu2 }
 0x804   : > { %v4620_v11 = vmax.f32 %v4588_v39, 0.0  ;;  %7962 = vmatmul.msk.bf16.gmra.mxu1 %vm3160_vm6, %v12039_v5  ;;  %8005 = vmatmul.msk.bf16.gmra.mxu3 %vm3160_vm6, %v12039_v5  ;;  %v12074_v39 = vpop.f32.mrf.mxu1 }
 0x806   : > { %v12059_v13 = vpack.i.bf16 %v4620_v11, %v4619_v27  ;;  %v12092_v63 = vpop.f32.mrf.mxu0 }
 0x807   : > { %7942 = vmatmul.msk.bf16.gmra.mxu0 %vm3160_vm6, %v12053_v30  ;;  %v4506_v1 = vpop.f32.mrf.mxu3 }
 0x808   : > { %7984 = vmatmul.msk.bf16.gmra.mxu2 %vm3160_vm6, %v12057_v45  ;;  %8590 = vrot.lane.b32.xlu0 %v12059_v13, %s13637_s12  ;;  %v4553_v61 = vadd.f32 %v4506_v1, %v4421_v48 }
 0x80a   : > { %v8521_v43 = vpop.permute.xlu1 %8520  ;;  %v4589_v55 = vadd.f32 %v11703_v32, %v4553_v61 }
 0x80b   : > { %v8523_v44 = vunpack.i.h.bf16 %v8521_v43  ;;  %v8522_v29 = vunpack.i.l.bf16 %v8521_v43 }
 0x80d   : > { %v4862_v4 = vsel %vm1132_vm4, %v8518_v15, %v8523_v44  ;;  %v4861_v28 = vsel %vm1132_vm4, %v8517_v31, %v8522_v29  ;;  %v4159_v44 = vadd.f32 %v11944_v25, %v11654_v26  ;;  %v4621_v29 = vmax.f32 %v4589_v55, 0.0 }
 0x80e   : > { %v4929_v58 = vrot.slane %v4862_v4, 7  ;;  %v4928_v8 = vrot.slane %v4861_v28, 7  ;;  %v8526_v4 = vpop.permute.xlu2 %8525 }
 0x80f   : > { %v4508_v49 = vpop.f32.mrf.mxu3 }
 0x810   : > { %v5034_v27 = vsel %vm817_vm2, %v4929_v58, 0.0  ;;  %v5018_v11 = vsel %vm817_vm2, 0.0, %v4928_v8  ;;  %v4554_v12 = vadd.f32 %v4508_v49, %v4422_v36  ;;  %8605 = vrot.lane.b32.xlu0 %v13734_v2, %s13719_s13  ;;  %v4930_v51 = vsel %vm817_vm2, %v4928_v8, %v4929_v58 }
 0x811   : > { %v5112_v1 = vrot.slane %v5034_v27, 1  ;;  %v5519_v57 = vrot.slane %v5034_v27, 2  ;;  %v5109_v34 = vrot.slane %v5018_v11, 1  ;;  %v5516_v48 = vrot.slane %v5018_v11, 2 }
 0x812   : > { %v4590_v15 = vadd.f32 %v11703_v32, %v4554_v12  ;;  %v12088_v43 = vpack.c.bf16 %v4930_v51, %v5018_v11  ;;  %v5110_v31 = vrot.slane %v4930_v51, 1  ;;  %v5517_v61 = vrot.slane %v4930_v51, 2  ;;  %v12109_v11 = vpop.f32.mrf.mxu1 }
 0x813   : > { %v4291_v27 = vadd.f32 %v11954_v6, %v4159_v44  ;;  %v4160_v2 = vadd.f32 %v11976_v7, %v11657_v21  ;;  %v8528_v6 = vunpack.i.h.bf16 %v8526_v4 }
 0x814   : > { %v4622_v28 = vmax.f32 %v4590_v15, 0.0  ;;  %7963 = vmatmul.msk.bf16.gmra.mxu1 %vm3160_vm6, %v12088_v43  ;;  %8006 = vmatmul.msk.bf16.gmra.mxu3 %vm3160_vm6, %v12088_v43  ;;  %v5111_v36 = vsel %vm1001_vm3, %v5109_v34, %v5110_v31  ;;  %v5113_v58 = vsel %vm1001_vm3, %v5110_v31, %v5112_v1  ;;  %v5518_v8 = vsel %vm1414_vm5, %v5516_v48, %v5517_v61  ;;  %v12120_v1 = vpop.f32.mrf.mxu2  ;;  %v8536_v48 = vpop.permute.xlu1 %8535 }
 0x815   : > { %v12101_v49 = vpack.c.bf16 %v5113_v58, %v5111_v36  ;;  %v5520_v26 = vsel %vm1414_vm5, %v5517_v61, %v5519_v57  ;;  %v4423_v51 = vadd.f32 %v11968_v41, %v4291_v27  ;;  %v8527_v34 = vunpack.i.l.bf16 %v8526_v4  ;;  %v12126_v36 = vpop.f32.mrf.mxu0 }
 0x816   : > { %v12104_v25 = vpack.c.bf16 %v5520_v26, %v5518_v8  ;;  %v12106_v55 = vpack.i.bf16 %v4622_v28, %v4621_v29  ;;  %v4292_v44 = vadd.f32 %v11981_v18, %v4160_v2  ;;  %v8541_v21 = vpop.permute.xlu2 %8540  ;;  %v8538_v41 = vunpack.i.h.bf16 %v8536_v48 }
 0x817   : > { %7943 = vmatmul.msk.bf16.gmra.mxu0 %vm3160_vm6, %v12101_v49  ;;  %v4511_v12 = vpop.f32.mrf.mxu3  ;;  %v8537_v4 = vunpack.i.l.bf16 %v8536_v48  ;;  %v8543_v27 = vunpack.i.h.bf16 %v8541_v21 }
 0x818   : > { %7985 = vmatmul.msk.bf16.gmra.mxu2 %vm3160_vm6, %v12104_v25  ;;  %8600 = vrot.lane.b32.xlu2 %v12106_v55, %s13637_s12  ;;  %v4555_v15 = vadd.f32 %v4511_v12, %v4423_v51  ;;  %v4424_v28 = vadd.f32 %v11989_v10, %v4292_v44  ;;  %v8542_v12 = vunpack.i.l.bf16 %v8541_v21  ;;  %v13735_v10 = vld [vmem:[#allocation47_spill] sm:$0xff] }
 0x81a   : > { %v8531_v57 = vpop.permute.xlu0 %8530  ;;  %v12128_v26 = vpop.f32.mrf.mxu1  ;;  %v4591_v51 = vadd.f32 %v11703_v32, %v4555_v15 }
 0x81b   : > { %v8533_v31 = vunpack.i.h.bf16 %v8531_v57  ;;  %v8532_v61 = vunpack.i.l.bf16 %v8531_v57 }
 0x81c   : > { %v12143_v59 = vpop.f32.mrf.mxu2 }
 0x81d   : > { %v4863_v7 = vsel %vm1132_vm4, %v8527_v34, %v8532_v61  ;;  %v4864_v29 = vsel %vm1132_vm4, %v8528_v6, %v8533_v31 }
 0x81e   : > { %v4931_v58 = vrot.slane %v4863_v7, 7  ;;  %v4932_v8 = vrot.slane %v4864_v29, 7 }
 0x81f   : > { %v4513_v18 = vpop.f32.mrf.mxu3 }
 0x820   : > { %v5019_v2 = vsel %vm817_vm2, 0.0, %v4931_v58  ;;  %v5035_v57 = vsel %vm817_vm2, %v4932_v8, 0.0  ;;  %v4556_v6 = vadd.f32 %v4513_v18, %v4424_v28  ;;  %8615 = vrot.lane.b32.xlu2 %v13735_v10, %s13719_s13  ;;  %v4933_v34 = vsel %vm817_vm2, %v4931_v58, %v4932_v8 }
 0x821   : > { %v5114_v31 = vrot.slane %v5019_v2, 1  ;;  %v5117_v61 = vrot.slane %v5035_v57, 1  ;;  %v5521_v44 = vrot.slane %v5019_v2, 2  ;;  %v5524_v7 = vrot.slane %v5035_v57, 2 }
 0x822   : > { %v4592_v48 = vadd.f32 %v11703_v32, %v4556_v6  ;;  %v12137_v21 = vpack.c.bf16 %v4933_v34, %v5019_v2  ;;  %v5115_v15 = vrot.slane %v4933_v34, 1  ;;  %v5522_v29 = vrot.slane %v4933_v34, 2 }
 0x823   : > { %v4866_v28 = vsel %vm1132_vm4, %v8538_v41, %v8543_v27  ;;  %v4865_v18 = vsel %vm1132_vm4, %v8537_v4, %v8542_v12  ;;  %v4623_v10 = vmax.f32 %v4591_v51, 0.0  ;;  %v4162_v6 = vadd.f32 %v12033_v0, %v11665_v50 }
 0x824   : > { %v4624_v58 = vmax.f32 %v4592_v48, 0.0  ;;  %7964 = vmatmul.msk.bf16.gmra.mxu1 %vm3160_vm6, %v12137_v21  ;;  %8007 = vmatmul.msk.bf16.gmra.mxu3 %vm3160_vm6, %v12137_v21  ;;  %v5116_v8 = vsel %vm1001_vm3, %v5114_v31, %v5115_v15  ;;  %v5118_v2 = vsel %vm1001_vm3, %v5115_v15, %v5117_v61  ;;  %v5523_v56 = vsel %vm1414_vm5, %v5521_v44, %v5522_v29  ;;  %v12168_v31 = vpop.f32.mrf.mxu0  ;;  %v12170_v61 = vpop.f32.mrf.mxu1 }
 0x825   : > { %v12152_v23 = vpack.c.bf16 %v5118_v2, %v5116_v8  ;;  %v5525_v41 = vsel %vm1414_vm5, %v5522_v29, %v5524_v7  ;;  %v4935_v12 = vrot.slane %v4866_v28, 7  ;;  %v4934_v51 = vrot.slane %v4865_v18, 7  ;;  %v12178_v15 = vpop.f32.mrf.mxu2 }
 0x826   : > { %v12155_v4 = vpack.c.bf16 %v5525_v41, %v5523_v56  ;;  %v12157_v27 = vpack.i.bf16 %v4624_v58, %v4623_v10  ;;  %v4293_v34 = vadd.f32 %v12023_v52, %v4161_v38  ;;  %v4294_v38 = vadd.f32 %v12045_v46, %v4162_v6  ;;  %v13736_v41 = vld [vmem:[#allocation51_spill] sm:$0xff] }
 0x827   : > { %7944 = vmatmul.msk.bf16.gmra.mxu0 %vm3160_vm6, %v12152_v23  ;;  %v4516_v57 = vpop.f32.mrf.mxu3  ;;  %v5036_v7 = vsel %vm817_vm2, %v4935_v12, 0.0  ;;  %v5020_v48 = vsel %vm817_vm2, 0.0, %v4934_v51  ;;  %v4936_v50 = vsel %vm817_vm2, %v4934_v51, %v4935_v12 }
 0x828   : > { %7986 = vmatmul.msk.bf16.gmra.mxu2 %vm3160_vm6, %v12155_v4  ;;  %8610 = vrot.lane.b32.xlu1 %v12157_v27, %s13637_s12  ;;  %v4425_v44 = vadd.f32 %v12030_v53, %v4293_v34  ;;  %v4426_v0 = vadd.f32 %v12055_v17, %v4294_v38  ;;  %v5122_v29 = vrot.slane %v5036_v7, 1  ;;  %v5119_v28 = vrot.slane %v5020_v48, 1 }
 0x829   : > { %v5120_v18 = vrot.slane %v4936_v50, 1  ;;  %v5529_v10 = vrot.slane %v5036_v7, 2  ;;  %v5526_v58 = vrot.slane %v5020_v48, 2  ;;  %v5527_v53 = vrot.slane %v4936_v50, 2 }
 0x82a   : > { %v4557_v52 = vadd.f32 %v4516_v57, %v4425_v44  ;;  %v12183_v12 = vpack.c.bf16 %v4936_v50, %v5020_v48  ;;  %v4163_v44 = vadd.f32 %v12071_v33, %v11670_v9  ;;  %v8546_v33 = vpop.permute.xlu0 %8545 }
 0x82b   : > { %v5121_v57 = vsel %vm1001_vm3, %v5119_v28, %v5120_v18  ;;  %v5123_v6 = vsel %vm1001_vm3, %v5120_v18, %v5122_v29  ;;  %v5528_v7 = vsel %vm1414_vm5, %v5526_v58, %v5527_v53  ;;  %v5530_v38 = vsel %vm1414_vm5, %v5527_v53, %v5529_v10 }
 0x82c   : > { %v4593_v2 = vadd.f32 %v11703_v32, %v4557_v52  ;;  %v5279_v46 = vpop.f32.mrf.mxu0  ;;  %v5421_v51 = vpop.f32.mrf.mxu1  ;;  %v12198_v48 = vpack.c.bf16 %v5530_v38, %v5528_v7  ;;  %v4295_v9 = vadd.f32 %v12074_v39, %v4163_v44  ;;  %v4164_v10 = vadd.f32 %v12092_v63, %v11673_v47  ;;  %v13737_v38 = vld [vmem:[#allocation55_spill] sm:$0xff] }
 0x82d   : > { %v5422_v34 = vadd.f32 %v5421_v51, %v5279_v46  ;;  %v5686_v29 = vpop.f32.mrf.mxu2  ;;  %v8547_v53 = vunpack.i.l.bf16 %v8546_v33 }
 0x82e   : > { %v4625_v52 = vmax.f32 %v4593_v2, 0.0  ;;  %v4427_v58 = vadd.f32 %v12080_v20, %v4295_v9  ;;  %v4296_v46 = vadd.f32 %v12109_v11, %v4164_v10  ;;  %v12221_v20 = vld [vmem:[%s13273_s6] ss:$0 sm:$0xff] }
 0x82f   : > { %v4518_v8 = vpop.f32.mrf.mxu3  ;;  %v12205_v18 = vadd.f32 %v5686_v29, %v5422_v34 }
 0x830   : > { %v4558_v56 = vadd.f32 %v4518_v8, %v4426_v0  ;;  %8625 = vrot.lane.b32.xlu1 %v13736_v41, %s13719_s13  ;;  %v8548_v8 = vunpack.i.h.bf16 %v8546_v33  ;;  %v4428_v63 = vadd.f32 %v12120_v1, %v4296_v46 }
 0x832   : > { %v4594_v17 = vadd.f32 %v11703_v32, %v4558_v56  ;;  %v12196_v32 = vpack.c.bf16 %v5123_v6, %v5121_v57 }
 0x834   : > { %v4626_v0 = vmax.f32 %v4594_v17, 0.0  ;;  %7965 = vmatmul.msk.bf16.gmra.mxu1 %vm3160_vm6, %v12183_v12  ;;  %8008 = vmatmul.msk.bf16.gmra.mxu3 %vm3160_vm6, %v12183_v12 }
 0x836   : > { %v12200_v50 = vpack.i.bf16 %v4626_v0, %v4625_v52 }
 0x837   : > { %7945 = vmatmul.msk.bf16.gmra.mxu0 %vm3160_vm6, %v12196_v32  ;;  %v4521_v28 = vpop.f32.mrf.mxu3 }
 0x838   : > { %7987 = vmatmul.msk.bf16.gmra.mxu2 %vm3160_vm6, %v12198_v48  ;;  %8620 = vrot.lane.b32.xlu0 %v12200_v50, %s13637_s12  ;;  %v4559_v2 = vadd.f32 %v4521_v28, %v4427_v58 }
 0x83a   : > { %v8551_v39 = vpop.permute.xlu1 %8550  ;;  %v4595_v6 = vadd.f32 %v12221_v20, %v4559_v2 }
 0x83b   : > { %v8553_v56 = vunpack.i.h.bf16 %v8551_v39  ;;  %v8552_v41 = vunpack.i.l.bf16 %v8551_v39 }
 0x83c   : > { %v4627_v39 = vmax.f32 %v4595_v6, 0.0  ;;  %v13738_v6 = vld [vmem:[#allocation67_spill] sm:$0xff] }
 0x83d   : > { %v4868_v51 = vsel %vm1132_vm4, %v8548_v8, %v8553_v56  ;;  %v4867_v47 = vsel %vm1132_vm4, %v8547_v53, %v8552_v41  ;;  %v4165_v8 = vadd.f32 %v12126_v36, %v11682_v3  ;;  %v8556_v53 = vpop.permute.xlu2 %8555 }
 0x83e   : > { %v4938_v17 = vrot.slane %v4868_v51, 7  ;;  %v4937_v57 = vrot.slane %v4867_v47, 7 }
 0x83f   : > { %v4523_v34 = vpop.f32.mrf.mxu3 }
 0x840   : > { %v5037_v44 = vsel %vm817_vm2, %v4938_v17, 0.0  ;;  %v5021_v11 = vsel %vm817_vm2, 0.0, %v4937_v57  ;;  %v4560_v7 = vadd.f32 %v4523_v34, %v4428_v63  ;;  %8635 = vrot.lane.b32.xlu0 %v13737_v38, %s13719_s13  ;;  %v4939_v1 = vsel %vm817_vm2, %v4937_v57, %v4938_v17  ;;  %s8960_s13 = smov 12  }
 0x841   : > { %v5127_v52 = vrot.slane %v5037_v44, 1  ;;  %v5534_v0 = vrot.slane %v5037_v44, 2  ;;  %v5124_v29 = vrot.slane %v5021_v11, 1  ;;  %v5531_v9 = vrot.slane %v5021_v11, 2 }
 0x842   : > { %v4596_v33 = vadd.f32 %v12221_v20, %v4560_v7  ;;  %v12230_v28 = vpack.c.bf16 %v4939_v1, %v5021_v11  ;;  %v5125_v10 = vrot.slane %v4939_v1, 1  ;;  %v5532_v58 = vrot.slane %v4939_v1, 2  ;;  %v8566_v7 = vpop.permute.xlu1 %8565 }
 0x843   : > { %v4297_v63 = vadd.f32 %v12128_v26, %v4165_v8  ;;  %v4166_v57 = vadd.f32 %v12168_v31, %v11687_v40  ;;  %v8558_v26 = vunpack.i.h.bf16 %v8556_v53  ;;  %v8557_v11 = vunpack.i.l.bf16 %v8556_v53 }
 0x844   : > { %v4628_v2 = vmax.f32 %v4596_v33, 0.0  ;;  %7966 = vmatmul.msk.bf16.gmra.mxu1 %vm3160_vm6, %v12230_v28  ;;  %8009 = vmatmul.msk.bf16.gmra.mxu3 %vm3160_vm6, %v12230_v28  ;;  %v5126_v56 = vsel %vm1001_vm3, %v5124_v29, %v5125_v10  ;;  %v5128_v41 = vsel %vm1001_vm3, %v5125_v10, %v5127_v52  ;;  %v5533_v46 = vsel %vm1414_vm5, %v5531_v9, %v5532_v58 }
 0x845   : > { %v12241_v51 = vpack.c.bf16 %v5128_v41, %v5126_v56  ;;  %v5535_v47 = vsel %vm1414_vm5, %v5532_v58, %v5534_v0  ;;  %v4429_v34 = vadd.f32 %v12143_v59, %v4297_v63  ;;  %v4298_v40 = vadd.f32 %v12170_v61, %v4166_v57  ;;  %v8571_v31 = vpop.permute.xlu2 %8570 }
 0x846   : > { %v12244_v3 = vpack.c.bf16 %v5535_v47, %v5533_v46  ;;  %v12246_v36 = vpack.i.bf16 %v4628_v2, %v4627_v39  ;;  %v8568_v59 = vunpack.i.h.bf16 %v8566_v7  ;;  %v8567_v58 = vunpack.i.l.bf16 %v8566_v7  ;;  %v13739_v46 = vld [vmem:[#allocation75_spill] sm:$0xff] }
 0x847   : > { %7946 = vmatmul.msk.bf16.gmra.mxu0 %vm3160_vm6, %v12241_v51  ;;  %v4526_v17 = vpop.f32.mrf.mxu3  ;;  %v4430_v9 = vadd.f32 %v12178_v15, %v4298_v40  ;;  %v8573_v8 = vunpack.i.h.bf16 %v8571_v31  ;;  %v8572_v39 = vunpack.i.l.bf16 %v8571_v31 }
 0x848   : > { %7988 = vmatmul.msk.bf16.gmra.mxu2 %vm3160_vm6, %v12244_v3  ;;  %8650 = vrot.lane.b32.xlu0 %v13738_v6, %s8960_s13  ;;  %v4561_v38 = vadd.f32 %v4526_v17, %v4429_v34  ;;  %v13740_v6 = vld [vmem:[#allocation71_spill] sm:$0xff] }
 0x849   : > { %8630 = vrot.lane.b32.xlu2 %v12246_v36, %s13637_s12  ;;  %v4872_v7 = vsel %vm1132_vm4, %v8568_v59, %v8573_v8  ;;  %v13741_v8 = vld [vmem:[#allocation82_spill] sm:$0xff] }
 0x84a   : > { %v8561_v44 = vpop.permute.xlu0 %8560  ;;  %v4597_v53 = vadd.f32 %v12221_v20, %v4561_v38  ;;  %v4871_v38 = vsel %vm1132_vm4, %v8567_v58, %v8572_v39  ;;  %v12297_v58 = vpop.f32.mrf.mxu1  ;;  %v13742_v39 = vld [vmem:[#allocation54_spill] sm:$0xff] }
 0x84b   : > { %v8563_v1 = vunpack.i.h.bf16 %v8561_v44  ;;  %v8562_v52 = vunpack.i.l.bf16 %v8561_v44 }
 0x84d   : > { %v4869_v0 = vsel %vm1132_vm4, %v8557_v11, %v8562_v52  ;;  %v4870_v29 = vsel %vm1132_vm4, %v8558_v26, %v8563_v1  ;;  %v4629_v1 = vmax.f32 %v4597_v53, 0.0 }
 0x84e   : > { %v4940_v33 = vrot.slane %v4869_v0, 7  ;;  %v4941_v10 = vrot.slane %v4870_v29, 7 }
 0x84f   : > { %v4528_v2 = vpop.f32.mrf.mxu3 }
 0x850   : > { %v5022_v56 = vsel %vm817_vm2, 0.0, %v4940_v33  ;;  %v5038_v61 = vsel %vm817_vm2, %v4941_v10, 0.0  ;;  %v4562_v41 = vadd.f32 %v4528_v2, %v4430_v9  ;;  %8665 = vrot.lane.b32.xlu0 %v13739_v46, %s8960_s13  ;;  %v4942_v47 = vsel %vm817_vm2, %v4940_v33, %v4941_v10 }
 0x851   : > { %v5129_v15 = vrot.slane %v5022_v56, 1  ;;  %v5132_v63 = vrot.slane %v5038_v61, 1  ;;  %v5536_v17 = vrot.slane %v5022_v56, 2  ;;  %v5539_v57 = vrot.slane %v5038_v61, 2  ;;  %8645 = vrot.lane.b32.xlu2 %v13740_v6, %s8961_s15  ;;  %v12306_v61 = vpop.f32.mrf.mxu0  ;;  %v13743_v6 = vld [vmem:[#allocation73_spill] sm:$0xff] }
 0x852   : > { %v4598_v34 = vadd.f32 %v12221_v20, %v4562_v41  ;;  %v12273_v26 = vpack.c.bf16 %v4942_v47, %v5022_v56  ;;  %v5130_v44 = vrot.slane %v4942_v47, 1  ;;  %v5537_v11 = vrot.slane %v4942_v47, 2 }
 0x853   : > { %v4944_v33 = vrot.slane %v4872_v7, 7  ;;  %v4943_v10 = vrot.slane %v4871_v38, 7  ;;  %v12316_v38 = vpop.f32.mrf.mxu2 }
 0x854   : > { %v4630_v52 = vmax.f32 %v4598_v34, 0.0  ;;  %7967 = vmatmul.msk.bf16.gmra.mxu1 %vm3160_vm6, %v12273_v26  ;;  %8010 = vmatmul.msk.bf16.gmra.mxu3 %vm3160_vm6, %v12273_v26  ;;  %v5131_v40 = vsel %vm1001_vm3, %v5129_v15, %v5130_v44  ;;  %v5133_v20 = vsel %vm1001_vm3, %v5130_v44, %v5132_v63  ;;  %v5538_v31 = vsel %vm1414_vm5, %v5536_v17, %v5537_v11  ;;  %v13744_v34 = vld [vmem:[#allocation72_spill] sm:$0xff] }
 0x855   : > { %v12284_v0 = vpack.c.bf16 %v5133_v20, %v5131_v40  ;;  %v5540_v29 = vsel %vm1414_vm5, %v5537_v11, %v5539_v57  ;;  %v5039_v53 = vsel %vm817_vm2, %v4944_v33, 0.0  ;;  %v5023_v2 = vsel %vm817_vm2, 0.0, %v4943_v10  ;;  %13745 = vst [vmem:[#allocation84_spill] sm:$0xff] %v12316_v38 }
 0x856   : > { %v12287_v9 = vpack.c.bf16 %v5540_v29, %v5538_v31  ;;  %v12289_v59 = vpack.i.bf16 %v4630_v52, %v4629_v1  ;;  %v4945_v56 = vsel %vm817_vm2, %v4943_v10, %v4944_v33  ;;  %v5137_v41 = vrot.slane %v5039_v53, 1  ;;  %v8576_v10 = vpop.permute.xlu0 %8575 }
 0x857   : > { %7947 = vmatmul.msk.bf16.gmra.mxu0 %vm3160_vm6, %v12284_v0  ;;  %v5134_v46 = vrot.slane %v5023_v2, 1  ;;  %v5135_v47 = vrot.slane %v4945_v56, 1  ;;  %v5544_v15 = vrot.slane %v5039_v53, 2  ;;  %v5541_v63 = vrot.slane %v5023_v2, 2  ;;  %v13746_v53 = vld [vmem:[#allocation74_spill] sm:$0xff] }
 0x858   : > { %7989 = vmatmul.msk.bf16.gmra.mxu2 %vm3160_vm6, %v12287_v9  ;;  %8640 = vrot.lane.b32.xlu1 %v12289_v59, %s13637_s12  ;;  %v5542_v17 = vrot.slane %v4945_v56, 2  ;;  %v12312_v44 = vpack.c.bf16 %v4945_v56, %v5023_v2  ;;  %v8578_v56 = vunpack.i.h.bf16 %v8576_v10  ;;  %s13484_s12 = smov 16  }
 0x859   : > { %8680 = vrot.lane.b32.xlu0 %v13741_v8, %s8960_s13  ;;  %8660 = vrot.lane.b32.xlu2 %v13742_v39, %s8961_s15  ;;  %v5136_v11 = vsel %vm1001_vm3, %v5134_v46, %v5135_v47  ;;  %v5138_v7 = vsel %vm1001_vm3, %v5135_v47, %v5137_v41  ;;  %v8577_v41 = vunpack.i.l.bf16 %v8576_v10 }
 0x85a   : > { %v5543_v1 = vsel %vm1414_vm5, %v5541_v63, %v5542_v17  ;;  %v5545_v52 = vsel %vm1414_vm5, %v5542_v17, %v5544_v15  ;;  %v12324_v31 = vpack.c.bf16 %v5138_v7, %v5136_v11 }
 0x85b   : > { %v12326_v29 = vpack.c.bf16 %v5545_v52, %v5543_v1 }
 0x861   : > { %v5426_v57 = vpop.f32.mrf.mxu1  ;;  %8695 = vrot.lane.b32.xlu0 %v13743_v6, %s8960_s13  ;;  %8675 = vrot.lane.b32.xlu2 %v13744_v34, %s8961_s15 }
 0x864   : > { %v5284_v40 = vpop.f32.mrf.mxu0  ;;  %7968 = vmatmul.msk.bf16.gmra.mxu1 %vm3160_vm6, %v12312_v44  ;;  %8011 = vmatmul.msk.bf16.gmra.mxu3 %vm3160_vm6, %v12312_v44 }
 0x865   : > { %v5427_v20 = vadd.f32 %v5426_v57, %v5284_v40 }
 0x867   : > { %7948 = vmatmul.msk.bf16.gmra.mxu0 %vm3160_vm6, %v12324_v31  ;;  %v5822_v33 = vpop.f32.mrf.mxu3 }
 0x868   : > { %7990 = vmatmul.msk.bf16.gmra.mxu2 %vm3160_vm6, %v12326_v29  ;;  %v12333_v8 = vadd.f32 %v5822_v33, %v12205_v18 }
 0x869   : > { %v5428_v39 = vpop.f32.mrf.mxu1  ;;  %8710 = vrot.lane.b32.xlu0 %v11808_v24, %s8960_s13  ;;  %8690 = vrot.lane.b32.xlu2 %v13746_v53, %s8961_s15  ;;  %v13748_v53 = vld [vmem:[#allocation58_spill] sm:$0xff] }
 0x86a   : > { %v8581_v2 = vpop.permute.xlu1 %8580 }
 0x86b   : > { %v5691_v46 = vpop.f32.mrf.mxu2  ;;  %v8583_v47 = vunpack.i.h.bf16 %v8581_v2  ;;  %v8582_v15 = vunpack.i.l.bf16 %v8581_v2 }
 0x86c   : > { %v5768_v63 = vadd.f32 %v5691_v46, %v5427_v20  ;;  %v5286_v17 = vpop.f32.mrf.mxu0 }
 0x86d   : > { %v4874_v57 = vsel %vm1132_vm4, %v8578_v56, %v8583_v47  ;;  %v4873_v18 = vsel %vm1132_vm4, %v8577_v41, %v8582_v15  ;;  %v5429_v6 = vadd.f32 %v5428_v39, %v5286_v17  ;;  %v8586_v47 = vpop.permute.xlu2 %8585 }
 0x86e   : > { %v4947_v34 = vrot.slane %v4874_v57, 7  ;;  %v4946_v11 = vrot.slane %v4873_v18, 7 }
 0x86f   : > { %v12341_v7 = vpop.f32.mrf.mxu3 }
 0x870   : > { %13747 = vst [vmem:[#allocation77_spill] sm:$0xff] %v12341_v7  ;;  %v5040_v24 = vsel %vm817_vm2, %v4947_v34, 0.0  ;;  %v5024_v1 = vsel %vm817_vm2, 0.0, %v4946_v11  ;;  %v4948_v52 = vsel %vm817_vm2, %v4946_v11, %v4947_v34 }
 0x871   : > { %v5142_v40 = vrot.slane %v5040_v24, 1  ;;  %v5549_v33 = vrot.slane %v5040_v24, 2  ;;  %v5139_v10 = vrot.slane %v5024_v1, 1  ;;  %v5431_v20 = vpop.f32.mrf.mxu1  ;;  %8725 = vrot.lane.b32.xlu0 %v11867_v54, %s8960_s13  ;;  %8705 = vrot.lane.b32.xlu2 %v13748_v53, %s8961_s15  ;;  %v5546_v39 = vrot.slane %v5024_v1, 2 }
 0x872   : > { %v12350_v2 = vpack.c.bf16 %v4948_v52, %v5024_v1  ;;  %v5140_v56 = vrot.slane %v4948_v52, 1  ;;  %v5547_v41 = vrot.slane %v4948_v52, 2  ;;  %v8587_v53 = vunpack.i.l.bf16 %v8586_v47 }
 0x873   : > { %v5693_v46 = vpop.f32.mrf.mxu2 }
 0x874   : > { %v5769_v15 = vadd.f32 %v5693_v46, %v5429_v6  ;;  %v5289_v17 = vpop.f32.mrf.mxu0  ;;  %7969 = vmatmul.msk.bf16.gmra.mxu1 %vm3160_vm6, %v12350_v2  ;;  %8012 = vmatmul.msk.bf16.gmra.mxu3 %vm3160_vm6, %v12350_v2  ;;  %v5141_v54 = vsel %vm1001_vm3, %v5139_v10, %v5140_v56  ;;  %v5143_v57 = vsel %vm1001_vm3, %v5140_v56, %v5142_v40  ;;  %v13752_v40 = vld [vmem:[#allocation76_spill] sm:$0xff] }
 0x875   : > { %v5432_v18 = vadd.f32 %v5431_v20, %v5289_v17  ;;  %v12358_v34 = vpack.c.bf16 %v5143_v57, %v5141_v54  ;;  %v5548_v11 = vsel %vm1414_vm5, %v5546_v39, %v5547_v41  ;;  %v5550_v24 = vsel %vm1414_vm5, %v5547_v41, %v5549_v33  ;;  %v8596_v39 = vpop.permute.xlu1 %8595  ;;  %v8601_v17 = vpop.permute.xlu2 %8600 }
 0x876   : > { %v12364_v6 = vpack.c.bf16 %v5550_v24, %v5548_v11  ;;  %v8588_v33 = vunpack.i.h.bf16 %v8586_v47 }
 0x877   : > { %13749 = vst [vmem:[#allocation66_spill] sm:$0xff] %v12358_v34  ;;  %7949 = vmatmul.msk.bf16.gmra.mxu0 %vm3160_vm6, %v12358_v34  ;;  %v5827_v1 = vpop.f32.mrf.mxu3  ;;  %v8597_v34 = vunpack.i.l.bf16 %v8596_v39 }
 0x878   : > { %13750 = vst [vmem:[#allocation80_spill] sm:$0xff] %v12364_v6  ;;  %v12366_v52 = vadd.f32 %v5827_v1, %v5768_v63  ;;  %7991 = vmatmul.msk.bf16.gmra.mxu2 %vm3160_vm6, %v12364_v6  ;;  %v8602_v6 = vunpack.i.l.bf16 %v8601_v17 }
 0x879   : > { %v5433_v10 = vpop.f32.mrf.mxu1  ;;  %8740 = vrot.lane.b32.xlu0 %v11894_v62, %s8960_s13  ;;  %8720 = vrot.lane.b32.xlu2 %v13752_v40, %s8961_s15  ;;  %v8603_v40 = vunpack.i.h.bf16 %v8601_v17 }
 0x87a   : > { %13751 = vst [vmem:[#allocation87_spill] sm:$0xff] %v12366_v52  ;;  %v8591_v20 = vpop.permute.xlu0 %8590  ;;  %v8598_v52 = vunpack.i.h.bf16 %v8596_v39  ;;  %v13753_v39 = vld [vmem:[#allocation57_spill] sm:$0xff] }
 0x87b   : > { %v5696_v56 = vpop.f32.mrf.mxu2  ;;  %v8593_v41 = vunpack.i.h.bf16 %v8591_v20  ;;  %v8592_v46 = vunpack.i.l.bf16 %v8591_v20 }
 0x87c   : > { %v5770_v63 = vadd.f32 %v5696_v56, %v5432_v18  ;;  %v5291_v54 = vpop.f32.mrf.mxu0 }
 0x87d   : > { %v4875_v57 = vsel %vm1132_vm4, %v8587_v53, %v8592_v46  ;;  %v4876_v11 = vsel %vm1132_vm4, %v8588_v33, %v8593_v41  ;;  %v5434_v24 = vadd.f32 %v5433_v10, %v5291_v54 }
 0x87e   : > { %v4949_v1 = vrot.slane %v4875_v57, 7  ;;  %v4950_v62 = vrot.slane %v4876_v11, 7 }
 0x87f   : > { %v5829_v7 = vpop.f32.mrf.mxu3 }
 0x880   : > { %v5025_v47 = vsel %vm817_vm2, 0.0, %v4949_v1  ;;  %v5041_v38 = vsel %vm817_vm2, %v4950_v62, 0.0  ;;  %v12378_v20 = vadd.f32 %v5829_v7, %v5769_v15  ;;  %v4951_v18 = vsel %vm817_vm2, %v4949_v1, %v4950_v62 }
 0x881   : > { %v5144_v56 = vrot.slane %v5025_v47, 1  ;;  %v5147_v53 = vrot.slane %v5041_v38, 1  ;;  %v5551_v46 = vrot.slane %v5025_v47, 2  ;;  %v5554_v33 = vrot.slane %v5041_v38, 2  ;;  %8755 = vrot.lane.b32.xlu0 %v11920_v14, %s8960_s13  ;;  %v5436_v10 = vpop.f32.mrf.mxu1  ;;  %8735 = vrot.lane.b32.xlu2 %v13753_v39, %s8961_s15 }
 0x882   : > { %v12385_v41 = vpack.c.bf16 %v4951_v18, %v5025_v47  ;;  %v5145_v17 = vrot.slane %v4951_v18, 1  ;;  %v5552_v54 = vrot.slane %v4951_v18, 2  ;;  %v4878_v7 = vsel %vm1132_vm4, %v8598_v52, %v8603_v40 }
 0x883   : > { %v4877_v15 = vsel %vm1132_vm4, %v8597_v34, %v8602_v6  ;;  %v5698_v57 = vpop.f32.mrf.mxu2 }
 0x884   : > { %v5771_v11 = vadd.f32 %v5698_v57, %v5434_v24  ;;  %v5294_v1 = vpop.f32.mrf.mxu0  ;;  %7970 = vmatmul.msk.bf16.gmra.mxu1 %vm3160_vm6, %v12385_v41  ;;  %8013 = vmatmul.msk.bf16.gmra.mxu3 %vm3160_vm6, %v12385_v41  ;;  %v5146_v14 = vsel %vm1001_vm3, %v5144_v56, %v5145_v17  ;;  %v5148_v38 = vsel %vm1001_vm3, %v5145_v17, %v5147_v53  ;;  %v4953_v24 = vrot.slane %v4878_v7, 7  ;;  %v13756_v53 = vld [vmem:[#allocation78_spill] sm:$0xff] }
 0x885   : > { %v5437_v62 = vadd.f32 %v5436_v10, %v5294_v1  ;;  %v12395_v47 = vpack.c.bf16 %v5148_v38, %v5146_v14  ;;  %v5553_v52 = vsel %vm1414_vm5, %v5551_v46, %v5552_v54  ;;  %v5555_v34 = vsel %vm1414_vm5, %v5552_v54, %v5554_v33 }
 0x886   : > { %v12399_v6 = vpack.c.bf16 %v5555_v34, %v5553_v52  ;;  %v4952_v40 = vrot.slane %v4877_v15, 7  ;;  %v5042_v46 = vsel %vm817_vm2, %v4953_v24, 0.0 }
 0x887   : > { %13754 = vst [vmem:[#allocation86_spill] sm:$0xff] %v12395_v47  ;;  %7950 = vmatmul.msk.bf16.gmra.mxu0 %vm3160_vm6, %v12395_v47  ;;  %v5832_v18 = vpop.f32.mrf.mxu3  ;;  %v5152_v15 = vrot.slane %v5042_v46, 1  ;;  %v5559_v38 = vrot.slane %v5042_v46, 2 }
 0x888   : > { %v12403_v39 = vadd.f32 %v5832_v18, %v5770_v63  ;;  %7992 = vmatmul.msk.bf16.gmra.mxu2 %vm3160_vm6, %v12399_v6  ;;  %v5026_v33 = vsel %vm817_vm2, 0.0, %v4952_v40  ;;  %v4954_v17 = vsel %vm817_vm2, %v4952_v40, %v4953_v24 }
 0x889   : > { %8770 = vrot.lane.b32.xlu0 %v11961_v60, %s8960_s13  ;;  %v5438_v56 = vpop.f32.mrf.mxu1  ;;  %8750 = vrot.lane.b32.xlu2 %v13756_v53, %s8961_s15  ;;  %v5149_v57 = vrot.slane %v5026_v33, 1  ;;  %v5150_v1 = vrot.slane %v4954_v17, 1  ;;  %v5556_v60 = vrot.slane %v5026_v33, 2  ;;  %v5557_v34 = vrot.slane %v4954_v17, 2  ;;  %v13758_v53 = vld [vmem:[#allocation61_spill] sm:$0xff] }
 0x88a   : > { %13755 = vst [vmem:[#allocation88_spill] sm:$0xff] %v12403_v39  ;;  %v12420_v24 = vpack.c.bf16 %v4954_v17, %v5026_v33 }
 0x88b   : > { %v5701_v10 = vpop.f32.mrf.mxu2  ;;  %v5153_v40 = vsel %vm1001_vm3, %v5150_v1, %v5152_v15  ;;  %v8606_v15 = vpop.permute.xlu0 %8605 }
 0x88c   : > { %v5772_v54 = vadd.f32 %v5701_v10, %v5437_v62  ;;  %v5296_v63 = vpop.f32.mrf.mxu0  ;;  %13759 = vst [vmem:[#allocation56_spill] sm:$0xff] %v12420_v24  ;;  %v5151_v62 = vsel %vm1001_vm3, %v5149_v57, %v5150_v1 }
 0x88d   : > { %v5439_v7 = vadd.f32 %v5438_v56, %v5296_v63  ;;  %v12430_v33 = vpack.c.bf16 %v5153_v40, %v5151_v62 }
 0x88f   : > { %v5834_v14 = vpop.f32.mrf.mxu3  ;;  %13760 = vst [vmem:[#allocation69_spill] sm:$0xff] %v12430_v33 }
 0x890   : > { %v12414_v52 = vadd.f32 %v5834_v14, %v5771_v11  ;;  %v5560_v11 = vsel %vm1414_vm5, %v5557_v34, %v5559_v38  ;;  %v13763_v14 = vld [vmem:[#allocation79_spill] sm:$0xff] }
 0x891   : > { %8785 = vrot.lane.b32.xlu0 %v12012_v16, %s8960_s13  ;;  %v5441_v18 = vpop.f32.mrf.mxu1  ;;  %8765 = vrot.lane.b32.xlu2 %v13758_v53, %s8961_s15  ;;  %v5558_v16 = vsel %vm1414_vm5, %v5556_v60, %v5557_v34  ;;  %v8608_v60 = vunpack.i.h.bf16 %v8606_v15  ;;  %v8607_v34 = vunpack.i.l.bf16 %v8606_v15 }
 0x892   : > { %13757 = vst [vmem:[#allocation89_spill] sm:$0xff] %v12414_v52  ;;  %v12434_v17 = vpack.c.bf16 %v5560_v11, %v5558_v16 }
 0x893   : > { %v5703_v56 = vpop.f32.mrf.mxu2 }
 0x894   : > { %v5773_v10 = vadd.f32 %v5703_v56, %v5439_v7  ;;  %v5299_v46 = vpop.f32.mrf.mxu0  ;;  %7971 = vmatmul.msk.bf16.gmra.mxu1 %vm3160_vm6, %v12420_v24  ;;  %8014 = vmatmul.msk.bf16.gmra.mxu3 %vm3160_vm6, %v12420_v24  ;;  %13761 = vst [vmem:[#allocation60_spill] sm:$0xff] %v12434_v17 }
 0x895   : > { %v5442_v63 = vadd.f32 %v5441_v18, %v5299_v46 }
 0x897   : > { %7951 = vmatmul.msk.bf16.gmra.mxu0 %vm3160_vm6, %v12430_v33  ;;  %v5837_v7 = vpop.f32.mrf.mxu3 }
 0x898   : > { %v12436_v57 = vadd.f32 %v5837_v7, %v5772_v54  ;;  %7993 = vmatmul.msk.bf16.gmra.mxu2 %vm3160_vm6, %v12434_v17 }
 0x899   : > { %8800 = vrot.lane.b32.xlu0 %v12059_v13, %s8960_s13  ;;  %v5443_v1 = vpop.f32.mrf.mxu1  ;;  %8780 = vrot.lane.b32.xlu2 %v13763_v14, %s8961_s15 }
 0x89a   : > { %13762 = vst [vmem:[#allocation70_spill] sm:$0xff] %v12436_v57  ;;  %v8611_v38 = vpop.permute.xlu1 %8610 }
 0x89b   : > { %v5706_v18 = vpop.f32.mrf.mxu2  ;;  %v8613_v53 = vunpack.i.h.bf16 %v8611_v38  ;;  %v8612_v62 = vunpack.i.l.bf16 %v8611_v38 }
 0x89c   : > { %v5774_v40 = vadd.f32 %v5706_v18, %v5442_v63  ;;  %v5301_v56 = vpop.f32.mrf.mxu0 }
 0x89d   : > { %v4880_v54 = vsel %vm1132_vm4, %v8608_v60, %v8613_v53  ;;  %v4879_v46 = vsel %vm1132_vm4, %v8607_v34, %v8612_v62  ;;  %v5444_v16 = vadd.f32 %v5443_v1, %v5301_v56  ;;  %v13765_v1 = vld [vmem:[#allocation81_spill] sm:$0xff] }
 0x89e   : > { %v4956_v11 = vrot.slane %v4880_v54, 7  ;;  %v4955_v7 = vrot.slane %v4879_v46, 7 }
 0x89f   : > { %v5839_v13 = vpop.f32.mrf.mxu3 }
 0x8a0   : > { %v5043_v57 = vsel %vm817_vm2, %v4956_v11, 0.0  ;;  %v5027_v14 = vsel %vm817_vm2, 0.0, %v4955_v7  ;;  %v12448_v33 = vadd.f32 %v5839_v13, %v5773_v10  ;;  %v4957_v15 = vsel %vm817_vm2, %v4955_v7, %v4956_v11  ;;  %v8616_v10 = vpop.permute.xlu2 %8615 }
 0x8a1   : > { %v5157_v17 = vrot.slane %v5043_v57, 1  ;;  %v5564_v38 = vrot.slane %v5043_v57, 2  ;;  %v5154_v63 = vrot.slane %v5027_v14, 1  ;;  %v5561_v18 = vrot.slane %v5027_v14, 2  ;;  %8815 = vrot.lane.b32.xlu0 %v12106_v55, %s8960_s13  ;;  %v5446_v60 = vpop.f32.mrf.mxu1  ;;  %8795 = vrot.lane.b32.xlu2 %v13765_v1, %s8961_s15 }
 0x8a2   : > { %13764 = vst [vmem:[#allocation50_spill] sm:$0xff] %v12448_v33  ;;  %v12455_v34 = vpack.c.bf16 %v4957_v15, %v5027_v14  ;;  %v5155_v53 = vrot.slane %v4957_v15, 1  ;;  %v5562_v62 = vrot.slane %v4957_v15, 2 }
 0x8a3   : > { %v5708_v56 = vpop.f32.mrf.mxu2 }
 0x8a4   : > { %13766 = vst [vmem:[#allocation90_spill] sm:$0xff] %v12455_v34  ;;  %v5775_v54 = vadd.f32 %v5708_v56, %v5444_v16  ;;  %v5304_v46 = vpop.f32.mrf.mxu0  ;;  %7972 = vmatmul.msk.bf16.gmra.mxu1 %vm3160_vm6, %v12455_v34  ;;  %8015 = vmatmul.msk.bf16.gmra.mxu3 %vm3160_vm6, %v12455_v34  ;;  %v5156_v55 = vsel %vm1001_vm3, %v5154_v63, %v5155_v53  ;;  %v13770_v63 = vld [vmem:[#allocation62_spill] sm:$0xff] }
 0x8a5   : > { %v5447_v57 = vadd.f32 %v5446_v60, %v5304_v46  ;;  %v5158_v11 = vsel %vm1001_vm3, %v5155_v53, %v5157_v17  ;;  %v5563_v7 = vsel %vm1414_vm5, %v5561_v18, %v5562_v62  ;;  %v5565_v13 = vsel %vm1414_vm5, %v5562_v62, %v5564_v38  ;;  %v8626_v53 = vpop.permute.xlu1 %8625 }
 0x8a6   : > { %v12465_v14 = vpack.c.bf16 %v5158_v11, %v5156_v55  ;;  %v12467_v15 = vpack.c.bf16 %v5565_v13, %v5563_v7  ;;  %v8618_v18 = vunpack.i.h.bf16 %v8616_v10  ;;  %v8617_v60 = vunpack.i.l.bf16 %v8616_v10 }
 0x8a7   : > { %v5842_v16 = vpop.f32.mrf.mxu3 }
 0x8a8   : > { %13767 = vst [vmem:[#allocation33_spill] sm:$0xff] %v12465_v14  ;;  %7952 = vmatmul.msk.bf16.gmra.mxu0 %vm3160_vm6, %v12465_v14  ;;  %v12471_v1 = vadd.f32 %v5842_v16, %v5774_v40  ;;  %7994 = vmatmul.msk.bf16.gmra.mxu2 %vm3160_vm6, %v12467_v15  ;;  %v8631_v55 = vpop.permute.xlu2 %8630  ;;  %v8628_v14 = vunpack.i.h.bf16 %v8626_v53 }
 0x8a9   : > { %13768 = vst [vmem:[#allocation59_spill] sm:$0xff] %v12467_v15  ;;  %8830 = vrot.lane.b32.xlu0 %v12157_v27, %s8960_s13  ;;  %v5448_v17 = vpop.f32.mrf.mxu1  ;;  %8810 = vrot.lane.b32.xlu2 %v13770_v63, %s8961_s15  ;;  %v8627_v15 = vunpack.i.l.bf16 %v8626_v53  ;;  %v8633_v63 = vunpack.i.h.bf16 %v8631_v55  ;;  %v8632_v33 = vunpack.i.l.bf16 %v8631_v55  ;;  %v8067_v53 = vld [vmem:[%s13274_s7 + $0x30] sm:$0xf] }
 0x8aa   : > { %13769 = vst [vmem:[#allocation92_spill] sm:$0xff] %v12471_v1  ;;  %v8621_v38 = vpop.permute.xlu0 %8620 }
 0x8ab   : > { %v5711_v62 = vpop.f32.mrf.mxu2  ;;  %v8623_v56 = vunpack.i.h.bf16 %v8621_v38  ;;  %v8622_v46 = vunpack.i.l.bf16 %v8621_v38 }
 0x8ac   : > { %v5776_v40 = vadd.f32 %v5711_v62, %v5447_v57  ;;  %v5306_v11 = vpop.f32.mrf.mxu0 }
 0x8ad   : > { %v4881_v7 = vsel %vm1132_vm4, %v8617_v60, %v8622_v46  ;;  %v4882_v13 = vsel %vm1132_vm4, %v8618_v18, %v8623_v56  ;;  %v5449_v16 = vadd.f32 %v5448_v17, %v5306_v11  ;;  %v13772_v56 = vld [vmem:[#allocation64_spill] sm:$0xff] }
 0x8ae   : > { %v4958_v27 = vrot.slane %v4881_v7, 7  ;;  %v4959_v1 = vrot.slane %v4882_v13, 7  ;;  %v8089_v7 = vld [vmem:[%s13274_s7 + $0x38] sm:$0xf]  ;;  %v4883_v13 = vsel %vm1132_vm4, %v8627_v15, %v8632_v33  ;;  %v8187_v33 = vld [vmem:[%s13274_s7 + $0x28] sm:$0x30] }
 0x8af   : > { %v5844_v34 = vpop.f32.mrf.mxu3  ;;  %v4961_v47 = vrot.slane %v4883_v13, 7 }
 0x8b0   : > { %v5028_v10 = vsel %vm817_vm2, 0.0, %v4958_v27  ;;  %v5044_v52 = vsel %vm817_vm2, %v4959_v1, 0.0  ;;  %v12483_v38 = vadd.f32 %v5844_v34, %v5775_v54  ;;  %v4960_v57 = vsel %vm817_vm2, %v4958_v27, %v4959_v1  ;;  %v8188_v1 = vld [vmem:[%s13274_s7 + $0x30] sm:$0x30] }
 0x8b1   : > { %v5159_v62 = vrot.slane %v5028_v10, 1  ;;  %v5162_v60 = vrot.slane %v5044_v52, 1  ;;  %v5566_v46 = vrot.slane %v5028_v10, 2  ;;  %v5569_v18 = vrot.slane %v5044_v52, 2  ;;  %8845 = vrot.lane.b32.xlu0 %v12200_v50, %s8960_s13  ;;  %v5451_v17 = vpop.f32.mrf.mxu1  ;;  %8825 = vrot.lane.b32.xlu2 %v13772_v56, %s8961_s15 }
 0x8b2   : > { %13771 = vst [vmem:[#allocation14_spill] sm:$0xff] %v12483_v38  ;;  %v12493_v55 = vpack.c.bf16 %v4960_v57, %v5028_v10  ;;  %v5160_v34 = vrot.slane %v4960_v57, 1  ;;  %v5567_v54 = vrot.slane %v4960_v57, 2  ;;  %v4884_v52 = vsel %vm1132_vm4, %v8628_v14, %v8633_v63  ;;  %v8189_v14 = vld [vmem:[%s13274_s7 + $0x38] sm:$0x30] }
 0x8b3   : > { %v5713_v11 = vpop.f32.mrf.mxu2  ;;  %v8068_v50 = vor.u32 %v8188_v1, %v8067_v53  ;;  %v8045_v63 = vld [vmem:[%s13274_s7 + $0x28] sm:$0xf]  ;;  %v8090_v24 = vor.u32 %v8189_v14, %v8089_v7 }
 0x8b4   : > { %13773 = vst [vmem:[#allocation91_spill] sm:$0xff] %v12493_v55  ;;  %v5777_v27 = vadd.f32 %v5713_v11, %v5449_v16  ;;  %v5309_v56 = vpop.f32.mrf.mxu0  ;;  %7973 = vmatmul.msk.bf16.gmra.mxu1 %vm3160_vm6, %v12493_v55  ;;  %8016 = vmatmul.msk.bf16.gmra.mxu3 %vm3160_vm6, %v12493_v55  ;;  %v5161_v10 = vsel %vm1001_vm3, %v5159_v62, %v5160_v34  ;;  %v4962_v11 = vrot.slane %v4884_v52, 7 }
 0x8b5   : > { %v5452_v15 = vadd.f32 %v5451_v17, %v5309_v56  ;;  %v5163_v16 = vsel %vm1001_vm3, %v5160_v34, %v5162_v60  ;;  %v5568_v57 = vsel %vm1414_vm5, %v5566_v46, %v5567_v54  ;;  %v5570_v53 = vsel %vm1414_vm5, %v5567_v54, %v5569_v18  ;;  %v8111_v34 = vld [vmem:[%s13274_s7 + $0x40] sm:$0xf] }
 0x8b6   : > { %v12520_v62 = vpack.c.bf16 %v5163_v16, %v5161_v10  ;;  %v12522_v1 = vpack.c.bf16 %v5570_v53, %v5568_v57  ;;  %v6231_v55 = vsel %vm1414_vm5, %v8068_v50, 0  ;;  %v8046_v39 = vor.u32 %v8187_v33, %v8045_v63 }
 0x8b7   : > { %v5847_v38 = vpop.f32.mrf.mxu3  ;;  %6240 = vmatpush.bf16.msrb.mxu2 %v6231_v55  ;;  %v6363_v46 = vsel %vm1414_vm5, %v8090_v24, 0  ;;  %v5029_v24 = vsel %vm817_vm2, 0.0, %v4961_v47  ;;  %v4963_v50 = vsel %vm817_vm2, %v4961_v47, %v4962_v11 }
 0x8b8   : > { %7953 = vmatmul.msk.bf16.gmra.mxu0 %vm3160_vm6, %v12520_v62  ;;  %v12527_v17 = vadd.f32 %v5847_v38, %v5776_v40  ;;  %7995 = vmatmul.msk.bf16.gmra.mxu2 %vm3160_vm6, %v12522_v1  ;;  %v6099_v18 = vsel %vm1414_vm5, %v8046_v39, 0  ;;  %v8190_v40 = vld [vmem:[%s13274_s7 + $0x40] sm:$0x30]  ;;  %v5164_v10 = vrot.slane %v5029_v24, 1  ;;  %v5165_v63 = vrot.slane %v4963_v50, 1 }
 0x8b9   : > { %8860 = vrot.lane.b32.xlu0 %v12246_v36, %s8960_s13  ;;  %v5453_v60 = vpop.f32.mrf.mxu1  ;;  %v13774_v38 = vld [vmem:[#allocation65_spill] sm:$0xff]  ;;  %6372 = vmatpush.bf16.msrb.mxu3 %v6363_v46  ;;  %v8112_v55 = vor.u32 %v8190_v40, %v8111_v34  ;;  %v5045_v36 = vsel %vm817_vm2, %v4962_v11, 0.0  ;;  %v5571_v16 = vrot.slane %v5029_v24, 2  ;;  %v5572_v53 = vrot.slane %v4963_v50, 2  ;;  %v13775_v46 = vld [vmem:[#allocation83_spill] sm:$0xff] }
 0x8ba   : > { %8840 = vrot.lane.b32.xlu2 %v13774_v38, %s8961_s15  ;;  %6108 = vmatpush.bf16.msra.mxu1 %v6099_v18  ;;  %v5167_v56 = vrot.slane %v5045_v36, 1  ;;  %v5574_v33 = vrot.slane %v5045_v36, 2  ;;  %v12553_v47 = vpack.c.bf16 %v4963_v50, %v5029_v24  ;;  %v8636_v24 = vpop.permute.xlu0 %8635 }
 0x8bb   : > { %v5716_v54 = vpop.f32.mrf.mxu2  ;;  %v6495_v7 = vsel %vm1414_vm5, %v8112_v55, 0 }
 0x8bc   : > { %v5778_v39 = vadd.f32 %v5716_v54, %v5452_v15  ;;  %v5311_v52 = vpop.f32.mrf.mxu0  ;;  %6504 = vmatpush.bf16.msrb.mxu0 %v6495_v7  ;;  %v5168_v18 = vsel %vm1001_vm3, %v5165_v63, %v5167_v56  ;;  %v13776_v7 = vld [vmem:[#allocation85_spill] sm:$0xff]  ;;  %v8638_v56 = vunpack.i.h.bf16 %v8636_v24 }
 0x8bd   : > { %v5454_v13 = vadd.f32 %v5453_v60, %v5311_v52  ;;  %v5166_v60 = vsel %vm1001_vm3, %v5164_v10, %v5165_v63  ;;  %v8637_v10 = vunpack.i.l.bf16 %v8636_v24 }
 0x8be   : > { %v12563_v55 = vpack.c.bf16 %v5168_v18, %v5166_v60 }
 0x8bf   : > { %v5849_v14 = vpop.f32.mrf.mxu3 }
 0x8c0   : > { %v12547_v57 = vadd.f32 %v5849_v14, %v5777_v27  ;;  %v5575_v27 = vsel %vm1414_vm5, %v5572_v53, %v5574_v33 }
 0x8c1   : > { %8875 = vrot.lane.b32.xlu0 %v12289_v59, %s8960_s13  ;;  %v5456_v15 = vpop.f32.mrf.mxu1  ;;  %v5573_v59 = vsel %vm1414_vm5, %v5571_v16, %v5572_v53 }
 0x8c2   : > { %8855 = vrot.lane.b32.xlu2 %v13775_v46, %s8961_s15  ;;  %v12565_v36 = vpack.c.bf16 %v5575_v27, %v5573_v59 }
 0x8c3   : > { %v5718_v11 = vpop.f32.mrf.mxu2 }
 0x8c4   : > { %v5779_v34 = vadd.f32 %v5718_v11, %v5454_v13  ;;  %v5314_v40 = vpop.f32.mrf.mxu0  ;;  %7974 = vmatmul.msk.bf16.gmra.mxu1 %vm3160_vm6, %v12553_v47  ;;  %8017 = vmatmul.msk.bf16.gmra.mxu3 %vm3160_vm6, %v12553_v47 }
 0x8c5   : > { %v5457_v38 = vadd.f32 %v5456_v15, %v5314_v40 }
 0x8c7   : > { %v5852_v54 = vpop.f32.mrf.mxu3 }
 0x8c8   : > { %7954 = vmatmul.msk.bf16.gmra.mxu0 %vm3160_vm6, %v12563_v55  ;;  %v12569_v52 = vadd.f32 %v5852_v54, %v5778_v39  ;;  %7996 = vmatmul.msk.bf16.gmra.mxu2 %vm3160_vm6, %v12565_v36 }
 0x8c9   : > { %v5458_v50 = vpop.f32.mrf.mxu1 }
 0x8ca   : > { %8870 = vrot.lane.b32.xlu2 %v13776_v7, %s8961_s15  ;;  %v8641_v13 = vpop.permute.xlu1 %8640 }
 0x8cb   : > { %v5721_v14 = vpop.f32.mrf.mxu2  ;;  %v8643_v63 = vunpack.i.h.bf16 %v8641_v13  ;;  %v8642_v33 = vunpack.i.l.bf16 %v8641_v13 }
 0x8cc   : > { %v5780_v16 = vadd.f32 %v5721_v14, %v5457_v38  ;;  %v5316_v53 = vpop.f32.mrf.mxu0 }
 0x8cd   : > { %v4886_v15 = vsel %vm1132_vm4, %v8638_v56, %v8643_v63  ;;  %v4885_v39 = vsel %vm1132_vm4, %v8637_v10, %v8642_v33  ;;  %v5459_v60 = vadd.f32 %v5458_v50, %v5316_v53 }
 0x8ce   : > { %v4965_v46 = vrot.slane %v4886_v15, 7  ;;  %v4964_v11 = vrot.slane %v4885_v39, 7 }
 0x8cf   : > { %v5854_v18 = vpop.f32.mrf.mxu3 }
 0x8d0   : > { %v5046_v40 = vsel %vm817_vm2, %v4965_v46, 0.0  ;;  %v5030_v59 = vsel %vm817_vm2, 0.0, %v4964_v11  ;;  %v12579_v27 = vadd.f32 %v5854_v18, %v5779_v34  ;;  %v4966_v54 = vsel %vm817_vm2, %v4964_v11, %v4965_v46 }
 0x8d1   : > { %v6082_v24 = vrot.slane %v5046_v40, 2  ;;  %v6079_v7 = vrot.slane %v5030_v59, 2  ;;  %v5461_v38 = vpop.f32.mrf.mxu1  ;;  %v5936_v13 = vrot.slane %v5030_v59, 1  ;;  %v12582_v14 = vpack.c.bf16 %v4966_v54, %v5030_v59 }
 0x8d2   : > { %v5937_v56 = vrot.slane %v4966_v54, 1  ;;  %v6080_v10 = vrot.slane %v4966_v54, 2  ;;  %v5939_v63 = vrot.slane %v5046_v40, 1 }
 0x8d3   : > { %v5723_v33 = vpop.f32.mrf.mxu2 }
 0x8d4   : > { %v5781_v50 = vadd.f32 %v5723_v33, %v5459_v60  ;;  %v5319_v53 = vpop.f32.mrf.mxu0  ;;  %8018 = vmatmul.msk.bf16.gmra.mxu3 %vm3160_vm6, %v12582_v14  ;;  %8047 = vmatmul.msk.bf16.vlgmr.msra.gmra.mxu1 %vm3160_vm6, %v11959_v19  ;;  %v6081_v34 = vsel %vm1414_vm5, %v6079_v7, %v6080_v10  ;;  %v6083_v39 = vsel %vm1414_vm5, %v6080_v10, %v6082_v24 }
 0x8d5   : > { %v5462_v15 = vadd.f32 %v5461_v38, %v5319_v53  ;;  %v12590_v46 = vpack.c.bf16 %v6083_v39, %v6081_v34  ;;  %v5938_v11 = vsel %vm1001_vm3, %v5936_v13, %v5937_v56  ;;  %v5940_v40 = vsel %vm1001_vm3, %v5937_v56, %v5939_v63 }
 0x8d6   : > { %v12598_v59 = vpack.c.bf16 %v5940_v40, %v5938_v11 }
 0x8d7   : > { %v5857_v18 = vpop.f32.mrf.mxu3 }
 0x8d8   : > { %v12594_v60 = vadd.f32 %v5857_v18, %v5780_v16  ;;  %8025 = vmatmul.msk.bf16.vlgmr.msra.gmra.mxu0 %vm3160_vm6, %v11956_v42  ;;  %8069 = vmatmul.msk.bf16.vlgmr.msrb.gmra.mxu2 %vm3160_vm6, %v11992_v22 }
 0x8d9   : > { %v5463_v19 = vpop.f32.mrf.mxu1 }
 0x8db   : > { %v5726_v54 = vpop.f32.mrf.mxu2 }
 0x8dc   : > { %v5782_v24 = vadd.f32 %v5726_v54, %v5462_v15  ;;  %v5321_v7 = vpop.f32.mrf.mxu0 }
 0x8dd   : > { %v5464_v38 = vadd.f32 %v5463_v19, %v5321_v7 }
 0x8df   : > { %v5859_v10 = vpop.f32.mrf.mxu3 }
 0x8e0   : > { %v12602_v13 = vadd.f32 %v5859_v10, %v5781_v50 }
 0x8e1   : > { %v5466_v33 = vpop.f32.mrf.mxu1 }
 0x8e3   : > { %v5728_v56 = vpop.f32.mrf.mxu2 }
 0x8e4   : > { %v5783_v16 = vadd.f32 %v5728_v56, %v5464_v38  ;;  %v5324_v63 = vpop.f32.mrf.mxu0  ;;  %8048 = vmatmul.msk.bf16.gmra.mxu1 %vm3160_vm6, %v12010_v37  ;;  %8091 = vmatmul.msk.bf16.vlgmr.msrb.gmra.mxu3 %vm3160_vm6, %v12005_v35 }
 0x8e5   : > { %v5467_v42 = vadd.f32 %v5466_v33, %v5324_v63 }
 0x8e7   : > { %v5862_v22 = vpop.f32.mrf.mxu3 }
 0x8e8   : > { %v12608_v53 = vadd.f32 %v5862_v22, %v5782_v24  ;;  %8026 = vmatmul.msk.bf16.gmra.mxu0 %vm3160_vm6, %v12005_v35  ;;  %8070 = vmatmul.msk.bf16.gmra.mxu2 %vm3160_vm6, %v12039_v5 }
 0x8e9   : > { %v5468_v50 = vpop.f32.mrf.mxu1 }
 0x8eb   : > { %v5731_v34 = vpop.f32.mrf.mxu2 }
 0x8ec   : > { %v5784_v15 = vadd.f32 %v5731_v34, %v5467_v42  ;;  %v5326_v39 = vpop.f32.mrf.mxu0 }
 0x8ed   : > { %v5469_v11 = vadd.f32 %v5468_v50, %v5326_v39 }
 0x8ef   : > { %v5864_v18 = vpop.f32.mrf.mxu3 }
 0x8f0   : > { %v12614_v40 = vadd.f32 %v5864_v18, %v5783_v16 }
 0x8f1   : > { %v5471_v19 = vpop.f32.mrf.mxu1 }
 0x8f3   : > { %v5733_v54 = vpop.f32.mrf.mxu2 }
 0x8f4   : > { %v5785_v7 = vadd.f32 %v5733_v54, %v5469_v11  ;;  %v5329_v38 = vpop.f32.mrf.mxu0  ;;  %8049 = vmatmul.msk.bf16.gmra.mxu1 %vm3160_vm6, %v12057_v45  ;;  %8092 = vmatmul.msk.bf16.gmra.mxu3 %vm3160_vm6, %v12053_v30 }
 0x8f5   : > { %v5472_v35 = vadd.f32 %v5471_v19, %v5329_v38 }
 0x8f7   : > { %v5867_v5 = vpop.f32.mrf.mxu3 }
 0x8f8   : > { %v12620_v24 = vadd.f32 %v5867_v5, %v5784_v15  ;;  %8027 = vmatmul.msk.bf16.gmra.mxu0 %vm3160_vm6, %v12053_v30  ;;  %8071 = vmatmul.msk.bf16.gmra.mxu2 %vm3160_vm6, %v12088_v43 }
 0x8f9   : > { %v5473_v10 = vpop.f32.mrf.mxu1 }
 0x8fb   : > { %v5736_v33 = vpop.f32.mrf.mxu2 }
 0x8fc   : > { %v5786_v56 = vadd.f32 %v5736_v33, %v5472_v35  ;;  %v5331_v16 = vpop.f32.mrf.mxu0 }
 0x8fd   : > { %v5474_v63 = vadd.f32 %v5473_v10, %v5331_v16 }
 0x8ff   : > { %v5869_v42 = vpop.f32.mrf.mxu3 }
 0x900   : > { %v12626_v22 = vadd.f32 %v5869_v42, %v5785_v7 }
 0x901   : > { %v5476_v50 = vpop.f32.mrf.mxu1 }
 0x903   : > { %v5738_v34 = vpop.f32.mrf.mxu2 }
 0x904   : > { %8050 = vmatmul.msk.bf16.gmra.mxu1 %vm3160_vm6, %v12104_v25  ;;  %8093 = vmatmul.msk.bf16.gmra.mxu3 %vm3160_vm6, %v12101_v49  ;;  %v5787_v30 = vadd.f32 %v5738_v34, %v5474_v63  ;;  %v5334_v15 = vpop.f32.mrf.mxu0 }
 0x905   : > { %v5477_v39 = vadd.f32 %v5476_v50, %v5334_v15 }
 0x907   : > { %v5872_v43 = vpop.f32.mrf.mxu3 }
 0x908   : > { %v12632_v11 = vadd.f32 %v5872_v43, %v5786_v56  ;;  %8028 = vmatmul.msk.bf16.gmra.mxu0 %vm3160_vm6, %v12101_v49  ;;  %8072 = vmatmul.msk.bf16.gmra.mxu2 %vm3160_vm6, %v12137_v21 }
 0x909   : > { %v5478_v18 = vpop.f32.mrf.mxu1 }
 0x90b   : > { %v5741_v19 = vpop.f32.mrf.mxu2 }
 0x90c   : > { %v5788_v54 = vadd.f32 %v5741_v19, %v5477_v39  ;;  %v5336_v7 = vpop.f32.mrf.mxu0 }
 0x90d   : > { %v5479_v38 = vadd.f32 %v5478_v18, %v5336_v7 }
 0x90f   : > { %v5874_v35 = vpop.f32.mrf.mxu3 }
 0x910   : > { %v12638_v5 = vadd.f32 %v5874_v35, %v5787_v30 }
 0x911   : > { %v5481_v10 = vpop.f32.mrf.mxu1 }
 0x913   : > { %v5743_v33 = vpop.f32.mrf.mxu2 }
 0x914   : > { %8051 = vmatmul.msk.bf16.gmra.mxu1 %vm3160_vm6, %v12155_v4  ;;  %8094 = vmatmul.msk.bf16.gmra.mxu3 %vm3160_vm6, %v12152_v23  ;;  %v5789_v49 = vadd.f32 %v5743_v33, %v5479_v38  ;;  %v5339_v56 = vpop.f32.mrf.mxu0 }
 0x915   : > { %v5482_v16 = vadd.f32 %v5481_v10, %v5339_v56 }
 0x917   : > { %v5877_v21 = vpop.f32.mrf.mxu3 }
 0x918   : > { %v12644_v63 = vadd.f32 %v5877_v21, %v5788_v54  ;;  %8029 = vmatmul.msk.bf16.gmra.mxu0 %vm3160_vm6, %v12152_v23  ;;  %8073 = vmatmul.msk.bf16.gmra.mxu2 %vm3160_vm6, %v12183_v12 }
 0x919   : > { %v5483_v42 = vpop.f32.mrf.mxu1 }
 0x91b   : > { %v5746_v50 = vpop.f32.mrf.mxu2 }
 0x91c   : > { %v5790_v34 = vadd.f32 %v5746_v50, %v5482_v16  ;;  %v5341_v30 = vpop.f32.mrf.mxu0 }
 0x91d   : > { %v5484_v15 = vadd.f32 %v5483_v42, %v5341_v30 }
 0x91f   : > { %v5879_v39 = vpop.f32.mrf.mxu3 }
 0x920   : > { %v12650_v43 = vadd.f32 %v5879_v39, %v5789_v49 }
 0x921   : > { %v5486_v18 = vpop.f32.mrf.mxu1 }
 0x923   : > { %v5748_v19 = vpop.f32.mrf.mxu2 }
 0x924   : > { %8052 = vmatmul.msk.bf16.gmra.mxu1 %vm3160_vm6, %v12198_v48  ;;  %8095 = vmatmul.msk.bf16.gmra.mxu3 %vm3160_vm6, %v12196_v32  ;;  %v5791_v23 = vadd.f32 %v5748_v19, %v5484_v15 }
 0x925   : > { %v5344_v54 = vpop.f32.mrf.mxu0 }
 0x926   : > { %v5487_v7 = vadd.f32 %v5486_v18, %v5344_v54 }
 0x927   : > { %v5882_v12 = vpop.f32.mrf.mxu3 }
 0x928   : > { %v12656_v38 = vadd.f32 %v5882_v12, %v5790_v34  ;;  %8030 = vmatmul.msk.bf16.gmra.mxu0 %vm3160_vm6, %v12196_v32  ;;  %8074 = vmatmul.msk.bf16.gmra.mxu2 %vm3160_vm6, %v12230_v28 }
 0x929   : > { %v5488_v35 = vpop.f32.mrf.mxu1 }
 0x92b   : > { %v5751_v10 = vpop.f32.mrf.mxu2 }
 0x92c   : > { %v5792_v33 = vadd.f32 %v5751_v10, %v5487_v7 }
 0x92d   : > { %v5346_v49 = vpop.f32.mrf.mxu0 }
 0x92e   : > { %v5489_v56 = vadd.f32 %v5488_v35, %v5346_v49 }
 0x92f   : > { %v5884_v16 = vpop.f32.mrf.mxu3 }
 0x930   : > { %v12662_v21 = vadd.f32 %v5884_v16, %v5791_v23 }
 0x931   : > { %v5491_v42 = vpop.f32.mrf.mxu1 }
 0x933   : > { %v5753_v50 = vpop.f32.mrf.mxu2 }
 0x934   : > { %8053 = vmatmul.msk.bf16.gmra.mxu1 %vm3160_vm6, %v12244_v3  ;;  %8096 = vmatmul.msk.bf16.gmra.mxu3 %vm3160_vm6, %v12241_v51  ;;  %v5793_v32 = vadd.f32 %v5753_v50, %v5489_v56 }
 0x935   : > { %v5349_v34 = vpop.f32.mrf.mxu0 }
 0x936   : > { %v5492_v30 = vadd.f32 %v5491_v42, %v5349_v34 }
 0x937   : > { %v5887_v28 = vpop.f32.mrf.mxu3 }
 0x938   : > { %v12668_v15 = vadd.f32 %v5887_v28, %v5792_v33  ;;  %8031 = vmatmul.msk.bf16.gmra.mxu0 %vm3160_vm6, %v12241_v51  ;;  %8075 = vmatmul.msk.bf16.gmra.mxu2 %vm3160_vm6, %v12273_v26 }
 0x939   : > { %v5493_v39 = vpop.f32.mrf.mxu1 }
 0x93b   : > { %v5756_v18 = vpop.f32.mrf.mxu2 }
 0x93c   : > { %v5794_v19 = vadd.f32 %v5756_v18, %v5492_v30 }
 0x93d   : > { %v5351_v23 = vpop.f32.mrf.mxu0 }
 0x93e   : > { %v5494_v54 = vadd.f32 %v5493_v39, %v5351_v23 }
 0x93f   : > { %v5889_v7 = vpop.f32.mrf.mxu3 }
 0x940   : > { %v12674_v12 = vadd.f32 %v5889_v7, %v5793_v32 }
 0x941   : > { %v5496_v35 = vpop.f32.mrf.mxu1 }
 0x943   : > { %v5758_v10 = vpop.f32.mrf.mxu2 }
 0x944   : > { %8054 = vmatmul.msk.bf16.gmra.mxu1 %vm3160_vm6, %v12287_v9  ;;  %8097 = vmatmul.msk.bf16.gmra.mxu3 %vm3160_vm6, %v12284_v0  ;;  %v5795_v51 = vadd.f32 %v5758_v10, %v5494_v54 }
 0x945   : > { %v5354_v33 = vpop.f32.mrf.mxu0 }
 0x946   : > { %v5497_v49 = vadd.f32 %v5496_v35, %v5354_v33 }
 0x947   : > { %v5892_v26 = vpop.f32.mrf.mxu3 }
 0x948   : > { %v12680_v56 = vadd.f32 %v5892_v26, %v5794_v19  ;;  %8032 = vmatmul.msk.bf16.gmra.mxu0 %vm3160_vm6, %v12284_v0  ;;  %8076 = vmatmul.msk.bf16.gmra.mxu2 %vm3160_vm6, %v12312_v44  ;;  %v5424_v44 = vadd.f32 %v12297_v58, %v12306_v61 }
 0x949   : > { %v5498_v16 = vpop.f32.mrf.mxu1 }
 0x94b   : > { %v5761_v42 = vpop.f32.mrf.mxu2 }
 0x94c   : > { %v5796_v50 = vadd.f32 %v5761_v42, %v5497_v49  ;;  %v13778_v49 = vld [vmem:[#allocation77_spill] sm:$0xff] }
 0x94d   : > { %v5356_v32 = vpop.f32.mrf.mxu0 }
 0x94e   : > { %v5499_v34 = vadd.f32 %v5498_v16, %v5356_v32 }
 0x94f   : > { %v5894_v30 = vpop.f32.mrf.mxu3 }
 0x950   : > { %v12686_v28 = vadd.f32 %v5894_v30, %v5795_v51  ;;  %v13777_v51 = vld [vmem:[#allocation84_spill] sm:$0xff] }
 0x951   : > { %v6110_v39 = vpop.f32.mrf.mxu1  ;;  %v5767_v33 = vadd.f32 %v13777_v51, %v5424_v44 }
 0x953   : > { %v5763_v18 = vpop.f32.mrf.mxu2  ;;  %v5903_v26 = vadd.f32 %v13778_v49, %v5767_v33 }
 0x954   : > { %8055 = vmatmul.msk.bf16.gmra.mxu1 %vm3160_vm6, %v12326_v29  ;;  %8098 = vmatmul.msk.bf16.gmra.mxu3 %vm3160_vm6, %v12324_v31  ;;  %v5797_v0 = vadd.f32 %v5763_v18, %v5499_v34 }
 0x955   : > { %v5967_v19 = vpop.f32.mrf.mxu0 }
 0x956   : > { %v6047_v23 = vadd.f32 %v5967_v19, %v12333_v8  ;;  %v13781_v19 = vld [vmem:[#allocation87_spill] sm:$0xff] }
 0x957   : > { %v5897_v54 = vpop.f32.mrf.mxu3 }
 0x958   : > { %v12695_v7 = vadd.f32 %v5897_v54, %v5796_v50  ;;  %8033 = vmatmul.msk.bf16.gmra.mxu0 %vm3160_vm6, %v12324_v31  ;;  %v6190_v35 = vadd.f32 %v6110_v39, %v6047_v23  ;;  %8077 = vmatmul.msk.bf16.gmra.mxu2 %vm3160_vm6, %v12350_v2  ;;  %v13779_v31 = vld [vmem:[#allocation80_spill] sm:$0xff]  ;;  %v13780_v39 = vld [vmem:[#allocation66_spill] sm:$0xff] }
 0x959   : > { %v6112_v10 = vpop.f32.mrf.mxu1 }
 0x95b   : > { %v6242_v16 = vpop.f32.mrf.mxu2 }
 0x95c   : > { %v6322_v42 = vadd.f32 %v6242_v16, %v6190_v35 }
 0x95d   : > { %v5969_v58 = vpop.f32.mrf.mxu0 }
 0x95e   : > { %v6048_v61 = vadd.f32 %v5969_v58, %v5903_v26 }
 0x95f   : > { %v5899_v8 = vpop.f32.mrf.mxu3 }
 0x960   : > { %v12703_v32 = vadd.f32 %v5899_v8, %v5797_v0  ;;  %v6191_v50 = vadd.f32 %v6112_v10, %v6048_v61 }
 0x961   : > { %v6115_v34 = vpop.f32.mrf.mxu1 }
 0x963   : > { %v6244_v30 = vpop.f32.mrf.mxu2 }
 0x964   : > { %8056 = vmatmul.msk.bf16.gmra.mxu1 %vm3160_vm6, %v13779_v31  ;;  %8099 = vmatmul.msk.bf16.gmra.mxu3 %vm3160_vm6, %v13780_v39  ;;  %v6323_v2 = vadd.f32 %v6244_v30, %v6191_v50 }
 0x965   : > { %v5972_v18 = vpop.f32.mrf.mxu0 }
 0x966   : > { %v6049_v44 = vadd.f32 %v5972_v18, %v13781_v19  ;;  %v13784_v18 = vld [vmem:[#allocation56_spill] sm:$0xff] }
 0x967   : > { %v6374_v23 = vpop.f32.mrf.mxu3 }
 0x968   : > { %8034 = vmatmul.msk.bf16.gmra.mxu0 %vm3160_vm6, %v13780_v39  ;;  %v12712_v54 = vadd.f32 %v6374_v23, %v6322_v42  ;;  %v6192_v0 = vadd.f32 %v6115_v34, %v6049_v44  ;;  %8078 = vmatmul.msk.bf16.gmra.mxu2 %vm3160_vm6, %v12385_v41  ;;  %v13782_v42 = vld [vmem:[#allocation86_spill] sm:$0xff]  ;;  %v13783_v34 = vld [vmem:[#allocation88_spill] sm:$0xff] }
 0x969   : > { %v6117_v35 = vpop.f32.mrf.mxu1 }
 0x96b   : > { %v6247_v10 = vpop.f32.mrf.mxu2 }
 0x96c   : > { %v6324_v51 = vadd.f32 %v6247_v10, %v6192_v0 }
 0x96d   : > { %v5974_v33 = vpop.f32.mrf.mxu0 }
 0x96e   : > { %v6050_v49 = vadd.f32 %v5974_v33, %v12378_v20 }
 0x96f   : > { %v6376_v26 = vpop.f32.mrf.mxu3 }
 0x970   : > { %v12717_v16 = vadd.f32 %v6376_v26, %v6323_v2  ;;  %v6193_v58 = vadd.f32 %v6117_v35, %v6050_v49  ;;  %v13785_v35 = vld [vmem:[#allocation89_spill] sm:$0xff] }
 0x971   : > { %v6120_v61 = vpop.f32.mrf.mxu1 }
 0x973   : > { %v6249_v8 = vpop.f32.mrf.mxu2 }
 0x974   : > { %8057 = vmatmul.msk.bf16.gmra.mxu1 %vm3160_vm6, %v12399_v6  ;;  %8100 = vmatmul.msk.bf16.gmra.mxu3 %vm3160_vm6, %v13782_v42  ;;  %v6325_v50 = vadd.f32 %v6249_v8, %v6193_v58  ;;  %v13786_v8 = vld [vmem:[#allocation60_spill] sm:$0xff] }
 0x975   : > { %v5977_v41 = vpop.f32.mrf.mxu0 }
 0x976   : > { %v6051_v30 = vadd.f32 %v5977_v41, %v13783_v34  ;;  %v13788_v34 = vld [vmem:[#allocation70_spill] sm:$0xff] }
 0x977   : > { %v6379_v39 = vpop.f32.mrf.mxu3 }
 0x978   : > { %8035 = vmatmul.msk.bf16.gmra.mxu0 %vm3160_vm6, %v13782_v42  ;;  %v12726_v20 = vadd.f32 %v6379_v39, %v6324_v51  ;;  %v6194_v2 = vadd.f32 %v6120_v61, %v6051_v30  ;;  %8079 = vmatmul.msk.bf16.gmra.mxu2 %vm3160_vm6, %v13784_v18  ;;  %v13787_v51 = vld [vmem:[#allocation69_spill] sm:$0xff]  ;;  %v13789_v18 = vld [vmem:[#allocation90_spill] sm:$0xff] }
 0x979   : > { %v6122_v19 = vpop.f32.mrf.mxu1 }
 0x97b   : > { %v6252_v44 = vpop.f32.mrf.mxu2 }
 0x97c   : > { %v6326_v23 = vadd.f32 %v6252_v44, %v6194_v2 }
 0x97d   : > { %v5979_v0 = vpop.f32.mrf.mxu0 }
 0x97e   : > { %v6052_v10 = vadd.f32 %v5979_v0, %v13785_v35  ;;  %v13790_v35 = vld [vmem:[#allocation50_spill] sm:$0xff] }
 0x97f   : > { %v6381_v33 = vpop.f32.mrf.mxu3 }
 0x980   : > { %v12731_v49 = vadd.f32 %v6381_v33, %v6325_v50  ;;  %v6195_v26 = vadd.f32 %v6122_v19, %v6052_v10 }
 0x981   : > { %v6125_v61 = vpop.f32.mrf.mxu1 }
 0x983   : > { %v6254_v58 = vpop.f32.mrf.mxu2 }
 0x984   : > { %8058 = vmatmul.msk.bf16.gmra.mxu1 %vm3160_vm6, %v13786_v8  ;;  %8101 = vmatmul.msk.bf16.gmra.mxu3 %vm3160_vm6, %v13787_v51  ;;  %v6327_v42 = vadd.f32 %v6254_v58, %v6195_v26  ;;  %v13791_v8 = vld [vmem:[#allocation59_spill] sm:$0xff] }
 0x985   : > { %v5982_v41 = vpop.f32.mrf.mxu0 }
 0x986   : > { %v6053_v30 = vadd.f32 %v5982_v41, %v13788_v34 }
 0x987   : > { %v6384_v39 = vpop.f32.mrf.mxu3 }
 0x988   : > { %8036 = vmatmul.msk.bf16.gmra.mxu0 %vm3160_vm6, %v13787_v51  ;;  %v12740_v2 = vadd.f32 %v6384_v39, %v6326_v23  ;;  %v6196_v50 = vadd.f32 %v6125_v61, %v6053_v30  ;;  %8080 = vmatmul.msk.bf16.gmra.mxu2 %vm3160_vm6, %v13789_v18  ;;  %v13792_v23 = vld [vmem:[#allocation33_spill] sm:$0xff]  ;;  %v13793_v30 = vld [vmem:[#allocation92_spill] sm:$0xff] }
 0x989   : > { %v6127_v33 = vpop.f32.mrf.mxu1 }
 0x98b   : > { %v6257_v19 = vpop.f32.mrf.mxu2 }
 0x98c   : > { %v6328_v44 = vadd.f32 %v6257_v19, %v6196_v50 }
 0x98d   : > { %v5984_v0 = vpop.f32.mrf.mxu0 }
 0x98e   : > { %v6054_v10 = vadd.f32 %v5984_v0, %v13790_v35  ;;  %v13795_v0 = vld [vmem:[#allocation14_spill] sm:$0xff] }
 0x98f   : > { %v6386_v26 = vpop.f32.mrf.mxu3 }
 0x990   : > { %v12745_v58 = vadd.f32 %v6386_v26, %v6327_v42  ;;  %v6197_v41 = vadd.f32 %v6127_v33, %v6054_v10  ;;  %v13794_v42 = vld [vmem:[#allocation91_spill] sm:$0xff] }
 0x993   : > { %v6259_v34 = vpop.f32.mrf.mxu2 }
 0x994   : > { %8059 = vmatmul.msk.bf16.gmra.mxu1 %vm3160_vm6, %v13791_v8  ;;  %8102 = vmatmul.msk.bf16.gmra.mxu3 %vm3160_vm6, %v13792_v23  ;;  %v6329_v51 = vadd.f32 %v6259_v34, %v6197_v41 }
 0x995   : > { %v5987_v61 = vpop.f32.mrf.mxu0 }
 0x996   : > { %v12752_v39 = vadd.f32 %v5987_v61, %v13793_v30 }
 0x997   : > { %v6389_v50 = vpop.f32.mrf.mxu3 }
 0x998   : > { %8037 = vmatmul.msk.bf16.gmra.mxu0 %vm3160_vm6, %v13792_v23  ;;  %v12756_v18 = vadd.f32 %v6389_v50, %v6328_v44  ;;  %8081 = vmatmul.msk.bf16.gmra.mxu2 %vm3160_vm6, %v13794_v42  ;;  %v13797_v42 = vld [vmem:[#allocation41_spill] sm:$0xff] }
 0x99d   : > { %v5989_v19 = vpop.f32.mrf.mxu0 }
 0x99e   : > { %v12761_v35 = vadd.f32 %v5989_v19, %v13795_v0 }
 0x99f   : > { %v6391_v10 = vpop.f32.mrf.mxu3 }
 0x9a0   : > { %v12763_v33 = vadd.f32 %v6391_v10, %v6329_v51 }
 0x9a4   : > { %8060 = vmatmul.msk.bf16.gmra.mxu1 %vm3160_vm6, %v12522_v1  ;;  %8103 = vmatmul.msk.bf16.gmra.mxu3 %vm3160_vm6, %v12520_v62 }
 0x9a5   : > { %v5992_v26 = vpop.f32.mrf.mxu0 }
 0x9a6   : > { %v12770_v44 = vadd.f32 %v5992_v26, %v12527_v17 }
 0x9a8   : > { %8038 = vmatmul.msk.bf16.gmra.mxu0 %vm3160_vm6, %v12520_v62  ;;  %8082 = vmatmul.msk.bf16.gmra.mxu2 %vm3160_vm6, %v12553_v47  ;;  %v7121_v47 = vld [vmem:[%s13276_s9 + $0x8] sm:$0xf] }
 0x9a9   : > { %v7131_v51 = vunpack.c.l.b16 %v7121_v47 }
 0x9ab   : > { %v7133_v61 = vpack.c.b16 %v7131_v51, %v7131_v51 }
 0x9ad   : > { %v5994_v41 = vpop.f32.mrf.mxu0  ;;  %v7185_v30 = vsel %vm1181_vm1, %v7133_v61, 0 }
 0x9ae   : > { %v12777_v34 = vadd.f32 %v5994_v41, %v12547_v57  ;;  %7193 = vmatpush.bf16.msrb.mxu1 %v7185_v30 }
 0x9b4   : > { %8061 = vmatmul.msk.bf16.gmra.mxu1 %vm3160_vm6, %v12565_v36  ;;  %8104 = vmatmul.msk.bf16.gmra.mxu3 %vm3160_vm6, %v12563_v55 }
 0x9b5   : > { %v5997_v23 = vpop.f32.mrf.mxu0 }
 0x9b6   : > { %v12784_v17 = vadd.f32 %v5997_v23, %v12569_v52 }
 0x9b8   : > { %8039 = vmatmul.msk.bf16.gmra.mxu0 %vm3160_vm6, %v12563_v55  ;;  %8083 = vmatmul.msk.bf16.gmra.mxu2 %vm3160_vm6, %v12582_v14 }
 0x9bd   : > { %v5999_v62 = vpop.f32.mrf.mxu0 }
 0x9be   : > { %v12791_v57 = vadd.f32 %v5999_v62, %v12579_v27  ;;  %v13796_v27 = vld [vmem:[#allocation63_spill] sm:$0xff] }
 0x9c4   : > { %8062 = vmatmul.msk.bf16.gmra.mxu1 %vm3160_vm6, %v12590_v46  ;;  %8105 = vmatmul.msk.bf16.gmra.mxu3 %vm3160_vm6, %v12598_v59 }
 0x9c5   : > { %v6002_v55 = vpop.f32.mrf.mxu0 }
 0x9c6   : > { %v12802_v52 = vadd.f32 %v6002_v55, %v12594_v60  ;;  %v12886_v55 = vld [vmem:[%s13275_s8] ss:$0 sm:$0xff] }
 0x9c8   : > { %8040 = vmatmul.msk.bf16.gmra.mxu0 %vm3160_vm6, %v12598_v59  ;;  %8084 = vmatmul.msk.bf16.gmra.mxu2 %vm3160_vm6, %v13796_v27 }
 0x9cd   : > { %v6004_v14 = vpop.f32.mrf.mxu0 }
 0x9ce   : > { %v12809_v50 = vadd.f32 %v6004_v14, %v12602_v13  ;;  %v6130_v14 = vpop.f32.mrf.mxu1 }
 0x9d4   : > { %8106 = vmatmul.msk.bf16.gmra.mxu3 %vm3160_vm6, %v13797_v42  ;;  %v6262_v42 = vpop.f32.mrf.mxu2 }
 0x9d5   : > { %v6007_v19 = vpop.f32.mrf.mxu0 }
 0x9d6   : > { %v12814_v0 = vadd.f32 %v6007_v19, %v12608_v53 }
 0x9d8   : > { %8113 = vmatmul.msk.bf16.vlgmr.msrb.gmra.mxu0 %vm3160_vm6, %v12010_v37 }
 0x9dd   : > { %v6009_v60 = vpop.f32.mrf.mxu0 }
 0x9de   : > { %v12819_v59 = vadd.f32 %v6009_v60, %v12614_v40 }
 0x9e5   : > { %v6012_v10 = vpop.f32.mrf.mxu0 }
 0x9e6   : > { %v12822_v26 = vadd.f32 %v6012_v10, %v12620_v24  ;;  %v6394_v10 = vpop.f32.mrf.mxu3 }
 0x9e8   : > { %8114 = vmatmul.msk.bf16.gmra.mxu0 %vm3160_vm6, %v12057_v45 }
 0x9ed   : > { %v6014_v13 = vpop.f32.mrf.mxu0 }
 0x9ee   : > { %v12827_v41 = vadd.f32 %v6014_v13, %v12626_v22 }
 0x9f5   : > { %v6017_v53 = vpop.f32.mrf.mxu0 }
 0x9f6   : > { %v12830_v23 = vadd.f32 %v6017_v53, %v12632_v11 }
 0x9f8   : > { %8115 = vmatmul.msk.bf16.gmra.mxu0 %vm3160_vm6, %v12104_v25 }
 0x9fd   : > { %v6019_v37 = vpop.f32.mrf.mxu0 }
 0x9fe   : > { %v12835_v40 = vadd.f32 %v6019_v37, %v12638_v5  ;;  %v6264_v37 = vpop.f32.mrf.mxu2 }
 0xa05   : > { %v6022_v24 = vpop.f32.mrf.mxu0 }
 0xa06   : > { %v12838_v62 = vadd.f32 %v6022_v24, %v12644_v63 }
 0xa08   : > { %8116 = vmatmul.msk.bf16.gmra.mxu0 %vm3160_vm6, %v12155_v4 }
 0xa0d   : > { %v6024_v45 = vpop.f32.mrf.mxu0 }
 0xa0e   : > { %v12843_v22 = vadd.f32 %v6024_v45, %v12650_v43 }
 0xa15   : > { %v6027_v11 = vpop.f32.mrf.mxu0 }
 0xa16   : > { %v12846_v47 = vadd.f32 %v6027_v11, %v12656_v38 }
 0xa18   : > { %8117 = vmatmul.msk.bf16.gmra.mxu0 %vm3160_vm6, %v12198_v48 }
 0xa1d   : > { %v6029_v25 = vpop.f32.mrf.mxu0 }
 0xa1e   : > { %v12851_v5 = vadd.f32 %v6029_v25, %v12662_v21 }
 0xa25   : > { %v6032_v63 = vpop.f32.mrf.mxu0 }
 0xa26   : > { %v12854_v51 = vadd.f32 %v6032_v63, %v12668_v15  ;;  %v8191_v15 = vld [vmem:[%s13276_s9] sm:$0xff] }
 0xa27   : > { %7194 = vmatpush.bf16.msrb.mxu1 %v8191_v15  ;;  %v6267_v15 = vpop.f32.mrf.mxu2 }
 0xa28   : > { %8118 = vmatmul.msk.bf16.gmra.mxu0 %vm3160_vm6, %v12244_v3 }
 0xa2d   : > { %v6034_v4 = vpop.f32.mrf.mxu0 }
 0xa2e   : > { %v12859_v43 = vadd.f32 %v6034_v4, %v12674_v12 }
 0xa35   : > { %v6037_v38 = vpop.f32.mrf.mxu0 }
 0xa36   : > { %v12862_v61 = vadd.f32 %v6037_v38, %v12680_v56 }
 0xa38   : > { %8119 = vmatmul.msk.bf16.gmra.mxu0 %vm3160_vm6, %v12287_v9 }
 0xa3d   : > { %v6039_v48 = vpop.f32.mrf.mxu0 }
 0xa3e   : > { %v12867_v21 = vadd.f32 %v6039_v48, %v12686_v28 }
 0xa45   : > { %v6042_v3 = vpop.f32.mrf.mxu0 }
 0xa46   : > { %v12873_v12 = vadd.f32 %v6042_v3, %v12695_v7 }
 0xa48   : > { %8120 = vmatmul.msk.bf16.gmra.mxu0 %vm3160_vm6, %v12326_v29 }
 0xa4d   : > { %v6044_v56 = vpop.f32.mrf.mxu0 }
 0xa4e   : > { %v12878_v30 = vadd.f32 %v6044_v56, %v12703_v32  ;;  %v13798_v56 = vld [vmem:[#allocation60_spill] sm:$0xff] }
 0xa55   : > { %v6506_v9 = vpop.f32.mrf.mxu0 }
 0xa56   : > { %v6586_v28 = vadd.f32 %v6506_v9, %v12712_v54  ;;  %v6132_v54 = vpop.f32.mrf.mxu1 }
 0xa58   : > { %8121 = vmatmul.msk.bf16.gmra.mxu0 %vm3160_vm6, %v13779_v31  ;;  %v6622_v27 = vadd.f32 %v12886_v55, %v6586_v28 }
 0xa5a   : > { %v6654_v19 = vmax.f32 %v6622_v27, 0.0  ;;  %v6269_v27 = vpop.f32.mrf.mxu2 }
 0xa5d   : > { %v6508_v7 = vpop.f32.mrf.mxu0 }
 0xa5e   : > { %v6587_v29 = vadd.f32 %v6508_v7, %v12717_v16  ;;  %v6396_v16 = vpop.f32.mrf.mxu3  ;;  %v6135_v38 = vpop.f32.mrf.mxu1 }
 0xa60   : > { %v6623_v32 = vadd.f32 %v12886_v55, %v6587_v29 }
 0xa62   : > { %v6655_v60 = vmax.f32 %v6623_v32, 0.0 }
 0xa64   : > { %v8654_v31 = vpack.i.bf16 %v6655_v60, %v6654_v19 }
 0xa65   : > { %v6511_v13 = vpop.f32.mrf.mxu0 }
 0xa66   : > { %8655 = vrot.lane.b32.xlu1 %v8654_v31, %s13484_s12  ;;  %v6588_v53 = vadd.f32 %v6511_v13, %v12726_v20  ;;  %v6137_v28 = vpop.f32.mrf.mxu1 }
 0xa68   : > { %8122 = vmatmul.msk.bf16.gmra.mxu0 %vm3160_vm6, %v12399_v6  ;;  %v6624_v45 = vadd.f32 %v12886_v55, %v6588_v53  ;;  %v6399_v6 = vpop.f32.mrf.mxu3 }
 0xa6a   : > { %v6656_v63 = vmax.f32 %v6624_v45, 0.0 }
 0xa6d   : > { %v6513_v24 = vpop.f32.mrf.mxu0 }
 0xa6e   : > { %v6589_v11 = vadd.f32 %v6513_v24, %v12731_v49  ;;  %v6140_v53 = vpop.f32.mrf.mxu1 }
 0xa70   : > { %v6625_v25 = vadd.f32 %v12886_v55, %v6589_v11  ;;  %v6401_v32 = vpop.f32.mrf.mxu3 }
 0xa72   : > { %v6657_v4 = vmax.f32 %v6625_v25, 0.0 }
 0xa74   : > { %v8669_v48 = vpack.i.bf16 %v6657_v4, %v6656_v63 }
 0xa75   : > { %v6516_v3 = vpop.f32.mrf.mxu0 }
 0xa76   : > { %8670 = vrot.lane.b32.xlu1 %v8669_v48, %s13484_s12  ;;  %v6590_v20 = vadd.f32 %v6516_v3, %v12740_v2  ;;  %v6272_v2 = vpop.f32.mrf.mxu2  ;;  %v6142_v4 = vpop.f32.mrf.mxu1 }
 0xa78   : > { %8123 = vmatmul.msk.bf16.gmra.mxu0 %vm3160_vm6, %v13798_v56  ;;  %v6626_v49 = vadd.f32 %v12886_v55, %v6590_v20  ;;  %v6404_v45 = vpop.f32.mrf.mxu3  ;;  %v6198_v20 = vadd.f32 %v6130_v14, %v12752_v39 }
 0xa7a   : > { %v6658_v19 = vmax.f32 %v6626_v49, 0.0 }
 0xa7d   : > { %v6518_v9 = vpop.f32.mrf.mxu0 }
 0xa7e   : > { %v6591_v7 = vadd.f32 %v6518_v9, %v12745_v58  ;;  %v6274_v56 = vpop.f32.mrf.mxu2 }
 0xa80   : > { %v6627_v29 = vadd.f32 %v12886_v55, %v6591_v7  ;;  %v6406_v49 = vpop.f32.mrf.mxu3  ;;  %v6330_v7 = vadd.f32 %v6262_v42, %v6198_v20 }
 0xa82   : > { %v6659_v60 = vmax.f32 %v6627_v29, 0.0  ;;  %v6462_v29 = vadd.f32 %v6394_v10, %v6330_v7 }
 0xa84   : > { %v8684_v31 = vpack.i.bf16 %v6659_v60, %v6658_v19 }
 0xa85   : > { %v6521_v13 = vpop.f32.mrf.mxu0 }
 0xa86   : > { %8685 = vrot.lane.b32.xlu1 %v8684_v31, %s13484_s12  ;;  %v6592_v24 = vadd.f32 %v6521_v13, %v12756_v18  ;;  %v6199_v18 = vadd.f32 %v6132_v54, %v12761_v35  ;;  %v6145_v31 = vpop.f32.mrf.mxu1  ;;  %v6277_v13 = vpop.f32.mrf.mxu2  ;;  %v6200_v35 = vadd.f32 %v6135_v38, %v12770_v44 }
 0xa88   : > { %8124 = vmatmul.msk.bf16.gmra.mxu0 %vm3160_vm6, %v13791_v8  ;;  %v6628_v58 = vadd.f32 %v12886_v55, %v6592_v24 }
 0xa8a   : > { %v6660_v48 = vmax.f32 %v6628_v58, 0.0 }
 0xa8d   : > { %v6523_v11 = vpop.f32.mrf.mxu0 }
 0xa8e   : > { %v6593_v25 = vadd.f32 %v6523_v11, %v12763_v33  ;;  %v6331_v33 = vadd.f32 %v6264_v37, %v6199_v18  ;;  %v6409_v11 = vpop.f32.mrf.mxu3  ;;  %v6279_v37 = vpop.f32.mrf.mxu2 }
 0xa90   : > { %v6629_v63 = vadd.f32 %v12886_v55, %v6593_v25  ;;  %v6463_v60 = vadd.f32 %v6396_v16, %v6331_v33  ;;  %v6201_v16 = vadd.f32 %v6137_v28, %v12777_v34  ;;  %v6202_v34 = vadd.f32 %v6140_v53, %v12784_v17 }
 0xa92   : > { %v6661_v3 = vmax.f32 %v6629_v63, 0.0  ;;  %v6332_v63 = vadd.f32 %v6267_v15, %v6200_v35  ;;  %v6333_v20 = vadd.f32 %v6269_v27, %v6201_v16  ;;  %v6203_v27 = vadd.f32 %v6142_v4, %v12791_v57 }
 0xa93   : > { %v6204_v57 = vadd.f32 %v6145_v31, %v12802_v52 }
 0xa94   : > { %v8699_v9 = vpack.i.bf16 %v6661_v3, %v6660_v48  ;;  %v6464_v48 = vadd.f32 %v6399_v6, %v6332_v63 }
 0xa95   : > { %v6526_v8 = vpop.f32.mrf.mxu0  ;;  %v6336_v63 = vadd.f32 %v6277_v13, %v6204_v57 }
 0xa96   : > { %8700 = vrot.lane.b32.xlu1 %v8699_v9, %s13484_s12  ;;  %v6594_v19 = vadd.f32 %v6526_v8, %v6462_v29  ;;  %v6411_v3 = vpop.f32.mrf.mxu3  ;;  %v6465_v8 = vadd.f32 %v6401_v32, %v6333_v20  ;;  %v6282_v29 = vpop.f32.mrf.mxu2  ;;  %v13799_v20 = vld [vmem:[#allocation68_spill] sm:$0xff] }
 0xa98   : > { %8125 = vmatmul.msk.bf16.gmra.mxu0 %vm3160_vm6, %v12522_v1  ;;  %v6630_v39 = vadd.f32 %v12886_v55, %v6594_v19  ;;  %v6147_v1 = vpop.f32.mrf.mxu1 }
 0xa99   : > { %v6205_v16 = vadd.f32 %v6147_v1, %v12809_v50  ;;  %v8651_v1 = vpop.permute.xlu0 %8650 }
 0xa9a   : > { %v6662_v58 = vmax.f32 %v6630_v39, 0.0 }
 0xa9d   : > { %v6528_v24 = vpop.f32.mrf.mxu0 }
 0xa9e   : > { %v6595_v14 = vadd.f32 %v6528_v24, %v6463_v60  ;;  %v6414_v60 = vpop.f32.mrf.mxu3  ;;  %v6335_v24 = vadd.f32 %v6274_v56, %v6203_v27  ;;  %v8652_v27 = vunpack.i.l.bf16 %v8651_v1 }
 0xaa0   : > { %v6631_v42 = vadd.f32 %v12886_v55, %v6595_v14  ;;  %v6150_v18 = vpop.f32.mrf.mxu1 }
 0xaa2   : > { %v6663_v25 = vmax.f32 %v6631_v42, 0.0  ;;  %v6284_v42 = vpop.f32.mrf.mxu2 }
 0xaa4   : > { %v8714_v10 = vpack.i.bf16 %v6663_v25, %v6662_v58  ;;  %v6467_v58 = vadd.f32 %v6406_v49, %v6335_v24 }
 0xaa5   : > { %v6531_v54 = vpop.f32.mrf.mxu0 }
 0xaa6   : > { %8715 = vrot.lane.b32.xlu1 %v8714_v10, %s13484_s12  ;;  %v6596_v9 = vadd.f32 %v6531_v54, %v6464_v48  ;;  %v6416_v25 = vpop.f32.mrf.mxu3  ;;  %v6468_v48 = vadd.f32 %v6409_v11, %v6336_v63 }
 0xaa8   : > { %8126 = vmatmul.msk.bf16.gmra.mxu0 %vm3160_vm6, %v12565_v36  ;;  %v6632_v44 = vadd.f32 %v12886_v55, %v6596_v9  ;;  %v6334_v36 = vadd.f32 %v6272_v2, %v6202_v34  ;;  %v6152_v39 = vpop.f32.mrf.mxu1  ;;  %v6337_v9 = vadd.f32 %v6279_v37, %v6205_v16  ;;  %v6206_v34 = vadd.f32 %v6150_v18, %v12814_v0  ;;  %v13802_v18 = vld [vmem:[#allocation30_spill] sm:$0xff] }
 0xaa9   : > { %v6207_v24 = vadd.f32 %v6152_v39, %v12819_v59 }
 0xaaa   : > { %v6664_v33 = vmax.f32 %v6632_v44, 0.0  ;;  %v6466_v32 = vadd.f32 %v6404_v45, %v6334_v36  ;;  %v6469_v52 = vadd.f32 %v6411_v3, %v6337_v9  ;;  %v8653_v36 = vunpack.i.h.bf16 %v8651_v1 }
 0xaad   : > { %v6533_v7 = vpop.f32.mrf.mxu0 }
 0xaae   : > { %v6597_v38 = vadd.f32 %v6533_v7, %v6465_v8  ;;  %v12939_v49 = vpop.f32.mrf.mxu3 }
 0xab0   : > { %v6633_v15 = vadd.f32 %v12886_v55, %v6597_v38  ;;  %v12934_v45 = vpop.f32.mrf.mxu1 }
 0xab2   : > { %v6665_v19 = vmax.f32 %v6633_v15, 0.0 }
 0xab4   : > { %v8729_v6 = vpack.i.bf16 %v6665_v19, %v6664_v33  ;;  %v8646_v19 = vpop.permute.xlu2 %8645 }
 0xab5   : > { %v6536_v28 = vpop.f32.mrf.mxu0  ;;  %v8647_v3 = vunpack.i.l.bf16 %v8646_v19 }
 0xab6   : > { %8730 = vrot.lane.b32.xlu1 %v8729_v6, %s13484_s12  ;;  %v6598_v14 = vadd.f32 %v6536_v28, %v6466_v32  ;;  %v12948_v33 = vpop.f32.mrf.mxu3  ;;  %v8648_v6 = vunpack.i.h.bf16 %v8646_v19  ;;  %v6338_v32 = vadd.f32 %v6282_v29, %v6206_v34  ;;  %v8666_v19 = vpop.permute.xlu0 %8665 }
 0xab8   : > { %8127 = vmatmul.msk.bf16.gmra.mxu0 %vm3160_vm6, %v12590_v46  ;;  %v6634_v17 = vadd.f32 %v12886_v55, %v6598_v14  ;;  %v12936_v46 = vpop.f32.mrf.mxu2  ;;  %v6157_v7 = vpop.f32.mrf.mxu1  ;;  %v6470_v14 = vadd.f32 %v6414_v60, %v6338_v32  ;;  %v6339_v60 = vadd.f32 %v6284_v42, %v6207_v24 }
 0xaba   : > { %v6666_v10 = vmax.f32 %v6634_v17, 0.0  ;;  %v13800_v17 = vld [vmem:[#allocation28_spill] sm:$0xff] }
 0xabd   : > { %v6538_v35 = vpop.f32.mrf.mxu0 }
 0xabe   : > { %v6599_v53 = vadd.f32 %v6538_v35, %v6467_v58 }
 0xac0   : > { %v6635_v2 = vadd.f32 %v12886_v55, %v6599_v53  ;;  %v12945_v15 = vpop.f32.mrf.mxu2  ;;  %v12953_v58 = vpop.f32.mrf.mxu1  ;;  %v13801_v53 = vmax.f32 %v13800_v17, 0.0 }
 0xac2   : > { %v6667_v54 = vmax.f32 %v6635_v2, 0.0  ;;  %v7007_v0 = vsel %vm1132_vm4, %v13801_v53, %v8648_v6  ;;  %v13803_v2 = vmax.f32 %v13802_v18, 0.0 }
 0xac3   : > { %v7039_v59 = vsel %vm3160_vm6, %v7007_v0, %v8653_v36 }
 0xac4   : > { %v8744_v4 = vpack.i.bf16 %v6667_v54, %v6666_v10  ;;  %v7006_v10 = vsel %vm1132_vm4, %v13803_v2, %v8647_v3  ;;  %v8668_v3 = vunpack.i.h.bf16 %v8666_v19 }
 0xac5   : > { %v6541_v56 = vpop.f32.mrf.mxu0 }
 0xac6   : > { %8745 = vrot.lane.b32.xlu1 %v8744_v4, %s13484_s12  ;;  %v6600_v8 = vadd.f32 %v6541_v56, %v6468_v48  ;;  %v7038_v4 = vsel %vm3160_vm6, %v7006_v10, %v8652_v27  ;;  %v12965_v56 = vpop.f32.mrf.mxu3  ;;  %v6471_v48 = vadd.f32 %v6416_v25, %v6339_v60  ;;  %v6209_v27 = vadd.f32 %v6157_v7, %v12827_v41 }
 0xac8   : > { %8128 = vmatmul.msk.bf16.gmra.mxu0 %vm3160_vm6, %v13799_v20  ;;  %v6636_v44 = vadd.f32 %v12886_v55, %v6600_v8  ;;  %v12961_v54 = vpop.f32.mrf.mxu2  ;;  %v6162_v42 = vpop.f32.mrf.mxu1  ;;  %v6341_v10 = vadd.f32 %v12945_v15, %v6209_v27 }
 0xaca   : > { %v6668_v50 = vmax.f32 %v6636_v44, 0.0  ;;  %v8661_v44 = vpop.permute.xlu2 %8660 }
 0xacb   : > { %v8663_v25 = vunpack.i.h.bf16 %v8661_v44  ;;  %v8662_v34 = vunpack.i.l.bf16 %v8661_v44 }
 0xacd   : > { %v6543_v31 = vpop.f32.mrf.mxu0 }
 0xace   : > { %v6601_v38 = vadd.f32 %v6543_v31, %v6469_v52 }
 0xad0   : > { %v6637_v13 = vadd.f32 %v12886_v55, %v6601_v38 }
 0xad2   : > { %v6669_v11 = vmax.f32 %v6637_v13, 0.0  ;;  %v8676_v15 = vpop.permute.xlu2 %8675 }
 0xad3   : > { %v8677_v44 = vunpack.i.l.bf16 %v8676_v15 }
 0xad4   : > { %v8759_v37 = vpack.i.bf16 %v6669_v11, %v6668_v50  ;;  %v6294_v50 = vpop.f32.mrf.mxu2  ;;  %v6208_v11 = vadd.f32 %v12934_v45, %v12822_v26  ;;  %v13806_v45 = vld [vmem:[#allocation12_spill] sm:$0xff] }
 0xad5   : > { %v6546_v28 = vpop.f32.mrf.mxu0  ;;  %v13807_v17 = vmax.f32 %v13806_v45, 0.0 }
 0xad6   : > { %8760 = vrot.lane.b32.xlu1 %v8759_v37, %s13484_s12  ;;  %v6602_v39 = vadd.f32 %v6546_v28, %v6470_v14  ;;  %v6426_v37 = vpop.f32.mrf.mxu3  ;;  %v8667_v28 = vunpack.i.l.bf16 %v8666_v19  ;;  %v6340_v36 = vadd.f32 %v12936_v46, %v6208_v11  ;;  %v13804_v14 = vld [vmem:[#allocation10_spill] sm:$0xff] }
 0xad7   : > { %v7008_v53 = vsel %vm1132_vm4, %v13807_v17, %v8662_v34  ;;  %v6211_v34 = vadd.f32 %v6162_v42, %v12835_v40 }
 0xad8   : > { %v8656_v35 = vpop.permute.xlu1 %8655  ;;  %v6638_v8 = vadd.f32 %v12886_v55, %v6602_v39  ;;  %v6472_v32 = vadd.f32 %v12939_v49, %v6340_v36  ;;  %v7040_v2 = vsel %vm3160_vm6, %v7008_v53, %v8667_v28  ;;  %v13808_v28 = vld [vmem:[#allocation22_spill] sm:$0xff] }
 0xad9   : > { %v8658_v29 = vunpack.i.h.bf16 %v8656_v35  ;;  %v8657_v57 = vunpack.i.l.bf16 %v8656_v35  ;;  %v13805_v35 = vmax.f32 %v13804_v14, 0.0  ;;  %v13809_v36 = vmax.f32 %v13808_v28, 0.0 }
 0xada   : > { %v6670_v38 = vmax.f32 %v6638_v8, 0.0  ;;  %v8681_v8 = vpop.permute.xlu0 %8680  ;;  %v6343_v45 = vadd.f32 %v6294_v50, %v6211_v34 }
 0xadb   : > { %v7072_v63 = vsel %vm7070_vm7, %v7039_v59, %v8658_v29  ;;  %v7071_v16 = vsel %vm7070_vm7, %v7038_v4, %v8657_v57  ;;  %v7009_v26 = vsel %vm1132_vm4, %v13805_v35, %v8663_v25  ;;  %v6473_v29 = vadd.f32 %v12948_v33, %v6341_v10  ;;  %v6165_v57 = vpop.f32.mrf.mxu1 }
 0xadc   : > { %v7103_v20 = vpack.c.bf16 %v7072_v63, %v7071_v16  ;;  %v7041_v46 = vsel %vm3160_vm6, %v7009_v26, %v8668_v3  ;;  %v6297_v59 = vpop.f32.mrf.mxu2  ;;  %v8682_v19 = vunpack.i.l.bf16 %v8681_v8  ;;  %v6475_v17 = vadd.f32 %v6426_v37, %v6343_v45 }
 0xadd   : > { %v6548_v9 = vpop.f32.mrf.mxu0 }
 0xade   : > { %v6603_v52 = vadd.f32 %v6548_v9, %v6471_v48  ;;  %8133 = vmatmul.msk.bf16.vlgmr.msrb.gmra.mxu1 %vm7135_vm8, %v7103_v20  ;;  %v6429_v16 = vpop.f32.mrf.mxu3 }
 0xae0   : > { %v6639_v31 = vadd.f32 %v12886_v55, %v6603_v52  ;;  %v6210_v52 = vadd.f32 %v12953_v58, %v12830_v23  ;;  %v13810_v58 = vld [vmem:[#allocation24_spill] sm:$0xff] }
 0xae1   : > { %v13811_v27 = vmax.f32 %v13810_v58, 0.0 }
 0xae2   : > { %v6671_v13 = vmax.f32 %v6639_v31, 0.0  ;;  %v8678_v31 = vunpack.i.h.bf16 %v8676_v15  ;;  %v6342_v11 = vadd.f32 %v12961_v54, %v6210_v52 }
 0xae4   : > { %v8774_v1 = vpack.i.bf16 %v6671_v13, %v6670_v38  ;;  %v8683_v13 = vunpack.i.h.bf16 %v8681_v8  ;;  %v6299_v25 = vpop.f32.mrf.mxu2  ;;  %v7011_v23 = vsel %vm1132_vm4, %v13809_v36, %v8678_v31  ;;  %v13812_v31 = vld [vmem:[#allocation31_spill] sm:$0xff] }
 0xae5   : > { %v6551_v6 = vpop.f32.mrf.mxu0 }
 0xae6   : > { %8775 = vrot.lane.b32.xlu1 %v8774_v1, %s13484_s12  ;;  %v6604_v41 = vadd.f32 %v6551_v6, %v6472_v32  ;;  %v6167_v1 = vpop.f32.mrf.mxu1  ;;  %v6474_v6 = vadd.f32 %v12965_v56, %v6342_v11  ;;  %v7010_v32 = vsel %vm1132_vm4, %v13811_v27, %v8677_v44  ;;  %v7043_v26 = vsel %vm3160_vm6, %v7011_v23, %v8683_v13  ;;  %v13814_v13 = vld [vmem:[#allocation34_spill] sm:$0xff] }
 0xae7   : > { %v7042_v35 = vsel %vm3160_vm6, %v7010_v32, %v8682_v19  ;;  %v6213_v8 = vadd.f32 %v6167_v1, %v12843_v22  ;;  %v13813_v44 = vmax.f32 %v13812_v31, 0.0  ;;  %v13815_v19 = vmax.f32 %v13814_v13, 0.0 }
 0xae8   : > { %v8671_v24 = vpop.permute.xlu1 %8670  ;;  %v6640_v39 = vadd.f32 %v12886_v55, %v6604_v41 }
 0xae9   : > { %v8673_v0 = vunpack.i.h.bf16 %v8671_v24  ;;  %v8672_v18 = vunpack.i.l.bf16 %v8671_v24  ;;  %v6431_v24 = vpop.f32.mrf.mxu3 }
 0xaea   : > { %v6672_v20 = vmax.f32 %v6640_v39, 0.0 }
 0xaeb   : > { %v7074_v49 = vsel %vm7070_vm7, %v7041_v46, %v8673_v0  ;;  %v7073_v7 = vsel %vm7070_vm7, %v7040_v2, %v8672_v18 }
 0xaec   : > { %v7104_v4 = vpack.c.bf16 %v7074_v49, %v7073_v7  ;;  %v6302_v41 = vpop.f32.mrf.mxu2  ;;  %v8691_v49 = vpop.permute.xlu2 %8690 }
 0xaed   : > { %v6553_v60 = vpop.f32.mrf.mxu0  ;;  %v8693_v37 = vunpack.i.h.bf16 %v8691_v49 }
 0xaee   : > { %v6605_v63 = vadd.f32 %v6553_v60, %v6473_v29  ;;  %8134 = vmatmul.msk.bf16.gmra.mxu1 %vm7135_vm8, %v7104_v4  ;;  %v6170_v46 = vpop.f32.mrf.mxu1  ;;  %v8696_v29 = vpop.permute.xlu0 %8695  ;;  %v6212_v60 = vadd.f32 %v6165_v57, %v12838_v62 }
 0xaef   : > { %v8698_v15 = vunpack.i.h.bf16 %v8696_v29 }
 0xaf0   : > { %v6641_v48 = vadd.f32 %v12886_v55, %v6605_v63  ;;  %v8692_v63 = vunpack.i.l.bf16 %v8691_v49 }
 0xaf1   : > { %v6434_v4 = vpop.f32.mrf.mxu3 }
 0xaf2   : > { %v6673_v9 = vmax.f32 %v6641_v48, 0.0  ;;  %v7012_v62 = vsel %vm1132_vm4, %v13815_v19, %v8692_v63 }
 0xaf4   : > { %v8789_v33 = vpack.i.bf16 %v6673_v9, %v6672_v20  ;;  %v8697_v20 = vunpack.i.l.bf16 %v8696_v29  ;;  %v6344_v9 = vadd.f32 %v6297_v59, %v6212_v60  ;;  %v6304_v22 = vpop.f32.mrf.mxu2  ;;  %v13816_v60 = vld [vmem:[#allocation13_spill] sm:$0xff] }
 0xaf5   : > { %v6556_v38 = vpop.f32.mrf.mxu0 }
 0xaf6   : > { %8790 = vrot.lane.b32.xlu1 %v8789_v33, %s13484_s12  ;;  %v6606_v40 = vadd.f32 %v6556_v38, %v6474_v6  ;;  %v6476_v52 = vadd.f32 %v6429_v16, %v6344_v9  ;;  %v7013_v38 = vsel %vm1132_vm4, %v13813_v44, %v8693_v37  ;;  %v7044_v34 = vsel %vm3160_vm6, %v7012_v62, %v8697_v20  ;;  %v8711_v45 = vpop.permute.xlu0 %8710 }
 0xaf7   : > { %v7045_v59 = vsel %vm3160_vm6, %v7013_v38, %v8698_v15  ;;  %v6345_v6 = vadd.f32 %v6299_v25, %v6213_v8 }
 0xaf8   : > { %v8686_v3 = vpop.permute.xlu1 %8685  ;;  %v6642_v18 = vadd.f32 %v12886_v55, %v6606_v40  ;;  %v6214_v40 = vadd.f32 %v6170_v46, %v12846_v47  ;;  %v13818_v46 = vld [vmem:[#allocation15_spill] sm:$0xff] }
 0xaf9   : > { %v8688_v14 = vunpack.i.h.bf16 %v8686_v3  ;;  %v8687_v54 = vunpack.i.l.bf16 %v8686_v3  ;;  %v6172_v3 = vpop.f32.mrf.mxu1  ;;  %v6477_v36 = vadd.f32 %v6431_v24, %v6345_v6  ;;  %v6436_v58 = vpop.f32.mrf.mxu3  ;;  %v13819_v37 = vmax.f32 %v13818_v46, 0.0 }
 0xafa   : > { %v6674_v7 = vmax.f32 %v6642_v18, 0.0  ;;  %v8713_v18 = vunpack.i.h.bf16 %v8711_v45 }
 0xafb   : > { %v7076_v56 = vsel %vm7070_vm7, %v7043_v26, %v8688_v14  ;;  %v7075_v42 = vsel %vm7070_vm7, %v7042_v35, %v8687_v54  ;;  %v8706_v35 = vpop.permute.xlu2 %8705 }
 0xafc   : > { %v7105_v53 = vpack.c.bf16 %v7076_v56, %v7075_v42  ;;  %v8707_v24 = vunpack.i.l.bf16 %v8706_v35 }
 0xafd   : > { %v6558_v0 = vpop.f32.mrf.mxu0 }
 0xafe   : > { %v6607_v2 = vadd.f32 %v6558_v0, %v6475_v17  ;;  %8135 = vmatmul.msk.bf16.gmra.mxu1 %vm7135_vm8, %v7105_v53  ;;  %v8708_v17 = vunpack.i.h.bf16 %v8706_v35  ;;  %v6307_v53 = vpop.f32.mrf.mxu2  ;;  %v7014_v63 = vsel %vm1132_vm4, %v13819_v37, %v8707_v24  ;;  %v8726_v6 = vpop.permute.xlu0 %8725  ;;  %v13820_v35 = vld [vmem:[#allocation6_spill] sm:$0xff] }
 0xb00   : > { %v6643_v10 = vadd.f32 %v12886_v55, %v6607_v2  ;;  %v8712_v2 = vunpack.i.l.bf16 %v8711_v45  ;;  %v13822_v45 = vld [vmem:[#allocation5_spill] sm:$0xff] }
 0xb01   : > { %v6175_v56 = vpop.f32.mrf.mxu1  ;;  %v6439_v49 = vpop.f32.mrf.mxu3 }
 0xb02   : > { %v6675_v50 = vmax.f32 %v6643_v10, 0.0  ;;  %v6346_v10 = vadd.f32 %v6302_v41, %v6214_v40  ;;  %v7046_v20 = vsel %vm3160_vm6, %v7014_v63, %v8712_v2 }
 0xb04   : > { %v8804_v39 = vpack.i.bf16 %v6675_v50, %v6674_v7  ;;  %v6215_v7 = vadd.f32 %v6172_v3, %v12851_v5  ;;  %v6478_v50 = vadd.f32 %v6434_v4, %v6346_v10  ;;  %v6216_v3 = vadd.f32 %v6175_v56, %v12854_v51 }
 0xb05   : > { %v6561_v48 = vpop.f32.mrf.mxu0  ;;  %v13823_v51 = vmax.f32 %v13822_v45, 0.0 }
 0xb06   : > { %8805 = vrot.lane.b32.xlu1 %v8804_v39, %s13484_s12  ;;  %v6608_v28 = vadd.f32 %v6561_v48, %v6476_v52  ;;  %v13817_v39 = vmax.f32 %v13816_v60, 0.0  ;;  %v6347_v9 = vadd.f32 %v6304_v22, %v6215_v7  ;;  %v6309_v19 = vpop.f32.mrf.mxu2 }
 0xb08   : > { %v8701_v33 = vpop.permute.xlu1 %8700  ;;  %v6644_v32 = vadd.f32 %v12886_v55, %v6608_v28  ;;  %v7015_v47 = vsel %vm1132_vm4, %v13817_v39, %v8708_v17  ;;  %v6479_v52 = vadd.f32 %v6436_v58, %v6347_v9  ;;  %v6348_v58 = vadd.f32 %v6307_v53, %v6216_v3 }
 0xb09   : > { %v8703_v57 = vunpack.i.h.bf16 %v8701_v33  ;;  %v8702_v11 = vunpack.i.l.bf16 %v8701_v33  ;;  %v7047_v41 = vsel %vm3160_vm6, %v7015_v47, %v8713_v18  ;;  %v6177_v44 = vpop.f32.mrf.mxu1 }
 0xb0a   : > { %v6676_v25 = vmax.f32 %v6644_v32, 0.0  ;;  %v6217_v32 = vadd.f32 %v6177_v44, %v12859_v43 }
 0xb0b   : > { %v7078_v16 = vsel %vm7070_vm7, %v7045_v59, %v8703_v57  ;;  %v7077_v1 = vsel %vm7070_vm7, %v7044_v34, %v8702_v11  ;;  %v6441_v57 = vpop.f32.mrf.mxu3  ;;  %v8721_v11 = vpop.permute.xlu2 %8720 }
 0xb0c   : > { %v7106_v23 = vpack.c.bf16 %v7078_v16, %v7077_v1  ;;  %v8723_v22 = vunpack.i.h.bf16 %v8721_v11  ;;  %v8722_v16 = vunpack.i.l.bf16 %v8721_v11  ;;  %v13826_v11 = vld [vmem:[#allocation8_spill] sm:$0xff] }
 0xb0d   : > { %v6563_v27 = vpop.f32.mrf.mxu0 }
 0xb0e   : > { %v6609_v14 = vadd.f32 %v6563_v27, %v6477_v36  ;;  %8136 = vmatmul.msk.bf16.gmra.mxu1 %vm7135_vm8, %v7106_v23  ;;  %v8728_v36 = vunpack.i.h.bf16 %v8726_v6  ;;  %v8727_v23 = vunpack.i.l.bf16 %v8726_v6  ;;  %v7016_v40 = vsel %vm1132_vm4, %v13823_v51, %v8722_v16  ;;  %v6312_v56 = vpop.f32.mrf.mxu2 }
 0xb10   : > { %v6645_v54 = vadd.f32 %v12886_v55, %v6609_v14  ;;  %v6480_v14 = vadd.f32 %v6439_v49, %v6348_v58  ;;  %v7048_v24 = vsel %vm3160_vm6, %v7016_v40, %v8727_v23 }
 0xb11   : > { %v6180_v27 = vpop.f32.mrf.mxu1 }
 0xb12   : > { %v6677_v26 = vmax.f32 %v6645_v54, 0.0 }
 0xb13   : > { %v6444_v43 = vpop.f32.mrf.mxu3  ;;  %v8736_v47 = vpop.permute.xlu2 %8735 }
 0xb14   : > { %v8819_v42 = vpack.i.bf16 %v6677_v26, %v6676_v25  ;;  %v13821_v25 = vmax.f32 %v13820_v35, 0.0  ;;  %v8738_v9 = vunpack.i.h.bf16 %v8736_v47 }
 0xb15   : > { %v6566_v0 = vpop.f32.mrf.mxu0 }
 0xb16   : > { %8820 = vrot.lane.b32.xlu1 %v8819_v42, %s13484_s12  ;;  %v6610_v8 = vadd.f32 %v6566_v0, %v6478_v50  ;;  %v7017_v26 = vsel %vm1132_vm4, %v13821_v25, %v8723_v22  ;;  %v6349_v0 = vadd.f32 %v6309_v19, %v6217_v32  ;;  %v13824_v19 = vld [vmem:[#allocation9_spill] sm:$0xff] }
 0xb17   : > { %v7049_v53 = vsel %vm3160_vm6, %v7017_v26, %v8728_v36 }
 0xb18   : > { %v8716_v29 = vpop.permute.xlu1 %8715  ;;  %v6646_v38 = vadd.f32 %v12886_v55, %v6610_v8  ;;  %v6481_v49 = vadd.f32 %v6441_v57, %v6349_v0  ;;  %v8737_v8 = vunpack.i.l.bf16 %v8736_v47 }
 0xb19   : > { %v8718_v48 = vunpack.i.h.bf16 %v8716_v29  ;;  %v8717_v15 = vunpack.i.l.bf16 %v8716_v29  ;;  %v6182_v46 = vpop.f32.mrf.mxu1 }
 0xb1a   : > { %v6678_v34 = vmax.f32 %v6646_v38, 0.0  ;;  %v6219_v44 = vadd.f32 %v6182_v46, %v12867_v21 }
 0xb1b   : > { %v7080_v5 = vsel %vm7070_vm7, %v7047_v41, %v8718_v48  ;;  %v7079_v4 = vsel %vm7070_vm7, %v7046_v20, %v8717_v15  ;;  %v8741_v48 = vpop.permute.xlu0 %8740  ;;  %v6314_v15 = vpop.f32.mrf.mxu2  ;;  %v6218_v20 = vadd.f32 %v6180_v27, %v12862_v61  ;;  %v13827_v61 = vmax.f32 %v13826_v11, 0.0 }
 0xb1c   : > { %v7107_v33 = vpack.c.bf16 %v7080_v5, %v7079_v4  ;;  %v6446_v5 = vpop.f32.mrf.mxu3  ;;  %v6351_v22 = vadd.f32 %v6314_v15, %v6219_v44  ;;  %v8751_v26 = vpop.permute.xlu2 %8750 }
 0xb1d   : > { %v6568_v31 = vpop.f32.mrf.mxu0 }
 0xb1e   : > { %v6611_v13 = vadd.f32 %v6568_v31, %v6479_v52  ;;  %8137 = vmatmul.msk.bf16.gmra.mxu1 %vm7135_vm8, %v7107_v33  ;;  %v8743_v52 = vunpack.i.h.bf16 %v8741_v48  ;;  %v8742_v33 = vunpack.i.l.bf16 %v8741_v48  ;;  %v6350_v31 = vadd.f32 %v6312_v56, %v6218_v20 }
 0xb1f   : > { %v6483_v23 = vadd.f32 %v6446_v5, %v6351_v22  ;;  %v13832_v22 = vld [vmem:[#allocation21_spill] sm:$0xff] }
 0xb20   : > { %v6647_v62 = vadd.f32 %v12886_v55, %v6611_v13  ;;  %v6482_v38 = vadd.f32 %v6444_v43, %v6350_v31 }
 0xb21   : > { %v6185_v36 = vpop.f32.mrf.mxu1 }
 0xb22   : > { %v6679_v59 = vmax.f32 %v6647_v62, 0.0  ;;  %v13825_v62 = vmax.f32 %v13824_v19, 0.0  ;;  %v6220_v56 = vadd.f32 %v6185_v36, %v12873_v12  ;;  %v13830_v12 = vld [vmem:[#allocation16_spill] sm:$0xff] }
 0xb23   : > { %v6317_v27 = vpop.f32.mrf.mxu2  ;;  %v8756_v40 = vpop.permute.xlu0 %8755  ;;  %v13831_v47 = vmax.f32 %v13830_v12, 0.0  ;;  %v13838_v12 = vld [vmem:[#allocation25_spill] sm:$0xff] }
 0xb24   : > { %v8834_v28 = vpack.i.bf16 %v6679_v59, %v6678_v34  ;;  %v7019_v57 = vsel %vm1132_vm4, %v13825_v62, %v8738_v9  ;;  %v7018_v34 = vsel %vm1132_vm4, %v13827_v61, %v8737_v8  ;;  %v6449_v35 = vpop.f32.mrf.mxu3  ;;  %v8758_v0 = vunpack.i.h.bf16 %v8756_v40 }
 0xb25   : > { %v6571_v1 = vpop.f32.mrf.mxu0  ;;  %v7050_v3 = vsel %vm3160_vm6, %v7018_v34, %v8742_v33  ;;  %v6352_v43 = vadd.f32 %v6317_v27, %v6220_v56 }
 0xb26   : > { %8835 = vrot.lane.b32.xlu1 %v8834_v28, %s13484_s12  ;;  %v6612_v18 = vadd.f32 %v6571_v1, %v6480_v14  ;;  %v7051_v28 = vsel %vm3160_vm6, %v7019_v57, %v8743_v52 }
 0xb28   : > { %v8731_v54 = vpop.permute.xlu1 %8730  ;;  %v6648_v29 = vadd.f32 %v12886_v55, %v6612_v18  ;;  %v8757_v18 = vunpack.i.l.bf16 %v8756_v40 }
 0xb29   : > { %v8733_v42 = vunpack.i.h.bf16 %v8731_v54  ;;  %v8732_v17 = vunpack.i.l.bf16 %v8731_v54 }
 0xb2a   : > { %v6680_v37 = vmax.f32 %v6648_v29, 0.0  ;;  %v13828_v29 = vld [vmem:[#allocation17_spill] sm:$0xff] }
 0xb2b   : > { %v7082_v2 = vsel %vm7070_vm7, %v7049_v53, %v8733_v42  ;;  %v7081_v10 = vsel %vm7070_vm7, %v7048_v24, %v8732_v17  ;;  %v8753_v17 = vunpack.i.h.bf16 %v8751_v26  ;;  %v8752_v24 = vunpack.i.l.bf16 %v8751_v26  ;;  %v8771_v62 = vpop.permute.xlu0 %8770 }
 0xb2c   : > { %v7108_v7 = vpack.c.bf16 %v7082_v2, %v7081_v10  ;;  %v6187_v2 = vpop.f32.mrf.mxu1  ;;  %v6319_v10 = vpop.f32.mrf.mxu2  ;;  %v8773_v34 = vunpack.i.h.bf16 %v8771_v62 }
 0xb2d   : > { %v6573_v50 = vpop.f32.mrf.mxu0  ;;  %v7020_v46 = vsel %vm1132_vm4, %v13831_v47, %v8752_v24  ;;  %v13839_v47 = vmax.f32 %v13838_v12, 0.0 }
 0xb2e   : > { %v6613_v60 = vadd.f32 %v6573_v50, %v6481_v49  ;;  %8138 = vmatmul.msk.bf16.gmra.mxu1 %vm7135_vm8, %v7108_v7  ;;  %v6221_v49 = vadd.f32 %v6187_v2, %v12878_v30  ;;  %v6484_v7 = vadd.f32 %v6449_v35, %v6352_v43  ;;  %v7052_v15 = vsel %vm3160_vm6, %v7020_v46, %v8757_v18 }
 0xb30   : > { %v6649_v39 = vadd.f32 %v12886_v55, %v6613_v60  ;;  %v13829_v60 = vmax.f32 %v13828_v29, 0.0  ;;  %v13836_v29 = vld [vmem:[#allocation27_spill] sm:$0xff] }
 0xb32   : > { %v6681_v63 = vmax.f32 %v6649_v39, 0.0  ;;  %v7021_v39 = vsel %vm1132_vm4, %v13829_v60, %v8753_v17  ;;  %v13837_v60 = vmax.f32 %v13836_v29, 0.0 }
 0xb33   : > { %v7053_v20 = vsel %vm3160_vm6, %v7021_v39, %v8758_v0  ;;  %v8786_v17 = vpop.permute.xlu0 %8785 }
 0xb34   : > { %v8849_v41 = vpack.i.bf16 %v6681_v63, %v6680_v37  ;;  %v6451_v37 = vpop.f32.mrf.mxu3  ;;  %v8788_v43 = vunpack.i.h.bf16 %v8786_v17  ;;  %v8787_v2 = vunpack.i.l.bf16 %v8786_v17 }
 0xb35   : > { %v6576_v4 = vpop.f32.mrf.mxu0 }
 0xb36   : > { %8850 = vrot.lane.b32.xlu1 %v8849_v41, %s13484_s12  ;;  %v6614_v16 = vadd.f32 %v6576_v4, %v6482_v38  ;;  %v6353_v41 = vadd.f32 %v6319_v10, %v6221_v49  ;;  %v8766_v38 = vpop.permute.xlu2 %8765  ;;  %v388_v49 = vld [vmem:[%s9083_s24 + $0x8] sm:$0xff]  }
 0xb37   : > { %v8768_v11 = vunpack.i.h.bf16 %v8766_v38  ;;  %v8767_v61 = vunpack.i.l.bf16 %v8766_v38 }
 0xb38   : > { %v8746_v13 = vpop.permute.xlu1 %8745  ;;  %v6650_v14 = vadd.f32 %v12886_v55, %v6614_v16  ;;  %v6485_v5 = vadd.f32 %v6451_v37, %v6353_v41 }
 0xb39   : > { %v8748_v59 = vunpack.i.h.bf16 %v8746_v13  ;;  %v8747_v6 = vunpack.i.l.bf16 %v8746_v13 }
 0xb3a   : > { %v6682_v45 = vmax.f32 %v6650_v14, 0.0 }
 0xb3b   : > { %v7084_v21 = vsel %vm7070_vm7, %v7051_v28, %v8748_v59  ;;  %v7083_v1 = vsel %vm7070_vm7, %v7050_v3, %v8747_v6  ;;  %v8772_v59 = vunpack.i.l.bf16 %v8771_v62  ;;  %v386_v6 = vld [vmem:[%s9083_s24] sm:$0xff]  }
 0xb3c   : > { %v7109_v58 = vpack.c.bf16 %v7084_v21, %v7083_v1  ;;  %v13097_v28 = vld [vmem:[%s13277_s10] ss:$0 sm:$0xff]  ;;  %v13834_v21 = vld [vmem:[#allocation20_spill] sm:$0xff]  ;;  %v418_v14 = vunpack.c.l.bf16 %v386_v6 }
 0xb3d   : > { %v6578_v32 = vpop.f32.mrf.mxu0  ;;  %v13835_v1 = vmax.f32 %v13834_v21, 0.0 }
 0xb3e   : > { %v6615_v54 = vadd.f32 %v6578_v32, %v6483_v23  ;;  %8139 = vmatmul.msk.bf16.gmra.mxu1 %vm7135_vm8, %v7109_v58  ;;  %v8781_v56 = vpop.permute.xlu2 %8780 }
 0xb3f   : > { %v7022_v36 = vsel %vm1132_vm4, %v13835_v1, %v8767_v61  ;;  %v8783_v0 = vunpack.i.h.bf16 %v8781_v56  ;;  %v8782_v18 = vunpack.i.l.bf16 %v8781_v56 }
 0xb40   : > { %v6651_v25 = vadd.f32 %v12886_v55, %v6615_v54  ;;  %v7054_v27 = vsel %vm3160_vm6, %v7022_v36, %v8772_v59 }
 0xb41   : > { %v7025_v39 = vsel %vm1132_vm4, %v13837_v60, %v8783_v0  ;;  %v7024_v46 = vsel %vm1132_vm4, %v13839_v47, %v8782_v18 }
 0xb42   : > { %v6683_v51 = vmax.f32 %v6651_v25, 0.0 }
 0xb44   : > { %v8864_v42 = vpack.i.bf16 %v6683_v51, %v6682_v45 }
 0xb45   : > { %v6581_v53 = vpop.f32.mrf.mxu0 }
 0xb46   : > { %8865 = vrot.lane.b32.xlu1 %v8864_v42, %s13484_s12  ;;  %v6616_v9 = vadd.f32 %v6581_v53, %v6484_v7  ;;  %v419_v42 = vunpack.c.h.bf16 %v386_v6 }
 0xb48   : > { %v8761_v50 = vpop.permute.xlu1 %8760  ;;  %v6652_v33 = vadd.f32 %v12886_v55, %v6616_v9 }
 0xb49   : > { %v8763_v63 = vunpack.i.h.bf16 %v8761_v50  ;;  %v8762_v48 = vunpack.i.l.bf16 %v8761_v50 }
 0xb4a   : > { %v6684_v13 = vmax.f32 %v6652_v33, 0.0  ;;  %v8796_v33 = vpop.permute.xlu2 %8795 }
 0xb4b   : > { %v7086_v30 = vsel %vm7070_vm7, %v7053_v20, %v8763_v63  ;;  %v7085_v8 = vsel %vm7070_vm7, %v7052_v15, %v8762_v48  ;;  %v7056_v48 = vsel %vm3160_vm6, %v7024_v46, %v8787_v2  ;;  %v7057_v15 = vsel %vm3160_vm6, %v7025_v39, %v8788_v43  ;;  %v13846_v39 = vld [vmem:[#allocation38_spill] sm:$0xff] }
 0xb4c   : > { %v7110_v4 = vpack.c.bf16 %v7086_v30, %v7085_v8  ;;  %v420_v20 = vunpack.c.l.bf16 %v388_v49  ;;  %v8797_v62 = vunpack.i.l.bf16 %v8796_v33  ;;  %v13847_v12 = vmax.f32 %v13846_v39, 0.0 }
 0xb4d   : > { %v6583_v52 = vpop.f32.mrf.mxu0 }
 0xb4e   : > { %v6617_v31 = vadd.f32 %v6583_v52, %v6485_v5  ;;  %8140 = vmatmul.msk.bf16.gmra.mxu1 %vm7135_vm8, %v7110_v4 }
 0xb50   : > { %v6653_v44 = vadd.f32 %v12886_v55, %v6617_v31  ;;  %v13833_v55 = vmax.f32 %v13832_v22, 0.0  ;;  %v421_v31 = vunpack.c.h.bf16 %v388_v49 }
 0xb52   : > { %v6685_v19 = vmax.f32 %v6653_v44, 0.0  ;;  %v7023_v16 = vsel %vm1132_vm4, %v13833_v55, %v8768_v11  ;;  %v8801_v44 = vpop.permute.xlu0 %8800 }
 0xb53   : > { %v7055_v32 = vsel %vm3160_vm6, %v7023_v16, %v8773_v34  ;;  %v8802_v11 = vunpack.i.l.bf16 %v8801_v44  ;;  %v390_v34 = vld [vmem:[%s9083_s24 + $0x10] sm:$0xff]   ;;  %v13842_v16 = vld [vmem:[#allocation32_spill] sm:$0xff] }
 0xb54   : > { %v8879_v57 = vpack.i.bf16 %v6685_v19, %v6684_v13  ;;  %v8798_v19 = vunpack.i.h.bf16 %v8796_v33  ;;  %v13843_v21 = vmax.f32 %v13842_v16, 0.0  ;;  %v423_v56 = vunpack.c.h.bf16 %v390_v34 }
 0xb56   : > { %8880 = vrot.lane.b32.xlu1 %v8879_v57, %s13484_s12  ;;  %v8803_v57 = vunpack.i.h.bf16 %v8801_v44  ;;  %v7026_v1 = vsel %vm1132_vm4, %v13843_v21, %v8797_v62  ;;  %s8911_s12 = scalar_lea.hbm %s13278_s11, 128 }
 0xb57   : > { %p8913_p1 = scmp.lt.s32.totalorder %s8911_s12, %s8907_s14 }
 0xb58   : > { %v8776_v3 = vpop.permute.xlu1 %8775 }
 0xb59   : > { %v8778_v23 = vunpack.i.h.bf16 %v8776_v3  ;;  %v8777_v58 = vunpack.i.l.bf16 %v8776_v3  ;;  %v13840_v3 = vld [vmem:[#allocation35_spill] sm:$0xff]  ;;  %p8914_p2 = por %p8913_p1, %p8912_p0 }
 0xb5a   : > { %v13841_v22 = vmax.f32 %v13840_v3, 0.0 }
 0xb5b   : > { %v7088_v54 = vsel %vm7070_vm7, %v7055_v32, %v8778_v23  ;;  %v7087_v35 = vsel %vm7070_vm7, %v7054_v27, %v8777_v58  ;;  %v7196_v25 = vpop.f32.mrf.mxu1  ;;  %v7058_v58 = vsel %vm3160_vm6, %v7026_v1, %v8802_v11  ;;  %v422_v32 = vunpack.c.l.bf16 %v390_v34  ;;  %p8915_p3 = pnand %p8914_p2, %p8910_p13 }
 0xb5c   : > { %v7111_v26 = vpack.c.bf16 %v7088_v54, %v7087_v35  ;;  %v7197_v45 = vadd.f32 %v13097_v28, %v7196_v25  ;;  %v7027_v55 = vsel %vm1132_vm4, %v13841_v22, %v8798_v19 }
 0xb5d   : > { %v7059_v27 = vsel %vm3160_vm6, %v7027_v55, %v8803_v57  ;;  %v13850_v55 = vld [vmem:[#allocation42_spill] sm:$0xff] }
 0xb5e   : > { %8141 = vmatmul.msk.bf16.gmra.mxu1 %vm7135_vm8, %v7111_v26  ;;  %v7276_v51 = vadd.f32 %v7197_v45, %v418_v14  ;;  %v13851_v16 = vmax.f32 %v13850_v55, 0.0 }
 0xb60   : > { %v7308_v40 = vmax.f32 %v7276_v51, 0.0 }
 0xb62   : > { %7340 = vxpose.xlu2.b32.start [1/16] (narrow) %v7308_v40, 32  ;;  %v8811_v40 = vpop.permute.xlu2 %8810 }
 0xb63   : > { %v7198_v24 = vpop.f32.mrf.mxu1  ;;  %v8812_v0 = vunpack.i.l.bf16 %v8811_v40 }
 0xb64   : > { %v7199_v53 = vadd.f32 %v13097_v28, %v7198_v24 }
 0xb65   : > { %v7028_v47 = vsel %vm1132_vm4, %v13847_v12, %v8812_v0 }
 0xb66   : > { %v7277_v10 = vadd.f32 %v7199_v53, %v419_v42  ;;  %v8816_v42 = vpop.permute.xlu0 %8815  ;;  %v8813_v53 = vunpack.i.h.bf16 %v8811_v40 }
 0xb67   : > { %v8818_v18 = vunpack.i.h.bf16 %v8816_v42  ;;  %v8817_v43 = vunpack.i.l.bf16 %v8816_v42 }
 0xb68   : > { %v8791_v7 = vpop.permute.xlu1 %8790  ;;  %v7309_v50 = vmax.f32 %v7277_v10, 0.0  ;;  %v392_v10 = vld [vmem:[%s9083_s24 + $0x18] sm:$0xff]  }
 0xb69   : > { %v8793_v37 = vunpack.i.h.bf16 %v8791_v7  ;;  %v8792_v63 = vunpack.i.l.bf16 %v8791_v7  ;;  %v425_v33 = vunpack.c.h.bf16 %v392_v10 }
 0xb6a   : > { %7341 = vxpose.xlu2.b32.cont [2/16] (narrow) %v7309_v50, 32  ;;  %v13844_v50 = vld [vmem:[#allocation39_spill] sm:$0xff] }
 0xb6b   : > { %v7090_v41 = vsel %vm7070_vm7, %v7057_v15, %v8793_v37  ;;  %v7089_v9 = vsel %vm7070_vm7, %v7056_v48, %v8792_v63  ;;  %v7201_v30 = vpop.f32.mrf.mxu1  ;;  %v13845_v29 = vmax.f32 %v13844_v50, 0.0  ;;  %v7060_v63 = vsel %vm3160_vm6, %v7028_v47, %v8817_v43 }
 0xb6c   : > { %v7112_v8 = vpack.c.bf16 %v7090_v41, %v7089_v9  ;;  %v7202_v5 = vadd.f32 %v13097_v28, %v7201_v30  ;;  %v424_v15 = vunpack.c.l.bf16 %v392_v10 }
 0xb6d   : > { %v7029_v60 = vsel %vm1132_vm4, %v13845_v29, %v8813_v53 }
 0xb6e   : > { %v7278_v4 = vadd.f32 %v7202_v5, %v420_v20  ;;  %8142 = vmatmul.msk.bf16.gmra.mxu1 %vm7135_vm8, %v7112_v8  ;;  %v7061_v48 = vsel %vm3160_vm6, %v7029_v60, %v8818_v18  ;;  %v13854_v60 = vld [vmem:[#allocation45_spill] sm:$0xff] }
 0xb6f   : > { %v13855_v39 = vmax.f32 %v13854_v60, 0.0 }
 0xb70   : > { %v7310_v52 = vmax.f32 %v7278_v4, 0.0 }
 0xb72   : > { %7342 = vxpose.xlu2.b32.cont [3/16] (narrow) %v7310_v52, 32  ;;  %v8826_v52 = vpop.permute.xlu2 %8825 }
 0xb73   : > { %v7203_v38 = vpop.f32.mrf.mxu1  ;;  %v8827_v19 = vunpack.i.l.bf16 %v8826_v52 }
 0xb74   : > { %v7204_v13 = vadd.f32 %v13097_v28, %v7203_v38 }
 0xb75   : > { %v7030_v21 = vsel %vm1132_vm4, %v13851_v16, %v8827_v19 }
 0xb76   : > { %v7279_v61 = vadd.f32 %v7204_v13, %v421_v31  ;;  %v8831_v31 = vpop.permute.xlu0 %8830  ;;  %v8828_v13 = vunpack.i.h.bf16 %v8826_v52 }
 0xb77   : > { %v8833_v62 = vunpack.i.h.bf16 %v8831_v31  ;;  %v8832_v57 = vunpack.i.l.bf16 %v8831_v31 }
 0xb78   : > { %v8806_v59 = vpop.permute.xlu1 %8805  ;;  %v7311_v6 = vmax.f32 %v7279_v61, 0.0  ;;  %v394_v61 = vld [vmem:[%s9083_s24 + $0x20] sm:$0xff]  }
 0xb79   : > { %v8808_v36 = vunpack.i.h.bf16 %v8806_v59  ;;  %v8807_v23 = vunpack.i.l.bf16 %v8806_v59  ;;  %v427_v40 = vunpack.c.h.bf16 %v394_v61 }
 0xb7a   : > { %7343 = vxpose.xlu2.b32.cont [4/16] (narrow) %v7311_v6, 32  ;;  %v13848_v6 = vld [vmem:[#allocation43_spill] sm:$0xff] }
 0xb7b   : > { %v7092_v14 = vsel %vm7070_vm7, %v7059_v27, %v8808_v36  ;;  %v7091_v54 = vsel %vm7070_vm7, %v7058_v58, %v8807_v23  ;;  %v7206_v35 = vpop.f32.mrf.mxu1  ;;  %v13849_v3 = vmax.f32 %v13848_v6, 0.0  ;;  %v7062_v23 = vsel %vm3160_vm6, %v7030_v21, %v8832_v57 }
 0xb7c   : > { %v7113_v25 = vpack.c.bf16 %v7092_v14, %v7091_v54  ;;  %v7207_v26 = vadd.f32 %v13097_v28, %v7206_v35  ;;  %v426_v27 = vunpack.c.l.bf16 %v394_v61 }
 0xb7d   : > { %v7031_v22 = vsel %vm1132_vm4, %v13849_v3, %v8828_v13 }
 0xb7e   : > { %v7280_v45 = vadd.f32 %v7207_v26, %v422_v32  ;;  %8143 = vmatmul.msk.bf16.gmra.mxu1 %vm7135_vm8, %v7113_v25  ;;  %v7063_v58 = vsel %vm3160_vm6, %v7031_v22, %v8833_v62  ;;  %v13858_v22 = vld [vmem:[#allocation48_spill] sm:$0xff] }
 0xb7f   : > { %v13859_v55 = vmax.f32 %v13858_v22, 0.0 }
 0xb80   : > { %v7312_v51 = vmax.f32 %v7280_v45, 0.0 }
 0xb82   : > { %7344 = vxpose.xlu2.b32.cont [5/16] (narrow) %v7312_v51, 32  ;;  %v8841_v51 = vpop.permute.xlu2 %8840 }
 0xb83   : > { %v7208_v17 = vpop.f32.mrf.mxu1  ;;  %v8842_v53 = vunpack.i.l.bf16 %v8841_v51 }
 0xb84   : > { %v7209_v24 = vadd.f32 %v13097_v28, %v7208_v17 }
 0xb85   : > { %v7032_v12 = vsel %vm1132_vm4, %v13855_v39, %v8842_v53 }
 0xb86   : > { %v7281_v2 = vadd.f32 %v7209_v24, %v423_v56  ;;  %v8846_v56 = vpop.permute.xlu0 %8845  ;;  %v8843_v24 = vunpack.i.h.bf16 %v8841_v51 }
 0xb87   : > { %v8848_v0 = vunpack.i.h.bf16 %v8846_v56  ;;  %v8847_v18 = vunpack.i.l.bf16 %v8846_v56 }
 0xb88   : > { %v8821_v49 = vpop.permute.xlu1 %8820  ;;  %v7313_v7 = vmax.f32 %v7281_v2, 0.0  ;;  %v396_v2 = vld [vmem:[%s9083_s24 + $0x28] sm:$0xff]  }
 0xb89   : > { %v8823_v46 = vunpack.i.h.bf16 %v8821_v49  ;;  %v8822_v37 = vunpack.i.l.bf16 %v8821_v49  ;;  %v429_v52 = vunpack.c.h.bf16 %v396_v2 }
 0xb8a   : > { %7345 = vxpose.xlu2.b32.cont [6/16] (narrow) %v7313_v7, 32  ;;  %v13852_v7 = vld [vmem:[#allocation46_spill] sm:$0xff] }
 0xb8b   : > { %v7094_v20 = vsel %vm7070_vm7, %v7061_v48, %v8823_v46  ;;  %v7093_v41 = vsel %vm7070_vm7, %v7060_v63, %v8822_v37  ;;  %v7211_v9 = vpop.f32.mrf.mxu1  ;;  %v13853_v50 = vmax.f32 %v13852_v7, 0.0  ;;  %v7064_v37 = vsel %vm3160_vm6, %v7032_v12, %v8847_v18 }
 0xb8c   : > { %v7114_v30 = vpack.c.bf16 %v7094_v20, %v7093_v41  ;;  %v7212_v8 = vadd.f32 %v13097_v28, %v7211_v9  ;;  %v428_v48 = vunpack.c.l.bf16 %v396_v2 }
 0xb8d   : > { %v7033_v29 = vsel %vm1132_vm4, %v13853_v50, %v8843_v24 }
 0xb8e   : > { %v7282_v5 = vadd.f32 %v7212_v8, %v424_v15  ;;  %8144 = vmatmul.msk.bf16.gmra.mxu1 %vm7135_vm8, %v7114_v30  ;;  %v7065_v63 = vsel %vm3160_vm6, %v7033_v29, %v8848_v0  ;;  %v13862_v29 = vld [vmem:[#allocation52_spill] sm:$0xff] }
 0xb8f   : > { %v13863_v60 = vmax.f32 %v13862_v29, 0.0  ;;  %v410_v29 = vld [vmem:[%s9083_s24 + $0x60] sm:$0xff]  }
 0xb90   : > { %v7314_v4 = vmax.f32 %v7282_v5, 0.0 }
 0xb92   : > { %7346 = vxpose.xlu2.b32.cont [7/16] (narrow) %v7314_v4, 32  ;;  %v8856_v4 = vpop.permute.xlu2 %8855 }
 0xb93   : > { %v7213_v44 = vpop.f32.mrf.mxu1  ;;  %v8857_v13 = vunpack.i.l.bf16 %v8856_v4 }
 0xb94   : > { %v7214_v38 = vadd.f32 %v13097_v28, %v7213_v44 }
 0xb95   : > { %v7034_v16 = vsel %vm1132_vm4, %v13859_v55, %v8857_v13 }
 0xb96   : > { %v7283_v11 = vadd.f32 %v7214_v38, %v425_v33  ;;  %v8861_v33 = vpop.permute.xlu0 %8860  ;;  %v8858_v38 = vunpack.i.h.bf16 %v8856_v4 }
 0xb97   : > { %v8863_v19 = vunpack.i.h.bf16 %v8861_v33  ;;  %v8862_v62 = vunpack.i.l.bf16 %v8861_v33 }
 0xb98   : > { %v8836_v34 = vpop.permute.xlu1 %8835  ;;  %v7315_v59 = vmax.f32 %v7283_v11, 0.0  ;;  %v398_v11 = vld [vmem:[%s9083_s24 + $0x30] sm:$0xff]  }
 0xb99   : > { %v8838_v1 = vunpack.i.h.bf16 %v8836_v34  ;;  %v8837_v36 = vunpack.i.l.bf16 %v8836_v34  ;;  %v431_v51 = vunpack.c.h.bf16 %v398_v11 }
 0xb9a   : > { %7347 = vxpose.xlu2.b32.cont [8/16] (narrow) %v7315_v59, 32  ;;  %v13856_v59 = vld [vmem:[#allocation49_spill] sm:$0xff] }
 0xb9b   : > { %v7096_v32 = vsel %vm7070_vm7, %v7063_v58, %v8838_v1  ;;  %v7095_v14 = vsel %vm7070_vm7, %v7062_v23, %v8837_v36  ;;  %v7216_v54 = vpop.f32.mrf.mxu1  ;;  %v13857_v6 = vmax.f32 %v13856_v59, 0.0  ;;  %v7066_v36 = vsel %vm3160_vm6, %v7034_v16, %v8862_v62 }
 0xb9c   : > { %v7115_v35 = vpack.c.bf16 %v7096_v32, %v7095_v14  ;;  %v7217_v25 = vadd.f32 %v13097_v28, %v7216_v54  ;;  %v430_v58 = vunpack.c.l.bf16 %v398_v11 }
 0xb9d   : > { %v7035_v3 = vsel %vm1132_vm4, %v13857_v6, %v8858_v38  ;;  %v404_v6 = vld [vmem:[%s9083_s24 + $0x48] sm:$0xff]  }
 0xb9e   : > { %v7284_v26 = vadd.f32 %v7217_v25, %v426_v27  ;;  %8145 = vmatmul.msk.bf16.gmra.mxu1 %vm7135_vm8, %v7115_v35  ;;  %v7067_v23 = vsel %vm3160_vm6, %v7035_v3, %v8863_v19  ;;  %v436_v22 = vunpack.c.l.bf16 %v404_v6 }
 0xba0   : > { %v7316_v45 = vmax.f32 %v7284_v26, 0.0 }
 0xba2   : > { %7348 = vxpose.xlu2.b32.cont [9/16] (narrow) %v7316_v45, 32  ;;  %v8871_v45 = vpop.permute.xlu2 %8870 }
 0xba3   : > { %v7218_v42 = vpop.f32.mrf.mxu1  ;;  %v8872_v24 = vunpack.i.l.bf16 %v8871_v45 }
 0xba4   : > { %v7219_v17 = vadd.f32 %v13097_v28, %v7218_v42 }
 0xba5   : > { %v7036_v39 = vsel %vm1132_vm4, %v13863_v60, %v8872_v24 }
 0xba6   : > { %v7285_v43 = vadd.f32 %v7219_v17, %v427_v40  ;;  %v8876_v40 = vpop.permute.xlu0 %8875  ;;  %v8873_v17 = vunpack.i.h.bf16 %v8871_v45 }
 0xba7   : > { %v8878_v53 = vunpack.i.h.bf16 %v8876_v40  ;;  %v8877_v0 = vunpack.i.l.bf16 %v8876_v40 }
 0xba8   : > { %v7317_v10 = vmax.f32 %v7285_v43, 0.0  ;;  %v8851_v49 = vpop.permute.xlu1 %8850  ;;  %v400_v43 = vld [vmem:[%s9083_s24 + $0x38] sm:$0xff]  }
 0xba9   : > { %v8853_v47 = vunpack.i.h.bf16 %v8851_v49  ;;  %v8852_v46 = vunpack.i.l.bf16 %v8851_v49  ;;  %v13860_v49 = vld [vmem:[#allocation53_spill] sm:$0xff] }
 0xbaa   : > { %7349 = vxpose.xlu2.b32.cont [10/16] (narrow) %v7317_v10, 32  ;;  %v13861_v7 = vmax.f32 %v13860_v49, 0.0 }
 0xbab   : > { %v7098_v15 = vsel %vm7070_vm7, %v7065_v63, %v8853_v47  ;;  %v7097_v20 = vsel %vm7070_vm7, %v7064_v37, %v8852_v46  ;;  %v7221_v41 = vpop.f32.mrf.mxu1  ;;  %v7068_v46 = vsel %vm3160_vm6, %v7036_v39, %v8877_v0  ;;  %v432_v63 = vunpack.c.l.bf16 %v400_v43 }
 0xbac   : > { %v7116_v9 = vpack.c.bf16 %v7098_v15, %v7097_v20  ;;  %v7222_v30 = vadd.f32 %v13097_v28, %v7221_v41  ;;  %v7037_v50 = vsel %vm1132_vm4, %v13861_v7, %v8873_v17  ;;  %v408_v17 = vld [vmem:[%s9083_s24 + $0x58] sm:$0xff]   ;;  %v442_v39 = vunpack.c.l.bf16 %v410_v29 }
 0xbad   : > { %v7069_v37 = vsel %vm3160_vm6, %v7037_v50, %v8878_v53  ;;  %v440_v53 = vunpack.c.l.bf16 %v408_v17 }
 0xbae   : > { %v7286_v8 = vadd.f32 %v7222_v30, %v428_v48  ;;  %8146 = vmatmul.msk.bf16.gmra.mxu1 %vm7135_vm8, %v7116_v9 }
 0xbb0   : > { %v7318_v5 = vmax.f32 %v7286_v8, 0.0 }
 0xbb2   : > { %7350 = vxpose.xlu2.b32.cont [11/16] (narrow) %v7318_v5, 32  ;;  %v433_v5 = vunpack.c.h.bf16 %v400_v43 }
 0xbb3   : > { %v7223_v31 = vpop.f32.mrf.mxu1 }
 0xbb4   : > { %v7224_v44 = vadd.f32 %v13097_v28, %v7223_v31  ;;  %v402_v31 = vld [vmem:[%s9083_s24 + $0x40] sm:$0xff]  }
 0xbb5   : > { %v434_v38 = vunpack.c.l.bf16 %v402_v31  ;;  %v435_v11 = vunpack.c.h.bf16 %v402_v31 }
 0xbb6   : > { %v7287_v57 = vadd.f32 %v7224_v44, %v429_v52 }
 0xbb8   : > { %v7319_v61 = vmax.f32 %v7287_v57, 0.0  ;;  %v8866_v34 = vpop.permute.xlu1 %8865 }
 0xbb9   : > { %v8868_v21 = vunpack.i.h.bf16 %v8866_v34  ;;  %v8867_v1 = vunpack.i.l.bf16 %v8866_v34 }
 0xbba   : > { %7351 = vxpose.xlu2.b32.cont [12/16] (narrow) %v7319_v61, 32 }
 0xbbb   : > { %v7100_v27 = vsel %vm7070_vm7, %v7067_v23, %v8868_v21  ;;  %v7099_v32 = vsel %vm7070_vm7, %v7066_v36, %v8867_v1  ;;  %v7226_v14 = vpop.f32.mrf.mxu1  ;;  %v437_v36 = vunpack.c.h.bf16 %v404_v6 }
 0xbbc   : > { %v7117_v54 = vpack.c.bf16 %v7100_v27, %v7099_v32  ;;  %v7227_v35 = vadd.f32 %v13097_v28, %v7226_v14  ;;  %v406_v32 = vld [vmem:[%s9083_s24 + $0x50] sm:$0xff]  }
 0xbbe   : > { %v7288_v25 = vadd.f32 %v7227_v35, %v430_v58  ;;  %8147 = vmatmul.msk.bf16.gmra.mxu1 %vm7135_vm8, %v7117_v54  ;;  %v438_v54 = vunpack.c.l.bf16 %v406_v32 }
 0xbc0   : > { %v7320_v26 = vmax.f32 %v7288_v25, 0.0 }
 0xbc2   : > { %7352 = vxpose.xlu2.b32.cont [13/16] (narrow) %v7320_v26, 32 }
 0xbc3   : > { %v7228_v56 = vpop.f32.mrf.mxu1 }
 0xbc4   : > { %v7229_v42 = vadd.f32 %v13097_v28, %v7228_v56 }
 0xbc6   : > { %v7289_v18 = vadd.f32 %v7229_v42, %v431_v51  ;;  %v439_v51 = vunpack.c.h.bf16 %v406_v32 }
 0xbc8   : > { %v7321_v2 = vmax.f32 %v7289_v18, 0.0  ;;  %v8881_v10 = vpop.permute.xlu1 %8880 }
 0xbc9   : > { %v8883_v12 = vunpack.i.h.bf16 %v8881_v10  ;;  %v8882_v47 = vunpack.i.l.bf16 %v8881_v10  ;;  %v441_v10 = vunpack.c.h.bf16 %v408_v17 }
 0xbca   : > { %7353 = vxpose.xlu2.b32.cont [14/16] (narrow) %v7321_v2, 32 }
 0xbcb   : > { %v7102_v48 = vsel %vm7070_vm7, %v7069_v37, %v8883_v12  ;;  %v7101_v15 = vsel %vm7070_vm7, %v7068_v46, %v8882_v47  ;;  %v7231_v20 = vpop.f32.mrf.mxu1 }
 0xbcc   : > { %v7118_v41 = vpack.c.bf16 %v7102_v48, %v7101_v15  ;;  %v7232_v9 = vadd.f32 %v13097_v28, %v7231_v20 }
 0xbce   : > { %v7290_v30 = vadd.f32 %v7232_v9, %v432_v63  ;;  %8148 = vmatmul.msk.bf16.gmra.mxu1 %vm7135_vm8, %v7118_v41  ;;  %v443_v63 = vunpack.c.h.bf16 %v410_v29  ;;  %v412_v41 = vld [vmem:[%s9083_s24 + $0x68] sm:$0xff]  }
 0xbd0   : > { %v7322_v8 = vmax.f32 %v7290_v30, 0.0  ;;  %v444_v30 = vunpack.c.l.bf16 %v412_v41 }
 0xbd2   : > { %7354 = vxpose.xlu2.b32.cont [15/16] (narrow) %v7322_v8, 32 }
 0xbd3   : > { %v7233_v4 = vpop.f32.mrf.mxu1 }
 0xbd4   : > { %v7234_v52 = vadd.f32 %v13097_v28, %v7233_v4 }
 0xbd6   : > { %v7291_v33 = vadd.f32 %v7234_v52, %v433_v5 }
 0xbd8   : > { %v7323_v44 = vmax.f32 %v7291_v33, 0.0  ;;  %v445_v33 = vunpack.c.h.bf16 %v412_v41 }
 0xbda   : > { %7355 = vxpose.xlu2.b32.end [16/16] (narrow) %v7323_v44, 32 }
 0xbdb   : > { %v7236_v13 = vpop.f32.mrf.mxu1 }
 0xbdc   : > { %v7237_v19 = vadd.f32 %v13097_v28, %v7236_v13  ;;  %v414_v13 = vld [vmem:[%s9083_s24 + $0x70] sm:$0xff]  }
 0xbde   : > { %v7292_v62 = vadd.f32 %v7237_v19, %v434_v38 }
 0xbe0   : > { %v7324_v57 = vmax.f32 %v7292_v62, 0.0  ;;  %v446_v62 = vunpack.c.l.bf16 %v414_v13 }
 0xbe2   : > { %7372 = vxpose.xlu0.b32.start [1/16] (narrow) %v7324_v57, 32 }
 0xbe3   : > { %v7238_v61 = vpop.f32.mrf.mxu1 }
 0xbe4   : > { %v7239_v34 = vadd.f32 %v13097_v28, %v7238_v61 }
 0xbe6   : > { %v7293_v59 = vadd.f32 %v7239_v34, %v435_v11 }
 0xbe8   : > { %v7325_v3 = vmax.f32 %v7293_v59, 0.0  ;;  %v447_v59 = vunpack.c.h.bf16 %v414_v13 }
 0xbea   : > { %7373 = vxpose.xlu0.b32.cont [2/16] (narrow) %v7325_v3, 32 }
 0xbeb   : > { %v7241_v55 = vpop.f32.mrf.mxu1 }
 0xbec   : > { %v7242_v16 = vadd.f32 %v13097_v28, %v7241_v55  ;;  %v416_v55 = vld [vmem:[%s9083_s24 + $0x78] sm:$0xff]   ;;  %s379_s24 = scalar_lea.vmem [#allocation2], %s7494_s0 }
 0xbed   : > { %s7425_s22 = sshll.u32 %s379_s24, 4  ;;  %s7426_s22 = int_to_ptr.vmem [resolvable:$true] %s7425_s22 }
 0xbee   : > { %v7294_v21 = vadd.f32 %v7242_v16, %v436_v22 }
 0xbf0   : > { %v7326_v1 = vmax.f32 %v7294_v21, 0.0  ;;  %v448_v21 = vunpack.c.l.bf16 %v416_v55 }
 0xbf2   : > { %7374 = vxpose.xlu0.b32.cont [3/16] (narrow) %v7326_v1, 32 }
 0xbf3   : > { %v7243_v23 = vpop.f32.mrf.mxu1 }
 0xbf4   : > { %v7244_v58 = vadd.f32 %v13097_v28, %v7243_v23 }
 0xbf6   : > { %v7295_v27 = vadd.f32 %v7244_v58, %v437_v36 }
 0xbf8   : > { %v7327_v14 = vmax.f32 %v7295_v27, 0.0  ;;  %v449_v27 = vunpack.c.h.bf16 %v416_v55 }
 0xbfa   : > { %7375 = vxpose.xlu0.b32.cont [4/16] (narrow) %v7327_v14, 32 }
 0xbfb   : > { %v7246_v35 = vpop.f32.mrf.mxu1 }
 0xbfc   : > { %v7247_v25 = vadd.f32 %v13097_v28, %v7246_v35 }
 0xbfe   : > { %v7296_v26 = vadd.f32 %v7247_v25, %v438_v54  ;;  %v7356_v25 = vpop.trf.xlu2 }
 0xbff   : > { %7404 = vst [vmem:[%s379_s24] sm:$0xff] %v7356_v25 }
 0xc00   : > { %v7328_v45 = vmax.f32 %v7296_v26, 0.0 }
 0xc02   : > { %7376 = vxpose.xlu0.b32.cont [5/16] (narrow) %v7328_v45, 32 }
 0xc03   : > { %v7248_v40 = vpop.f32.mrf.mxu1 }
 0xc04   : > { %v7249_v56 = vadd.f32 %v13097_v28, %v7248_v40 }
 0xc06   : > { %v7297_v42 = vadd.f32 %v7249_v56, %v439_v51  ;;  %v7357_v26 = vpop.trf.xlu2 }
 0xc07   : > { %7406 = vst [vmem:[%s379_s24 + $0x10] sm:$0xff] %v7357_v26 }
 0xc08   : > { %v7329_v24 = vmax.f32 %v7297_v42, 0.0 }
 0xc0a   : > { %7377 = vxpose.xlu0.b32.cont [6/16] (narrow) %v7329_v24, 32 }
 0xc0b   : > { %v7251_v0 = vpop.f32.mrf.mxu1 }
 0xc0c   : > { %v7252_v18 = vadd.f32 %v13097_v28, %v7251_v0 }
 0xc0e   : > { %v7298_v43 = vadd.f32 %v7252_v18, %v440_v53  ;;  %v7358_v45 = vpop.trf.xlu2 }
 0xc0f   : > { %7408 = vst [vmem:[%s379_s24 + $0x20] sm:$0xff] %v7358_v45 }
 0xc10   : > { %v7330_v2 = vmax.f32 %v7298_v43, 0.0 }
 0xc12   : > { %7378 = vxpose.xlu0.b32.cont [7/16] (narrow) %v7330_v2, 32 }
 0xc13   : > { %v7253_v49 = vpop.f32.mrf.mxu1 }
 0xc14   : > { %v7254_v7 = vadd.f32 %v13097_v28, %v7253_v49 }
 0xc16   : > { %v7299_v50 = vadd.f32 %v7254_v7, %v441_v10  ;;  %v7359_v51 = vpop.trf.xlu2 }
 0xc17   : > { %7410 = vst [vmem:[%s379_s24 + $0x30] sm:$0xff] %v7359_v51 }
 0xc18   : > { %v7331_v60 = vmax.f32 %v7299_v50, 0.0 }
 0xc1a   : > { %7379 = vxpose.xlu0.b32.cont [8/16] (narrow) %v7331_v60, 32 }
 0xc1b   : > { %v7256_v12 = vpop.f32.mrf.mxu1 }
 0xc1c   : > { %v7257_v47 = vadd.f32 %v13097_v28, %v7256_v12 }
 0xc1e   : > { %v7300_v46 = vadd.f32 %v7257_v47, %v442_v39 }
 0xc20   : > { %v7332_v37 = vmax.f32 %v7300_v46, 0.0 }
 0xc22   : > { %7380 = vxpose.xlu0.b32.cont [9/16] (narrow) %v7332_v37, 32 }
 0xc23   : > { %v7258_v48 = vpop.f32.mrf.mxu1 }
 0xc24   : > { %v7259_v15 = vadd.f32 %v13097_v28, %v7258_v48 }
 0xc26   : > { %v7301_v20 = vadd.f32 %v7259_v15, %v443_v63 }
 0xc28   : > { %v7333_v9 = vmax.f32 %v7301_v20, 0.0 }
 0xc2a   : > { %7381 = vxpose.xlu0.b32.cont [10/16] (narrow) %v7333_v9, 32 }
 0xc2b   : > { %v7261_v8 = vpop.f32.mrf.mxu1 }
 0xc2c   : > { %v7262_v5 = vadd.f32 %v13097_v28, %v7261_v8 }
 0xc2e   : > { %v7302_v4 = vadd.f32 %v7262_v5, %v444_v30 }
 0xc30   : > { %v7334_v52 = vmax.f32 %v7302_v4, 0.0 }
 0xc32   : > { %7382 = vxpose.xlu0.b32.cont [11/16] (narrow) %v7334_v52, 32 }
 0xc33   : > { %v7263_v31 = vpop.f32.mrf.mxu1 }
 0xc34   : > { %v7264_v44 = vadd.f32 %v13097_v28, %v7263_v31 }
 0xc36   : > { %v7303_v38 = vadd.f32 %v7264_v44, %v445_v33 }
 0xc38   : > { %v7335_v19 = vmax.f32 %v7303_v38, 0.0 }
 0xc3a   : > { %7383 = vxpose.xlu0.b32.cont [12/16] (narrow) %v7335_v19, 32 }
 0xc3b   : > { %v7266_v57 = vpop.f32.mrf.mxu1 }
 0xc3c   : > { %v7267_v11 = vadd.f32 %v13097_v28, %v7266_v57 }
 0xc3e   : > { %v7304_v61 = vadd.f32 %v7267_v11, %v446_v62 }
 0xc40   : > { %v7336_v34 = vmax.f32 %v7304_v61, 0.0 }
 0xc42   : > { %7384 = vxpose.xlu0.b32.cont [13/16] (narrow) %v7336_v34, 32 }
 0xc43   : > { %v7268_v6 = vpop.f32.mrf.mxu1 }
 0xc44   : > { %v7269_v3 = vadd.f32 %v13097_v28, %v7268_v6 }
 0xc46   : > { %v7305_v22 = vadd.f32 %v7269_v3, %v447_v59 }
 0xc48   : > { %v7337_v16 = vmax.f32 %v7305_v22, 0.0 }
 0xc4a   : > { %7385 = vxpose.xlu0.b32.cont [14/16] (narrow) %v7337_v16, 32 }
 0xc4b   : > { %v7271_v1 = vpop.f32.mrf.mxu1 }
 0xc4c   : > { %v7272_v36 = vadd.f32 %v13097_v28, %v7271_v1 }
 0xc4e   : > { %v7306_v23 = vadd.f32 %v7272_v36, %v448_v21 }
 0xc50   : > { %v7338_v58 = vmax.f32 %v7306_v23, 0.0 }
 0xc52   : > { %7386 = vxpose.xlu0.b32.cont [15/16] (narrow) %v7338_v58, 32 }
 0xc53   : > { %v7273_v32 = vpop.f32.mrf.mxu1 }
 0xc54   : > { %v7274_v14 = vadd.f32 %v13097_v28, %v7273_v32 }
 0xc56   : > { %v7307_v54 = vadd.f32 %v7274_v14, %v449_v27 }
 0xc58   : > { %v7339_v35 = vmax.f32 %v7307_v54, 0.0 }
 0xc5a   : > { %7387 = vxpose.xlu0.b32.end [16/16] (narrow) %v7339_v35, 32 }
 0xc86   : > { %v7388_v40 = vpop.trf.xlu0 }
 0xc87   : > { %7405 = vst [vmem:[%s379_s24 + $0x8] sm:$0xff] %v7388_v40 }
 0xc8e   : > { %v7389_v56 = vpop.trf.xlu0 }
 0xc8f   : > { %7407 = vst [vmem:[%s379_s24 + $0x18] sm:$0xff] %v7389_v56 }
 0xc96   : > { %v7390_v28 = vpop.trf.xlu0 }
 0xc97   : > { %7409 = vst [vmem:[%s379_s24 + $0x28] sm:$0xff] %v7390_v28 }
 0xc9e   : > { %v7391_v42 = vpop.trf.xlu0 }
 0xc9f   : > { %7411 = vst [vmem:[%s379_s24 + $0x38] sm:$0xff] %v7391_v42 }
 0xca0   : > { %8918 = shalt.err (!%p8915_p3)
}
 0xca1   : > { %s8963_s16 = smov 256   ;;  %s13864_s24 = smov 16  }
 0xca2   : > { %8196 = dma.vmem_to_hbm [thread:$0]  (%p9062_p5), %s7426_s22, 1024, %s7428_s29, %s7413_s30, %s8963_s16, %s8963_s16, %s13864_s24  }
 0xca3 PF: > { %p8202_p4 = scmp.ge.s32.totalorder %s8953_s20, 2  ;;  %s7442_s15 = sand.u32 1, %s8941_s17  }
 0xca4   : > { %s7443_s2 = scalar_lea.sflag [#allocation3], %s7442_s15 }
 0xca5   : > { %p8199_p7 = pnand %p8202_p4, %p9066_p6 }
 0xca7   : > { %p8200_p8 = pneg %p8199_p7 }
 0xca9   : > { %8936 = dma.done.wait (%p8200_p8), %s7443_s2, 1024  }
 0xcaa   : > { %8938 = vsyncadd (%p8200_p8), %s7443_s2, 4294966272  ;;  %p21_p9 = scmp.ge.s32.totalorder %s9049_s23, 4   ;;  %s13865_s17 = smov %s8945_s18 }
 0xcab   : > { %s13866_s18 = smov %s8949_s19  ;;  %s13867_s19 = smov %s9060_s26 }
 0xcac   : > { %s13868_s20 = smov %s9049_s23  ;;  %23 = sbr.rel (!%p21_p9) target bundleno = 7 (0x7), region = 123 }
 0xcb1   :  { %7449 = vsyncpa [#allocation3], 1 }
 0xcb2   :  { %7451 = vsyncpa [#allocation3 + $0x1], 1 }

</bundles_post_ra>
